<compile_context>
chip_gen: v6e
topology: v6e:2x2x1
jax: 0.10.0
libtpu: 0.0.40
codegen_flags: <defaults>
</compile_context>

<pallas_src>
import jax
import jax.numpy as jnp
from jax.experimental import pallas as pl
from jax.experimental.pallas import tpu as pltpu


# ---------------------------------------------------------------------------
# Pallas kernels
# ---------------------------------------------------------------------------

def pooler_xproj_kernel(emb_ref, mask_ref, sent_ref, pw_ref, pb_ref,
                        wa_ref, wb_ref, b_ref, gx_ref):
    """Fused: masked mean pooling + pooler dense/tanh + tanh(sent) + LSTM x-projection.

    emb_ref : (Sb, L, 768)  token embeddings (bf16)
    mask_ref: (Sb, L)       attention mask (f32)
    sent_ref: (Sb, Ds)      sentence embeddings (f32)
    pw_ref  : (768, 768)    pooler weight, in x out (bf16)
    pb_ref  : (1, 768)      pooler bias (f32)
    wa_ref  : (Ds, 4H)      W_ih rows for the tanh(sent) part (bf16)
    wb_ref  : (768, 4H)     W_ih rows for the BERT part (bf16)
    b_ref   : (1, 4H)       b_ih + b_hh (f32)
    gx_ref  : (Sb, 4H)      output: input-side gate pre-activations (f32)
    """
    emb = emb_ref[...].astype(jnp.float32)                              # (Sb, L, E)
    mask = mask_ref[...]                                                # (Sb, L)
    denom = jnp.maximum(jnp.sum(mask, axis=1, keepdims=True), 1.0)      # (Sb, 1)
    pooled = jnp.sum(emb * mask[:, :, None], axis=1) / denom            # (Sb, E) f32

    pooler_out = jnp.tanh(
        jnp.dot(pooled.astype(jnp.bfloat16), pw_ref[...],
                preferred_element_type=jnp.float32) + pb_ref[...])      # (Sb, E) f32

    sent_t = jnp.tanh(sent_ref[...])                                    # (Sb, Ds)

    gx_ref[...] = (
        jnp.dot(sent_t.astype(jnp.bfloat16), wa_ref[...],
                preferred_element_type=jnp.float32)
        + jnp.dot(pooler_out.astype(jnp.bfloat16), wb_ref[...],
                  preferred_element_type=jnp.float32)
        + b_ref[...]
    )


def lstm_tag_kernel(gx_ref, whh_ref, tagw_ref, tagb_ref, out_ref,
                    h_scr, c_scr, hall_scr):
    """Full LSTM time loop in one kernel invocation + fused hidden2tag.

    gx_ref  : (T, N, 4H)  precomputed x @ W_ih + b (gate order i, f, g, o)
    whh_ref : (H, 4H)     recurrent weights (in x out)
    tagw_ref: (H, P)      hidden2tag weight (in x out)
    tagb_ref: (1, P)      hidden2tag bias
    out_ref : (T, N, P)   tag_space
    h_scr, c_scr : VMEM (N, H) hidden / cell state
    hall_scr     : VMEM (T, N, H) all hidden states (for the batched tag matmul)
    """
    T = gx_ref.shape[0]
    N, H = h_scr.shape

    h_scr[...] = jnp.zeros_like(h_scr)
    c_scr[...] = jnp.zeros_like(c_scr)

    # Lane mask selecting the "g" gate block (loop-invariant; hoisted).
    lane = jax.lax.broadcasted_iota(jnp.int32, (N, 4 * H), 1)
    g_mask = (lane >= 2 * H) & (lane < 3 * H)

    def step(t, carry):
        gates = gx_ref[t] + jnp.dot(h_scr[...], whh_ref[...],
                                    preferred_element_type=jnp.float32)  # (N, 4H)
        # Full-vreg activations on the EUP, then per-gate combine.
        act = jnp.where(g_mask, jnp.tanh(gates), jax.nn.sigmoid(gates))
        i_g = act[:, 0 * H:1 * H]
        f_g = act[:, 1 * H:2 * H]
        g_g = act[:, 2 * H:3 * H]
        o_g = act[:, 3 * H:4 * H]

        c_new = f_g * c_scr[...] + i_g * g_g
        h_new = o_g * jnp.tanh(c_new)

        c_scr[...] = c_new
        h_scr[...] = h_new
        hall_scr[t] = h_new
        return carry

    jax.lax.fori_loop(0, T, step, 0, unroll=(T <= 8))

    # Batched hidden2tag over all timesteps at once (better MXU row utilization).
    h_all = hall_scr[...].reshape(T * N, H)
    tags = (jnp.dot(h_all, tagw_ref[...], preferred_element_type=jnp.float32)
            + tagb_ref[...])
    out_ref[...] = tags.reshape(T, N, -1)


# ---------------------------------------------------------------------------
# Wrappers (pallas_call plumbing)
# ---------------------------------------------------------------------------

_VMEM_SPEC = pl.BlockSpec(memory_space=pltpu.MemorySpace.VMEM)


def run_pooler_xproj(tok_emb, mask, sent_flat, pw_t, pb, wa_t, wb_t, b):
    S, L, E = tok_emb.shape
    Ds = sent_flat.shape[1]
    G = wa_t.shape[1]                        # 4 * hidden_dim

    # Sentence-block size: 8 keeps double-buffered bf16 tiles (+ f32 compute
    # intermediates) comfortably inside v7x's 64 MiB VMEM; if S < 8 use the
    # whole array (block == full dim satisfies the (8,128) rule).
    S_blk = min(S, 8)
    grid = (pl.cdiv(S, S_blk),)

    return pl.pallas_call(
        pooler_xproj_kernel,
        out_shape=jax.ShapeDtypeStruct((S, G), jnp.float32),
        grid=grid,
        in_specs=[
            pl.BlockSpec((S_blk, L, E), lambda i: (i, 0, 0)),
            pl.BlockSpec((S_blk, L), lambda i: (i, 0)),
            pl.BlockSpec((S_blk, Ds), lambda i: (i, 0)),
            pl.BlockSpec((E, E), lambda i: (0, 0)),
            pl.BlockSpec((1, E), lambda i: (0, 0)),
            pl.BlockSpec((Ds, G), lambda i: (0, 0)),
            pl.BlockSpec((E, G), lambda i: (0, 0)),
            pl.BlockSpec((1, G), lambda i: (0, 0)),
        ],
        out_specs=pl.BlockSpec((S_blk, G), lambda i: (i, 0)),
        compiler_params=pltpu.CompilerParams(
            dimension_semantics=("parallel",),
            vmem_limit_bytes=32 * 1024 * 1024,
        ),
    )(tok_emb, mask, sent_flat, pw_t, pb, wa_t, wb_t, b)


def run_lstm_tag(gx, whh_t, tag_w_t, tag_b):
    T, N, _ = gx.shape
    H = whh_t.shape[0]
    P = tag_w_t.shape[1]
    return pl.pallas_call(
        lstm_tag_kernel,
        out_shape=jax.ShapeDtypeStruct((T, N, P), jnp.float32),
        in_specs=[_VMEM_SPEC] * 4,
        out_specs=_VMEM_SPEC,
        scratch_shapes=[
            pltpu.VMEM((N, H), jnp.float32),
            pltpu.VMEM((N, H), jnp.float32),
            pltpu.VMEM((T, N, H), jnp.float32),
        ],
    )(gx, whh_t, tag_w_t, tag_b)


# ---------------------------------------------------------------------------
# BertLSTM forward (glue in plain JAX, hot paths in Pallas)
# ---------------------------------------------------------------------------

def bert_lstm_forward(params, sentence_emb, input_ids, attention_masks):
    num_batches = input_ids.shape[0] // 10
    T, N = num_batches, 10
    S = T * N

    # --- synthetic BERT stand-in: embedding lookup (glue, bf16 table) ---
    tok_emb = jnp.take(params["bert_emb_table"], input_ids, axis=0)    # (S,146,768) bf16
    mask_f = attention_masks.astype(jnp.float32)                       # (S,146)

    # Row s = batch*10 + i matches the (T, 10, ...) ordering of sentence_emb.
    sent_flat = sentence_emb.reshape(S, -1)                            # (S, Ds)

    # --- fused pooler + tanh(sent) + concat + x@W_ih (+ bias) in ONE kernel ---
    # dropout(whole_emb) -> identity (eval mode)
    gates_x = run_pooler_xproj(
        tok_emb, mask_f, sent_flat,
        params["bert_pooler_w_t"], params["bert_pooler_b"],
        params["lstm_wih_a_t"], params["lstm_wih_b_t"], params["lstm_b"],
    )                                                                  # (S, 4H)

    H = params["lstm_whh_t"].shape[0]
    gates_x = gates_x.reshape(T, N, 4 * H)

    # --- LSTM recurrence + fused hidden2tag in ONE kernel ---
    # dropout(lstm_out) -> identity (eval mode)
    tag_space = run_lstm_tag(
        gates_x, params["lstm_whh_t"], params["tag_w_t"], params["tag_b"]
    )                                                                  # (T, N, P)
    return tag_space


# ---------------------------------------------------------------------------
# Deterministic parameter construction
# ---------------------------------------------------------------------------

def make_params(key, sent_dim, hidden_dim, tagset_size, vocab_size=1000,
                bert_dim=768):
    ks = jax.random.split(key, 8)
    H = hidden_dim
    input_dim = sent_dim + bert_dim

    def unif(k, shape, scale):
        return jax.random.uniform(k, shape, jnp.float32, -scale, scale)

    # nn.LSTM(input_dim, hidden_dim): gate order i, f, g, o; b = b_ih + b_hh.
    wih_t = unif(ks[3], (input_dim, 4 * H), 1.0 / jnp.sqrt(H))

    params = {
        # synthetic BERT stand-in (bf16 MXU / gather operands)
        "bert_emb_table": unif(ks[0], (vocab_size, bert_dim), 0.05).astype(jnp.bfloat16),
        "bert_pooler_w_t": unif(ks[1], (bert_dim, bert_dim),
                                1.0 / jnp.sqrt(bert_dim)).astype(jnp.bfloat16),
        "bert_pooler_b": unif(ks[2], (1, bert_dim), 0.02),
        # W_ih split along the input axis: rows for tanh(sent) and for the BERT part
        "lstm_wih_a_t": wih_t[:sent_dim].astype(jnp.bfloat16),
        "lstm_wih_b_t": wih_t[sent_dim:].astype(jnp.bfloat16),
        "lstm_b": unif(ks[4], (1, 4 * H), 1.0 / jnp.sqrt(H)),
        "lstm_whh_t": unif(ks[5], (H, 4 * H), 1.0 / jnp.sqrt(H)),
        # nn.Linear(hidden_dim, tagset_size)
        "tag_w_t": unif(ks[6], (H, tagset_size), 1.0 / jnp.sqrt(H)),
        "tag_b": unif(ks[7], (1, tagset_size), 1.0 / jnp.sqrt(H)),
    }
    return params


if __name__ == "__main__":
    # small shapes consistent with the module
    num_batches = 2            # -> input_ids.shape[0] = 20, LSTM seq_len = 2
    seq_len_tok = 146          # hard-coded in the PyTorch forward
    sent_dim = 32              # sentence_emb feature dim
    hidden_dim = 32
    tagset_size = 8
    vocab_size = 1000

    key = jax.random.PRNGKey(0)
    k_par, k_sent, k_ids, k_len = jax.random.split(key, 4)

    params = make_params(k_par, sent_dim, hidden_dim, tagset_size, vocab_size)

    sentence_emb = jax.random.normal(
        k_sent, (num_batches, 10, sent_dim), jnp.float32)
    input_ids = jax.random.randint(
        k_ids, (num_batches * 10, seq_len_tok), 0, vocab_size, jnp.int32)
    lengths = jax.random.randint(
        k_len, (num_batches * 10, 1), 10, seq_len_tok + 1, jnp.int32)
    attention_masks = (
        jnp.arange(seq_len_tok, dtype=jnp.int32)[None, :] < lengths
    ).astype(jnp.int32)

    fwd = jax.jit(bert_lstm_forward)
    tag_space = fwd(params, sentence_emb, input_ids, attention_masks)
    tag_space = jax.block_until_ready(tag_space)

    assert tag_space.shape == (num_batches, 10, tagset_size), tag_space.shape
    assert tag_space.dtype == jnp.float32
    assert bool(jnp.all(jnp.isfinite(tag_space)))
    print("KERNEL_OK")
</pallas_src>

<mosaic_0001>
module attributes {stable_mosaic.version = 11 : i64} {
  func.func @pooler_xproj_kernel(%arg0: i32, %arg1: memref<8x146x768xbf16, #tpu.memory_space<vmem>>, %arg2: memref<8x146xf32, #tpu.memory_space<vmem>>, %arg3: memref<8x32xf32, #tpu.memory_space<vmem>>, %arg4: memref<768x768xbf16, #tpu.memory_space<vmem>>, %arg5: memref<1x768xf32, #tpu.memory_space<vmem>>, %arg6: memref<32x128xbf16, #tpu.memory_space<vmem>>, %arg7: memref<768x128xbf16, #tpu.memory_space<vmem>>, %arg8: memref<1x128xf32, #tpu.memory_space<vmem>>, %arg9: memref<8x128xf32, #tpu.memory_space<vmem>>) attributes {dimension_semantics = [#tpu.dimension_semantics<parallel>], iteration_bounds = array<i64: 3>, scalar_prefetch = 0 : i64, scratch_operands = 0 : i64, tpu.core_type = #tpu.core_type<tc>, window_params = [{transform_indices = @transform_0, window_bounds = array<i64: 8, 146, 768>}, {transform_indices = @transform_1, window_bounds = array<i64: 8, 146>}, {transform_indices = @transform_2, window_bounds = array<i64: 8, 32>}, {pipeline_mode = #tpu.pipeline_mode<synchronous>, transform_indices = @transform_3, window_bounds = array<i64: 768, 768>}, {pipeline_mode = #tpu.pipeline_mode<synchronous>, transform_indices = @transform_4, window_bounds = array<i64: 1, 768>}, {pipeline_mode = #tpu.pipeline_mode<synchronous>, transform_indices = @transform_5, window_bounds = array<i64: 32, 128>}, {pipeline_mode = #tpu.pipeline_mode<synchronous>, transform_indices = @transform_6, window_bounds = array<i64: 768, 128>}, {pipeline_mode = #tpu.pipeline_mode<synchronous>, transform_indices = @transform_7, window_bounds = array<i64: 1, 128>}, {transform_indices = @transform_8, window_bounds = array<i64: 8, 128>}]} {
    %c0 = arith.constant 0 : index
    %c0_0 = arith.constant 0 : index
    %c0_1 = arith.constant 0 : index
    %0 = vector.load %arg1[%c0, %c0_0, %c0_1] : memref<8x146x768xbf16, #tpu.memory_space<vmem>>, vector<8x146x768xbf16>
    %1 = arith.extf %0 : vector<8x146x768xbf16> to vector<8x146x768xf32>
    %c0_2 = arith.constant 0 : index
    %c0_3 = arith.constant 0 : index
    %2 = vector.load %arg2[%c0_2, %c0_3] : memref<8x146xf32, #tpu.memory_space<vmem>>, vector<8x146xf32>
    %cst = arith.constant dense<0.000000e+00> : vector<8xf32>
    %3 = vector.multi_reduction <add>, %2, %cst [1] : vector<8x146xf32> to vector<8xf32>
    %4 = vector.shape_cast %3 : vector<8xf32> to vector<8x1xf32>
    %cst_4 = arith.constant 1.000000e+00 : f32
    %5 = vector.broadcast %cst_4 : f32 to vector<8x1xf32>
    %6 = arith.maximumf %4, %5 : vector<8x1xf32>
    %7 = vector.shape_cast %2 : vector<8x146xf32> to vector<8x146x1xf32>
    %8 = vector.broadcast %7 : vector<8x146x1xf32> to vector<8x146x768xf32>
    %9 = arith.mulf %1, %8 : vector<8x146x768xf32>
    %cst_5 = arith.constant dense<0.000000e+00> : vector<8x768xf32>
    %10 = vector.multi_reduction <add>, %9, %cst_5 [1] : vector<8x146x768xf32> to vector<8x768xf32>
    %11 = vector.broadcast %6 : vector<8x1xf32> to vector<8x768xf32>
    %12 = arith.divf %10, %11 : vector<8x768xf32>
    %13 = arith.truncf %12 : vector<8x768xf32> to vector<8x768xbf16>
    %c0_6 = arith.constant 0 : index
    %c0_7 = arith.constant 0 : index
    %14 = vector.load %arg4[%c0_6, %c0_7] : memref<768x768xbf16, #tpu.memory_space<vmem>>, vector<768x768xbf16>
    %cst_8 = arith.constant dense<0.000000e+00> : vector<8x768xf32>
    %15 = tpu.matmul %13, %14, %cst_8 {dimension_numbers = #tpu.dot_dimension_numbers<[1], [0], [0], [1], [0, 0, 1, 1], [], []>} : vector<8x768xbf16>, vector<768x768xbf16>, vector<8x768xf32> -> vector<8x768xf32>
    %c0_9 = arith.constant 0 : index
    %c0_10 = arith.constant 0 : index
    %16 = vector.load %arg5[%c0_9, %c0_10] : memref<1x768xf32, #tpu.memory_space<vmem>>, vector<1x768xf32>
    %17 = vector.broadcast %16 : vector<1x768xf32> to vector<8x768xf32>
    %18 = arith.addf %15, %17 : vector<8x768xf32>
    %19 = math.tanh %18 : vector<8x768xf32>
    %c0_11 = arith.constant 0 : index
    %c0_12 = arith.constant 0 : index
    %20 = vector.load %arg3[%c0_11, %c0_12] : memref<8x32xf32, #tpu.memory_space<vmem>>, vector<8x32xf32>
    %21 = math.tanh %20 : vector<8x32xf32>
    %22 = arith.truncf %21 : vector<8x32xf32> to vector<8x32xbf16>
    %c0_13 = arith.constant 0 : index
    %c0_14 = arith.constant 0 : index
    %23 = vector.load %arg6[%c0_13, %c0_14] : memref<32x128xbf16, #tpu.memory_space<vmem>>, vector<32x128xbf16>
    %cst_15 = arith.constant dense<0.000000e+00> : vector<8x128xf32>
    %24 = tpu.matmul %22, %23, %cst_15 {dimension_numbers = #tpu.dot_dimension_numbers<[1], [0], [0], [1], [0, 0, 1, 1], [], []>} : vector<8x32xbf16>, vector<32x128xbf16>, vector<8x128xf32> -> vector<8x128xf32>
    %25 = arith.truncf %19 : vector<8x768xf32> to vector<8x768xbf16>
    %c0_16 = arith.constant 0 : index
    %c0_17 = arith.constant 0 : index
    %26 = vector.load %arg7[%c0_16, %c0_17] : memref<768x128xbf16, #tpu.memory_space<vmem>>, vector<768x128xbf16>
    %cst_18 = arith.constant dense<0.000000e+00> : vector<8x128xf32>
    %27 = tpu.matmul %25, %26, %cst_18 {dimension_numbers = #tpu.dot_dimension_numbers<[1], [0], [0], [1], [0, 0, 1, 1], [], []>} : vector<8x768xbf16>, vector<768x128xbf16>, vector<8x128xf32> -> vector<8x128xf32>
    %28 = arith.addf %24, %27 : vector<8x128xf32>
    %c0_19 = arith.constant 0 : index
    %c0_20 = arith.constant 0 : index
    %29 = vector.load %arg8[%c0_19, %c0_20] : memref<1x128xf32, #tpu.memory_space<vmem>>, vector<1x128xf32>
    %30 = vector.broadcast %29 : vector<1x128xf32> to vector<8x128xf32>
    %31 = arith.addf %28, %30 : vector<8x128xf32>
    %c0_21 = arith.constant 0 : index
    %c0_22 = arith.constant 0 : index
    %32 = vector.load %arg9[%c0_21, %c0_22] : memref<8x128xf32, #tpu.memory_space<vmem>>, vector<8x128xf32>
    tpu.vector_store %arg9[%c0_21, %c0_22], %31 {strides = array<i32>} : memref<8x128xf32, #tpu.memory_space<vmem>>, vector<8x128xf32>,
    return
  }
  func.func @transform_0(%arg0: i32) -> (i32, i32, i32) {
    %c0_i32 = arith.constant 0 : i32
    %c0_i32_0 = arith.constant 0 : i32
    %c0_i32_1 = arith.constant 0 : i32
    return %arg0, %c0_i32, %c0_i32_0 : i32, i32, i32
  }
  func.func @transform_1(%arg0: i32) -> (i32, i32) {
    %c0_i32 = arith.constant 0 : i32
    %c0_i32_0 = arith.constant 0 : i32
    return %arg0, %c0_i32 : i32, i32
  }
  func.func @transform_2(%arg0: i32) -> (i32, i32) {
    %c0_i32 = arith.constant 0 : i32
    %c0_i32_0 = arith.constant 0 : i32
    return %arg0, %c0_i32 : i32, i32
  }
  func.func @transform_3(%arg0: i32) -> (i32, i32) {
    %c0_i32 = arith.constant 0 : i32
    %c0_i32_0 = arith.constant 0 : i32
    %c0_i32_1 = arith.constant 0 : i32
    return %c0_i32, %c0_i32_0 : i32, i32
  }
  func.func @transform_4(%arg0: i32) -> (i32, i32) {
    %c0_i32 = arith.constant 0 : i32
    %c0_i32_0 = arith.constant 0 : i32
    %c0_i32_1 = arith.constant 0 : i32
    return %c0_i32, %c0_i32_0 : i32, i32
  }
  func.func @transform_5(%arg0: i32) -> (i32, i32) {
    %c0_i32 = arith.constant 0 : i32
    %c0_i32_0 = arith.constant 0 : i32
    %c0_i32_1 = arith.constant 0 : i32
    return %c0_i32, %c0_i32_0 : i32, i32
  }
  func.func @transform_6(%arg0: i32) -> (i32, i32) {
    %c0_i32 = arith.constant 0 : i32
    %c0_i32_0 = arith.constant 0 : i32
    %c0_i32_1 = arith.constant 0 : i32
    return %c0_i32, %c0_i32_0 : i32, i32
  }
  func.func @transform_7(%arg0: i32) -> (i32, i32) {
    %c0_i32 = arith.constant 0 : i32
    %c0_i32_0 = arith.constant 0 : i32
    %c0_i32_1 = arith.constant 0 : i32
    return %c0_i32, %c0_i32_0 : i32, i32
  }
  func.func @transform_8(%arg0: i32) -> (i32, i32) {
    %c0_i32 = arith.constant 0 : i32
    %c0_i32_0 = arith.constant 0 : i32
    return %arg0, %c0_i32 : i32, i32
  }
}

module attributes {stable_mosaic.version = 11 : i64} {
  func.func @lstm_tag_kernel(%arg0: memref<2x10x128xf32, #tpu.memory_space<vmem>>, %arg1: memref<32x128xf32, #tpu.memory_space<vmem>>, %arg2: memref<32x8xf32, #tpu.memory_space<vmem>>, %arg3: memref<1x8xf32, #tpu.memory_space<vmem>>, %arg4: memref<2x10x8xf32, #tpu.memory_space<vmem>>, %arg5: memref<10x32xf32, #tpu.memory_space<vmem>>, %arg6: memref<10x32xf32, #tpu.memory_space<vmem>>, %arg7: memref<2x10x32xf32, #tpu.memory_space<vmem>>) attributes {dimension_semantics = [], scalar_prefetch = 0 : i64, scratch_operands = 3 : i64, tpu.core_type = #tpu.core_type<tc>} {
    %cst = arith.constant 0.000000e+00 : f32
    %0 = vector.broadcast %cst : f32 to vector<10x32xf32>
    %c0 = arith.constant 0 : index
    %c0_0 = arith.constant 0 : index
    %1 = vector.load %arg5[%c0, %c0_0] : memref<10x32xf32, #tpu.memory_space<vmem>>, vector<10x32xf32>
    tpu.vector_store %arg5[%c0, %c0_0], %0 {strides = array<i32>} : memref<10x32xf32, #tpu.memory_space<vmem>>, vector<10x32xf32>,
    %cst_1 = arith.constant 0.000000e+00 : f32
    %2 = vector.broadcast %cst_1 : f32 to vector<10x32xf32>
    %c0_2 = arith.constant 0 : index
    %c0_3 = arith.constant 0 : index
    %3 = vector.load %arg6[%c0_2, %c0_3] : memref<10x32xf32, #tpu.memory_space<vmem>>, vector<10x32xf32>
    tpu.vector_store %arg6[%c0_2, %c0_3], %2 {strides = array<i32>} : memref<10x32xf32, #tpu.memory_space<vmem>>, vector<10x32xf32>,
    %4 = tpu.iota {dimensions = array<i32: 1>} : vector<10x128xi32>
    %c64_i32 = arith.constant 64 : i32
    %5 = vector.broadcast %c64_i32 : i32 to vector<10x128xi32>
    %6 = arith.cmpi sge, %4, %5 : vector<10x128xi32>
    %c96_i32 = arith.constant 96 : i32
    %7 = vector.broadcast %c96_i32 : i32 to vector<10x128xi32>
    %8 = arith.cmpi slt, %4, %7 : vector<10x128xi32>
    %9 = arith.andi %6, %8 : vector<10x128xi1>
    %c0_i32 = arith.constant 0 : i32
    %10 = arith.index_cast %c0_i32 : i32 to index
    %c0_4 = arith.constant 0 : index
    %c0_5 = arith.constant 0 : index
    %11 = vector.load %arg0[%10, %c0_4, %c0_5] : memref<2x10x128xf32, #tpu.memory_space<vmem>>, vector<1x10x128xf32>
    %12 = vector.shape_cast %11 : vector<1x10x128xf32> to vector<10x128xf32>
    %c0_6 = arith.constant 0 : index
    %c0_7 = arith.constant 0 : index
    %13 = vector.load %arg5[%c0_6, %c0_7] : memref<10x32xf32, #tpu.memory_space<vmem>>, vector<10x32xf32>
    %c0_8 = arith.constant 0 : index
    %c0_9 = arith.constant 0 : index
    %14 = vector.load %arg1[%c0_8, %c0_9] : memref<32x128xf32, #tpu.memory_space<vmem>>, vector<32x128xf32>
    %cst_10 = arith.constant dense<0.000000e+00> : vector<10x128xf32>
    %15 = tpu.matmul %13, %14, %cst_10 {dimension_numbers = #tpu.dot_dimension_numbers<[1], [0], [0], [1], [0, 0, 1, 1], [], []>} : vector<10x32xf32>, vector<32x128xf32>, vector<10x128xf32> -> vector<10x128xf32>
    %16 = arith.addf %12, %15 : vector<10x128xf32>
    %17 = math.tanh %16 : vector<10x128xf32>
    %18 = arith.negf %16 : vector<10x128xf32>
    %19 = math.exp %18 : vector<10x128xf32>
    %cst_11 = arith.constant 1.000000e+00 : f32
    %20 = vector.broadcast %cst_11 : f32 to vector<10x128xf32>
    %21 = arith.addf %20, %19 : vector<10x128xf32>
    %22 = arith.divf %20, %21 : vector<10x128xf32>
    %23 = arith.select %9, %17, %22 : vector<10x128xi1>, vector<10x128xf32>
    %24 = vector.extract_strided_slice %23 {offsets = [0, 0], sizes = [10, 32], strides = [1, 1]} : vector<10x128xf32> to vector<10x32xf32>
    %25 = vector.extract_strided_slice %23 {offsets = [0, 32], sizes = [10, 32], strides = [1, 1]} : vector<10x128xf32> to vector<10x32xf32>
    %26 = vector.extract_strided_slice %23 {offsets = [0, 64], sizes = [10, 32], strides = [1, 1]} : vector<10x128xf32> to vector<10x32xf32>
    %27 = vector.extract_strided_slice %23 {offsets = [0, 96], sizes = [10, 32], strides = [1, 1]} : vector<10x128xf32> to vector<10x32xf32>
    %c0_12 = arith.constant 0 : index
    %c0_13 = arith.constant 0 : index
    %28 = vector.load %arg6[%c0_12, %c0_13] : memref<10x32xf32, #tpu.memory_space<vmem>>, vector<10x32xf32>
    %29 = arith.mulf %25, %28 : vector<10x32xf32>
    %30 = arith.mulf %24, %26 : vector<10x32xf32>
    %31 = arith.addf %29, %30 : vector<10x32xf32>
    %32 = math.tanh %31 : vector<10x32xf32>
    %33 = arith.mulf %27, %32 : vector<10x32xf32>
    %c0_14 = arith.constant 0 : index
    %c0_15 = arith.constant 0 : index
    %34 = vector.load %arg6[%c0_14, %c0_15] : memref<10x32xf32, #tpu.memory_space<vmem>>, vector<10x32xf32>
    tpu.vector_store %arg6[%c0_14, %c0_15], %31 {strides = array<i32>} : memref<10x32xf32, #tpu.memory_space<vmem>>, vector<10x32xf32>,
    %c0_16 = arith.constant 0 : index
    %c0_17 = arith.constant 0 : index
    %35 = vector.load %arg5[%c0_16, %c0_17] : memref<10x32xf32, #tpu.memory_space<vmem>>, vector<10x32xf32>
    tpu.vector_store %arg5[%c0_16, %c0_17], %33 {strides = array<i32>} : memref<10x32xf32, #tpu.memory_space<vmem>>, vector<10x32xf32>,
    %36 = arith.index_cast %c0_i32 : i32 to index
    %c0_18 = arith.constant 0 : index
    %c0_19 = arith.constant 0 : index
    %37 = vector.load %arg7[%36, %c0_18, %c0_19] : memref<2x10x32xf32, #tpu.memory_space<vmem>>, vector<1x10x32xf32>
    %38 = vector.shape_cast %37 : vector<1x10x32xf32> to vector<10x32xf32>
    %39 = vector.shape_cast %33 : vector<10x32xf32> to vector<1x10x32xf32>
    tpu.vector_store %arg7[%36, %c0_18, %c0_19], %39 {strides = array<i32>} : memref<2x10x32xf32, #tpu.memory_space<vmem>>, vector<1x10x32xf32>,
    %c1_i32 = arith.constant 1 : i32
    %40 = arith.index_cast %c1_i32 : i32 to index
    %c0_20 = arith.constant 0 : index
    %c0_21 = arith.constant 0 : index
    %41 = vector.load %arg0[%40, %c0_20, %c0_21] : memref<2x10x128xf32, #tpu.memory_space<vmem>>, vector<1x10x128xf32>
    %42 = vector.shape_cast %41 : vector<1x10x128xf32> to vector<10x128xf32>
    %c0_22 = arith.constant 0 : index
    %c0_23 = arith.constant 0 : index
    %43 = vector.load %arg5[%c0_22, %c0_23] : memref<10x32xf32, #tpu.memory_space<vmem>>, vector<10x32xf32>
    %c0_24 = arith.constant 0 : index
    %c0_25 = arith.constant 0 : index
    %44 = vector.load %arg1[%c0_24, %c0_25] : memref<32x128xf32, #tpu.memory_space<vmem>>, vector<32x128xf32>
    %cst_26 = arith.constant dense<0.000000e+00> : vector<10x128xf32>
    %45 = tpu.matmul %43, %44, %cst_26 {dimension_numbers = #tpu.dot_dimension_numbers<[1], [0], [0], [1], [0, 0, 1, 1], [], []>} : vector<10x32xf32>, vector<32x128xf32>, vector<10x128xf32> -> vector<10x128xf32>
    %46 = arith.addf %42, %45 : vector<10x128xf32>
    %47 = math.tanh %46 : vector<10x128xf32>
    %48 = arith.negf %46 : vector<10x128xf32>
    %49 = math.exp %48 : vector<10x128xf32>
    %cst_27 = arith.constant 1.000000e+00 : f32
    %50 = vector.broadcast %cst_27 : f32 to vector<10x128xf32>
    %51 = arith.addf %50, %49 : vector<10x128xf32>
    %52 = arith.divf %50, %51 : vector<10x128xf32>
    %53 = arith.select %9, %47, %52 : vector<10x128xi1>, vector<10x128xf32>
    %54 = vector.extract_strided_slice %53 {offsets = [0, 0], sizes = [10, 32], strides = [1, 1]} : vector<10x128xf32> to vector<10x32xf32>
    %55 = vector.extract_strided_slice %53 {offsets = [0, 32], sizes = [10, 32], strides = [1, 1]} : vector<10x128xf32> to vector<10x32xf32>
    %56 = vector.extract_strided_slice %53 {offsets = [0, 64], sizes = [10, 32], strides = [1, 1]} : vector<10x128xf32> to vector<10x32xf32>
    %57 = vector.extract_strided_slice %53 {offsets = [0, 96], sizes = [10, 32], strides = [1, 1]} : vector<10x128xf32> to vector<10x32xf32>
    %c0_28 = arith.constant 0 : index
    %c0_29 = arith.constant 0 : index
    %58 = vector.load %arg6[%c0_28, %c0_29] : memref<10x32xf32, #tpu.memory_space<vmem>>, vector<10x32xf32>
    %59 = arith.mulf %55, %58 : vector<10x32xf32>
    %60 = arith.mulf %54, %56 : vector<10x32xf32>
    %61 = arith.addf %59, %60 : vector<10x32xf32>
    %62 = math.tanh %61 : vector<10x32xf32>
    %63 = arith.mulf %57, %62 : vector<10x32xf32>
    %c0_30 = arith.constant 0 : index
    %c0_31 = arith.constant 0 : index
    %64 = vector.load %arg6[%c0_30, %c0_31] : memref<10x32xf32, #tpu.memory_space<vmem>>, vector<10x32xf32>
    tpu.vector_store %arg6[%c0_30, %c0_31], %61 {strides = array<i32>} : memref<10x32xf32, #tpu.memory_space<vmem>>, vector<10x32xf32>,
    %c0_32 = arith.constant 0 : index
    %c0_33 = arith.constant 0 : index
    %65 = vector.load %arg5[%c0_32, %c0_33] : memref<10x32xf32, #tpu.memory_space<vmem>>, vector<10x32xf32>
    tpu.vector_store %arg5[%c0_32, %c0_33], %63 {strides = array<i32>} : memref<10x32xf32, #tpu.memory_space<vmem>>, vector<10x32xf32>,
    %66 = arith.index_cast %c1_i32 : i32 to index
    %c0_34 = arith.constant 0 : index
    %c0_35 = arith.constant 0 : index
    %67 = vector.load %arg7[%66, %c0_34, %c0_35] : memref<2x10x32xf32, #tpu.memory_space<vmem>>, vector<1x10x32xf32>
    %68 = vector.shape_cast %67 : vector<1x10x32xf32> to vector<10x32xf32>
    %69 = vector.shape_cast %63 : vector<10x32xf32> to vector<1x10x32xf32>
    tpu.vector_store %arg7[%66, %c0_34, %c0_35], %69 {strides = array<i32>} : memref<2x10x32xf32, #tpu.memory_space<vmem>>, vector<1x10x32xf32>,
    %c2_i32 = arith.constant 2 : i32
    %c0_36 = arith.constant 0 : index
    %c0_37 = arith.constant 0 : index
    %c0_38 = arith.constant 0 : index
    %70 = vector.load %arg7[%c0_36, %c0_37, %c0_38] : memref<2x10x32xf32, #tpu.memory_space<vmem>>, vector<2x10x32xf32>
    %71 = vector.shape_cast %70 : vector<2x10x32xf32> to vector<20x32xf32>
    %c0_39 = arith.constant 0 : index
    %c0_40 = arith.constant 0 : index
    %72 = vector.load %arg2[%c0_39, %c0_40] : memref<32x8xf32, #tpu.memory_space<vmem>>, vector<32x8xf32>
    %cst_41 = arith.constant dense<0.000000e+00> : vector<20x8xf32>
    %73 = tpu.matmul %71, %72, %cst_41 {dimension_numbers = #tpu.dot_dimension_numbers<[1], [0], [0], [1], [0, 0, 1, 1], [], []>} : vector<20x32xf32>, vector<32x8xf32>, vector<20x8xf32> -> vector<20x8xf32>
    %c0_42 = arith.constant 0 : index
    %c0_43 = arith.constant 0 : index
    %74 = vector.load %arg3[%c0_42, %c0_43] : memref<1x8xf32, #tpu.memory_space<vmem>>, vector<1x8xf32>
    %75 = vector.broadcast %74 : vector<1x8xf32> to vector<20x8xf32>
    %76 = arith.addf %73, %75 : vector<20x8xf32>
    %77 = vector.shape_cast %76 : vector<20x8xf32> to vector<2x10x8xf32>
    %c0_44 = arith.constant 0 : index
    %c0_45 = arith.constant 0 : index
    %c0_46 = arith.constant 0 : index
    %78 = vector.load %arg4[%c0_44, %c0_45, %c0_46] : memref<2x10x8xf32, #tpu.memory_space<vmem>>, vector<2x10x8xf32>
    tpu.vector_store %arg4[%c0_44, %c0_45, %c0_46], %77 {strides = array<i32>} : memref<2x10x8xf32, #tpu.memory_space<vmem>>, vector<2x10x8xf32>,
    return
  }
}

</mosaic_0001>

<bundles_post_ra>
// kernel: bert_lstm_forward.3
= control target key start
LH: loop header
LB: loop body
LE: loop exit
PB: predicated region body
PF: predicated region fallthrough
CT: control target
= control target key end

     0   :  { %vm17_vm0 = vcmask 261120   ;;  %vm19_vm1 = vcmask 254976   ;;  %v792_v2 = vmov 0.0   ;;  %s793_s23 = smov 32   ;;  %v23_v21 = vlaneseq  ;;  %s794_s27 = smov 64   ;;  %s978_s1 = inlined_call_operand.vmem [shape: f32[32,128], index: 1, kind: input, shape index: {}]   ;;  %s979_s0 = inlined_call_operand.vmem [shape: f32[2,10,128], index: 0, kind: input, shape index: {}]   ;;  %s980_s2 = inlined_call_operand.vmem [shape: f32[32,8], index: 2, kind: input, shape index: {}]   ;;  %s981_s3 = inlined_call_operand.vmem [shape: f32[1,8], index: 3, kind: input, shape index: {}]   ;;  %s982_s4 = inlined_call_operand.vmem [shape: f32[2,10,8], index: 4, kind: output, shape index: {}]  }
   0x1   :  { %v35_v0 = vld [vmem:[%s978_s1 + $0x18] sm:$0xff]  ;;  %v34_v1 = vld [vmem:[%s978_s1 + $0x10] sm:$0xff]  ;;  %18 = vst.msk [vmem:[#allocation2] sm:$0xff] %vm17_vm0, %v792_v2  ;;  %21 = vst.msk [vmem:[#allocation3] sm:$0xff] %vm17_vm0, %v792_v2  ;;  %735 = vmatprep.subr.mxu0 %v792_v2  ;;  %s795_s8 = smov 96   ;;  %vm796_vm5 = vmmov 0  }
   0x2   :  { %20 = vst.msk [vmem:[#allocation2 + $0x8] sm:$0x3] %vm19_vm1, %v792_v2  ;;  %22 = vst.msk [vmem:[#allocation3 + $0x8] sm:$0x3] %vm19_vm1, %v792_v2  ;;  %713 = vmatprep.subr.mxu1 %v35_v0  ;;  %v33_v3 = vld [vmem:[%s978_s1 + $0x8] sm:$0xff]  ;;  %v32_v4 = vld [vmem:[%s978_s1] sm:$0xff]  ;;  %743 = vmatprep.mubr.msk.f32.mxu0 %vm796_vm5, %v792_v2 }
   0x3   :  { %714 = vmatpush3.msra.mxu1 %v35_v0  ;;  %v29_v9 = vld [vmem:[%s979_s0 + $0x8] sm:$0x3]  ;;  %v28_v11 = vld [vmem:[%s979_s0] sm:$0xff]  ;;  %v24_v22 = vand.u32 127, %v23_v21  ;;  %v435_v46 = vld [vmem:[%s980_s2 + $0x18] sm:$0xff]  ;;  %v389_v56 = vshrl.u32 %v23_v21, 7 }
   0x4   :  { %715 = vmatprep.subr.mxu1 %v34_v1  ;;  %v434_v47 = vld [vmem:[%s980_s2 + $0x10] sm:$0xff]  ;;  %736 = vmatpush3.msra.mxu0 %v435_v46  ;;  %v433_v50 = vld [vmem:[%s980_s2 + $0x8] sm:$0xff]  ;;  %v432_v51 = vld [vmem:[%s980_s2] sm:$0xff]  ;;  %v797_v52 = vmov 1983009808   ;;  %vm668_vm6 = vcmask 64512  }
   0x5   :  { %716 = vmatpush3.msra.mxu1 %v34_v1  ;;  %vm25_vm2 = vcmp.ge.s32.totalorder %v24_v22, 64  ;;  %vm26_vm3 = vcmp.lt.s32.totalorder %v24_v22, 96  ;;  %737 = vmatprep.subr.mxu0 %v792_v2  ;;  %v386_v53 = vunpack.c.l.s4 %v797_v52  ;;  %v917_v21 = vld [vmem:[%s981_s3] ss:$0 sm:$0xff]  ;;  %vm670_vm7 = vcmask 58368  }
   0x6   :  { %717 = vmatprep.subr.mxu1 %v33_v3  ;;  %vm854_vm4 = vmand %vm25_vm2, %vm26_vm3  ;;  %738 = vmatpush3.msra.mxu0 %v434_v47 }
   0x7   :  { %718 = vmatpush3.msra.mxu1 %v33_v3  ;;  %739 = vmatprep.subr.mxu0 %v792_v2  ;;  %v387_v55 = vunpack.c.0.s8 %v386_v53 }
   0x8   :  { %719 = vmatprep.subr.mxu1 %v32_v4  ;;  %v30_v5 = vld [vmem:[#allocation2] sm:$0xff]  ;;  %v135_v7 = vld [vmem:[#allocation3] sm:$0xff]  ;;  %740 = vmatpush3.msra.mxu0 %v433_v50 }
   0x9   :  { %v31_v6 = vld [vmem:[#allocation2 + $0x8] sm:$0x3]  ;;  %720 = vmatpush3.msra.mxu1 %v32_v4  ;;  %721 = vmatprep.mubr.msk.f32.mxu1 %vm17_vm0, %v30_v5  ;;  %v136_v8 = vld [vmem:[#allocation3 + $0x8] sm:$0x3]  ;;  %v891_v59 = vsub.s32 %v387_v55, %v389_v56 }
   0xa   :  { %722 = vmatmul.mubr.msk.f32.vlgmr.msra.gmra.mxu1 %vm17_vm0, %v31_v6  ;;  %139 = vrot.lane.b32.xlu1 %v135_v7, %s793_s23 }
   0xb   :  { %724 = vmatprep.subr.mxu1 %v35_v0  ;;  %741 = vmatprep.subr.mxu0 %v792_v2 }
   0xc   :  { %725 = vmatpush3.msra.mxu1 %v35_v0  ;;  %742 = vmatpush3.msra.mxu0 %v432_v51 }
   0xd   :  { %726 = vmatprep.subr.mxu1 %v34_v1 }
   0xe   :  { %141 = vrot.lane.b32.xlu1 %v136_v8, %s793_s23  ;;  %727 = vmatpush3.msra.mxu1 %v34_v1 }
   0xf   :  { %728 = vmatprep.subr.mxu1 %v33_v3 }
  0x10   :  { %729 = vmatpush3.msra.mxu1 %v33_v3 }
  0x11   :  { %730 = vmatprep.subr.mxu1 %v32_v4 }
  0x12   :  { %731 = vmatpush3.msra.mxu1 %v32_v4 }
  0x7c   :  { %v140_v34 = vpop.permute.xlu1 %139 }
  0x80   :  { %v142_v36 = vpop.permute.xlu1 %141 }
  0xca   :  { %v723_v10 = vpop.f32.mrf.mxu1 }
  0xcb   :  { %v118_v12 = vadd.f32 %v723_v10, %v29_v9 }
  0xcc   :  { %v108_v13 = vpop.f32.mrf.mxu1 }
  0xcd   :  { %v681_v14 = vmul.f32 -1.442695, %v118_v12  ;;  %v117_v15 = vadd.f32 %v108_v13, %v28_v11  ;;  %v683_v13 = vld [vmem:[%s979_s0 + $0x18] sm:$0x3] }
  0xcf   :  { %760 = vpow2.f32 %v681_v14  ;;  %v680_v16 = vmul.f32 -1.442695, %v117_v15 }
  0xd1   :  { %762 = vpow2.f32 %v680_v16 }
  0xd2   :  { %764 = vtanh.f32 %v117_v15  ;;  %v682_v15 = vld [vmem:[%s979_s0 + $0x10] sm:$0xff] }
  0xdc   :  { %v761_v17 = vpop.eup %760 }
  0xdd   :  { %v128_v19 = vadd.f32 1.0, %v761_v17 }
  0xde   :  { %v763_v18 = vpop.eup %762 }
  0xdf   :  { %v127_v20 = vadd.f32 1.0, %v763_v18  ;;  %v765_v23 = vpop.eup %764 }
  0xe1   :  { %766 = vrcp.f32 %v127_v20 }
  0xe2   :  { %768 = vrcp.f32 %v128_v19 }
  0xe3   :  { %770 = vtanh.f32 %v118_v12 }
  0xee   :  { %v767_v24 = vpop.eup %766 }
  0xef   :  { %v133_v26 = vsel %vm854_vm4, %v765_v23, %v767_v24  ;;  %v769_v27 = vpop.eup %768 }
  0xf0   :  { %149 = vrot.lane.b32.xlu0 %v133_v26, %s794_s27  ;;  %v771_v28 = vpop.eup %770  ;;  %v145_v35 = vmul.f32 %v140_v34, %v133_v26 }
  0xf1   :  { %v134_v29 = vsel %vm854_vm4, %v771_v28, %v769_v27 }
  0xf2   :  { %v146_v39 = vmul.f32 %v142_v36, %v134_v29 }
  0xf4   :  { %151 = vrot.lane.b32.xlu0 %v134_v29, %s794_s27 }
 0x162   :  { %v150_v30 = vpop.permute.xlu0 %149 }
 0x163   :  { %v155_v31 = vmul.f32 %v150_v30, %v133_v26 }
 0x165   :  { %159 = vrot.lane.b32.xlu0 %v155_v31, %s793_s23 }
 0x166   :  { %v152_v32 = vpop.permute.xlu0 %151 }
 0x167   :  { %v156_v33 = vmul.f32 %v152_v32, %v134_v29 }
 0x169   :  { %161 = vrot.lane.b32.xlu1 %v156_v33, %s793_s23 }
 0x1d7   :  { %v160_v37 = vpop.permute.xlu0 %159 }
 0x1d8   :  { %v165_v38 = vadd.f32 %v160_v37, %v145_v35 }
 0x1da   :  { %772 = vtanh.f32 %v165_v38 }
 0x1db   :  { %v162_v40 = vpop.permute.xlu1 %161 }
 0x1dc   :  { %v166_v41 = vadd.f32 %v162_v40, %v146_v39 }
 0x1de   :  { %774 = vtanh.f32 %v166_v41 }
 0x1e7   :  { %v773_v42 = vpop.eup %772 }
 0x1e8   :  { %171 = vrot.lane.b32.xlu0 %v773_v42, %s794_s27 }
 0x1eb   :  { %v775_v43 = vpop.eup %774 }
 0x1ec   :  { %173 = vrot.lane.b32.xlu1 %v775_v43, %s794_s27 }
 0x25a   :  { %v172_v44 = vpop.permute.xlu0 %171 }
 0x25b   :  { %v177_v45 = vmul.f32 %v172_v44, %v133_v26 }
 0x25d   :  { %191 = vrot.lane.b32.xlu0 %v177_v45, %s793_s23 }
 0x25e   :  { %v174_v48 = vpop.permute.xlu1 %173 }
 0x25f   :  { %v178_v49 = vmul.f32 %v174_v48, %v134_v29 }
 0x261   :  { %193 = vrot.lane.b32.xlu1 %v178_v49, %s793_s23  ;;  %181 = vrot.lane.b32.xlu0 %v165_v38, %s795_s8 }
 0x265   :  { %183 = vrot.lane.b32.xlu0 %v166_v41, %s795_s8 }
 0x2cf   :  { %v192_v54 = vpop.permute.xlu0 %191 }
 0x2d0   :  { %197 = vst.msk [vmem:[#allocation2] sm:$0xff] %vm17_vm0, %v192_v54  ;;  %199 = vst.msk [vmem:[#allocation4] sm:$0xff] %vm17_vm0, %v192_v54 }
 0x2d3   :  { %v194_v57 = vpop.permute.xlu1 %193  ;;  %v182_v58 = vpop.permute.xlu0 %181 }
 0x2d4   :  { %198 = vst.msk [vmem:[#allocation2 + $0x8] sm:$0x3] %vm19_vm1, %v194_v57  ;;  %200 = vst.msk [vmem:[#allocation4 + $0x8] sm:$0x3] %vm19_vm1, %v194_v57 }
 0x2d5   :  { %187 = vst.msk [vmem:[#allocation3] sm:$0xff] %vm17_vm0, %v182_v58 }
 0x2d7   :  { %v184_v60 = vpop.permute.xlu0 %183  ;;  %v204_v61 = vld [vmem:[#allocation2] sm:$0xff] }
 0x2d8   :  { %v376_v62 = vld [vmem:[#allocation4] sm:$0xff]  ;;  %188 = vst.msk [vmem:[#allocation3 + $0x8] sm:$0x3] %vm19_vm1, %v184_v60  ;;  %732 = vmatprep.mubr.msk.f32.mxu1 %vm17_vm0, %v204_v61 }
 0x2d9   :  { %v384_v63 = vcombine.high %v376_v62, %v376_v62  ;;  %v391_v0 = vrot.slane %v376_v62, %v891_v59 }
 0x2db   :  { %v398_v1 = vrot.slane %v384_v63, %v891_v59  ;;  %v399_v3 = vcombine.high %v391_v0, %v391_v0  ;;  %v205_v4 = vld [vmem:[#allocation2 + $0x8] sm:$0x3] }
 0x2dc   :  { %v309_v5 = vld [vmem:[#allocation3] sm:$0xff]  ;;  %733 = vmatmul.mubr.msk.f32.vlgmr.msra.gmra.mxu1 %vm17_vm0, %v205_v4 }
 0x2dd   :  { %313 = vrot.lane.b32.xlu0 %v309_v5, %s793_s23  ;;  %v400_v6 = vcombine.high %v398_v1, %v398_v1  ;;  %v443_v7 = vcombine.low %v391_v0, %v399_v3 }
 0x2df   :  { %v444_v8 = vcombine.low %v398_v1, %v400_v6  ;;  %v310_v9 = vld [vmem:[#allocation3 + $0x8] sm:$0x3]  ;;  %v451_v10 = vrot.slane %v443_v7, %v891_v59 }
 0x2e1   :  { %315 = vrot.lane.b32.xlu0 %v310_v9, %s793_s23  ;;  %v458_v11 = vrot.slane %v444_v8, %v891_v59  ;;  %v688_v8 = vld.sshfl [vmem:[#allocation4 + $0x8] sm:$0x3 pattern:$0x76325410] }
 0x2e3   :  { %v459_v12 = vcombine.low %v451_v10, %v458_v11 }
 0x2e5   :  { %744 = vmatmul.mubr.msk.f32.vlgmr.msra.gmra.mxu0 %vm17_vm0, %v459_v12 }
 0x2e6   :  { %746 = vmatprep.mubr.msk.f32.mxu0 %vm796_vm5, %v792_v2 }
 0x34f   :  { %v314_v50 = vpop.permute.xlu0 %313 }
 0x353   :  { %v316_v54 = vpop.permute.xlu0 %315 }
 0x39c   :  { %v734_v14 = vpop.f32.mrf.mxu1 }
 0x39d   :  { %v292_v16 = vadd.f32 %v734_v14, %v683_v13 }
 0x39e   :  { %v282_v17 = vpop.f32.mrf.mxu1 }
 0x39f   :  { %v687_v18 = vmul.f32 -1.442695, %v292_v16  ;;  %v291_v19 = vadd.f32 %v682_v15, %v282_v17 }
 0x3a1   :  { %776 = vpow2.f32 %v687_v18  ;;  %v686_v20 = vmul.f32 -1.442695, %v291_v19 }
 0x3a3   :  { %778 = vpow2.f32 %v686_v20 }
 0x3a4   :  { %780 = vtanh.f32 %v291_v19 }
 0x3a5   :  { %v557_v22 = vpop.f32.mrf.mxu0 }
 0x3a6   :  { %v558_v23 = vadd.f32 %v917_v21, %v557_v22 }
 0x3a7   :  { %v745_v24 = vpop.f32.mrf.mxu0 }
 0x3a8   :  { %v574_v26 = vcombine.high %v558_v23, %v558_v23  ;;  %v581_v27 = vrot.slane %v558_v23, %v891_v59 }
 0x3aa   :  { %v588_v28 = vrot.slane %v574_v26, %v891_v59  ;;  %v589_v29 = vcombine.high %v581_v27, %v581_v27 }
 0x3ac   :  { %v590_v30 = vcombine.high %v588_v28, %v588_v28  ;;  %v616_v31 = vcombine.low %v581_v27, %v589_v29 }
 0x3ae   :  { %v617_v32 = vcombine.low %v588_v28, %v590_v30  ;;  %v777_v33 = vpop.eup %776  ;;  %v624_v34 = vrot.slane %v616_v31, %v891_v59 }
 0x3af   :  { %v302_v37 = vadd.f32 1.0, %v777_v33 }
 0x3b0   :  { %v631_v35 = vrot.slane %v617_v32, %v891_v59  ;;  %v779_v36 = vpop.eup %778 }
 0x3b1   :  { %v301_v38 = vadd.f32 1.0, %v779_v36  ;;  %v781_v40 = vpop.eup %780 }
 0x3b2   :  { %v632_v39 = vcombine.low %v624_v34, %v631_v35 }
 0x3b3   :  { %782 = vrcp.f32 %v301_v38 }
 0x3b4   :  { %669 = vst.msk [vmem:[%s982_s4] sm:$0xff] %vm668_vm6, %v632_v39  ;;  %784 = vrcp.f32 %v302_v37 }
 0x3b5   :  { %786 = vtanh.f32 %v292_v16 }
 0x3c0   :  { %v783_v41 = vpop.eup %782 }
 0x3c1   :  { %v307_v42 = vsel %vm854_vm4, %v781_v40, %v783_v41  ;;  %v785_v43 = vpop.eup %784 }
 0x3c2   :  { %323 = vrot.lane.b32.xlu1 %v307_v42, %s794_s27  ;;  %v787_v44 = vpop.eup %786  ;;  %v319_v51 = vmul.f32 %v314_v50, %v307_v42 }
 0x3c3   :  { %v308_v45 = vsel %vm854_vm4, %v787_v44, %v785_v43 }
 0x3c4   :  { %v320_v55 = vmul.f32 %v316_v54, %v308_v45 }
 0x3c6   :  { %325 = vrot.lane.b32.xlu1 %v308_v45, %s794_s27 }
 0x434   :  { %v324_v46 = vpop.permute.xlu1 %323 }
 0x435   :  { %v329_v47 = vmul.f32 %v324_v46, %v307_v42 }
 0x437   :  { %333 = vrot.lane.b32.xlu1 %v329_v47, %s793_s23 }
 0x438   :  { %v326_v48 = vpop.permute.xlu1 %325 }
 0x439   :  { %v330_v49 = vmul.f32 %v326_v48, %v308_v45 }
 0x43b   :  { %335 = vrot.lane.b32.xlu1 %v330_v49, %s793_s23 }
 0x4a9   :  { %v334_v52 = vpop.permute.xlu1 %333 }
 0x4aa   :  { %v339_v53 = vadd.f32 %v334_v52, %v319_v51 }
 0x4ac   :  { %788 = vtanh.f32 %v339_v53 }
 0x4ad   :  { %v336_v56 = vpop.permute.xlu1 %335 }
 0x4ae   :  { %v340_v25 = vadd.f32 %v336_v56, %v320_v55 }
 0x4b0   :  { %790 = vtanh.f32 %v340_v25 }
 0x4b9   :  { %v789_v57 = vpop.eup %788 }
 0x4ba   :  { %345 = vrot.lane.b32.xlu0 %v789_v57, %s794_s27 }
 0x4bd   :  { %v791_v58 = vpop.eup %790 }
 0x4be   :  { %347 = vrot.lane.b32.xlu1 %v791_v58, %s794_s27 }
 0x52c   :  { %v346_v60 = vpop.permute.xlu0 %345 }
 0x52d   :  { %v351_v61 = vmul.f32 %v346_v60, %v307_v42 }
 0x52f   :  { %365 = vrot.lane.b32.xlu0 %v351_v61, %s793_s23 }
 0x530   :  { %v348_v62 = vpop.permute.xlu1 %347 }
 0x531   :  { %v352_v63 = vmul.f32 %v348_v62, %v308_v45 }
 0x533   :  { %367 = vrot.lane.b32.xlu1 %v352_v63, %s793_s23  ;;  %355 = vrot.lane.b32.xlu0 %v339_v53, %s795_s8 }
 0x537   :  { %357 = vrot.lane.b32.xlu1 %v340_v25, %s795_s8 }
 0x5a1   :  { %v366_v0 = vpop.permute.xlu0 %365 }
 0x5a2   :  { %371 = vst.msk [vmem:[#allocation2] sm:$0xff] %vm17_vm0, %v366_v0  ;;  %374 = vst.msk [vmem:[#allocation4 + $0x10] sm:$0xff] %vm17_vm0, %v366_v0 }
 0x5a5   :  { %v368_v1 = vpop.permute.xlu1 %367  ;;  %v356_v3 = vpop.permute.xlu0 %355 }
 0x5a6   :  { %372 = vst.msk [vmem:[#allocation2 + $0x8] sm:$0x3] %vm19_vm1, %v368_v1  ;;  %375 = vst.msk [vmem:[#allocation4 + $0x18] sm:$0x3] %vm19_vm1, %v368_v1 }
 0x5a7   :  { %361 = vst.msk [vmem:[#allocation3] sm:$0xff] %vm17_vm0, %v356_v3 }
 0x5a9   :  { %v358_v4 = vpop.permute.xlu1 %357  ;;  %v378_v5 = vld [vmem:[#allocation4 + $0x10] sm:$0xff] }
 0x5aa   :  { %362 = vst.msk [vmem:[#allocation3 + $0x8] sm:$0x3] %vm19_vm1, %v358_v4  ;;  %v408_v6 = vcombine.high %v378_v5, %v378_v5  ;;  %v415_v7 = vrot.slane %v378_v5, %v891_v59 }
 0x5ac   :  { %v422_v9 = vrot.slane %v408_v6, %v891_v59  ;;  %v423_v10 = vcombine.high %v415_v7, %v415_v7  ;;  %v460_v11 = vcombine.low %v688_v8, %v415_v7 }
 0x5ad   :  { %v689_v16 = vld.sshfl [vmem:[#allocation4 + $0x18] sm:$0x3 pattern:$0x76325410] }
 0x5ae   :  { %v461_v12 = vcombine.low %v423_v10, %v422_v9  ;;  %v424_v13 = vcombine.high %v422_v9, %v422_v9  ;;  %v468_v14 = vrot.slane %v460_v11, %v891_v59 }
 0x5b0   :  { %v475_v15 = vrot.slane %v461_v12, %v891_v59  ;;  %v477_v18 = vcombine.low %v424_v13, %v689_v16 }
 0x5b2   :  { %v476_v17 = vcombine.low %v468_v14, %v475_v15  ;;  %v484_v19 = vrot.slane %v477_v18, %v891_v59 }
 0x5b4   :  { %747 = vmatmul.mubr.msk.f32.gmra.mxu0 %vm17_vm0, %v476_v17 }
 0x5b5   :  { %749 = vmatprep.mubr.msk.f32.mxu0 %vm796_vm5, %v792_v2 }
 0x5b8   :  { %750 = vmatmul.mubr.msk.f32.gmra.mxu0 %vm17_vm0, %v484_v19 }
 0x674   :  { %v562_v20 = vpop.f32.mrf.mxu0 }
 0x675   :  { %v563_v22 = vadd.f32 %v917_v21, %v562_v20 }
 0x676   :  { %v748_v23 = vpop.f32.mrf.mxu0 }
 0x677   :  { %v591_v24 = vcombine.high %v563_v22, %v563_v22  ;;  %v598_v26 = vrot.slane %v563_v22, %v891_v59 }
 0x678   :  { %v567_v27 = vpop.f32.mrf.mxu0 }
 0x679   :  { %v605_v28 = vrot.slane %v591_v24, %v891_v59  ;;  %v606_v29 = vcombine.high %v598_v26, %v598_v26  ;;  %v639_v30 = vrot.slane %v598_v26, %v891_v59  ;;  %v568_v2 = vadd.f32 %v917_v21, %v567_v27 }
 0x67a   :  { %v751_v31 = vpop.f32.mrf.mxu0 }
 0x67b   :  { %v640_v32 = vcombine.low %v606_v29, %v605_v28  ;;  %671 = vst.msk [vmem:[%s982_s4 + $0x8] sm:$0x3] %vm670_vm7, %v639_v30  ;;  %v607_v33 = vcombine.high %v605_v28, %v605_v28  ;;  %v614_v34 = vrot.slane %v568_v2, %v891_v59 }
 0x67d   :  { %v615_v35 = vcombine.high %v614_v34, %v614_v34  ;;  %v641_v36 = vcombine.low %v607_v33, %v614_v34  ;;  %v648_v37 = vrot.slane %v640_v32, %v891_v59 }
 0x67f   :  { %v655_v38 = vrot.slane %v641_v36, %v891_v59  ;;  %v663_v39 = vrot.slane %v615_v35, %v891_v59 }
 0x681   :  { %v656_v40 = vcombine.low %v648_v37, %v655_v38  ;;  %673 = vst.msk [vmem:[%s982_s4 + $0x18] sm:$0x3] %vm670_vm7, %v663_v39 }
 0x683   :  { %672 = vst.msk [vmem:[%s982_s4 + $0x10] sm:$0xff] %vm668_vm6, %v656_v40 }

// kernel: bert_lstm_forward.2
= control target key start
LH: loop header
LB: loop body
LE: loop exit
PB: predicated region body
PF: predicated region fallthrough
CT: control target
= control target key end

     0   :  { %s8646_s27 = smov 0   ;;  %s14454_s0 = inlined_call_operand.vmem [shape: bf16[20,146,768], index: 0, kind: input, shape index: {}]   ;;  %s14455_s1 = inlined_call_operand.vmem [shape: f32[20,146], index: 1, kind: input, shape index: {}]   ;;  %s14456_s2 = inlined_call_operand.vmem [shape: f32[20,32], index: 2, kind: input, shape index: {}]   ;;  %s14457_s3 = inlined_call_operand.vmem [shape: bf16[768,768], index: 3, kind: input, shape index: {}]   ;;  %s14458_s4 = inlined_call_operand.vmem [shape: f32[1,768], index: 4, kind: input, shape index: {}]   ;;  %s14459_s5 = inlined_call_operand.vmem [shape: bf16[32,128], index: 5, kind: input, shape index: {}]   ;;  %s14460_s6 = inlined_call_operand.vmem [shape: bf16[768,128], index: 6, kind: input, shape index: {}]   ;;  %s14461_s7 = inlined_call_operand.vmem [shape: f32[1,128], index: 7, kind: input, shape index: {}]   ;;  %s14462_s8 = inlined_call_operand.vmem [shape: f32[20,128], index: 8, kind: output, shape index: {}]  }
   0x1 LB: > { %s8652_s28 = sadd.s32 4294967295, %s8597_s27   ;;  %p7639_p0 = scmp.ge.s32.totalorder %s8597_s27, 1  ;;  %s8597_s27 = sphi %s8646_s27, %s18_s27  }
   0x2   : > { %p295_p1 = scmp.lt.s32.totalorder %s8597_s27, 4 }
   0x4   : > { %p296_p2 = pnand %p7639_p0, %p295_p1 }
   0x6   : > { %299 = sbr.rel (%p296_p2) target bundleno = 1607 (0x647), region = 52 }
   0xb   : > { %p363_p3 = scmp.lt.s32.totalorder %s8652_s28, 2  ;;  %v1753_v0 = vlaneseq  ;;  %s7640_s12 = sshll.u32 %s8652_s28, 3  ;;  %vm1747_vm0 = vcmask 146432   ;;  %vm3338_vm1 = vcmask 1041408   ;;  %vm5059_vm2 = vcmask 1041409  }
   0xc   : > { %p351_p4 = scmp.lt.s32.totalorder %s7640_s12, 19  ;;  %vm5062_vm3 = vcmask 1042434   ;;  %vm5065_vm4 = vcmask 1043459   ;;  %vm5068_vm5 = vcmask 1044484   ;;  %vm5071_vm6 = vcmask 1045509  }
   0xd   : > { %s8658_s29 = scalar_select %p363_p3, %s8652_s28, 2  ;;  %v8660_v1 = vshrl.u32 %v1753_v0, 7  ;;  %vm5074_vm7 = vcmask 1046534   ;;  %vm5077_vm8 = vcmask 1047559   ;;  %vm8600_vm9 = vmmov 0  }
   0xe   : > { %s15678_s12 = smov (!%p351_p4, %s7640_s12), 19  ;;  %vm7505_vm10 = vcmask 261120  }
   0xf   : > { %14729 = vst [vmem:[#allocation2_spill] sm:$0xff] %v8660_v1  ;;  %s7988_s30 = sshll.u32 %s8658_s29, 4  ;;  %v8664_v2 = vsub.s32 2, %v8660_v1  ;;  %v8667_v3 = vsub.s32 1, %v8660_v1  ;;  %v8684_v7 = vsub.s32 0, %v8660_v1  ;;  %v8692_v9 = vsub.s32 3, %v8660_v1 }
  0x10   : > { %s8672_s11 = scalar_lea.vmem %s14455_s1, %s7988_s30  ;;  %v8702_v11 = vsub.s32 4, %v8660_v1  ;;  %v8713_v13 = vsub.s32 5, %v8660_v1  ;;  %v14464_v15 = vsub.s32 6, %v8660_v1  ;;  %s8066_s13 = smul.u32 456, %s15678_s12  ;;  %v14463_v19 = vsub.s32 7, %v8660_v1 }
  0x11   : > { %14730 = vst [vmem:[#allocation3_spill] sm:$0xff] %v8664_v2  ;;  %14731 = vst [vmem:[#allocation4_spill] sm:$0xff] %v8667_v3  ;;  %v1745_v4 = vld [vmem:[%s8672_s11] sm:$0xff]  ;;  %s7644_s28 = sshll.u32 %s8658_s29, 3 }
  0x12   : > { %v8676_v5 = vrot.slane %v1745_v4, %v8664_v2  ;;  %v8679_v6 = vrot.slane %v1745_v4, %v8667_v3  ;;  %14734 = vst [vmem:[#allocation7_spill] sm:$0xff] %v8684_v7  ;;  %v8689_v8 = vrot.slane %v1745_v4, %v8684_v7  ;;  %14736 = vst [vmem:[#allocation9_spill] sm:$0xff] %v8692_v9  ;;  %s8732_s16 = scalar_lea.vmem %s14454_s0, %s8066_s13  ;;  %s371_s10 = scalar_lea.vmem %s14456_s2, %s7644_s28 }
  0x13   : > { %v8697_v10 = vrot.slane %v1745_v4, %v8692_v9  ;;  %14737 = vst [vmem:[#allocation10_spill] sm:$0xff] %v8702_v11  ;;  %v8707_v12 = vrot.slane %v1745_v4, %v8702_v11  ;;  %14739 = vst [vmem:[#allocation12_spill] sm:$0xff] %v8713_v13  ;;  %v8718_v14 = vrot.slane %v1745_v4, %v8713_v13  ;;  %v8737_v17 = vld [vmem:[%s8732_s16 + $0x390] sm:$0xff]  ;;  %v8740_v18 = vld [vmem:[%s8732_s16 + $0x398] sm:$0xff] }
  0x14   : > { %14732 = vst [vmem:[#allocation5_spill] sm:$0xff] %v8676_v5  ;;  %14733 = vst [vmem:[#allocation6_spill] sm:$0xff] %v8679_v6  ;;  %1922 = vbcast.lane.b32.xlu1 %v8676_v5, 256  ;;  %1840 = vbcast.lane.b32.xlu0 %v8679_v6, 256  ;;  %v8727_v16 = vrot.slane %v1745_v4, %v14464_v15  ;;  %v8744_v20 = vld [vmem:[%s8732_s16 + $0x3a0] sm:$0xff]  ;;  %v8747_v21 = vld [vmem:[%s8732_s16 + $0x1c8] sm:$0xff]  ;;  %v8765_v26 = vrot.slane %v1745_v4, %v14463_v19 }
  0x15   : > { %14735 = vst [vmem:[#allocation8_spill] sm:$0xff] %v8689_v8  ;;  %14738 = vst [vmem:[#allocation11_spill] sm:$0xff] %v8707_v12  ;;  %v8750_v22 = vld [vmem:[%s8732_s16 + $0x1d0] sm:$0xff]  ;;  %v8753_v23 = vld [vmem:[%s8732_s16 + $0x1d8] sm:$0xff] }
  0x16   : > { %14740 = vst [vmem:[#allocation13_spill] sm:$0xff] %v8718_v14  ;;  %14741 = vst [vmem:[#allocation14_spill] sm:$0xff] %v8727_v16  ;;  %v8758_v24 = vld [vmem:[%s8732_s16 + $0x3a8] sm:$0xff]  ;;  %v8761_v25 = vld [vmem:[%s8732_s16 + $0x3b0] sm:$0xff] }
  0x17   : > { %14742 = vst [vmem:[#allocation15_spill] sm:$0xff] %v8765_v26  ;;  %v8771_v30 = vld [vmem:[%s8732_s16 + $0x3b8] sm:$0xff]  ;;  %v8774_v31 = vld [vmem:[%s8732_s16 + $0x1e0] sm:$0xff]  ;;  %v8777_v32 = vld [vmem:[%s8732_s16 + $0x1e8] sm:$0xff] }
  0x18   : > { %1926 = vbcast.lane.b32.xlu1 %v8676_v5, 264  ;;  %1844 = vbcast.lane.b32.xlu0 %v8679_v6, 264  ;;  %v8784_v37 = vld [vmem:[%s8732_s16 + $0x1f0] sm:$0xff]  ;;  %v8787_v38 = vld [vmem:[%s8732_s16 + $0x18] sm:$0xff]  ;;  %v8790_v39 = vld [vmem:[%s8732_s16 + $0x20] sm:$0xff] }
  0x19   : > { %v8799_v44 = vld [vmem:[%s8732_s16 + $0x28] sm:$0xff]  ;;  %v8802_v45 = vld [vmem:[%s8732_s16] sm:$0xff]  ;;  %v8812_v51 = vld [vmem:[%s8732_s16 + $0x10] sm:$0xff] }
  0x1a   : > { %v8809_v50 = vld [vmem:[%s8732_s16 + $0x8] sm:$0xff]  ;;  %v8819_v56 = vld [vmem:[%s8732_s16 + $0x558] sm:$0xff]  ;;  %v8822_v57 = vld [vmem:[%s8732_s16 + $0x560] sm:$0xff] }
  0x1b   : > { %v8835_v19 = vld [vmem:[%s8732_s16 + $0x568] sm:$0xff]  ;;  %v8838_v15 = vld [vmem:[%s8732_s16 + $0x1f8] sm:$0xff]  ;;  %v8841_v61 = vld [vmem:[%s8732_s16 + $0x200] sm:$0xff] }
  0x1c   : > { %1762 = vbcast.lane.b32.xlu1 %v8689_v8, 264  ;;  %1758 = vbcast.lane.b32.xlu0 %v8689_v8, 256  ;;  %v8848_v63 = vld [vmem:[%s8732_s16 + $0x208] sm:$0xff]  ;;  %v8851_v4 = vld [vmem:[%s8732_s16 + $0x3c0] sm:$0xff]  ;;  %v8861_v53 = vld [vmem:[%s8732_s16 + $0x3d0] sm:$0xff] }
  0x1d   : > { %v8854_v58 = vld [vmem:[%s8732_s16 + $0x3c8] sm:$0xff]  ;;  %v8864_v62 = vld [vmem:[%s8732_s16 + $0x570] sm:$0xff]  ;;  %v8871_v54 = vld [vmem:[%s8732_s16 + $0x578] sm:$0xff] }
  0x1e   : > { %v8874_v60 = vld [vmem:[%s8732_s16 + $0x580] sm:$0xff]  ;;  %v8887_v43 = vld [vmem:[%s8732_s16 + $0x738] sm:$0xff]  ;;  %v8893_v52 = vld [vmem:[%s8732_s16 + $0x748] sm:$0xff] }
  0x1f   : > { %v8890_v0 = vld [vmem:[%s8732_s16 + $0x740] sm:$0xff]  ;;  %v8903_v46 = vld [vmem:[%s8732_s16 + $0x728] sm:$0xff]  ;;  %v8906_v42 = vld [vmem:[%s8732_s16 + $0x730] sm:$0xff] }
  0x20   : > { %2004 = vbcast.lane.b32.xlu1 %v8697_v10, 256  ;;  %1848 = vbcast.lane.b32.xlu0 %v8679_v6, 272  ;;  %v8900_v47 = vld [vmem:[%s8732_s16 + $0x720] sm:$0xff]  ;;  %14744 = vst [vmem:[#allocation17_spill] sm:$0xff] %v8903_v46  ;;  %14745 = vst [vmem:[#allocation18_spill] sm:$0xff] %v8906_v42  ;;  %v8913_v55 = vld [vmem:[%s8732_s16 + $0x210] sm:$0xff] }
  0x21   : > { %14743 = vst [vmem:[#allocation16_spill] sm:$0xff] %v8900_v47  ;;  %14746 = vst [vmem:[#allocation19_spill] sm:$0xff] %v8913_v55  ;;  %v8916_v48 = vld [vmem:[%s8732_s16 + $0x218] sm:$0xff]  ;;  %v8925_v49 = vld [vmem:[%s8732_s16 + $0x220] sm:$0xff] }
  0x22   : > { %14747 = vst [vmem:[#allocation20_spill] sm:$0xff] %v8916_v48  ;;  %14748 = vst [vmem:[#allocation21_spill] sm:$0xff] %v8925_v49  ;;  %v8928_v59 = vld [vmem:[%s8732_s16 + $0x30] sm:$0xff]  ;;  %v8935_v35 = vld [vmem:[%s8732_s16 + $0x38] sm:$0xff] }
  0x23   : > { %14749 = vst [vmem:[#allocation22_spill] sm:$0xff] %v8928_v59  ;;  %14750 = vst [vmem:[#allocation23_spill] sm:$0xff] %v8935_v35  ;;  %v8946_v1 = vld [vmem:[%s8732_s16 + $0x40] sm:$0xff]  ;;  %v8949_v41 = vld [vmem:[%s8732_s16 + $0x588] sm:$0xff] }
  0x24   : > { %1930 = vbcast.lane.b32.xlu1 %v8676_v5, 272  ;;  %2008 = vbcast.lane.b32.xlu0 %v8697_v10, 264  ;;  %14751 = vst [vmem:[#allocation24_spill] sm:$0xff] %v8946_v1  ;;  %14752 = vst [vmem:[#allocation25_spill] sm:$0xff] %v8949_v41  ;;  %v8952_v40 = vld [vmem:[%s8732_s16 + $0x590] sm:$0xff]  ;;  %v8961_v27 = vld [vmem:[%s8732_s16 + $0x8e8] sm:$0xff] }
  0x25   : > { %14753 = vst [vmem:[#allocation26_spill] sm:$0xff] %v8952_v40  ;;  %14754 = vst [vmem:[#allocation27_spill] sm:$0xff] %v8961_v27  ;;  %v8964_v28 = vld [vmem:[%s8732_s16 + $0x8f0] sm:$0xff]  ;;  %v8967_v13 = vld [vmem:[%s8732_s16 + $0x8f8] sm:$0xff] }
  0x26   : > { %14755 = vst [vmem:[#allocation28_spill] sm:$0xff] %v8964_v28  ;;  %14756 = vst [vmem:[#allocation29_spill] sm:$0xff] %v8967_v13  ;;  %v8970_v11 = vld [vmem:[%s8732_s16 + $0x598] sm:$0xff]  ;;  %v8980_v33 = vld [vmem:[%s8732_s16 + $0x3e0] sm:$0xff] }
  0x27   : > { %14757 = vst [vmem:[#allocation30_spill] sm:$0xff] %v8970_v11  ;;  %v8977_v7 = vld [vmem:[%s8732_s16 + $0x3d8] sm:$0xff]  ;;  %14759 = vst [vmem:[#allocation32_spill] sm:$0xff] %v8980_v33  ;;  %v8987_v9 = vld [vmem:[%s8732_s16 + $0x3e8] sm:$0xff] }
  0x28   : > { %2090 = vbcast.lane.b32.xlu1 %v8707_v12, 264  ;;  %2086 = vbcast.lane.b32.xlu0 %v8707_v12, 256  ;;  %14758 = vst [vmem:[#allocation31_spill] sm:$0xff] %v8977_v7  ;;  %14760 = vst [vmem:[#allocation33_spill] sm:$0xff] %v8987_v9  ;;  %v8990_v48 = vld [vmem:[%s8732_s16 + $0x900] sm:$0xff]  ;;  %v8997_v3 = vld [vmem:[%s8732_s16 + $0x908] sm:$0xff] }
  0x29   : > { %14761 = vst [vmem:[#allocation34_spill] sm:$0xff] %v8990_v48  ;;  %14762 = vst [vmem:[#allocation35_spill] sm:$0xff] %v8997_v3  ;;  %v9010_v35 = vld [vmem:[%s8732_s16 + $0x910] sm:$0xff]  ;;  %v9016_v29 = vld [vmem:[%s8732_s16 + $0x758] sm:$0xff] }
  0x2a   : > { %14763 = vst [vmem:[#allocation36_spill] sm:$0xff] %v9010_v35  ;;  %v9013_v42 = vld [vmem:[%s8732_s16 + $0x750] sm:$0xff]  ;;  %14765 = vst [vmem:[#allocation38_spill] sm:$0xff] %v9016_v29  ;;  %v9026_v1 = vld [vmem:[%s8732_s16 + $0xab8] sm:$0xff] }
  0x2b   : > { %14764 = vst [vmem:[#allocation37_spill] sm:$0xff] %v9013_v42  ;;  %v9023_v40 = vld [vmem:[%s8732_s16 + $0xab0] sm:$0xff]  ;;  %14767 = vst [vmem:[#allocation40_spill] sm:$0xff] %v9026_v1  ;;  %v9029_v41 = vld [vmem:[%s8732_s16 + $0xac0] sm:$0xff] }
  0x2c   : > { %1852 = vbcast.lane.b32.xlu1 %v8679_v6, 280  ;;  %1766 = vbcast.lane.b32.xlu0 %v8689_v8, 272  ;;  %14766 = vst [vmem:[#allocation39_spill] sm:$0xff] %v9023_v40  ;;  %14768 = vst [vmem:[#allocation41_spill] sm:$0xff] %v9029_v41  ;;  %v9032_v13 = vld [vmem:[%s8732_s16 + $0x760] sm:$0xff]  ;;  %v9039_v55 = vld [vmem:[%s8732_s16 + $0x48] sm:$0xff] }
  0x2d   : > { %14769 = vst [vmem:[#allocation42_spill] sm:$0xff] %v9032_v13  ;;  %14770 = vst [vmem:[#allocation43_spill] sm:$0xff] %v9039_v55  ;;  %v9042_v7 = vld [vmem:[%s8732_s16 + $0x50] sm:$0xff]  ;;  %v9051_v9 = vld [vmem:[%s8732_s16 + $0x58] sm:$0xff] }
  0x2e   : > { %14771 = vst [vmem:[#allocation44_spill] sm:$0xff] %v9042_v7  ;;  %14772 = vst [vmem:[#allocation45_spill] sm:$0xff] %v9051_v9  ;;  %v9054_v2 = vld [vmem:[%s8732_s16 + $0xac8] sm:$0xff]  ;;  %v9061_v28 = vld [vmem:[%s8732_s16 + $0xad0] sm:$0xff] }
  0x2f   : > { %14773 = vst [vmem:[#allocation46_spill] sm:$0xff] %v9054_v2  ;;  %14774 = vst [vmem:[#allocation47_spill] sm:$0xff] %v9061_v28  ;;  %v9064_v36 = vld [vmem:[%s8732_s16 + $0xad8] sm:$0xff]  ;;  %v9075_v35 = vld [vmem:[%s8732_s16 + $0x5a0] sm:$0xff] }
  0x30   : > { %2168 = vbcast.lane.b32.xlu1 %v8718_v14, 256  ;;  %2012 = vbcast.lane.b32.xlu0 %v8697_v10, 272  ;;  %14775 = vst [vmem:[#allocation48_spill] sm:$0xff] %v9064_v36  ;;  %14776 = vst [vmem:[#allocation49_spill] sm:$0xff] %v9075_v35  ;;  %v9078_v34 = vld [vmem:[%s8732_s16 + $0x5a8] sm:$0xff]  ;;  %v9081_v3 = vld [vmem:[%s8732_s16 + $0x5b0] sm:$0xff] }
  0x31   : > { %14777 = vst [vmem:[#allocation50_spill] sm:$0xff] %v9078_v34  ;;  %14778 = vst [vmem:[#allocation51_spill] sm:$0xff] %v9081_v3  ;;  %v9090_v27 = vld [vmem:[%s8732_s16 + $0x228] sm:$0xff]  ;;  %v9093_v48 = vld [vmem:[%s8732_s16 + $0x230] sm:$0xff] }
  0x32   : > { %14779 = vst [vmem:[#allocation52_spill] sm:$0xff] %v9090_v27  ;;  %14780 = vst [vmem:[#allocation53_spill] sm:$0xff] %v9093_v48  ;;  %v9096_v29 = vld [vmem:[%s8732_s16 + $0x238] sm:$0xff]  ;;  %v9106_v55 = vld [vmem:[%s8732_s16 + $0x920] sm:$0xff] }
  0x33   : > { %14781 = vst [vmem:[#allocation54_spill] sm:$0xff] %v9096_v29  ;;  %v9103_v11 = vld [vmem:[%s8732_s16 + $0x918] sm:$0xff]  ;;  %14783 = vst [vmem:[#allocation56_spill] sm:$0xff] %v9106_v55  ;;  %v9116_v1 = vld [vmem:[%s8732_s16 + $0xc80] sm:$0xff] }
  0x34   : > { %1934 = vbcast.lane.b32.xlu1 %v8676_v5, 280  ;;  %2172 = vbcast.lane.b32.xlu0 %v8718_v14, 264  ;;  %14782 = vst [vmem:[#allocation55_spill] sm:$0xff] %v9103_v11  ;;  %v9113_v7 = vld [vmem:[%s8732_s16 + $0xc78] sm:$0xff]  ;;  %14785 = vst [vmem:[#allocation58_spill] sm:$0xff] %v9116_v1  ;;  %v9123_v13 = vld [vmem:[%s8732_s16 + $0xc88] sm:$0xff] }
  0x35   : > { %14784 = vst [vmem:[#allocation57_spill] sm:$0xff] %v9113_v7  ;;  %14786 = vst [vmem:[#allocation59_spill] sm:$0xff] %v9123_v13  ;;  %v9126_v40 = vld [vmem:[%s8732_s16 + $0x928] sm:$0xff]  ;;  %v9139_v2 = vld [vmem:[%s8732_s16 + $0x3f0] sm:$0xff] }
  0x36   : > { %14787 = vst [vmem:[#allocation60_spill] sm:$0xff] %v9126_v40  ;;  %14788 = vst [vmem:[#allocation61_spill] sm:$0xff] %v9139_v2  ;;  %v9142_v59 = vld [vmem:[%s8732_s16 + $0x3f8] sm:$0xff]  ;;  %v9145_v33 = vld [vmem:[%s8732_s16 + $0x400] sm:$0xff] }
  0x37   : > { %14789 = vst [vmem:[#allocation62_spill] sm:$0xff] %v9142_v59  ;;  %14790 = vst [vmem:[#allocation63_spill] sm:$0xff] %v9145_v33  ;;  %v9152_v36 = vld [vmem:[%s8732_s16 + $0xc90] sm:$0xff]  ;;  %v9155_v28 = vld [vmem:[%s8732_s16 + $0xc98] sm:$0xff] }
  0x38   : > { %2250 = vbcast.lane.b32.xlu1 %v8727_v16, 256  ;;  %2094 = vbcast.lane.b32.xlu0 %v8707_v12, 272  ;;  %14791 = vst [vmem:[#allocation64_spill] sm:$0xff] %v9152_v36  ;;  %14792 = vst [vmem:[#allocation65_spill] sm:$0xff] %v9155_v28  ;;  %v9158_v48 = vld [vmem:[%s8732_s16 + $0xca0] sm:$0xff]  ;;  %v9168_v35 = vld [vmem:[%s8732_s16 + $0xae8] sm:$0xff] }
  0x39   : > { %14793 = vst [vmem:[#allocation66_spill] sm:$0xff] %v9158_v48  ;;  %v9165_v42 = vld [vmem:[%s8732_s16 + $0xae0] sm:$0xff]  ;;  %14795 = vst [vmem:[#allocation68_spill] sm:$0xff] %v9168_v35  ;;  %v9177_v7 = vld [vmem:[%s8732_s16 + $0xaf0] sm:$0xff] }
  0x3a   : > { %14794 = vst [vmem:[#allocation67_spill] sm:$0xff] %v9165_v42  ;;  %14796 = vst [vmem:[#allocation69_spill] sm:$0xff] %v9177_v7  ;;  %v9180_v41 = vld [vmem:[%s8732_s16 + $0x768] sm:$0xff]  ;;  %v9187_v27 = vld [vmem:[%s8732_s16 + $0x770] sm:$0xff] }
  0x3b   : > { %14797 = vst [vmem:[#allocation70_spill] sm:$0xff] %v9180_v41  ;;  %14798 = vst [vmem:[#allocation71_spill] sm:$0xff] %v9187_v27  ;;  %v9190_v3 = vld [vmem:[%s8732_s16 + $0x778] sm:$0xff]  ;;  %v9201_v40 = vld [vmem:[%s8732_s16 + $0x240] sm:$0xff] }
  0x3c   : > { %1770 = vbcast.lane.b32.xlu1 %v8689_v8, 280  ;;  %2254 = vbcast.lane.b32.xlu0 %v8727_v16, 264  ;;  %14799 = vst [vmem:[#allocation72_spill] sm:$0xff] %v9190_v3  ;;  %14800 = vst [vmem:[#allocation73_spill] sm:$0xff] %v9201_v40  ;;  %v9204_v9 = vld [vmem:[%s8732_s16 + $0x248] sm:$0xff]  ;;  %v9207_v13 = vld [vmem:[%s8732_s16 + $0x250] sm:$0xff] }
  0x3d   : > { %14801 = vst [vmem:[#allocation74_spill] sm:$0xff] %v9204_v9  ;;  %14802 = vst [vmem:[#allocation75_spill] sm:$0xff] %v9207_v13  ;;  %v9216_v29 = vld [vmem:[%s8732_s16 + $0x60] sm:$0xff]  ;;  %v9219_v1 = vld [vmem:[%s8732_s16 + $0x68] sm:$0xff] }
  0x3e   : > { %14803 = vst [vmem:[#allocation76_spill] sm:$0xff] %v9216_v29  ;;  %14804 = vst [vmem:[#allocation77_spill] sm:$0xff] %v9219_v1  ;;  %v9222_v28 = vld [vmem:[%s8732_s16 + $0x70] sm:$0xff]  ;;  %v9236_v36 = vld [vmem:[%s8732_s16 + $0x938] sm:$0xff] }
  0x3f   : > { %14805 = vst [vmem:[#allocation78_spill] sm:$0xff] %v9222_v28  ;;  %v9229_v48 = vld [vmem:[%s8732_s16 + $0x930] sm:$0xff]  ;;  %14807 = vst [vmem:[#allocation80_spill] sm:$0xff] %v9236_v36  ;;  %v9239_v33 = vld [vmem:[%s8732_s16 + $0x940] sm:$0xff] }
  0x40   : > { %2016 = vbcast.lane.b32.xlu1 %v8697_v10, 280  ;;  %1856 = vbcast.lane.b32.xlu0 %v8679_v6, 288  ;;  %14806 = vst [vmem:[#allocation79_spill] sm:$0xff] %v9229_v48  ;;  %14808 = vst [vmem:[#allocation81_spill] sm:$0xff] %v9239_v33  ;;  %v9246_v11 = vld [vmem:[%s8732_s16 + $0x5b8] sm:$0xff]  ;;  %v9255_v55 = vld [vmem:[%s8732_s16 + $0x5c0] sm:$0xff] }
  0x41   : > { %14809 = vst [vmem:[#allocation82_spill] sm:$0xff] %v9246_v11  ;;  %14810 = vst [vmem:[#allocation83_spill] sm:$0xff] %v9255_v55  ;;  %v9258_v2 = vld [vmem:[%s8732_s16 + $0x5c8] sm:$0xff]  ;;  %v9268_v42 = vld [vmem:[%s8732_s16 + $0x410] sm:$0xff] }
  0x42   : > { %14811 = vst [vmem:[#allocation84_spill] sm:$0xff] %v9258_v2  ;;  %v9261_v40 = vld [vmem:[%s8732_s16 + $0x408] sm:$0xff]  ;;  %14813 = vst [vmem:[#allocation86_spill] sm:$0xff] %v9268_v42  ;;  %v9271_v9 = vld [vmem:[%s8732_s16 + $0x418] sm:$0xff] }
  0x43   : > { %14812 = vst [vmem:[#allocation85_spill] sm:$0xff] %v9261_v40  ;;  %14814 = vst [vmem:[#allocation87_spill] sm:$0xff] %v9271_v9  ;;  %v1746_v34 = vld [vmem:[%s8672_s11 + $0x8] sm:$0xff]  ;;  %v9291_v41 = vld [vmem:[%s8732_s16 + $0xcb0] sm:$0xff] }
  0x44   : > { %2332 = vbcast.lane.b32.xlu1 %v8765_v26, 256  ;;  %2176 = vbcast.lane.b32.xlu0 %v8718_v14, 272  ;;  %v9278_v29 = vld [vmem:[%s8732_s16 + $0xca8] sm:$0xff]  ;;  %14816 = vst [vmem:[#allocation89_spill] sm:$0xff] %v9291_v41  ;;  %v9294_v27 = vld [vmem:[%s8732_s16 + $0xcb8] sm:$0xff]  ;;  %v1748_v7 = vsel %vm1747_vm0, %v1746_v34, 0.0 }
  0x45   : > { %14815 = vst [vmem:[#allocation88_spill] sm:$0xff] %v9278_v29  ;;  %14817 = vst [vmem:[#allocation90_spill] sm:$0xff] %v9294_v27  ;;  %v9297_v1 = vld [vmem:[%s8732_s16 + $0xaf8] sm:$0xff]  ;;  %v9304_v13 = vld [vmem:[%s8732_s16 + $0xb00] sm:$0xff] }
  0x46   : > { %14818 = vst [vmem:[#allocation91_spill] sm:$0xff] %v9297_v1  ;;  %14819 = vst [vmem:[#allocation92_spill] sm:$0xff] %v9304_v13  ;;  %v9307_v59 = vld [vmem:[%s8732_s16 + $0xb08] sm:$0xff]  ;;  %v9310_v55 = vld [vmem:[%s8732_s16 + $0x780] sm:$0xff] }
  0x47   : > { %14820 = vst [vmem:[#allocation93_spill] sm:$0xff] %v9307_v59  ;;  %14821 = vst [vmem:[#allocation94_spill] sm:$0xff] %v9310_v55  ;;  %v9317_v2 = vld [vmem:[%s8732_s16 + $0x788] sm:$0xff]  ;;  %v9320_v3 = vld [vmem:[%s8732_s16 + $0x790] sm:$0xff] }
  0x48   : > { %1938 = vbcast.lane.b32.xlu1 %v8676_v5, 288  ;;  %2336 = vbcast.lane.b32.xlu0 %v8765_v26, 264  ;;  %14822 = vst [vmem:[#allocation95_spill] sm:$0xff] %v9317_v2  ;;  %14823 = vst [vmem:[#allocation96_spill] sm:$0xff] %v9320_v3  ;;  %v9327_v48 = vld [vmem:[%s8732_s16 + $0x258] sm:$0xff]  ;;  %v9330_v33 = vld [vmem:[%s8732_s16 + $0x260] sm:$0xff] }
  0x49   : > { %14824 = vst [vmem:[#allocation97_spill] sm:$0xff] %v9327_v48  ;;  %14825 = vst [vmem:[#allocation98_spill] sm:$0xff] %v9330_v33  ;;  %v8589_v34 = vld [vmem:[%s8672_s11] sm:$0xff]  ;;  %v9345_v36 = vld [vmem:[%s8732_s16 + $0x268] sm:$0xff]  ;;  %v14857_v33 = vunpack.c.l.bf16 %v8740_v18  ;;  %v14859_v48 = vunpack.c.l.bf16 %v8744_v20 }
  0x4a   : > { %v9338_v11 = vadd.f32 %v8589_v34, %v1748_v7  ;;  %14827 = vst [vmem:[#allocation100_spill] sm:$0xff] %v9345_v36  ;;  %v9348_v28 = vld [vmem:[%s8732_s16 + $0x78] sm:$0xff]  ;;  %v9351_v41 = vld [vmem:[%s8732_s16 + $0x80] sm:$0xff]  ;;  %v9358_v29 = vld [vmem:[%s8732_s16 + $0x88] sm:$0xff] }
  0x4b   : > { %14828 = vst [vmem:[#allocation101_spill] sm:$0xff] %v9348_v28  ;;  %14829 = vst [vmem:[#allocation102_spill] sm:$0xff] %v9351_v41  ;;  %v9361_v42 = vld [vmem:[%s8732_s16 + $0x948] sm:$0xff]  ;;  %v9364_v40 = vld [vmem:[%s8732_s16 + $0x950] sm:$0xff] }
  0x4c   : > { %2258 = vbcast.lane.b32.xlu1 %v8727_v16, 272  ;;  %2098 = vbcast.lane.b32.xlu0 %v8707_v12, 280  ;;  %14826 = vst [vmem:[#allocation99_spill] sm:$0xff] %v9338_v11  ;;  %14830 = vst [vmem:[#allocation103_spill] sm:$0xff] %v9358_v29  ;;  %v9371_v34 = vld [vmem:[%s8732_s16 + $0x958] sm:$0xff]  ;;  %v9374_v9 = vld [vmem:[%s8732_s16 + $0x5d0] sm:$0xff] }
  0x4d   : > { %14831 = vst [vmem:[#allocation104_spill] sm:$0xff] %v9361_v42  ;;  %14832 = vst [vmem:[#allocation105_spill] sm:$0xff] %v9364_v40  ;;  %v9387_v27 = vld [vmem:[%s8732_s16 + $0x5d8] sm:$0xff]  ;;  %v9390_v13 = vld [vmem:[%s8732_s16 + $0x5e0] sm:$0xff] }
  0x4e   : > { %14833 = vst [vmem:[#allocation106_spill] sm:$0xff] %v9371_v34  ;;  %14834 = vst [vmem:[#allocation107_spill] sm:$0xff] %v9374_v9  ;;  %v9393_v1 = vld [vmem:[%s8732_s16 + $0x420] sm:$0xff]  ;;  %v9400_v55 = vld [vmem:[%s8732_s16 + $0x428] sm:$0xff]  ;;  %v14856_v9 = vunpack.c.h.bf16 %v8737_v17 }
  0x4f   : > { %14835 = vst [vmem:[#allocation108_spill] sm:$0xff] %v9387_v27  ;;  %14836 = vst [vmem:[#allocation109_spill] sm:$0xff] %v9390_v13  ;;  %v9403_v59 = vld [vmem:[%s8732_s16 + $0x430] sm:$0xff]  ;;  %v9406_v28 = vld [vmem:[%s8732_s16 + $0xcc0] sm:$0xff]  ;;  %v14872_v27 = vunpack.c.h.bf16 %v8761_v25 }
  0x50   : > { %1860 = vbcast.lane.b32.xlu1 %v8679_v6, 296  ;;  %1774 = vbcast.lane.b32.xlu0 %v8689_v8, 288  ;;  %14837 = vst [vmem:[#allocation110_spill] sm:$0xff] %v9393_v1  ;;  %14838 = vst [vmem:[#allocation111_spill] sm:$0xff] %v9400_v55  ;;  %v9413_v7 = vld [vmem:[%s8732_s16 + $0xcc8] sm:$0xff]  ;;  %v9416_v3 = vld [vmem:[%s8732_s16 + $0xcd0] sm:$0xff]  ;;  %v14871_v1 = vunpack.c.l.bf16 %v8761_v25 }
  0x51   : > { %14839 = vst [vmem:[#allocation112_spill] sm:$0xff] %v9403_v59  ;;  %14840 = vst [vmem:[#allocation113_spill] sm:$0xff] %v9406_v28  ;;  %v9425_v2 = vld [vmem:[%s8732_s16 + $0xb10] sm:$0xff]  ;;  %v9428_v40 = vld [vmem:[%s8732_s16 + $0xb18] sm:$0xff] }
  0x52   : > { %14841 = vst [vmem:[#allocation114_spill] sm:$0xff] %v9413_v7  ;;  %14842 = vst [vmem:[#allocation115_spill] sm:$0xff] %v9416_v3  ;;  %v9435_v11 = vld [vmem:[%s8732_s16 + $0xb20] sm:$0xff]  ;;  %v9438_v36 = vld [vmem:[%s8732_s16 + $0x798] sm:$0xff]  ;;  %v14873_v7 = vunpack.c.l.bf16 %v8771_v30 }
  0x53   : > { %14843 = vst [vmem:[#allocation116_spill] sm:$0xff] %v9425_v2  ;;  %14844 = vst [vmem:[#allocation117_spill] sm:$0xff] %v9428_v40  ;;  %v9445_v49 = vld [vmem:[%s8732_s16 + $0x7a0] sm:$0xff]  ;;  %v9448_v41 = vld [vmem:[%s8732_s16 + $0x7a8] sm:$0xff] }
  0x54   : > { %2180 = vbcast.lane.b32.xlu1 %v8718_v14, 280  ;;  %2020 = vbcast.lane.b32.xlu0 %v8697_v10, 288  ;;  %14845 = vst [vmem:[#allocation118_spill] sm:$0xff] %v9435_v11  ;;  %14846 = vst [vmem:[#allocation119_spill] sm:$0xff] %v9438_v36  ;;  %v9465_v28 = vld [vmem:[%s8732_s16 + $0x270] sm:$0xff]  ;;  %v9468_v59 = vld [vmem:[%s8732_s16 + $0x278] sm:$0xff]  ;;  %v14855_v11 = vunpack.c.l.bf16 %v8737_v17 }
  0x55   : > { %14847 = vst [vmem:[#allocation120_spill] sm:$0xff] %v9445_v49  ;;  %14848 = vst [vmem:[#allocation121_spill] sm:$0xff] %v9448_v41  ;;  %v9471_v34 = vld [vmem:[%s8732_s16 + $0x280] sm:$0xff]  ;;  %v9488_v36 = vld [vmem:[%s8732_s16 + $0x90] sm:$0xff] }
  0x56   : > { %14849 = vst [vmem:[#allocation122_spill] sm:$0xff] %v9465_v28  ;;  %14850 = vst [vmem:[#allocation123_spill] sm:$0xff] %v9468_v59  ;;  %v9491_v42 = vld [vmem:[%s8732_s16 + $0x98] sm:$0xff]  ;;  %v9494_v35 = vld [vmem:[%s8732_s16 + $0xa0] sm:$0xff]  ;;  %v14860_v59 = vunpack.c.h.bf16 %v8744_v20  ;;  %v14861_v28 = vunpack.c.l.bf16 %v8747_v21  ;;  %v14866_v20 = vunpack.c.h.bf16 %v8753_v23 }
  0x57   : > { %14851 = vst [vmem:[#allocation124_spill] sm:$0xff] %v9471_v34  ;;  %14852 = vst [vmem:[#allocation125_spill] sm:$0xff] %v9488_v36  ;;  %v14858_v34 = vunpack.c.h.bf16 %v8740_v18  ;;  %v14864_v18 = vunpack.c.h.bf16 %v8750_v22 }
  0x58   : > { %1942 = vbcast.lane.b32.xlu1 %v8676_v5, 296  ;;  %2340 = vbcast.lane.b32.xlu0 %v8765_v26, 272  ;;  %14853 = vst [vmem:[#allocation126_spill] sm:$0xff] %v9491_v42  ;;  %14854 = vst [vmem:[#allocation127_spill] sm:$0xff] %v9494_v35 }
  0x5c   : > { %2262 = vbcast.lane.b32.xlu1 %v8727_v16, 280  ;;  %2102 = vbcast.lane.b32.xlu0 %v8707_v12, 288 }
  0x60   : > { %1864 = vbcast.lane.b32.xlu1 %v8679_v6, 304  ;;  %1778 = vbcast.lane.b32.xlu0 %v8689_v8, 296 }
  0x64   : > { %2184 = vbcast.lane.b32.xlu1 %v8718_v14, 288  ;;  %2024 = vbcast.lane.b32.xlu0 %v8697_v10, 296 }
  0x68   : > { %1946 = vbcast.lane.b32.xlu1 %v8676_v5, 304  ;;  %2344 = vbcast.lane.b32.xlu0 %v8765_v26, 280 }
  0x6c   : > { %2266 = vbcast.lane.b32.xlu1 %v8727_v16, 288  ;;  %2106 = vbcast.lane.b32.xlu0 %v8707_v12, 296 }
  0x70   : > { %1868 = vbcast.lane.b32.xlu1 %v8679_v6, 312  ;;  %1782 = vbcast.lane.b32.xlu0 %v8689_v8, 304 }
  0x74   : > { %2188 = vbcast.lane.b32.xlu1 %v8718_v14, 296  ;;  %2028 = vbcast.lane.b32.xlu0 %v8697_v10, 304 }
  0x78   : > { %1950 = vbcast.lane.b32.xlu1 %v8676_v5, 312  ;;  %2348 = vbcast.lane.b32.xlu0 %v8765_v26, 288 }
  0x7c   : > { %2270 = vbcast.lane.b32.xlu1 %v8727_v16, 296  ;;  %2110 = vbcast.lane.b32.xlu0 %v8707_v12, 304 }
  0x80   : > { %1872 = vbcast.lane.b32.xlu1 %v8679_v6, 320  ;;  %1786 = vbcast.lane.b32.xlu0 %v8689_v8, 312 }
  0x84   : > { %2192 = vbcast.lane.b32.xlu1 %v8718_v14, 304  ;;  %2032 = vbcast.lane.b32.xlu0 %v8697_v10, 312 }
  0x86   : > { %v1923_v49 = vpop.permute.xlu1 %1922  ;;  %v1841_v55 = vpop.permute.xlu0 %1840 }
  0x87   : > { %v2637_v40 = vmul.f32 %v1923_v49, %v14855_v11  ;;  %v2638_v41 = vmul.f32 %v1923_v49, %v14856_v9  ;;  %v2639_v36 = vmul.f32 %v1923_v49, %v14857_v33  ;;  %v2640_v29 = vmul.f32 %v1923_v49, %v14858_v34 }
  0x88   : > { %v2641_v42 = vmul.f32 %v1923_v49, %v14859_v48  ;;  %v2642_v2 = vmul.f32 %v1923_v49, %v14860_v59  ;;  %v2523_v35 = vmul.f32 %v1841_v55, %v14861_v28  ;;  %v14862_v11 = vunpack.c.h.bf16 %v8747_v21  ;;  %1954 = vbcast.lane.b32.xlu1 %v8676_v5, 320  ;;  %2352 = vbcast.lane.b32.xlu0 %v8765_v26, 296  ;;  %v9531_v28 = vld [vmem:[%s8732_s16 + $0x960] sm:$0xff]  ;;  %v9534_v21 = vld [vmem:[%s8732_s16 + $0x968] sm:$0xff] }
  0x89   : > { %v14863_v9 = vunpack.c.l.bf16 %v8750_v22  ;;  %v2526_v33 = vmul.f32 %v1841_v55, %v14864_v18  ;;  %v14865_v34 = vunpack.c.l.bf16 %v8753_v23  ;;  %v2528_v49 = vmul.f32 %v1841_v55, %v14866_v20  ;;  %14867 = vst [vmem:[#allocation128_spill] sm:$0xff] %v9531_v28  ;;  %14868 = vst [vmem:[#allocation129_spill] sm:$0xff] %v9534_v21 }
  0x8a   : > { %v2524_v3 = vmul.f32 %v1841_v55, %v14862_v11  ;;  %v1927_v59 = vpop.permute.xlu1 %1926  ;;  %v1845_v11 = vpop.permute.xlu0 %1844  ;;  %v14875_v18 = vunpack.c.l.bf16 %v8774_v31 }
  0x8b   : > { %v2525_v17 = vmul.f32 %v1841_v55, %v14863_v9  ;;  %v2527_v48 = vmul.f32 %v1841_v55, %v14865_v34  ;;  %v14869_v34 = vunpack.c.l.bf16 %v8758_v24  ;;  %v14870_v55 = vunpack.c.h.bf16 %v8758_v24 }
  0x8c   : > { %v2645_v13 = vmul.f32 %v1927_v59, %v14871_v1  ;;  %v2646_v46 = vmul.f32 %v1927_v59, %v14872_v27  ;;  %v2647_v47 = vmul.f32 %v1927_v59, %v14873_v7  ;;  %v14874_v9 = vunpack.c.h.bf16 %v8771_v30  ;;  %2274 = vbcast.lane.b32.xlu1 %v8727_v16, 304  ;;  %2114 = vbcast.lane.b32.xlu0 %v8707_v12, 312 }
  0x8d   : > { %v2643_v23 = vmul.f32 %v1927_v59, %v14869_v34  ;;  %v2644_v20 = vmul.f32 %v1927_v59, %v14870_v55  ;;  %v2529_v21 = vmul.f32 %v1845_v11, %v14875_v18  ;;  %v14876_v34 = vunpack.c.h.bf16 %v8774_v31 }
  0x8e   : > { %v2648_v22 = vmul.f32 %v1927_v59, %v14874_v9  ;;  %v9561_v25 = vadd.f32 %v2645_v13, %v2639_v36  ;;  %v9563_v27 = vadd.f32 %v2646_v46, %v2640_v29  ;;  %v9566_v30 = vadd.f32 %v2647_v47, %v2641_v42 }
  0x8f   : > { %v2530_v28 = vmul.f32 %v1845_v11, %v14876_v34  ;;  %v9557_v24 = vadd.f32 %v2643_v23, %v2637_v40  ;;  %v9559_v1 = vadd.f32 %v2644_v20, %v2638_v41  ;;  %v14877_v59 = vunpack.c.l.bf16 %v8777_v32  ;;  %v1763_v40 = vpop.permute.xlu1 %1762  ;;  %v1759_v23 = vpop.permute.xlu0 %1758 }
  0x90   : > { %v9568_v7 = vadd.f32 %v2648_v22, %v2642_v2  ;;  %v14878_v9 = vunpack.c.h.bf16 %v8777_v32  ;;  %v14879_v41 = vunpack.c.l.bf16 %v8784_v37  ;;  %v14880_v29 = vunpack.c.h.bf16 %v8784_v37  ;;  %1876 = vbcast.lane.b32.xlu1 %v8679_v6, 328  ;;  %1790 = vbcast.lane.b32.xlu0 %v8689_v8, 320 }
  0x91   : > { %v2531_v31 = vmul.f32 %v1845_v11, %v14877_v59  ;;  %v3472_v46 = vadd.f32 %v2529_v21, %v2523_v35  ;;  %v3497_v55 = vadd.f32 %v2530_v28, %v2524_v3  ;;  %v14881_v2 = vunpack.c.l.bf16 %v8787_v38 }
  0x92   : > { %v2532_v18 = vmul.f32 %v1845_v11, %v14878_v9  ;;  %v2533_v13 = vmul.f32 %v1845_v11, %v14879_v41  ;;  %v2534_v36 = vmul.f32 %v1845_v11, %v14880_v29  ;;  %v14882_v20 = vunpack.c.h.bf16 %v8787_v38 }
  0x93   : > { %v3522_v42 = vadd.f32 %v2531_v31, %v2525_v17  ;;  %v2415_v22 = vmul.f32 %v1763_v40, %v14881_v2  ;;  %v14883_v9 = vunpack.c.l.bf16 %v8790_v39  ;;  %v14884_v37 = vunpack.c.h.bf16 %v8790_v39  ;;  %v2005_v21 = vpop.permute.xlu1 %2004  ;;  %v1849_v31 = vpop.permute.xlu0 %1848 }
  0x94   : > { %v3547_v47 = vadd.f32 %v2532_v18, %v2526_v33  ;;  %v2416_v34 = vmul.f32 %v1763_v40, %v14882_v20  ;;  %v3572_v32 = vadd.f32 %v2533_v13, %v2527_v48  ;;  %v3597_v59 = vadd.f32 %v2534_v36, %v2528_v49  ;;  %2196 = vbcast.lane.b32.xlu1 %v8718_v14, 312 }
  0x95   : > { %v2417_v41 = vmul.f32 %v1763_v40, %v14883_v9  ;;  %v2418_v11 = vmul.f32 %v1763_v40, %v14884_v37  ;;  %v14885_v3 = vunpack.c.l.bf16 %v8799_v44  ;;  %v14886_v17 = vunpack.c.h.bf16 %v8799_v44  ;;  %2036 = vbcast.lane.b32.xlu0 %v8697_v10, 320 }
  0x96   : > { %v14887_v38 = vunpack.c.l.bf16 %v8802_v45  ;;  %v14888_v48 = vunpack.c.h.bf16 %v8802_v45  ;;  %v14889_v18 = vunpack.c.l.bf16 %v8809_v50  ;;  %v14890_v13 = vunpack.c.h.bf16 %v8809_v50 }
  0x97   : > { %v2419_v35 = vmul.f32 %v1763_v40, %v14885_v3  ;;  %v2420_v33 = vmul.f32 %v1763_v40, %v14886_v17  ;;  %v14891_v36 = vunpack.c.l.bf16 %v8812_v51  ;;  %v14892_v44 = vunpack.c.h.bf16 %v8812_v51 }
  0x98   : > { %v2409_v28 = vmul.f32 %v1759_v23, %v14887_v38  ;;  %v2410_v49 = vmul.f32 %v1759_v23, %v14888_v48  ;;  %v2411_v39 = vmul.f32 %v1759_v23, %v14889_v18  ;;  %v2412_v29 = vmul.f32 %v1759_v23, %v14890_v13  ;;  %1958 = vbcast.lane.b32.xlu1 %v8676_v5, 328 }
  0x99   : > { %v2413_v2 = vmul.f32 %v1759_v23, %v14891_v36  ;;  %v2414_v40 = vmul.f32 %v1759_v23, %v14892_v44  ;;  %v14893_v45 = vunpack.c.l.bf16 %v8819_v56  ;;  %v14894_v3 = vunpack.c.h.bf16 %v8819_v56  ;;  %2356 = vbcast.lane.b32.xlu0 %v8765_v26, 304 }
  0x9a   : > { %v9604_v20 = vadd.f32 %v2415_v22, %v2409_v28  ;;  %v9606_v9 = vadd.f32 %v2416_v34, %v2410_v49  ;;  %v9613_v50 = vadd.f32 %v2417_v41, %v2411_v39  ;;  %v9615_v38 = vadd.f32 %v2418_v11, %v2412_v29  ;;  %v1931_v11 = vpop.permute.xlu1 %1930  ;;  %v2009_v39 = vpop.permute.xlu0 %2008 }
  0x9b   : > { %v2751_v37 = vmul.f32 %v2005_v21, %v14893_v45  ;;  %v2752_v17 = vmul.f32 %v2005_v21, %v14894_v3  ;;  %v9617_v48 = vadd.f32 %v2419_v35, %v2413_v2  ;;  %v9619_v51 = vadd.f32 %v2420_v33, %v2414_v40 }
  0x9c   : > { %v14895_v23 = vunpack.c.l.bf16 %v8822_v57  ;;  %v14896_v34 = vunpack.c.h.bf16 %v8822_v57  ;;  %v14897_v56 = vunpack.c.l.bf16 %v8835_v19  ;;  %v14898_v41 = vunpack.c.h.bf16 %v8835_v19  ;;  %2278 = vbcast.lane.b32.xlu1 %v8727_v16, 312 }
  0x9d   : > { %v14899_v35 = vunpack.c.l.bf16 %v8838_v15  ;;  %v14900_v13 = vunpack.c.h.bf16 %v8838_v15  ;;  %v14901_v36 = vunpack.c.l.bf16 %v8841_v61  ;;  %v14902_v57 = vunpack.c.h.bf16 %v8841_v61  ;;  %2118 = vbcast.lane.b32.xlu0 %v8707_v12, 320 }
  0x9e   : > { %v2753_v22 = vmul.f32 %v2005_v21, %v14895_v23  ;;  %v2754_v28 = vmul.f32 %v2005_v21, %v14896_v34  ;;  %v2755_v49 = vmul.f32 %v2005_v21, %v14897_v56  ;;  %v2756_v18 = vmul.f32 %v2005_v21, %v14898_v41 }
  0x9f   : > { %v2535_v33 = vmul.f32 %v1849_v31, %v14899_v35  ;;  %v2536_v29 = vmul.f32 %v1849_v31, %v14900_v13  ;;  %v2537_v2 = vmul.f32 %v1849_v31, %v14901_v36  ;;  %v2538_v44 = vmul.f32 %v1849_v31, %v14902_v57 }
  0xa0   : > { %v14903_v40 = vunpack.c.l.bf16 %v8848_v63  ;;  %v14904_v19 = vunpack.c.h.bf16 %v8848_v63  ;;  %v14905_v3 = vunpack.c.l.bf16 %v8851_v4  ;;  %v14906_v34 = vunpack.c.h.bf16 %v8851_v4  ;;  %1880 = vbcast.lane.b32.xlu1 %v8679_v6, 336 }
  0xa1   : > { %v9647_v15 = vadd.f32 %v3472_v46, %v2535_v33  ;;  %v9649_v41 = vadd.f32 %v3497_v55, %v2536_v29  ;;  %v9651_v61 = vadd.f32 %v3522_v42, %v2537_v2  ;;  %v9653_v35 = vadd.f32 %v3547_v47, %v2538_v44  ;;  %v2091_v46 = vpop.permute.xlu1 %2090  ;;  %v2087_v33 = vpop.permute.xlu0 %2086  ;;  %1794 = vbcast.lane.b32.xlu0 %v8689_v8, 328 }
  0xa2   : > { %v2539_v45 = vmul.f32 %v1849_v31, %v14903_v40  ;;  %v2540_v21 = vmul.f32 %v1849_v31, %v14904_v19  ;;  %v2649_v23 = vmul.f32 %v1931_v11, %v14905_v3  ;;  %v2650_v56 = vmul.f32 %v1931_v11, %v14906_v34 }
  0xa3   : > { %v14907_v13 = vunpack.c.l.bf16 %v8854_v58  ;;  %v14908_v36 = vunpack.c.h.bf16 %v8854_v58  ;;  %v14909_v55 = vunpack.c.l.bf16 %v8861_v53  ;;  %v14910_v47 = vunpack.c.h.bf16 %v8861_v53 }
  0xa4   : > { %v9656_v63 = vadd.f32 %v3572_v32, %v2539_v45  ;;  %v9658_v31 = vadd.f32 %v3597_v59, %v2540_v21  ;;  %v9669_v2 = vadd.f32 %v9557_v24, %v2649_v23  ;;  %v9672_v32 = vadd.f32 %v9559_v1, %v2650_v56  ;;  %2200 = vbcast.lane.b32.xlu1 %v8718_v14, 320 }
  0xa5   : > { %v2651_v4 = vmul.f32 %v1931_v11, %v14907_v13  ;;  %v2652_v57 = vmul.f32 %v1931_v11, %v14908_v36  ;;  %v2653_v42 = vmul.f32 %v1931_v11, %v14909_v55  ;;  %v2654_v29 = vmul.f32 %v1931_v11, %v14910_v47  ;;  %v1767_v56 = vpop.permute.xlu0 %1766  ;;  %2040 = vbcast.lane.b32.xlu0 %v8697_v10, 328 }
  0xa6   : > { %v14911_v44 = vunpack.c.l.bf16 %v8864_v62  ;;  %v14912_v45 = vunpack.c.h.bf16 %v8864_v62  ;;  %v14913_v1 = vunpack.c.l.bf16 %v8871_v54  ;;  %v14915_v21 = vunpack.c.l.bf16 %v8874_v60 }
  0xa7   : > { %v9675_v59 = vadd.f32 %v9561_v25, %v2651_v4  ;;  %v9678_v58 = vadd.f32 %v9563_v27, %v2652_v57  ;;  %v9686_v53 = vadd.f32 %v9566_v30, %v2653_v42  ;;  %v9689_v24 = vadd.f32 %v9568_v7, %v2654_v29  ;;  %v1853_v7 = vpop.permute.xlu1 %1852 }
  0xa8   : > { %v2757_v40 = vmul.f32 %v2009_v39, %v14911_v44  ;;  %v2758_v19 = vmul.f32 %v2009_v39, %v14912_v45  ;;  %v2759_v25 = vmul.f32 %v2009_v39, %v14913_v1  ;;  %v14914_v27 = vunpack.c.h.bf16 %v8871_v54  ;;  %1962 = vbcast.lane.b32.xlu1 %v8676_v5, 336 }
  0xa9   : > { %v2761_v62 = vmul.f32 %v2009_v39, %v14915_v21  ;;  %v14916_v3 = vunpack.c.h.bf16 %v8874_v60  ;;  %v14917_v54 = vunpack.c.l.bf16 %v8887_v43  ;;  %v14918_v57 = vunpack.c.h.bf16 %v8887_v43  ;;  %v14923_v43 = vld [vmem:[#allocation16_spill] sm:$0xff]  ;;  %2360 = vbcast.lane.b32.xlu0 %v8765_v26, 312 }
  0xaa   : > { %v2760_v11 = vmul.f32 %v2009_v39, %v14914_v27  ;;  %v9700_v34 = vadd.f32 %v2757_v40, %v2751_v37  ;;  %v9702_v30 = vadd.f32 %v2758_v19, %v2752_v17  ;;  %v9704_v13 = vadd.f32 %v2759_v25, %v2753_v22  ;;  %v14926_v19 = vld [vmem:[#allocation17_spill] sm:$0xff] }
  0xab   : > { %v2762_v23 = vmul.f32 %v2009_v39, %v14916_v3  ;;  %v2871_v36 = vmul.f32 %v2091_v46, %v14917_v54  ;;  %v2872_v55 = vmul.f32 %v2091_v46, %v14918_v57  ;;  %v9712_v42 = vadd.f32 %v2761_v62, %v2755_v49  ;;  %v2169_v3 = vpop.permute.xlu1 %2168 }
  0xac   : > { %v9706_v4 = vadd.f32 %v2760_v11, %v2754_v28  ;;  %v14919_v37 = vunpack.c.l.bf16 %v8890_v0  ;;  %v14920_v39 = vunpack.c.h.bf16 %v8890_v0  ;;  %v14921_v22 = vunpack.c.l.bf16 %v8893_v52  ;;  %v14929_v11 = vld [vmem:[#allocation18_spill] sm:$0xff]  ;;  %2282 = vbcast.lane.b32.xlu1 %v8727_v16, 320 }
  0xad   : > { %v9714_v60 = vadd.f32 %v2762_v23, %v2756_v18  ;;  %v14922_v29 = vunpack.c.h.bf16 %v8893_v52  ;;  %v14924_v40 = vunpack.c.l.bf16 %v14923_v43  ;;  %v14925_v18 = vunpack.c.h.bf16 %v14923_v43  ;;  %v2013_v23 = vpop.permute.xlu0 %2012  ;;  %2122 = vbcast.lane.b32.xlu0 %v8707_v12, 328 }
  0xae   : > { %v2873_v17 = vmul.f32 %v2091_v46, %v14919_v37  ;;  %v2874_v47 = vmul.f32 %v2091_v46, %v14920_v39  ;;  %v2875_v28 = vmul.f32 %v2091_v46, %v14921_v22  ;;  %v14927_v1 = vunpack.c.l.bf16 %v14926_v19  ;;  %v14932_v37 = vld [vmem:[#allocation19_spill] sm:$0xff] }
  0xaf   : > { %v2876_v44 = vmul.f32 %v2091_v46, %v14922_v29  ;;  %v2865_v49 = vmul.f32 %v2087_v33, %v14924_v40  ;;  %v2866_v45 = vmul.f32 %v2087_v33, %v14925_v18  ;;  %v14928_v25 = vunpack.c.h.bf16 %v14926_v19 }
  0xb0   : > { %v2867_v0 = vmul.f32 %v2087_v33, %v14927_v1  ;;  %v14930_v21 = vunpack.c.l.bf16 %v14929_v11  ;;  %v14931_v52 = vunpack.c.h.bf16 %v14929_v11  ;;  %v14933_v39 = vunpack.c.l.bf16 %v14932_v37  ;;  %1798 = vbcast.lane.b32.xlu1 %v8689_v8, 336 }
  0xb1   : > { %v2868_v27 = vmul.f32 %v2087_v33, %v14928_v25  ;;  %v9738_v54 = vadd.f32 %v2871_v36, %v2865_v49  ;;  %v9740_v57 = vadd.f32 %v2872_v55, %v2866_v45  ;;  %v14934_v29 = vunpack.c.h.bf16 %v14932_v37  ;;  %v14938_v25 = vld [vmem:[#allocation21_spill] sm:$0xff]  ;;  %v1935_v37 = vpop.permute.xlu1 %1934 }
  0xb2   : > { %v2869_v62 = vmul.f32 %v2087_v33, %v14930_v21  ;;  %v2870_v46 = vmul.f32 %v2087_v33, %v14931_v52  ;;  %v2541_v22 = vmul.f32 %v1853_v7, %v14933_v39  ;;  %v9746_v40 = vadd.f32 %v2873_v17, %v2867_v0  ;;  %v14935_v33 = vld [vmem:[#allocation20_spill] sm:$0xff]  ;;  %v2173_v39 = vpop.permute.xlu0 %2172 }
  0xb3   : > { %v2542_v43 = vmul.f32 %v1853_v7, %v14934_v29  ;;  %v9748_v18 = vadd.f32 %v2874_v47, %v2868_v27  ;;  %v14936_v36 = vunpack.c.l.bf16 %v14935_v33  ;;  %v14937_v49 = vunpack.c.h.bf16 %v14935_v33 }
  0xb4   : > { %v9750_v19 = vadd.f32 %v2875_v28, %v2869_v62  ;;  %v9752_v1 = vadd.f32 %v2876_v44, %v2870_v46  ;;  %v14939_v11 = vunpack.c.l.bf16 %v14938_v25  ;;  %v14940_v17 = vunpack.c.h.bf16 %v14938_v25  ;;  %v14941_v44 = vld [vmem:[#allocation22_spill] sm:$0xff]  ;;  %v14949_v25 = vld [vmem:[#allocation24_spill] sm:$0xff]  ;;  %1884 = vbcast.lane.b32.xlu1 %v8679_v6, 344 }
  0xb5   : > { %v2543_v55 = vmul.f32 %v1853_v7, %v14936_v36  ;;  %v2544_v45 = vmul.f32 %v1853_v7, %v14937_v49  ;;  %v9765_v47 = vadd.f32 %v9647_v15, %v2541_v22  ;;  %v9768_v28 = vadd.f32 %v9649_v41, %v2542_v43  ;;  %v14946_v22 = vld [vmem:[#allocation23_spill] sm:$0xff] }
  0xb6   : > { %v2545_v21 = vmul.f32 %v1853_v7, %v14939_v11  ;;  %v2546_v0 = vmul.f32 %v1853_v7, %v14940_v17  ;;  %v14942_v27 = vunpack.c.l.bf16 %v14941_v44  ;;  %v14943_v52 = vunpack.c.h.bf16 %v14941_v44 }
  0xb7   : > { %v9775_v29 = vadd.f32 %v9651_v61, %v2543_v55  ;;  %v9778_v7 = vadd.f32 %v9653_v35, %v2544_v45  ;;  %v14947_v43 = vunpack.c.l.bf16 %v14946_v22  ;;  %v14948_v36 = vunpack.c.h.bf16 %v14946_v22 }
  0xb8   : > { %v2421_v62 = vmul.f32 %v1767_v56, %v14942_v27  ;;  %v2422_v46 = vmul.f32 %v1767_v56, %v14943_v52  ;;  %v9781_v15 = vadd.f32 %v9656_v63, %v2545_v21  ;;  %v9784_v41 = vadd.f32 %v9658_v31, %v2546_v0  ;;  %v14952_v31 = vld [vmem:[#allocation27_spill] sm:$0xff]  ;;  %v2095_v52 = vpop.permute.xlu0 %2094  ;;  %2044 = vbcast.lane.b32.xlu1 %v8697_v10, 336 }
  0xb9   : > { %v2423_v33 = vmul.f32 %v1767_v56, %v14947_v43  ;;  %v2424_v49 = vmul.f32 %v1767_v56, %v14948_v36  ;;  %v14950_v11 = vunpack.c.l.bf16 %v14949_v25  ;;  %v14951_v61 = vunpack.c.h.bf16 %v14949_v25 }
  0xba   : > { %14944 = vst [vmem:[#allocation16_spill] sm:$0xff] %v9781_v15  ;;  %14945 = vst [vmem:[#allocation17_spill] sm:$0xff] %v9784_v41  ;;  %v9796_v35 = vadd.f32 %v9604_v20, %v2421_v62  ;;  %v9799_v63 = vadd.f32 %v9606_v9, %v2422_v46  ;;  %v14953_v45 = vunpack.c.l.bf16 %v14952_v31  ;;  %v14954_v0 = vunpack.c.h.bf16 %v14952_v31  ;;  %v2251_v62 = vpop.permute.xlu1 %2250  ;;  %v14955_v46 = vld [vmem:[#allocation28_spill] sm:$0xff]  ;;  %v14964_v31 = vld [vmem:[#allocation26_spill] sm:$0xff] }
  0xbb   : > { %v2425_v17 = vmul.f32 %v1767_v56, %v14950_v11  ;;  %v2426_v55 = vmul.f32 %v1767_v56, %v14951_v61  ;;  %v9807_v27 = vadd.f32 %v9613_v50, %v2423_v33  ;;  %v9810_v56 = vadd.f32 %v9615_v38, %v2424_v49  ;;  %v14958_v11 = vld [vmem:[#allocation29_spill] sm:$0xff] }
  0xbc   : > { %v2979_v21 = vmul.f32 %v2169_v3, %v14953_v45  ;;  %v2980_v44 = vmul.f32 %v2169_v3, %v14954_v0  ;;  %v14956_v22 = vunpack.c.l.bf16 %v14955_v46  ;;  %v14957_v36 = vunpack.c.h.bf16 %v14955_v46  ;;  %v14961_v61 = vld [vmem:[#allocation25_spill] sm:$0xff]  ;;  %v14967_v46 = vld [vmem:[#allocation30_spill] sm:$0xff]  ;;  %2204 = vbcast.lane.b32.xlu1 %v8718_v14, 328 }
  0xbd   : > { %v9813_v20 = vadd.f32 %v9617_v48, %v2425_v17  ;;  %v9816_v9 = vadd.f32 %v9619_v51, %v2426_v55  ;;  %v14959_v50 = vunpack.c.l.bf16 %v14958_v11  ;;  %v14960_v38 = vunpack.c.h.bf16 %v14958_v11 }
  0xbe   : > { %v2981_v43 = vmul.f32 %v2169_v3, %v14956_v22  ;;  %v2982_v25 = vmul.f32 %v2169_v3, %v14957_v36  ;;  %v14962_v48 = vunpack.c.l.bf16 %v14961_v61  ;;  %v14963_v51 = vunpack.c.h.bf16 %v14961_v61 }
  0xbf   : > { %v2983_v33 = vmul.f32 %v2169_v3, %v14959_v50  ;;  %v2984_v49 = vmul.f32 %v2169_v3, %v14960_v38  ;;  %v14965_v45 = vunpack.c.l.bf16 %v14964_v31  ;;  %v14966_v22 = vunpack.c.h.bf16 %v14964_v31  ;;  %v14970_v38 = vld [vmem:[#allocation31_spill] sm:$0xff] }
  0xc0   : > { %v2763_v17 = vmul.f32 %v2013_v23, %v14962_v48  ;;  %v2764_v55 = vmul.f32 %v2013_v23, %v14963_v51  ;;  %v14968_v36 = vunpack.c.l.bf16 %v14967_v46  ;;  %v14969_v11 = vunpack.c.h.bf16 %v14967_v46  ;;  %2364 = vbcast.lane.b32.xlu1 %v8765_v26, 320 }
  0xc1   : > { %v2765_v0 = vmul.f32 %v2013_v23, %v14965_v45  ;;  %v2766_v41 = vmul.f32 %v2013_v23, %v14966_v22  ;;  %v14971_v15 = vunpack.c.l.bf16 %v14970_v38  ;;  %v14972_v61 = vunpack.c.h.bf16 %v14970_v38 }
  0xc2   : > { %v2767_v50 = vmul.f32 %v2013_v23, %v14968_v36  ;;  %v2768_v3 = vmul.f32 %v2013_v23, %v14969_v11  ;;  %v9845_v45 = vadd.f32 %v9700_v34, %v2763_v17  ;;  %v9848_v31 = vadd.f32 %v9702_v30, %v2764_v55  ;;  %v14973_v36 = vld [vmem:[#allocation32_spill] sm:$0xff]  ;;  %v1771_v30 = vpop.permute.xlu1 %1770  ;;  %v14976_v55 = vld [vmem:[#allocation33_spill] sm:$0xff] }
  0xc3   : > { %v2655_v48 = vmul.f32 %v1935_v37, %v14971_v15  ;;  %v2656_v51 = vmul.f32 %v1935_v37, %v14972_v61  ;;  %v9851_v22 = vadd.f32 %v9704_v13, %v2765_v0  ;;  %v9854_v46 = vadd.f32 %v9706_v4, %v2766_v41 }
  0xc4   : > { %v9857_v23 = vadd.f32 %v9712_v42, %v2767_v50  ;;  %v9860_v15 = vadd.f32 %v9714_v60, %v2768_v3  ;;  %v14974_v11 = vunpack.c.l.bf16 %v14973_v36  ;;  %v14975_v34 = vunpack.c.h.bf16 %v14973_v36  ;;  %v2255_v60 = vpop.permute.xlu0 %2254  ;;  %v14981_v36 = vld [vmem:[#allocation34_spill] sm:$0xff]  ;;  %1966 = vbcast.lane.b32.xlu1 %v8676_v5, 344 }
  0xc5   : > { %v14977_v61 = vunpack.c.l.bf16 %v14976_v55  ;;  %v14978_v0 = vunpack.c.h.bf16 %v14976_v55  ;;  %v9871_v41 = vadd.f32 %v9669_v2, %v2655_v48  ;;  %v9874_v42 = vadd.f32 %v9672_v32, %v2656_v51  ;;  %v14986_v48 = vld [vmem:[#allocation35_spill] sm:$0xff] }
  0xc6   : > { %v2657_v38 = vmul.f32 %v1935_v37, %v14974_v11  ;;  %v2658_v17 = vmul.f32 %v1935_v37, %v14975_v34  ;;  %v14982_v11 = vunpack.c.l.bf16 %v14981_v36  ;;  %v14987_v51 = vunpack.c.l.bf16 %v14986_v48 }
  0xc7   : > { %v2659_v13 = vmul.f32 %v1935_v37, %v14977_v61  ;;  %v2660_v4 = vmul.f32 %v1935_v37, %v14978_v0  ;;  %v14983_v37 = vunpack.c.h.bf16 %v14981_v36 }
  0xc8   : > { %v9878_v50 = vadd.f32 %v9675_v59, %v2657_v38  ;;  %v9881_v3 = vadd.f32 %v9678_v58, %v2658_v17  ;;  %v2985_v34 = vmul.f32 %v2173_v39, %v14982_v11  ;;  %v2987_v61 = vmul.f32 %v2173_v39, %v14987_v51  ;;  %v14989_v58 = vld [vmem:[#allocation36_spill] sm:$0xff]  ;;  %2126 = vbcast.lane.b32.xlu1 %v8707_v12, 336 }
  0xc9   : > { %v2986_v55 = vmul.f32 %v2173_v39, %v14983_v37  ;;  %v9888_v2 = vadd.f32 %v9686_v53, %v2659_v13  ;;  %v9891_v32 = vadd.f32 %v9689_v24, %v2660_v4  ;;  %v14988_v59 = vunpack.c.h.bf16 %v14986_v48  ;;  %v14992_v13 = vld [vmem:[#allocation39_spill] sm:$0xff] }
  0xca   : > { %14979 = vst [vmem:[#allocation18_spill] sm:$0xff] %v9878_v50  ;;  %14980 = vst [vmem:[#allocation19_spill] sm:$0xff] %v9881_v3  ;;  %v14990_v17 = vunpack.c.l.bf16 %v14989_v58  ;;  %v14991_v11 = vunpack.c.h.bf16 %v14989_v58  ;;  %v9901_v36 = vadd.f32 %v2985_v34, %v2979_v21  ;;  %v9905_v53 = vadd.f32 %v2987_v61, %v2981_v43 }
  0xcb   : > { %14984 = vst [vmem:[#allocation20_spill] sm:$0xff] %v9888_v2  ;;  %14985 = vst [vmem:[#allocation21_spill] sm:$0xff] %v9891_v32  ;;  %v2988_v38 = vmul.f32 %v2173_v39, %v14988_v59  ;;  %v9903_v37 = vadd.f32 %v2986_v55, %v2980_v44  ;;  %v14993_v4 = vunpack.c.l.bf16 %v14992_v13  ;;  %v14994_v48 = vunpack.c.h.bf16 %v14992_v13  ;;  %v14998_v55 = vld [vmem:[#allocation41_spill] sm:$0xff]  ;;  %v15007_v32 = vld [vmem:[#allocation42_spill] sm:$0xff] }
  0xcc   : > { %v2989_v0 = vmul.f32 %v2173_v39, %v14990_v17  ;;  %v2990_v8 = vmul.f32 %v2173_v39, %v14991_v11  ;;  %v14995_v39 = vld [vmem:[#allocation40_spill] sm:$0xff]  ;;  %v14999_v61 = vunpack.c.l.bf16 %v14998_v55  ;;  %v15000_v11 = vunpack.c.h.bf16 %v14998_v55 }
  0xcd   : > { %v9907_v24 = vadd.f32 %v2988_v38, %v2982_v25  ;;  %v3093_v51 = vmul.f32 %v2251_v62, %v14993_v4  ;;  %v3094_v59 = vmul.f32 %v2251_v62, %v14994_v48  ;;  %v14996_v21 = vunpack.c.l.bf16 %v14995_v39  ;;  %v2017_v25 = vpop.permute.xlu1 %2016  ;;  %v15001_v4 = vld [vmem:[#allocation37_spill] sm:$0xff] }
  0xce   : > { %v9914_v17 = vadd.f32 %v2989_v0, %v2983_v33  ;;  %v9916_v58 = vadd.f32 %v2990_v8, %v2984_v49  ;;  %v14997_v43 = vunpack.c.h.bf16 %v14995_v39  ;;  %v3097_v38 = vmul.f32 %v2251_v62, %v14999_v61  ;;  %v1857_v49 = vpop.permute.xlu0 %1856  ;;  %v15004_v0 = vld [vmem:[#allocation38_spill] sm:$0xff] }
  0xcf   : > { %v3095_v44 = vmul.f32 %v2251_v62, %v14996_v21  ;;  %v3098_v13 = vmul.f32 %v2251_v62, %v15000_v11  ;;  %v15002_v48 = vunpack.c.l.bf16 %v15001_v4  ;;  %v15003_v33 = vunpack.c.h.bf16 %v15001_v4  ;;  %v15010_v4 = vld [vmem:[#allocation43_spill] sm:$0xff] }
  0xd0   : > { %v3096_v34 = vmul.f32 %v2251_v62, %v14997_v43  ;;  %v15005_v16 = vunpack.c.l.bf16 %v15004_v0  ;;  %v15006_v39 = vunpack.c.h.bf16 %v15004_v0  ;;  %v15008_v2 = vunpack.c.l.bf16 %v15007_v32 }
  0xd1   : > { %v2877_v6 = vmul.f32 %v2095_v52, %v15002_v48  ;;  %v2878_v8 = vmul.f32 %v2095_v52, %v15003_v33  ;;  %v15009_v61 = vunpack.c.h.bf16 %v15007_v32  ;;  %v15011_v48 = vunpack.c.l.bf16 %v15010_v4 }
  0xd2   : > { %v2879_v21 = vmul.f32 %v2095_v52, %v15005_v16  ;;  %v2880_v43 = vmul.f32 %v2095_v52, %v15006_v39  ;;  %v2881_v3 = vmul.f32 %v2095_v52, %v15008_v2  ;;  %v15012_v16 = vunpack.c.h.bf16 %v15010_v4 }
  0xd3   : > { %v2882_v55 = vmul.f32 %v2095_v52, %v15009_v61  ;;  %v9939_v62 = vadd.f32 %v9738_v54, %v2877_v6  ;;  %v9942_v11 = vadd.f32 %v9740_v57, %v2878_v8  ;;  %v2427_v33 = vmul.f32 %v1771_v30, %v15011_v48  ;;  %v15013_v57 = vld [vmem:[#allocation44_spill] sm:$0xff]  ;;  %v15016_v61 = vld [vmem:[#allocation45_spill] sm:$0xff] }
  0xd4   : > { %v2428_v50 = vmul.f32 %v1771_v30, %v15012_v16  ;;  %v9950_v0 = vadd.f32 %v9746_v40, %v2879_v21  ;;  %v9953_v2 = vadd.f32 %v9748_v18, %v2880_v43  ;;  %v9956_v6 = vadd.f32 %v9750_v19, %v2881_v3 }
  0xd5   : > { %v9959_v54 = vadd.f32 %v9752_v1, %v2882_v55  ;;  %v15014_v52 = vunpack.c.l.bf16 %v15013_v57  ;;  %v15015_v8 = vunpack.c.h.bf16 %v15013_v57  ;;  %v15017_v4 = vunpack.c.l.bf16 %v15016_v61  ;;  %v15019_v1 = vld [vmem:[#allocation46_spill] sm:$0xff]  ;;  %v2333_v57 = vpop.permute.xlu1 %2332 }
  0xd6   : > { %v15018_v40 = vunpack.c.h.bf16 %v15016_v61  ;;  %v9970_v18 = vadd.f32 %v9796_v35, %v2427_v33  ;;  %v9973_v19 = vadd.f32 %v9799_v63, %v2428_v50  ;;  %v15020_v3 = vunpack.c.l.bf16 %v15019_v1  ;;  %v2177_v63 = vpop.permute.xlu0 %2176  ;;  %v15023_v50 = vld [vmem:[#allocation47_spill] sm:$0xff] }
  0xd7   : > { %v2429_v32 = vmul.f32 %v1771_v30, %v15014_v52  ;;  %v2430_v39 = vmul.f32 %v1771_v30, %v15015_v8  ;;  %v2431_v48 = vmul.f32 %v1771_v30, %v15017_v4  ;;  %v15021_v55 = vunpack.c.h.bf16 %v15019_v1 }
  0xd8   : > { %v2432_v21 = vmul.f32 %v1771_v30, %v15018_v40  ;;  %v3099_v43 = vmul.f32 %v2255_v60, %v15020_v3  ;;  %v15024_v33 = vunpack.c.l.bf16 %v15023_v50  ;;  %v15025_v4 = vunpack.c.h.bf16 %v15023_v50 }
  0xd9   : > { %v3100_v16 = vmul.f32 %v2255_v60, %v15021_v55  ;;  %v9980_v52 = vadd.f32 %v9807_v27, %v2429_v32  ;;  %v9983_v8 = vadd.f32 %v9810_v56, %v2430_v39  ;;  %v9986_v30 = vadd.f32 %v9813_v20, %v2431_v48  ;;  %v15026_v27 = vld [vmem:[#allocation48_spill] sm:$0xff] }
  0xda   : > { %v9989_v35 = vadd.f32 %v9816_v9, %v2432_v21  ;;  %v3101_v61 = vmul.f32 %v2255_v60, %v15024_v33  ;;  %v3102_v40 = vmul.f32 %v2255_v60, %v15025_v4  ;;  %v15027_v32 = vunpack.c.l.bf16 %v15026_v27  ;;  %v15029_v9 = vld [vmem:[#allocation49_spill] sm:$0xff] }
  0xdb   : > { %v15028_v56 = vunpack.c.h.bf16 %v15026_v27  ;;  %v10000_v20 = vadd.f32 %v3099_v43, %v3093_v51  ;;  %v10002_v48 = vadd.f32 %v3100_v16, %v3094_v59  ;;  %v15030_v21 = vunpack.c.l.bf16 %v15029_v9  ;;  %v15032_v27 = vld [vmem:[#allocation50_spill] sm:$0xff]  ;;  %v15035_v16 = vld [vmem:[#allocation51_spill] sm:$0xff] }
  0xdc   : > { %15022 = vst [vmem:[#allocation22_spill] sm:$0xff] %v9989_v35  ;;  %v3103_v1 = vmul.f32 %v2255_v60, %v15027_v32  ;;  %v15031_v55 = vunpack.c.h.bf16 %v15029_v9  ;;  %v10008_v33 = vadd.f32 %v3101_v61, %v3095_v44  ;;  %v10010_v50 = vadd.f32 %v3102_v40, %v3096_v34 }
  0xdd   : > { %v3104_v39 = vmul.f32 %v2255_v60, %v15028_v56  ;;  %v2769_v3 = vmul.f32 %v2017_v25, %v15030_v21  ;;  %v15033_v60 = vunpack.c.l.bf16 %v15032_v27  ;;  %v15034_v59 = vunpack.c.h.bf16 %v15032_v27 }
  0xde   : > { %v2770_v35 = vmul.f32 %v2017_v25, %v15031_v55  ;;  %v10012_v4 = vadd.f32 %v3103_v1, %v3097_v38  ;;  %v15036_v56 = vunpack.c.l.bf16 %v15035_v16  ;;  %v15037_v9 = vunpack.c.h.bf16 %v15035_v16  ;;  %v15039_v38 = vld [vmem:[#allocation52_spill] sm:$0xff] }
  0xdf   : > { %v10014_v32 = vadd.f32 %v3104_v39, %v3098_v13  ;;  %v2771_v51 = vmul.f32 %v2017_v25, %v15033_v60  ;;  %v2772_v43 = vmul.f32 %v2017_v25, %v15034_v59  ;;  %v10026_v44 = vadd.f32 %v9845_v45, %v2769_v3  ;;  %v1939_v39 = vpop.permute.xlu1 %1938 }
  0xe0   : > { %v2773_v21 = vmul.f32 %v2017_v25, %v15036_v56  ;;  %v2774_v55 = vmul.f32 %v2017_v25, %v15037_v9  ;;  %v10029_v34 = vadd.f32 %v9848_v31, %v2770_v35  ;;  %v15040_v13 = vunpack.c.l.bf16 %v15039_v38  ;;  %v2337_v31 = vpop.permute.xlu0 %2336  ;;  %v15046_v35 = vld [vmem:[#allocation53_spill] sm:$0xff]  ;;  %v15049_v9 = vld [vmem:[#allocation54_spill] sm:$0xff] }
  0xe1   : > { %v15041_v40 = vunpack.c.h.bf16 %v15039_v38  ;;  %v10036_v27 = vadd.f32 %v9851_v22, %v2771_v51  ;;  %v10039_v25 = vadd.f32 %v9854_v46, %v2772_v43  ;;  %v15047_v3 = vunpack.c.l.bf16 %v15046_v35 }
  0xe2   : > { %15038 = vst [vmem:[#allocation23_spill] sm:$0xff] %v10029_v34  ;;  %v2547_v61 = vmul.f32 %v1857_v49, %v15040_v13  ;;  %v10042_v60 = vadd.f32 %v9857_v23, %v2773_v21  ;;  %v10045_v45 = vadd.f32 %v9860_v15, %v2774_v55  ;;  %v15048_v16 = vunpack.c.h.bf16 %v15046_v35  ;;  %v15052_v15 = vld [vmem:[#allocation57_spill] sm:$0xff] }
  0xe3   : > { %v2548_v1 = vmul.f32 %v1857_v49, %v15041_v40  ;;  %15042 = vst [vmem:[#allocation24_spill] sm:$0xff] %v10036_v27  ;;  %15043 = vst [vmem:[#allocation27_spill] sm:$0xff] %v10039_v25  ;;  %v2549_v59 = vmul.f32 %v1857_v49, %v15047_v3  ;;  %v15050_v38 = vunpack.c.l.bf16 %v15049_v9  ;;  %v15051_v51 = vunpack.c.h.bf16 %v15049_v9 }
  0xe4   : > { %15044 = vst [vmem:[#allocation28_spill] sm:$0xff] %v10042_v60  ;;  %15045 = vst [vmem:[#allocation29_spill] sm:$0xff] %v10045_v45  ;;  %v2550_v56 = vmul.f32 %v1857_v49, %v15048_v16  ;;  %v10056_v43 = vadd.f32 %v9765_v47, %v2547_v61  ;;  %v15053_v21 = vunpack.c.l.bf16 %v15052_v15  ;;  %v15054_v13 = vunpack.c.h.bf16 %v15052_v15  ;;  %v15056_v61 = vld [vmem:[#allocation17_spill] sm:$0xff]  ;;  %v15060_v15 = vld [vmem:[#allocation59_spill] sm:$0xff] }
  0xe5   : > { %v2551_v22 = vmul.f32 %v1857_v49, %v15050_v38  ;;  %v2552_v46 = vmul.f32 %v1857_v49, %v15051_v51  ;;  %v10059_v23 = vadd.f32 %v9768_v28, %v2548_v1  ;;  %v10067_v35 = vadd.f32 %v9775_v29, %v2549_v59  ;;  %v15055_v49 = vld [vmem:[#allocation16_spill] sm:$0xff]  ;;  %v15057_v1 = vld [vmem:[#allocation58_spill] sm:$0xff] }
  0xe6   : > { %v3207_v55 = vmul.f32 %v2333_v57, %v15053_v21  ;;  %v3208_v40 = vmul.f32 %v2333_v57, %v15054_v13  ;;  %v10070_v3 = vadd.f32 %v9778_v7, %v2550_v56  ;;  %v15058_v16 = vunpack.c.l.bf16 %v15057_v1  ;;  %v15063_v7 = vld [vmem:[#allocation55_spill] sm:$0xff] }
  0xe7   : > { %v10073_v47 = vadd.f32 %v15055_v49, %v2551_v22  ;;  %v10076_v28 = vadd.f32 %v15056_v61, %v2552_v46  ;;  %v15059_v38 = vunpack.c.h.bf16 %v15057_v1  ;;  %v15061_v21 = vunpack.c.l.bf16 %v15060_v15  ;;  %v15066_v46 = vld [vmem:[#allocation56_spill] sm:$0xff]  ;;  %v2259_v1 = vpop.permute.xlu1 %2258 }
  0xe8   : > { %v3209_v9 = vmul.f32 %v2333_v57, %v15058_v16  ;;  %v15062_v29 = vunpack.c.h.bf16 %v15060_v15  ;;  %v15064_v56 = vunpack.c.l.bf16 %v15063_v7  ;;  %v15065_v22 = vunpack.c.h.bf16 %v15063_v7 }
  0xe9   : > { %v3210_v51 = vmul.f32 %v2333_v57, %v15059_v38  ;;  %v3211_v13 = vmul.f32 %v2333_v57, %v15061_v21  ;;  %v15067_v61 = vunpack.c.l.bf16 %v15066_v46  ;;  %v15068_v16 = vunpack.c.h.bf16 %v15066_v46  ;;  %v15069_v38 = vld [vmem:[#allocation60_spill] sm:$0xff] }
  0xea   : > { %v3212_v59 = vmul.f32 %v2333_v57, %v15062_v29  ;;  %v2991_v45 = vmul.f32 %v2177_v63, %v15064_v56  ;;  %v2992_v49 = vmul.f32 %v2177_v63, %v15065_v22  ;;  %v15070_v25 = vunpack.c.l.bf16 %v15069_v38  ;;  %v15072_v57 = vld [vmem:[#allocation61_spill] sm:$0xff]  ;;  %v2099_v22 = vpop.permute.xlu0 %2098 }
  0xeb   : > { %v2993_v60 = vmul.f32 %v2177_v63, %v15067_v61  ;;  %v2994_v5 = vmul.f32 %v2177_v63, %v15068_v16  ;;  %v15071_v21 = vunpack.c.h.bf16 %v15069_v38  ;;  %v15073_v29 = vunpack.c.l.bf16 %v15072_v57 }
  0xec   : > { %v2995_v27 = vmul.f32 %v2177_v63, %v15070_v25  ;;  %v15074_v56 = vunpack.c.h.bf16 %v15072_v57  ;;  %v10104_v61 = vadd.f32 %v9901_v36, %v2991_v45  ;;  %v10107_v46 = vadd.f32 %v9903_v37, %v2992_v49  ;;  %v15078_v37 = vld [vmem:[#allocation63_spill] sm:$0xff] }
  0xed   : > { %v2996_v15 = vmul.f32 %v2177_v63, %v15071_v21  ;;  %v2661_v34 = vmul.f32 %v1939_v39, %v15073_v29  ;;  %v10110_v25 = vadd.f32 %v9905_v53, %v2993_v60  ;;  %v10113_v63 = vadd.f32 %v9907_v24, %v2994_v5  ;;  %v15075_v21 = vld [vmem:[#allocation62_spill] sm:$0xff] }
  0xee   : > { %v2662_v7 = vmul.f32 %v1939_v39, %v15074_v56  ;;  %v10116_v16 = vadd.f32 %v9914_v17, %v2995_v27  ;;  %v15076_v57 = vunpack.c.l.bf16 %v15075_v21  ;;  %v15077_v36 = vunpack.c.h.bf16 %v15075_v21  ;;  %v15082_v17 = vld [vmem:[#allocation18_spill] sm:$0xff]  ;;  %v15084_v27 = vld [vmem:[#allocation19_spill] sm:$0xff]  ;;  %v15086_v21 = vld [vmem:[#allocation64_spill] sm:$0xff] }
  0xef   : > { %v10119_v38 = vadd.f32 %v9916_v58, %v2996_v15  ;;  %v15079_v49 = vunpack.c.l.bf16 %v15078_v37  ;;  %v15080_v53 = vunpack.c.h.bf16 %v15078_v37  ;;  %v10130_v5 = vadd.f32 %v9871_v41, %v2661_v34  ;;  %v15089_v37 = vld [vmem:[#allocation99_spill] sm:$0xff]  ;;  %v15092_v34 = vld [vmem:[#allocation21_spill] sm:$0xff] }
  0xf0   : > { %v2663_v29 = vmul.f32 %v1939_v39, %v15076_v57  ;;  %v2664_v45 = vmul.f32 %v1939_v39, %v15077_v36  ;;  %v10133_v24 = vadd.f32 %v9874_v42, %v2662_v7  ;;  %v15087_v57 = vunpack.c.l.bf16 %v15086_v21  ;;  %1750 = vadd.xlane.f32.xlu0 %v15089_v37  ;;  %v15094_v7 = vld [vmem:[#allocation65_spill] sm:$0xff] }
  0xf1   : > { %v2665_v56 = vmul.f32 %v1939_v39, %v15079_v49  ;;  %v2666_v60 = vmul.f32 %v1939_v39, %v15080_v53  ;;  %v15088_v49 = vunpack.c.h.bf16 %v15086_v21  ;;  %v15090_v39 = vld [vmem:[#allocation20_spill] sm:$0xff] }
  0xf2   : > { %15081 = vst [vmem:[#allocation25_spill] sm:$0xff] %v10133_v24  ;;  %v10136_v58 = vadd.f32 %v15082_v17, %v2663_v29  ;;  %v10139_v15 = vadd.f32 %v15084_v27, %v2664_v45  ;;  %v3213_v36 = vmul.f32 %v2337_v31, %v15087_v57  ;;  %v15095_v29 = vunpack.c.l.bf16 %v15094_v7  ;;  %v1861_v27 = vpop.permute.xlu1 %1860  ;;  %v15098_v57 = vld [vmem:[#allocation66_spill] sm:$0xff] }
  0xf3   : > { %v3214_v12 = vmul.f32 %v2337_v31, %v15088_v49  ;;  %v10147_v41 = vadd.f32 %v15090_v39, %v2665_v56  ;;  %v10150_v42 = vadd.f32 %v15092_v34, %v2666_v60  ;;  %v15096_v45 = vunpack.c.h.bf16 %v15094_v7  ;;  %v1775_v60 = vpop.permute.xlu0 %1774  ;;  %v15101_v7 = vld [vmem:[#allocation67_spill] sm:$0xff] }
  0xf4   : > { %15083 = vst [vmem:[#allocation26_spill] sm:$0xff] %v10136_v58  ;;  %15085 = vst [vmem:[#allocation30_spill] sm:$0xff] %v10139_v15  ;;  %v3215_v53 = vmul.f32 %v2337_v31, %v15095_v29  ;;  %v15097_v15 = vld [vmem:[#allocation14_spill] sm:$0xff]  ;;  %v15099_v21 = vunpack.c.l.bf16 %v15098_v57  ;;  %v15100_v37 = vunpack.c.h.bf16 %v15098_v57  ;;  %v10161_v56 = vadd.f32 %v3213_v36, %v3207_v55 }
  0xf5   : > { %15091 = vst [vmem:[#allocation31_spill] sm:$0xff] %v10147_v41  ;;  %15093 = vst [vmem:[#allocation32_spill] sm:$0xff] %v10150_v42  ;;  %v3216_v17 = vmul.f32 %v2337_v31, %v15096_v45  ;;  %2286 = vbcast.lane.b32.xlu1 %v15097_v15, 328  ;;  %v10163_v39 = vadd.f32 %v3214_v12, %v3208_v40  ;;  %v15102_v45 = vunpack.c.l.bf16 %v15101_v7  ;;  %v15103_v15 = vunpack.c.h.bf16 %v15101_v7 }
  0xf6   : > { %v3217_v49 = vmul.f32 %v2337_v31, %v15099_v21  ;;  %v3218_v58 = vmul.f32 %v2337_v31, %v15100_v37  ;;  %v10165_v34 = vadd.f32 %v3215_v53, %v3209_v9  ;;  %v15104_v31 = vld [vmem:[#allocation68_spill] sm:$0xff]  ;;  %v15107_v9 = vld [vmem:[#allocation69_spill] sm:$0xff] }
  0xf7   : > { %v10167_v29 = vadd.f32 %v3216_v17, %v3210_v51  ;;  %v3105_v42 = vmul.f32 %v2259_v1, %v15102_v45  ;;  %v3106_v41 = vmul.f32 %v2259_v1, %v15103_v15  ;;  %v15105_v55 = vunpack.c.l.bf16 %v15104_v31 }
  0xf8   : > { %v10173_v24 = vadd.f32 %v3217_v49, %v3211_v13  ;;  %v10175_v21 = vadd.f32 %v3218_v58, %v3212_v59  ;;  %v15106_v12 = vunpack.c.h.bf16 %v15104_v31  ;;  %v15108_v53 = vunpack.c.l.bf16 %v15107_v9  ;;  %v15110_v59 = vld [vmem:[#allocation6_spill] sm:$0xff] }
  0xf9   : > { %v3107_v36 = vmul.f32 %v2259_v1, %v15105_v55  ;;  %v15109_v17 = vunpack.c.h.bf16 %v15107_v9  ;;  %v10186_v37 = vadd.f32 %v10000_v20, %v3105_v42  ;;  %v10189_v13 = vadd.f32 %v10002_v48, %v3106_v41  ;;  %1888 = vbcast.lane.b32.xlu1 %v15110_v59, 352  ;;  %v15111_v49 = vld [vmem:[#allocation70_spill] sm:$0xff]  ;;  %v15114_v41 = vld [vmem:[#allocation71_spill] sm:$0xff] }
  0xfa   : > { %v3108_v40 = vmul.f32 %v2259_v1, %v15106_v12  ;;  %v3109_v51 = vmul.f32 %v2259_v1, %v15108_v53  ;;  %v15112_v7 = vunpack.c.l.bf16 %v15111_v49  ;;  %v15113_v31 = vunpack.c.h.bf16 %v15111_v49  ;;  %v15117_v12 = vld [vmem:[#allocation72_spill] sm:$0xff] }
  0xfb   : > { %v3110_v57 = vmul.f32 %v2259_v1, %v15109_v17  ;;  %v10193_v58 = vadd.f32 %v10008_v33, %v3107_v36  ;;  %v15115_v42 = vunpack.c.l.bf16 %v15114_v41  ;;  %v15116_v33 = vunpack.c.h.bf16 %v15114_v41 }
  0xfc   : > { %v10196_v15 = vadd.f32 %v10010_v50, %v3108_v40  ;;  %v2883_v45 = vmul.f32 %v2099_v22, %v15112_v7  ;;  %v2884_v1 = vmul.f32 %v2099_v22, %v15113_v31  ;;  %v10203_v20 = vadd.f32 %v10012_v4, %v3109_v51  ;;  %v2181_v50 = vpop.permute.xlu1 %2180  ;;  %v15120_v7 = vld [vmem:[#allocation73_spill] sm:$0xff] }
  0xfd   : > { %v10206_v48 = vadd.f32 %v10014_v32, %v3110_v57  ;;  %v2885_v55 = vmul.f32 %v2099_v22, %v15115_v42  ;;  %v2886_v36 = vmul.f32 %v2099_v22, %v15116_v33  ;;  %v15118_v40 = vunpack.c.l.bf16 %v15117_v12  ;;  %v2021_v32 = vpop.permute.xlu0 %2020  ;;  %2048 = vbcast.lane.b32.xlu1 %v8697_v10, 344 }
  0xfe   : > { %v15119_v53 = vunpack.c.h.bf16 %v15117_v12  ;;  %v10217_v49 = vadd.f32 %v9939_v62, %v2883_v45  ;;  %v10220_v4 = vadd.f32 %v9942_v11, %v2884_v1  ;;  %v15121_v31 = vunpack.c.l.bf16 %v15120_v7 }
  0xff   : > { %v2887_v9 = vmul.f32 %v2099_v22, %v15118_v40  ;;  %v10223_v51 = vadd.f32 %v9950_v0, %v2885_v55  ;;  %v10226_v57 = vadd.f32 %v9953_v2, %v2886_v36  ;;  %v15122_v42 = vunpack.c.h.bf16 %v15120_v7  ;;  %v15126_v55 = vld [vmem:[#allocation75_spill] sm:$0xff] }
 0x100   : > { %v2888_v17 = vmul.f32 %v2099_v22, %v15119_v53  ;;  %v2553_v41 = vmul.f32 %v1861_v27, %v15121_v31  ;;  %v15123_v22 = vld [vmem:[#allocation74_spill] sm:$0xff]  ;;  %v15127_v36 = vunpack.c.l.bf16 %v15126_v55  ;;  %v15128_v40 = vunpack.c.h.bf16 %v15126_v55 }
 0x101   : > { %v2554_v33 = vmul.f32 %v1861_v27, %v15122_v42  ;;  %v10234_v62 = vadd.f32 %v9956_v6, %v2887_v9  ;;  %v15124_v0 = vunpack.c.l.bf16 %v15123_v22  ;;  %v15125_v2 = vunpack.c.h.bf16 %v15123_v22  ;;  %2208 = vbcast.lane.b32.xlu1 %v8718_v14, 336 }
 0x102   : > { %v10237_v11 = vadd.f32 %v9959_v54, %v2888_v17  ;;  %v2557_v12 = vmul.f32 %v1861_v27, %v15127_v36  ;;  %v2558_v53 = vmul.f32 %v1861_v27, %v15128_v40  ;;  %v10248_v7 = vadd.f32 %v10056_v43, %v2553_v41  ;;  %v15129_v17 = vld [vmem:[#allocation76_spill] sm:$0xff] }
 0x103   : > { %v2555_v45 = vmul.f32 %v1861_v27, %v15124_v0  ;;  %v2556_v1 = vmul.f32 %v1861_v27, %v15125_v2  ;;  %v10251_v6 = vadd.f32 %v10059_v23, %v2554_v33  ;;  %v15130_v31 = vunpack.c.l.bf16 %v15129_v17  ;;  %v15132_v23 = vld [vmem:[#allocation77_spill] sm:$0xff]  ;;  %v15135_v2 = vld [vmem:[#allocation78_spill] sm:$0xff] }
 0x104   : > { %v15131_v22 = vunpack.c.h.bf16 %v15129_v17  ;;  %v10264_v27 = vadd.f32 %v10073_v47, %v2557_v12  ;;  %v10267_v43 = vadd.f32 %v10076_v28, %v2558_v53  ;;  %v15133_v41 = vunpack.c.l.bf16 %v15132_v23  ;;  %v2341_v12 = vpop.permute.xlu0 %2340 }
 0x105   : > { %v10254_v54 = vadd.f32 %v10067_v35, %v2555_v45  ;;  %v10257_v9 = vadd.f32 %v10070_v3, %v2556_v1  ;;  %v2433_v42 = vmul.f32 %v1775_v60, %v15130_v31  ;;  %v15134_v35 = vunpack.c.h.bf16 %v15132_v23  ;;  %v1943_v3 = vpop.permute.xlu1 %1942  ;;  %v15142_v31 = vld [vmem:[#allocation79_spill] sm:$0xff]  ;;  %2368 = vbcast.lane.b32.xlu1 %v8765_v26, 328 }
 0x106   : > { %v2434_v0 = vmul.f32 %v1775_v60, %v15131_v22  ;;  %v2435_v33 = vmul.f32 %v1775_v60, %v15133_v41  ;;  %v15136_v1 = vunpack.c.l.bf16 %v15135_v2  ;;  %v15137_v36 = vunpack.c.h.bf16 %v15135_v2 }
 0x107   : > { %v2436_v45 = vmul.f32 %v1775_v60, %v15134_v35  ;;  %v10279_v47 = vadd.f32 %v9970_v18, %v2433_v42  ;;  %v15143_v22 = vunpack.c.l.bf16 %v15142_v31  ;;  %v15144_v41 = vunpack.c.h.bf16 %v15142_v31  ;;  %v15146_v18 = vld [vmem:[#allocation22_spill] sm:$0xff] }
 0x108   : > { %v2437_v55 = vmul.f32 %v1775_v60, %v15136_v1  ;;  %v2438_v40 = vmul.f32 %v1775_v60, %v15137_v36  ;;  %v10282_v28 = vadd.f32 %v9973_v19, %v2434_v0  ;;  %v10285_v53 = vadd.f32 %v9980_v52, %v2435_v33  ;;  %v15148_v19 = vld [vmem:[#allocation80_spill] sm:$0xff] }
 0x109   : > { %15138 = vst [vmem:[#allocation33_spill] sm:$0xff] %v10279_v47  ;;  %v10288_v17 = vadd.f32 %v9983_v8, %v2436_v45  ;;  %v2997_v23 = vmul.f32 %v2181_v50, %v15143_v22  ;;  %v2998_v35 = vmul.f32 %v2181_v50, %v15144_v41  ;;  %v15149_v0 = vunpack.c.l.bf16 %v15148_v19  ;;  %v15151_v8 = vld [vmem:[#allocation81_spill] sm:$0xff]  ;;  %v15154_v41 = vld [vmem:[#allocation82_spill] sm:$0xff] }
 0x10a   : > { %15139 = vst [vmem:[#allocation34_spill] sm:$0xff] %v10282_v28  ;;  %15140 = vst [vmem:[#allocation35_spill] sm:$0xff] %v10285_v53  ;;  %v10295_v60 = vadd.f32 %v9986_v30, %v2437_v55  ;;  %v10298_v42 = vadd.f32 %v15146_v18, %v2438_v40  ;;  %v15150_v52 = vunpack.c.h.bf16 %v15148_v19  ;;  %v15152_v45 = vunpack.c.l.bf16 %v15151_v8  ;;  %v15197_v53 = vld [vmem:[#allocation90_spill] sm:$0xff] }
 0x10b   : > { %15141 = vst [vmem:[#allocation36_spill] sm:$0xff] %v10288_v17  ;;  %v2999_v2 = vmul.f32 %v2181_v50, %v15149_v0  ;;  %v15153_v36 = vunpack.c.h.bf16 %v15151_v8  ;;  %v10309_v31 = vadd.f32 %v10104_v61, %v2997_v23  ;;  %v10312_v30 = vadd.f32 %v10107_v46, %v2998_v35  ;;  %v15157_v23 = vld [vmem:[#allocation83_spill] sm:$0xff] }
 0x10c   : > { %15145 = vst [vmem:[#allocation39_spill] sm:$0xff] %v10295_v60  ;;  %15147 = vst [vmem:[#allocation40_spill] sm:$0xff] %v10298_v42  ;;  %v3000_v33 = vmul.f32 %v2181_v50, %v15150_v52  ;;  %v3001_v1 = vmul.f32 %v2181_v50, %v15152_v45  ;;  %v15155_v18 = vunpack.c.l.bf16 %v15154_v41  ;;  %v15156_v0 = vunpack.c.h.bf16 %v15154_v41 }
 0x10d   : > { %v3002_v22 = vmul.f32 %v2181_v50, %v15153_v36  ;;  %v10316_v55 = vadd.f32 %v10110_v25, %v2999_v2  ;;  %v15158_v35 = vunpack.c.l.bf16 %v15157_v23  ;;  %v15159_v25 = vunpack.c.h.bf16 %v15157_v23 }
 0x10e   : > { %v10319_v40 = vadd.f32 %v10113_v63, %v3000_v33  ;;  %v2775_v19 = vmul.f32 %v2021_v32, %v15155_v18  ;;  %v2776_v50 = vmul.f32 %v2021_v32, %v15156_v0  ;;  %v10326_v61 = vadd.f32 %v10116_v16, %v3001_v1  ;;  %v2263_v63 = vpop.permute.xlu1 %2262  ;;  %v15160_v33 = vld [vmem:[#allocation84_spill] sm:$0xff]  ;;  %v15164_v16 = vld [vmem:[#allocation23_spill] sm:$0xff] }
 0x10f   : > { %v10329_v46 = vadd.f32 %v10119_v38, %v3002_v22  ;;  %v2777_v52 = vmul.f32 %v2021_v32, %v15158_v35  ;;  %v2778_v2 = vmul.f32 %v2021_v32, %v15159_v25  ;;  %v15161_v8 = vunpack.c.l.bf16 %v15160_v33  ;;  %v2103_v38 = vpop.permute.xlu0 %2102  ;;  %v15166_v22 = vld [vmem:[#allocation24_spill] sm:$0xff]  ;;  %v15168_v35 = vld [vmem:[#allocation27_spill] sm:$0xff]  ;;  %v15170_v25 = vld [vmem:[#allocation85_spill] sm:$0xff] }
 0x110   : > { %v15162_v36 = vunpack.c.h.bf16 %v15160_v33  ;;  %v10340_v18 = vadd.f32 %v10026_v44, %v2775_v19  ;;  %v10343_v1 = vadd.f32 %v15164_v16, %v2776_v50  ;;  %v15171_v42 = vunpack.c.l.bf16 %v15170_v25  ;;  %v15174_v44 = vld [vmem:[#allocation28_spill] sm:$0xff]  ;;  %v15176_v50 = vld [vmem:[#allocation29_spill] sm:$0xff]  ;;  %v15178_v16 = vld [vmem:[#allocation86_spill] sm:$0xff] }
 0x111   : > { %v2779_v45 = vmul.f32 %v2021_v32, %v15161_v8  ;;  %v10346_v0 = vadd.f32 %v15166_v22, %v2777_v52  ;;  %v10349_v23 = vadd.f32 %v15168_v35, %v2778_v2  ;;  %v15172_v8 = vunpack.c.h.bf16 %v15170_v25 }
 0x112   : > { %v2780_v41 = vmul.f32 %v2021_v32, %v15162_v36  ;;  %15163 = vst [vmem:[#allocation41_spill] sm:$0xff] %v10340_v18  ;;  %15165 = vst [vmem:[#allocation37_spill] sm:$0xff] %v10343_v1  ;;  %v2667_v60 = vmul.f32 %v1943_v3, %v15171_v42  ;;  %v15173_v32 = vld [vmem:[#allocation5_spill] sm:$0xff]  ;;  %v15179_v52 = vunpack.c.l.bf16 %v15178_v16  ;;  %v15180_v2 = vunpack.c.h.bf16 %v15178_v16  ;;  %v15182_v42 = vld [vmem:[#allocation87_spill] sm:$0xff] }
 0x113   : > { %15167 = vst [vmem:[#allocation38_spill] sm:$0xff] %v10346_v0  ;;  %15169 = vst [vmem:[#allocation42_spill] sm:$0xff] %v10349_v23  ;;  %v2668_v33 = vmul.f32 %v1943_v3, %v15172_v8  ;;  %1970 = vbcast.lane.b32.xlu1 %v15173_v32, 352  ;;  %v10357_v19 = vadd.f32 %v15174_v44, %v2779_v45  ;;  %v15181_v23 = vld [vmem:[#allocation8_spill] sm:$0xff]  ;;  %v15183_v0 = vunpack.c.l.bf16 %v15182_v42  ;;  %v15184_v8 = vunpack.c.h.bf16 %v15182_v42  ;;  %v15185_v44 = vld [vmem:[#allocation25_spill] sm:$0xff] }
 0x114   : > { %v10360_v36 = vadd.f32 %v15176_v50, %v2780_v41  ;;  %v2669_v22 = vmul.f32 %v1943_v3, %v15179_v52  ;;  %v2670_v35 = vmul.f32 %v1943_v3, %v15180_v2  ;;  %1802 = vbcast.lane.b32.xlu0 %v15181_v23, 344  ;;  %v10372_v45 = vadd.f32 %v10130_v5, %v2667_v60  ;;  %v15186_v50 = vld [vmem:[#allocation26_spill] sm:$0xff]  ;;  %v15188_v2 = vld [vmem:[#allocation88_spill] sm:$0xff]  ;;  %v15191_v42 = vld [vmem:[#allocation31_spill] sm:$0xff] }
 0x115   : > { %15175 = vst [vmem:[#allocation43_spill] sm:$0xff] %v10357_v19  ;;  %v2671_v25 = vmul.f32 %v1943_v3, %v15183_v0  ;;  %v2672_v1 = vmul.f32 %v1943_v3, %v15184_v8  ;;  %v10375_v41 = vadd.f32 %v15185_v44, %v2668_v33  ;;  %v15187_v52 = vld [vmem:[#allocation30_spill] sm:$0xff]  ;;  %v15189_v19 = vunpack.c.l.bf16 %v15188_v2  ;;  %v15192_v5 = vld [vmem:[#allocation32_spill] sm:$0xff]  ;;  %v15193_v33 = vld [vmem:[#allocation89_spill] sm:$0xff] }
 0x116   : > { %15177 = vst [vmem:[#allocation44_spill] sm:$0xff] %v10360_v36  ;;  %v10378_v36 = vadd.f32 %v15186_v50, %v2669_v22  ;;  %v10381_v16 = vadd.f32 %v15187_v52, %v2670_v35  ;;  %v15190_v0 = vunpack.c.h.bf16 %v15188_v2  ;;  %v15194_v8 = vunpack.c.l.bf16 %v15193_v33  ;;  %v1865_v35 = vpop.permute.xlu1 %1864  ;;  %v15196_v52 = vld [vmem:[#allocation11_spill] sm:$0xff] }
 0x117   : > { %v3219_v18 = vmul.f32 %v2341_v12, %v15189_v19  ;;  %v10388_v3 = vadd.f32 %v15191_v42, %v2671_v25  ;;  %v10391_v60 = vadd.f32 %v15192_v5, %v2672_v1  ;;  %v15195_v22 = vunpack.c.h.bf16 %v15193_v33  ;;  %2130 = vbcast.lane.b32.xlu1 %v15196_v52, 344  ;;  %v1779_v42 = vpop.permute.xlu0 %1778  ;;  %v15202_v5 = vld [vmem:[#allocation14_spill] sm:$0xff] }
 0x118   : > { %v3220_v17 = vmul.f32 %v2341_v12, %v15190_v0  ;;  %v3221_v44 = vmul.f32 %v2341_v12, %v15194_v8  ;;  %v15198_v19 = vunpack.c.l.bf16 %v15197_v53  ;;  %v15199_v2 = vunpack.c.h.bf16 %v15197_v53  ;;  %2290 = vbcast.lane.b32.xlu0 %v15202_v5, 336 }
 0x119   : > { %v3222_v50 = vmul.f32 %v2341_v12, %v15195_v22  ;;  %v10403_v25 = vadd.f32 %v10161_v56, %v3219_v18  ;;  %v15205_v22 = vld [vmem:[#allocation91_spill] sm:$0xff] }
 0x11a   : > { %v3223_v28 = vmul.f32 %v2341_v12, %v15198_v19  ;;  %v3224_v0 = vmul.f32 %v2341_v12, %v15199_v2  ;;  %v10406_v1 = vadd.f32 %v10163_v39, %v3220_v17  ;;  %v10410_v33 = vadd.f32 %v10165_v34, %v3221_v44  ;;  %v15210_v17 = vld [vmem:[#allocation92_spill] sm:$0xff] }
 0x11b   : > { %15200 = vst [vmem:[#allocation45_spill] sm:$0xff] %v10403_v25  ;;  %v10413_v8 = vadd.f32 %v10167_v29, %v3222_v50  ;;  %v15206_v19 = vunpack.c.l.bf16 %v15205_v22  ;;  %v15207_v12 = vunpack.c.h.bf16 %v15205_v22  ;;  %v15211_v18 = vunpack.c.l.bf16 %v15210_v17  ;;  %v15213_v29 = vld [vmem:[#allocation93_spill] sm:$0xff]  ;;  %1806 = vbcast.lane.b32.xlu1 %v15181_v23, 352 }
 0x11c   : > { %15201 = vst [vmem:[#allocation46_spill] sm:$0xff] %v10406_v1  ;;  %15203 = vst [vmem:[#allocation47_spill] sm:$0xff] %v10410_v33  ;;  %v10420_v56 = vadd.f32 %v10173_v24, %v3223_v28  ;;  %v10423_v39 = vadd.f32 %v10175_v21, %v3224_v0  ;;  %v15212_v34 = vunpack.c.h.bf16 %v15210_v17  ;;  %v15214_v50 = vunpack.c.l.bf16 %v15213_v29  ;;  %v15216_v0 = vld [vmem:[#allocation94_spill] sm:$0xff]  ;;  %1892 = vbcast.lane.b32.xlu0 %v15110_v59, 360  ;;  %v15231_v1 = vld [vmem:[#allocation100_spill] sm:$0xff] }
 0x11d   : > { %15204 = vst [vmem:[#allocation48_spill] sm:$0xff] %v10413_v8  ;;  %v3111_v47 = vmul.f32 %v2263_v63, %v15206_v19  ;;  %v3112_v53 = vmul.f32 %v2263_v63, %v15207_v12  ;;  %v3113_v2 = vmul.f32 %v2263_v63, %v15211_v18  ;;  %v15215_v19 = vunpack.c.h.bf16 %v15213_v29 }
 0x11e   : > { %15208 = vst [vmem:[#allocation49_spill] sm:$0xff] %v10420_v56  ;;  %15209 = vst [vmem:[#allocation50_spill] sm:$0xff] %v10423_v39  ;;  %v3114_v44 = vmul.f32 %v2263_v63, %v15212_v34  ;;  %v3115_v8 = vmul.f32 %v2263_v63, %v15214_v50  ;;  %v15217_v12 = vunpack.c.l.bf16 %v15216_v0  ;;  %v2185_v34 = vpop.permute.xlu1 %2184 }
 0x11f   : > { %v3116_v33 = vmul.f32 %v2263_v63, %v15215_v19  ;;  %v10434_v22 = vadd.f32 %v10186_v37, %v3111_v47  ;;  %v10437_v24 = vadd.f32 %v10189_v13, %v3112_v53  ;;  %v10441_v21 = vadd.f32 %v10193_v58, %v3113_v2  ;;  %v15219_v58 = vld [vmem:[#allocation95_spill] sm:$0xff]  ;;  %2052 = vbcast.lane.b32.xlu1 %v8697_v10, 352 }
 0x120   : > { %v10444_v28 = vadd.f32 %v10196_v15, %v3114_v44  ;;  %v10448_v17 = vmul.f32 %v2103_v38, %v15217_v12  ;;  %v15218_v63 = vunpack.c.h.bf16 %v15216_v0  ;;  %v10456_v37 = vadd.f32 %v10203_v20, %v3115_v8  ;;  %v15222_v44 = vld [vmem:[#allocation96_spill] sm:$0xff]  ;;  %v15225_v8 = vld [vmem:[#allocation97_spill] sm:$0xff]  ;;  %2212 = vbcast.lane.b32.xlu0 %v8718_v14, 344 }
 0x121   : > { %v10459_v13 = vadd.f32 %v10206_v48, %v3116_v33  ;;  %v15220_v47 = vunpack.c.l.bf16 %v15219_v58  ;;  %v15221_v53 = vunpack.c.h.bf16 %v15219_v58  ;;  %v15223_v29 = vunpack.c.l.bf16 %v15222_v44 }
 0x122   : > { %v10452_v18 = vmul.f32 %v2103_v38, %v15218_v63  ;;  %v15224_v19 = vunpack.c.h.bf16 %v15222_v44  ;;  %v15226_v48 = vunpack.c.l.bf16 %v15225_v8  ;;  %v15227_v0 = vunpack.c.h.bf16 %v15225_v8  ;;  %v2025_v63 = vpop.permute.xlu0 %2024 }
 0x123   : > { %v10463_v15 = vmul.f32 %v2103_v38, %v15220_v47  ;;  %v10467_v2 = vmul.f32 %v2103_v38, %v15221_v53  ;;  %v10471_v50 = vmul.f32 %v2103_v38, %v15223_v29  ;;  %v15228_v47 = vld [vmem:[#allocation98_spill] sm:$0xff]  ;;  %v15232_v29 = vunpack.c.l.bf16 %v15231_v1  ;;  %2372 = vbcast.lane.b32.xlu1 %v8765_v26, 336 }
 0x124   : > { %v10475_v20 = vmul.f32 %v2103_v38, %v15224_v19  ;;  %v2559_v33 = vmul.f32 %v1865_v35, %v15226_v48  ;;  %v2560_v12 = vmul.f32 %v1865_v35, %v15227_v0  ;;  %v15229_v58 = vunpack.c.l.bf16 %v15228_v47  ;;  %v15234_v48 = vld [vmem:[#allocation101_spill] sm:$0xff]  ;;  %1974 = vbcast.lane.b32.xlu0 %v15173_v32, 360 }
 0x125   : > { %v15230_v39 = vunpack.c.h.bf16 %v15228_v47  ;;  %v2563_v25 = vmul.f32 %v1865_v35, %v15232_v29  ;;  %v15233_v44 = vunpack.c.h.bf16 %v15231_v1  ;;  %v15235_v0 = vunpack.c.l.bf16 %v15234_v48 }
 0x126   : > { %v2561_v53 = vmul.f32 %v1865_v35, %v15229_v58  ;;  %v10491_v19 = vadd.f32 %v10248_v7, %v2559_v33  ;;  %v10494_v8 = vadd.f32 %v10251_v6, %v2560_v12  ;;  %v15239_v33 = vld [vmem:[#allocation102_spill] sm:$0xff] }
 0x127   : > { %v2562_v56 = vmul.f32 %v1865_v35, %v15230_v39  ;;  %v2564_v38 = vmul.f32 %v1865_v35, %v15233_v44  ;;  %v10498_v58 = vmul.f32 %v1779_v42, %v15235_v0  ;;  %v15237_v39 = vunpack.c.h.bf16 %v15234_v48  ;;  %v15244_v0 = vld [vmem:[#allocation103_spill] sm:$0xff]  ;;  %2134 = vbcast.lane.b32.xlu1 %v15196_v52, 352 }
 0x128   : > { %v10506_v35 = vadd.f32 %v10254_v54, %v2561_v53  ;;  %v10512_v7 = vadd.f32 %v10264_v27, %v2563_v25  ;;  %v15240_v12 = vunpack.c.l.bf16 %v15239_v33  ;;  %v15242_v44 = vunpack.c.h.bf16 %v15239_v33  ;;  %v15249_v27 = vld [vmem:[#allocation104_spill] sm:$0xff]  ;;  %2294 = vbcast.lane.b32.xlu0 %v15202_v5, 344 }
 0x129   : > { %15236 = vst [vmem:[#allocation51_spill] sm:$0xff] %v10498_v58  ;;  %v10502_v47 = vmul.f32 %v1779_v42, %v15237_v39  ;;  %v10509_v1 = vadd.f32 %v10257_v9, %v2562_v56  ;;  %v10515_v6 = vadd.f32 %v10267_v43, %v2564_v38  ;;  %v15245_v54 = vunpack.c.l.bf16 %v15244_v0 }
 0x12a   : > { %v10519_v29 = vmul.f32 %v1779_v42, %v15240_v12  ;;  %v10523_v48 = vmul.f32 %v1779_v42, %v15242_v44  ;;  %v15247_v9 = vunpack.c.h.bf16 %v15244_v0  ;;  %v15250_v25 = vunpack.c.l.bf16 %v15249_v27  ;;  %v15252_v12 = vld [vmem:[#allocation105_spill] sm:$0xff] }
 0x12b   : > { %15238 = vst [vmem:[#allocation52_spill] sm:$0xff] %v10502_v47  ;;  %v10527_v53 = vmul.f32 %v1779_v42, %v15245_v54  ;;  %v15251_v38 = vunpack.c.h.bf16 %v15249_v27  ;;  %v15254_v33 = vunpack.c.h.bf16 %v15252_v12  ;;  %v15255_v54 = vld [vmem:[#allocation106_spill] sm:$0xff]  ;;  %1810 = vbcast.lane.b32.xlu1 %v15181_v23, 360 }
 0x12c   : > { %15241 = vst [vmem:[#allocation53_spill] sm:$0xff] %v10519_v29  ;;  %15243 = vst [vmem:[#allocation54_spill] sm:$0xff] %v10523_v48  ;;  %v10531_v56 = vmul.f32 %v1779_v42, %v15247_v9  ;;  %v3003_v43 = vmul.f32 %v2185_v34, %v15250_v25  ;;  %v15253_v29 = vunpack.c.l.bf16 %v15252_v12  ;;  %v1947_v48 = vpop.permute.xlu1 %1946  ;;  %v15257_v42 = vunpack.c.h.bf16 %v15255_v54  ;;  %1896 = vbcast.lane.b32.xlu0 %v15110_v59, 368 }
 0x12d   : > { %15246 = vst [vmem:[#allocation57_spill] sm:$0xff] %v10527_v53  ;;  %v3004_v39 = vmul.f32 %v2185_v34, %v15251_v38  ;;  %v3006_v44 = vmul.f32 %v2185_v34, %v15254_v33  ;;  %v15256_v53 = vunpack.c.l.bf16 %v15255_v54 }
 0x12e   : > { %15248 = vst [vmem:[#allocation16_spill] sm:$0xff] %v10531_v56  ;;  %v3005_v47 = vmul.f32 %v2185_v34, %v15253_v29  ;;  %v3008_v9 = vmul.f32 %v2185_v34, %v15257_v42  ;;  %v15258_v56 = vld [vmem:[#allocation107_spill] sm:$0xff]  ;;  %v2345_v29 = vpop.permute.xlu0 %2344  ;;  %v10556_v12 = vadd.f32 %v10309_v31, %v3003_v43  ;;  %v15262_v42 = vld [vmem:[#allocation108_spill] sm:$0xff]  ;;  %v15267_v43 = vld [vmem:[#allocation109_spill] sm:$0xff] }
 0x12f   : > { %v3007_v0 = vmul.f32 %v2185_v34, %v15256_v53  ;;  %v15259_v25 = vunpack.c.l.bf16 %v15258_v56  ;;  %v15260_v27 = vunpack.c.h.bf16 %v15258_v56  ;;  %v10559_v33 = vadd.f32 %v10312_v30, %v3004_v39  ;;  %2056 = vbcast.lane.b32.xlu1 %v8697_v10, 360 }
 0x130   : > { %v10562_v53 = vadd.f32 %v10316_v55, %v3005_v47  ;;  %v10565_v34 = vadd.f32 %v10319_v40, %v3006_v44  ;;  %v10571_v56 = vadd.f32 %v10329_v46, %v3008_v9  ;;  %v15265_v31 = vunpack.c.h.bf16 %v15262_v42  ;;  %2216 = vbcast.lane.b32.xlu0 %v8718_v14, 352 }
 0x131   : > { %v10548_v58 = vmul.f32 %v2025_v63, %v15259_v25  ;;  %v10552_v38 = vmul.f32 %v2025_v63, %v15260_v27  ;;  %v10568_v54 = vadd.f32 %v10326_v61, %v3007_v0  ;;  %v15263_v25 = vunpack.c.l.bf16 %v15262_v42  ;;  %v15271_v61 = vld [vmem:[#allocation110_spill] sm:$0xff] }
 0x132   : > { %v10579_v30 = vmul.f32 %v2025_v63, %v15265_v31  ;;  %v15268_v55 = vunpack.c.l.bf16 %v15267_v43  ;;  %v15270_v40 = vunpack.c.h.bf16 %v15267_v43  ;;  %v15272_v44 = vunpack.c.l.bf16 %v15271_v61 }
 0x133   : > { %15261 = vst [vmem:[#allocation17_spill] sm:$0xff] %v10552_v38  ;;  %v10575_v27 = vmul.f32 %v2025_v63, %v15263_v25  ;;  %v15273_v0 = vunpack.c.h.bf16 %v15271_v61  ;;  %v15274_v25 = vld [vmem:[#allocation111_spill] sm:$0xff]  ;;  %2376 = vbcast.lane.b32.xlu1 %v8765_v26, 344 }
 0x134   : > { %15266 = vst [vmem:[#allocation59_spill] sm:$0xff] %v10579_v30  ;;  %v10583_v47 = vmul.f32 %v2025_v63, %v15268_v55  ;;  %v10587_v39 = vmul.f32 %v2025_v63, %v15270_v40  ;;  %v2673_v46 = vmul.f32 %v1947_v48, %v15272_v44  ;;  %v15275_v42 = vunpack.c.l.bf16 %v15274_v25  ;;  %v15277_v55 = vld [vmem:[#allocation112_spill] sm:$0xff]  ;;  %v15280_v44 = vld [vmem:[#allocation113_spill] sm:$0xff]  ;;  %1978 = vbcast.lane.b32.xlu0 %v15173_v32, 368 }
 0x135   : > { %15264 = vst [vmem:[#allocation58_spill] sm:$0xff] %v10575_v27  ;;  %v2674_v9 = vmul.f32 %v1947_v48, %v15273_v0  ;;  %v15276_v30 = vunpack.c.h.bf16 %v15274_v25  ;;  %v15279_v63 = vunpack.c.h.bf16 %v15277_v55  ;;  %v15281_v0 = vunpack.c.l.bf16 %v15280_v44 }
 0x136   : > { %15269 = vst [vmem:[#allocation55_spill] sm:$0xff] %v10583_v47  ;;  %v2675_v31 = vmul.f32 %v1947_v48, %v15275_v42  ;;  %v15278_v47 = vunpack.c.l.bf16 %v15277_v55  ;;  %v10604_v40 = vadd.f32 %v10372_v45, %v2673_v46  ;;  %v2107_v46 = vpop.permute.xlu0 %2106 }
 0x137   : > { %v2676_v27 = vmul.f32 %v1947_v48, %v15276_v30  ;;  %v2678_v43 = vmul.f32 %v1947_v48, %v15279_v63  ;;  %v10607_v61 = vadd.f32 %v10375_v41, %v2674_v9  ;;  %v10611_v42 = vmul.f32 %v2345_v29, %v15281_v0  ;;  %v15287_v9 = vld [vmem:[#allocation114_spill] sm:$0xff]  ;;  %2138 = vbcast.lane.b32.xlu1 %v15196_v52, 360 }
 0x138   : > { %v2677_v38 = vmul.f32 %v1947_v48, %v15278_v47  ;;  %v15283_v30 = vunpack.c.h.bf16 %v15280_v44  ;;  %v2267_v47 = vpop.permute.xlu1 %2266  ;;  %v10618_v55 = vadd.f32 %v10378_v36, %v2675_v31  ;;  %v15288_v63 = vunpack.c.l.bf16 %v15287_v9  ;;  %v15292_v36 = vld [vmem:[#allocation115_spill] sm:$0xff]  ;;  %2298 = vbcast.lane.b32.xlu0 %v15202_v5, 352 }
 0x139   : > { %15282 = vst [vmem:[#allocation56_spill] sm:$0xff] %v10611_v42  ;;  %v10621_v48 = vadd.f32 %v10381_v16, %v2676_v27  ;;  %v10627_v41 = vadd.f32 %v10391_v60, %v2678_v43  ;;  %v15290_v44 = vunpack.c.h.bf16 %v15287_v9  ;;  %v15293_v31 = vunpack.c.l.bf16 %v15292_v36  ;;  %v15297_v60 = vld [vmem:[#allocation116_spill] sm:$0xff] }
 0x13a   : > { %v10615_v25 = vmul.f32 %v2345_v29, %v15283_v30  ;;  %v10624_v45 = vadd.f32 %v10388_v3, %v2677_v38  ;;  %v10631_v0 = vmul.f32 %v2345_v29, %v15288_v63  ;;  %v15295_v16 = vunpack.c.h.bf16 %v15292_v36 }
 0x13b   : > { %15286 = vst [vmem:[#allocation62_spill] sm:$0xff] %v10627_v41  ;;  %v10635_v30 = vmul.f32 %v2345_v29, %v15290_v44  ;;  %v15298_v38 = vunpack.c.l.bf16 %v15297_v60  ;;  %v15299_v43 = vunpack.c.h.bf16 %v15297_v60  ;;  %1814 = vbcast.lane.b32.xlu1 %v15181_v23, 368 }
 0x13c   : > { %15284 = vst [vmem:[#allocation60_spill] sm:$0xff] %v10615_v25  ;;  %15285 = vst [vmem:[#allocation61_spill] sm:$0xff] %v10624_v45  ;;  %v10639_v25 = vmul.f32 %v2345_v29, %v15293_v31  ;;  %v10643_v3 = vmul.f32 %v2345_v29, %v15295_v16  ;;  %v15303_v31 = vld [vmem:[#allocation118_spill] sm:$0xff]  ;;  %1900 = vbcast.lane.b32.xlu0 %v15110_v59, 376 }
 0x13d   : > { %15289 = vst [vmem:[#allocation63_spill] sm:$0xff] %v10631_v0  ;;  %15291 = vst [vmem:[#allocation18_spill] sm:$0xff] %v10635_v30  ;;  %v3117_v27 = vmul.f32 %v2267_v47, %v15298_v38  ;;  %v3118_v63 = vmul.f32 %v2267_v47, %v15299_v43  ;;  %v15300_v0 = vld [vmem:[#allocation117_spill] sm:$0xff]  ;;  %v15304_v36 = vunpack.c.l.bf16 %v15303_v31  ;;  %v15305_v16 = vunpack.c.h.bf16 %v15303_v31 }
 0x13e   : > { %15294 = vst [vmem:[#allocation19_spill] sm:$0xff] %v10639_v25  ;;  %15296 = vst [vmem:[#allocation64_spill] sm:$0xff] %v10643_v3  ;;  %v15301_v9 = vunpack.c.l.bf16 %v15300_v0  ;;  %v15302_v30 = vunpack.c.h.bf16 %v15300_v0  ;;  %v15306_v25 = vld [vmem:[#allocation119_spill] sm:$0xff] }
 0x13f   : > { %v3121_v29 = vmul.f32 %v2267_v47, %v15304_v36  ;;  %v3122_v3 = vmul.f32 %v2267_v47, %v15305_v16  ;;  %v15307_v41 = vunpack.c.l.bf16 %v15306_v25  ;;  %v15308_v60 = vunpack.c.h.bf16 %v15306_v25  ;;  %v15309_v25 = vld [vmem:[#allocation120_spill] sm:$0xff]  ;;  %2060 = vbcast.lane.b32.xlu1 %v8697_v10, 368 }
 0x140   : > { %v3119_v44 = vmul.f32 %v2267_v47, %v15301_v9  ;;  %v3120_v42 = vmul.f32 %v2267_v47, %v15302_v30  ;;  %v10664_v45 = vadd.f32 %v10434_v22, %v3117_v27  ;;  %v10667_v0 = vadd.f32 %v10437_v24, %v3118_v63  ;;  %v1869_v24 = vpop.permute.xlu1 %1868  ;;  %2220 = vbcast.lane.b32.xlu0 %v8718_v14, 360 }
 0x141   : > { %v2895_v38 = vmul.f32 %v2107_v46, %v15307_v41  ;;  %v2896_v43 = vmul.f32 %v2107_v46, %v15308_v60  ;;  %v10676_v47 = vadd.f32 %v10456_v37, %v3121_v29  ;;  %v10679_v41 = vadd.f32 %v10459_v13, %v3122_v3 }
 0x142   : > { %v10670_v30 = vadd.f32 %v10441_v21, %v3119_v44  ;;  %v10673_v9 = vadd.f32 %v10444_v28, %v3120_v42  ;;  %v15310_v31 = vunpack.c.l.bf16 %v15309_v25  ;;  %v15311_v22 = vunpack.c.h.bf16 %v15309_v25  ;;  %v15312_v21 = vld [vmem:[#allocation121_spill] sm:$0xff] }
 0x143   : > { %v15313_v63 = vunpack.c.l.bf16 %v15312_v21  ;;  %v15314_v28 = vunpack.c.h.bf16 %v15312_v21  ;;  %v3925_v37 = vadd.f32 %v10217_v49, %v10448_v17  ;;  %v3950_v13 = vadd.f32 %v10220_v4, %v10452_v18  ;;  %v15315_v17 = vld [vmem:[#allocation122_spill] sm:$0xff]  ;;  %2380 = vbcast.lane.b32.xlu1 %v8765_v26, 352 }
 0x144   : > { %v2897_v36 = vmul.f32 %v2107_v46, %v15310_v31  ;;  %v2898_v27 = vmul.f32 %v2107_v46, %v15311_v22  ;;  %v3975_v3 = vadd.f32 %v10223_v51, %v10463_v15  ;;  %v4000_v29 = vadd.f32 %v10226_v57, %v10467_v2  ;;  %v1783_v51 = vpop.permute.xlu0 %1782  ;;  %v15321_v22 = vld [vmem:[#allocation124_spill] sm:$0xff]  ;;  %1982 = vbcast.lane.b32.xlu0 %v15173_v32, 376 }
 0x145   : > { %v2899_v44 = vmul.f32 %v2107_v46, %v15313_v63  ;;  %v2900_v42 = vmul.f32 %v2107_v46, %v15314_v28  ;;  %v4025_v16 = vadd.f32 %v10234_v62, %v10471_v50  ;;  %v4050_v46 = vadd.f32 %v10237_v11, %v10475_v20  ;;  %v15318_v11 = vld [vmem:[#allocation123_spill] sm:$0xff] }
 0x146   : > { %v10703_v60 = vadd.f32 %v3925_v37, %v2895_v38  ;;  %v10705_v49 = vadd.f32 %v3950_v13, %v2896_v43  ;;  %v15316_v4 = vunpack.c.l.bf16 %v15315_v17  ;;  %v15317_v25 = vunpack.c.h.bf16 %v15315_v17  ;;  %v15328_v17 = vld [vmem:[#allocation126_spill] sm:$0xff] }
 0x147   : > { %v10711_v15 = vadd.f32 %v3975_v3, %v2897_v36  ;;  %v10713_v57 = vadd.f32 %v4000_v29, %v2898_v27  ;;  %v10715_v2 = vadd.f32 %v4025_v16, %v2899_v44  ;;  %v10717_v62 = vadd.f32 %v4050_v46, %v2900_v42  ;;  %v15324_v42 = vld [vmem:[#allocation125_spill] sm:$0xff]  ;;  %2142 = vbcast.lane.b32.xlu1 %v15196_v52, 368 }
 0x148   : > { %v2565_v18 = vmul.f32 %v1869_v24, %v15316_v4  ;;  %v2566_v31 = vmul.f32 %v1869_v24, %v15317_v25  ;;  %v15319_v50 = vunpack.c.l.bf16 %v15318_v11  ;;  %v15320_v38 = vunpack.c.h.bf16 %v15318_v11  ;;  %v15331_v11 = vld [vmem:[#allocation127_spill] sm:$0xff]  ;;  %2302 = vbcast.lane.b32.xlu0 %v15202_v5, 360  ;;  %v735_v5 = vld [vmem:[%s8732_s16 + $0xb30] sm:$0xff] }
 0x149   : > { %v15322_v21 = vunpack.c.l.bf16 %v15321_v22  ;;  %v15323_v36 = vunpack.c.h.bf16 %v15321_v22  ;;  %v15325_v37 = vunpack.c.l.bf16 %v15324_v42  ;;  %v15326_v3 = vunpack.c.h.bf16 %v15324_v42  ;;  %v15337_v22 = vld [vmem:[#allocation34_spill] sm:$0xff] }
 0x14a   : > { %v2567_v20 = vmul.f32 %v1869_v24, %v15319_v50  ;;  %v2568_v43 = vmul.f32 %v1869_v24, %v15320_v38  ;;  %v10730_v44 = vadd.f32 %v10491_v19, %v2565_v18  ;;  %v10733_v28 = vadd.f32 %v10494_v8, %v2566_v31  ;;  %v679_v8 = vld [vmem:[%s8732_s16 + $0x970] sm:$0xff]  ;;  %v15335_v38 = vld [vmem:[#allocation33_spill] sm:$0xff]  ;;  %v15340_v42 = vld [vmem:[#allocation54_spill] sm:$0xff] }
 0x14b   : > { %v2569_v63 = vmul.f32 %v1869_v24, %v15322_v21  ;;  %v2570_v27 = vmul.f32 %v1869_v24, %v15323_v36  ;;  %v2445_v13 = vmul.f32 %v1783_v51, %v15325_v37  ;;  %v2446_v29 = vmul.f32 %v1783_v51, %v15326_v3  ;;  %v15339_v36 = vld [vmem:[#allocation35_spill] sm:$0xff]  ;;  %v15341_v37 = vld [vmem:[#allocation36_spill] sm:$0xff]  ;;  %1818 = vbcast.lane.b32.xlu1 %v15181_v23, 376 }
 0x14c   : > { %v10740_v16 = vadd.f32 %v10506_v35, %v2567_v20  ;;  %v10743_v46 = vadd.f32 %v10509_v1, %v2568_v43  ;;  %v15329_v4 = vunpack.c.l.bf16 %v15328_v17  ;;  %v15330_v25 = vunpack.c.h.bf16 %v15328_v17  ;;  %v15336_v43 = vld [vmem:[#allocation52_spill] sm:$0xff]  ;;  %v2189_v17 = vpop.permute.xlu1 %2188 }
 0x14d   : > { %v10746_v24 = vadd.f32 %v10512_v7, %v2569_v63  ;;  %v10749_v19 = vadd.f32 %v10515_v6, %v2570_v27  ;;  %v15332_v50 = vunpack.c.l.bf16 %v15331_v11  ;;  %v15333_v20 = vunpack.c.h.bf16 %v15331_v11  ;;  %v15334_v7 = vld [vmem:[#allocation51_spill] sm:$0xff]  ;;  %v15338_v63 = vld [vmem:[#allocation53_spill] sm:$0xff]  ;;  %v15344_v11 = vld [vmem:[#allocation16_spill] sm:$0xff] }
 0x14e   : > { %v2447_v18 = vmul.f32 %v1783_v51, %v15329_v4  ;;  %v2448_v31 = vmul.f32 %v1783_v51, %v15330_v25  ;;  %v3325_v6 = vadd.f32 %v15335_v38, %v15334_v7  ;;  %v3351_v21 = vadd.f32 %v15337_v22, %v15336_v43  ;;  %v15342_v4 = vld [vmem:[#allocation57_spill] sm:$0xff] }
 0x14f   : > { %15327 = vst [vmem:[#allocation99_spill] sm:$0xff] %v10749_v19  ;;  %v2449_v35 = vmul.f32 %v1783_v51, %v15332_v50  ;;  %v2450_v1 = vmul.f32 %v1783_v51, %v15333_v20  ;;  %v3376_v27 = vadd.f32 %v15339_v36, %v15338_v63  ;;  %v3401_v3 = vadd.f32 %v15341_v37, %v15340_v42  ;;  %v15343_v51 = vld [vmem:[#allocation39_spill] sm:$0xff]  ;;  %v15345_v50 = vld [vmem:[#allocation40_spill] sm:$0xff] }
 0x150   : > { %v3426_v25 = vadd.f32 %v15343_v51, %v15342_v4  ;;  %v3451_v20 = vadd.f32 %v15345_v50, %v15344_v11  ;;  %v1437_v19 = vunpack.c.l.bf16 %v679_v8  ;;  %v1438_v7 = vunpack.c.h.bf16 %v679_v8  ;;  %v566_v36 = vld [vmem:[%s8732_s16 + $0x5e8] sm:$0xff]  ;;  %v15346_v4 = vld [vmem:[#allocation128_spill] sm:$0xff]  ;;  %2064 = vbcast.lane.b32.xlu1 %v8697_v10, 376 }
 0x151   : > { %v10774_v38 = vadd.f32 %v3325_v6, %v2445_v13  ;;  %v10776_v43 = vadd.f32 %v3351_v21, %v2446_v29  ;;  %v10778_v22 = vadd.f32 %v3376_v27, %v2447_v18  ;;  %v10780_v63 = vadd.f32 %v3401_v3, %v2448_v31  ;;  %v15349_v13 = vld [vmem:[#allocation129_spill] sm:$0xff] }
 0x152   : > { %v10783_v42 = vadd.f32 %v3426_v25, %v2449_v35  ;;  %v10785_v37 = vadd.f32 %v3451_v20, %v2450_v1  ;;  %v15347_v51 = vunpack.c.l.bf16 %v15346_v4  ;;  %v15348_v50 = vunpack.c.h.bf16 %v15346_v4  ;;  %v567_v35 = vld [vmem:[%s8732_s16 + $0x5f0] sm:$0xff]  ;;  %v568_v3 = vld [vmem:[%s8732_s16 + $0x5f8] sm:$0xff]  ;;  %v2029_v20 = vpop.permute.xlu0 %2028 }
 0x153   : > { %v15350_v29 = vunpack.c.l.bf16 %v15349_v13  ;;  %v15351_v18 = vunpack.c.h.bf16 %v15349_v13  ;;  %v3013_v21 = vmul.f32 %v2189_v17, %v1437_v19  ;;  %v3014_v27 = vmul.f32 %v2189_v17, %v1438_v7  ;;  %v15356_v13 = vld [vmem:[#allocation17_spill] sm:$0xff] }
 0x154   : > { %v3009_v11 = vmul.f32 %v2189_v17, %v15347_v51  ;;  %v3010_v8 = vmul.f32 %v2189_v17, %v15348_v50  ;;  %v1211_v4 = vunpack.c.l.bf16 %v566_v36  ;;  %v1212_v51 = vunpack.c.h.bf16 %v566_v36  ;;  %2384 = vbcast.lane.b32.xlu1 %v8765_v26, 360 }
 0x155   : > { %v3011_v6 = vmul.f32 %v2189_v17, %v15350_v29  ;;  %v3012_v31 = vmul.f32 %v2189_v17, %v15351_v18  ;;  %v10812_v17 = vadd.f32 %v10568_v54, %v3013_v21  ;;  %v10815_v59 = vadd.f32 %v10571_v56, %v3014_v27  ;;  %v15357_v29 = vld [vmem:[#allocation37_spill] sm:$0xff]  ;;  %v513_v27 = vld [vmem:[%s8732_s16 + $0x440] sm:$0xff] }
 0x156   : > { %v10800_v1 = vadd.f32 %v10556_v12, %v3009_v11  ;;  %v10803_v25 = vadd.f32 %v10559_v33, %v3010_v8  ;;  %v1213_v12 = vunpack.c.l.bf16 %v567_v35  ;;  %v1214_v33 = vunpack.c.h.bf16 %v567_v35  ;;  %v15355_v8 = vld [vmem:[#allocation41_spill] sm:$0xff] }
 0x157   : > { %v10806_v50 = vadd.f32 %v10562_v53, %v3011_v6  ;;  %v10809_v19 = vadd.f32 %v10565_v34, %v3012_v31  ;;  %15353 = vst [vmem:[#allocation21_spill] sm:$0xff] %v10812_v17  ;;  %15354 = vst [vmem:[#allocation65_spill] sm:$0xff] %v10815_v59  ;;  %v1215_v7 = vunpack.c.l.bf16 %v568_v3  ;;  %v1216_v11 = vunpack.c.h.bf16 %v568_v3  ;;  %v512_v6 = vld [vmem:[%s8732_s16 + $0x438] sm:$0xff] }
 0x158   : > { %v2787_v36 = vmul.f32 %v2029_v20, %v1211_v4  ;;  %v2788_v53 = vmul.f32 %v2029_v20, %v1212_v51  ;;  %v3776_v34 = vadd.f32 %v15355_v8, %v10548_v58  ;;  %v3801_v54 = vadd.f32 %v15357_v29, %v15356_v13  ;;  %v15358_v4 = vld [vmem:[#allocation58_spill] sm:$0xff]  ;;  %v15360_v58 = vld [vmem:[#allocation59_spill] sm:$0xff]  ;;  %2146 = vbcast.lane.b32.xlu1 %v15196_v52, 376 }
 0x159   : > { %15352 = vst [vmem:[#allocation20_spill] sm:$0xff] %v10809_v19  ;;  %v2789_v56 = vmul.f32 %v2029_v20, %v1213_v12  ;;  %v2790_v18 = vmul.f32 %v2029_v20, %v1214_v33  ;;  %v2791_v31 = vmul.f32 %v2029_v20, %v1215_v7  ;;  %v2792_v21 = vmul.f32 %v2029_v20, %v1216_v11  ;;  %v15359_v51 = vld [vmem:[#allocation38_spill] sm:$0xff]  ;;  %v514_v13 = vld [vmem:[%s8732_s16 + $0x448] sm:$0xff]  ;;  %v15364_v12 = vld [vmem:[#allocation44_spill] sm:$0xff]  ;;  %v1951_v20 = vpop.permute.xlu1 %1950 }
 0x15a   : > { %v10825_v35 = vadd.f32 %v3776_v34, %v2787_v36  ;;  %v10827_v3 = vadd.f32 %v3801_v54, %v2788_v53  ;;  %v3826_v59 = vadd.f32 %v15359_v51, %v15358_v4  ;;  %v15361_v8 = vld [vmem:[#allocation42_spill] sm:$0xff]  ;;  %v15362_v29 = vld [vmem:[#allocation55_spill] sm:$0xff]  ;;  %v3901_v33 = vadd.f32 %v15364_v12, %v10587_v39  ;;  %v788_v4 = vld [vmem:[%s8732_s16 + $0xcd8] sm:$0xff] }
 0x15b   : > { %v3851_v17 = vadd.f32 %v15361_v8, %v15360_v58  ;;  %v15363_v19 = vld [vmem:[#allocation43_spill] sm:$0xff]  ;;  %v1103_v7 = vunpack.c.l.bf16 %v512_v6  ;;  %v1104_v11 = vunpack.c.h.bf16 %v512_v6  ;;  %v1105_v34 = vunpack.c.l.bf16 %v513_v27 }
 0x15c   : > { %v3876_v14 = vadd.f32 %v15363_v19, %v15362_v29  ;;  %v10839_v36 = vadd.f32 %v3826_v59, %v2789_v56  ;;  %v1106_v54 = vunpack.c.h.bf16 %v513_v27  ;;  %v10847_v51 = vadd.f32 %v3901_v33, %v2792_v21  ;;  %v789_v59 = vld [vmem:[%s8732_s16 + $0xce0] sm:$0xff] }
 0x15d   : > { %v10841_v53 = vadd.f32 %v3851_v17, %v2790_v18  ;;  %v1107_v39 = vunpack.c.l.bf16 %v514_v13  ;;  %v1108_v58 = vunpack.c.h.bf16 %v514_v13  ;;  %v2679_v6 = vmul.f32 %v1951_v20, %v1103_v7  ;;  %v2349_v18 = vpop.permute.xlu0 %2348  ;;  %v15369_v13 = vld [vmem:[#allocation61_spill] sm:$0xff] }
 0x15e   : > { %15365 = vst [vmem:[#allocation66_spill] sm:$0xff] %v10839_v36  ;;  %v10845_v19 = vadd.f32 %v3876_v14, %v2791_v31  ;;  %v2680_v8 = vmul.f32 %v1951_v20, %v1104_v11  ;;  %v2681_v29 = vmul.f32 %v1951_v20, %v1105_v34  ;;  %v2682_v12 = vmul.f32 %v1951_v20, %v1106_v54 }
 0x15f   : > { %15366 = vst [vmem:[#allocation67_spill] sm:$0xff] %v10841_v53  ;;  %v2683_v56 = vmul.f32 %v1951_v20, %v1107_v39  ;;  %v2684_v17 = vmul.f32 %v1951_v20, %v1108_v58  ;;  %v790_v53 = vld [vmem:[%s8732_s16 + $0xce8] sm:$0xff]  ;;  %v1655_v36 = vunpack.c.l.bf16 %v788_v4  ;;  %v1656_v27 = vunpack.c.h.bf16 %v788_v4  ;;  %v15371_v20 = vld [vmem:[#allocation62_spill] sm:$0xff]  ;;  %v15374_v58 = vld [vmem:[#allocation45_spill] sm:$0xff] }
 0x160   : > { %v10853_v14 = vadd.f32 %v10604_v40, %v2679_v6  ;;  %v10856_v32 = vadd.f32 %v10607_v61, %v2680_v8  ;;  %v10859_v31 = vadd.f32 %v10618_v55, %v2681_v29  ;;  %v10862_v21 = vadd.f32 %v10621_v48, %v2682_v12  ;;  %v15373_v48 = vld [vmem:[#allocation56_spill] sm:$0xff]  ;;  %v15376_v29 = vld [vmem:[#allocation46_spill] sm:$0xff] }
 0x161   : > { %v10866_v33 = vadd.f32 %v15369_v13, %v2683_v56  ;;  %v10869_v7 = vadd.f32 %v15371_v20, %v2684_v17  ;;  %v1657_v40 = vunpack.c.l.bf16 %v789_v59  ;;  %v1658_v11 = vunpack.c.h.bf16 %v789_v59  ;;  %v15375_v8 = vld [vmem:[#allocation60_spill] sm:$0xff]  ;;  %v734_v56 = vld [vmem:[%s8732_s16 + $0xb28] sm:$0xff]  ;;  %v2111_v10 = vpop.permute.xlu0 %2110 }
 0x162   : > { %15367 = vst [vmem:[#allocation68_spill] sm:$0xff] %v10859_v31  ;;  %15368 = vst [vmem:[#allocation69_spill] sm:$0xff] %v10862_v21  ;;  %v1659_v61 = vunpack.c.l.bf16 %v790_v53  ;;  %v1660_v34 = vunpack.c.h.bf16 %v790_v53  ;;  %v3231_v54 = vmul.f32 %v2349_v18, %v1655_v36  ;;  %v3232_v4 = vmul.f32 %v2349_v18, %v1656_v27  ;;  %v15377_v59 = vld [vmem:[#allocation63_spill] sm:$0xff]  ;;  %v15379_v36 = vld [vmem:[#allocation18_spill] sm:$0xff]  ;;  %v2271_v21 = vpop.permute.xlu1 %2270 }
 0x163   : > { %15370 = vst [vmem:[#allocation6_spill] sm:$0xff] %v10866_v33  ;;  %15372 = vst [vmem:[#allocation70_spill] sm:$0xff] %v10869_v7  ;;  %v3233_v55 = vmul.f32 %v2349_v18, %v1657_v40  ;;  %v3234_v39 = vmul.f32 %v2349_v18, %v1658_v11  ;;  %v4374_v6 = vadd.f32 %v15374_v58, %v15373_v48  ;;  %v15378_v20 = vld [vmem:[#allocation47_spill] sm:$0xff]  ;;  %v15380_v27 = vld [vmem:[#allocation48_spill] sm:$0xff] }
 0x164   : > { %v4399_v12 = vadd.f32 %v15376_v29, %v15375_v8  ;;  %v3235_v17 = vmul.f32 %v2349_v18, %v1659_v61  ;;  %v3236_v13 = vmul.f32 %v2349_v18, %v1660_v34  ;;  %v4424_v53 = vadd.f32 %v15378_v20, %v15377_v59  ;;  %v15381_v48 = vld [vmem:[#allocation19_spill] sm:$0xff]  ;;  %v15382_v58 = vld [vmem:[#allocation49_spill] sm:$0xff]  ;;  %v15383_v29 = vld [vmem:[#allocation64_spill] sm:$0xff] }
 0x165   : > { %v4449_v40 = vadd.f32 %v15380_v27, %v15379_v36  ;;  %v10882_v11 = vadd.f32 %v4374_v6, %v3231_v54  ;;  %v4474_v8 = vadd.f32 %v15382_v58, %v15381_v48  ;;  %v15384_v33 = vld [vmem:[#allocation50_spill] sm:$0xff]  ;;  %v736_v18 = vld [vmem:[%s8732_s16 + $0xb38] sm:$0xff]  ;;  %v1547_v59 = vunpack.c.l.bf16 %v734_v56  ;;  %v623_v54 = vld [vmem:[%s8732_s16 + $0x7b0] sm:$0xff] }
 0x166   : > { %v10884_v7 = vadd.f32 %v4399_v12, %v3232_v4  ;;  %v4499_v23 = vadd.f32 %v15384_v33, %v15383_v29  ;;  %v10891_v61 = vadd.f32 %v4424_v53, %v3233_v55  ;;  %v1548_v20 = vunpack.c.h.bf16 %v734_v56  ;;  %v624_v55 = vld [vmem:[%s8732_s16 + $0x7b8] sm:$0xff] }
 0x167   : > { %v10893_v34 = vadd.f32 %v4449_v40, %v3234_v39  ;;  %v10896_v6 = vadd.f32 %v4474_v8, %v3235_v17  ;;  %v1549_v12 = vunpack.c.l.bf16 %v735_v5  ;;  %v1550_v36 = vunpack.c.h.bf16 %v735_v5  ;;  %v625_v40 = vld [vmem:[%s8732_s16 + $0x7c0] sm:$0xff] }
 0x168   : > { %v10898_v4 = vadd.f32 %v4499_v23, %v3236_v13  ;;  %v1551_v33 = vunpack.c.l.bf16 %v736_v18  ;;  %v1552_v27 = vunpack.c.h.bf16 %v736_v18  ;;  %v3123_v48 = vmul.f32 %v2271_v21, %v1547_v59 }
 0x169   : > { %v3124_v58 = vmul.f32 %v2271_v21, %v1548_v20  ;;  %v3125_v39 = vmul.f32 %v2271_v21, %v1549_v12  ;;  %v3126_v53 = vmul.f32 %v2271_v21, %v1550_v36  ;;  %v1325_v29 = vunpack.c.l.bf16 %v623_v54  ;;  %v458_v20 = vld [vmem:[%s8732_s16 + $0x288] sm:$0xff] }
 0x16a   : > { %v1326_v56 = vunpack.c.h.bf16 %v623_v54  ;;  %v3127_v31 = vmul.f32 %v2271_v21, %v1551_v33  ;;  %v3128_v17 = vmul.f32 %v2271_v21, %v1552_v27  ;;  %v10904_v13 = vadd.f32 %v10664_v45, %v3123_v48  ;;  %v459_v33 = vld [vmem:[%s8732_s16 + $0x290] sm:$0xff] }
 0x16b   : > { %v10907_v5 = vadd.f32 %v10667_v0, %v3124_v58  ;;  %v10910_v8 = vadd.f32 %v10670_v30, %v3125_v39  ;;  %v10913_v23 = vadd.f32 %v10673_v9, %v3126_v53  ;;  %v1327_v18 = vunpack.c.l.bf16 %v624_v55  ;;  %v1873_v58 = vpop.permute.xlu1 %1872 }
 0x16c   : > { %v1328_v59 = vunpack.c.h.bf16 %v624_v55  ;;  %v10918_v45 = vadd.f32 %v10676_v47, %v3127_v31  ;;  %v10921_v0 = vadd.f32 %v10679_v41, %v3128_v17  ;;  %v1329_v21 = vunpack.c.l.bf16 %v625_v40  ;;  %v460_v55 = vld [vmem:[%s8732_s16 + $0x298] sm:$0xff] }
 0x16d   : > { %v1330_v54 = vunpack.c.h.bf16 %v625_v40  ;;  %v2901_v30 = vmul.f32 %v2111_v10, %v1325_v29  ;;  %v2902_v12 = vmul.f32 %v2111_v10, %v1326_v56  ;;  %v2903_v36 = vmul.f32 %v2111_v10, %v1327_v18  ;;  %v398_v29 = vld [vmem:[%s8732_s16 + $0xa8] sm:$0xff] }
 0x16e   : > { %15385 = vst [vmem:[#allocation71_spill] sm:$0xff] %v10918_v45  ;;  %15386 = vst [vmem:[#allocation72_spill] sm:$0xff] %v10921_v0  ;;  %v2904_v9 = vmul.f32 %v2111_v10, %v1328_v59  ;;  %v2905_v27 = vmul.f32 %v2111_v10, %v1329_v21  ;;  %v995_v39 = vunpack.c.l.bf16 %v458_v20  ;;  %v996_v53 = vunpack.c.h.bf16 %v458_v20 }
 0x16f   : > { %v2906_v48 = vmul.f32 %v2111_v10, %v1330_v54  ;;  %v10926_v47 = vadd.f32 %v10703_v60, %v2901_v30  ;;  %v10929_v41 = vadd.f32 %v10705_v49, %v2902_v12  ;;  %v10932_v31 = vadd.f32 %v10711_v15, %v2903_v36  ;;  %v399_v15 = vld [vmem:[%s8732_s16 + $0xb0] sm:$0xff]  ;;  %v400_v54 = vld [vmem:[%s8732_s16 + $0xb8] sm:$0xff] }
 0x170   : > { %v10935_v40 = vadd.f32 %v10713_v57, %v2904_v9  ;;  %v10940_v56 = vadd.f32 %v10715_v2, %v2905_v27  ;;  %v997_v60 = vunpack.c.l.bf16 %v459_v33  ;;  %v998_v10 = vunpack.c.h.bf16 %v459_v33  ;;  %v1787_v9 = vpop.permute.xlu0 %1786 }
 0x171   : > { %v10943_v17 = vadd.f32 %v10717_v62, %v2906_v48  ;;  %v999_v49 = vunpack.c.l.bf16 %v460_v55  ;;  %v1000_v18 = vunpack.c.h.bf16 %v460_v55  ;;  %v2571_v59 = vmul.f32 %v1873_v58, %v995_v39  ;;  %v680_v39 = vld [vmem:[%s8732_s16 + $0x978] sm:$0xff] }
 0x172   : > { %v2572_v20 = vmul.f32 %v1873_v58, %v996_v53  ;;  %v2573_v21 = vmul.f32 %v1873_v58, %v997_v60  ;;  %v2574_v57 = vmul.f32 %v1873_v58, %v998_v10  ;;  %v875_v30 = vunpack.c.l.bf16 %v398_v29 }
 0x173   : > { %v876_v12 = vunpack.c.h.bf16 %v398_v29  ;;  %v2575_v52 = vmul.f32 %v1873_v58, %v999_v49  ;;  %v2576_v36 = vmul.f32 %v1873_v58, %v1000_v18  ;;  %v10948_v2 = vadd.f32 %v10730_v44, %v2571_v59  ;;  %v15392_v44 = vld [vmem:[#allocation99_spill] sm:$0xff]  ;;  %v681_v18 = vld [vmem:[%s8732_s16 + $0x980] sm:$0xff] }
 0x174   : > { %v10951_v62 = vadd.f32 %v10733_v28, %v2572_v20  ;;  %v10954_v33 = vadd.f32 %v10740_v16, %v2573_v21  ;;  %v10957_v27 = vadd.f32 %v10743_v46, %v2574_v57  ;;  %v877_v48 = vunpack.c.l.bf16 %v399_v15  ;;  %v2193_v20 = vpop.permute.xlu1 %2192  ;;  %v682_v21 = vld [vmem:[%s8732_s16 + $0x988] sm:$0xff] }
 0x175   : > { %15387 = vst [vmem:[#allocation73_spill] sm:$0xff] %v10948_v2  ;;  %v878_v55 = vunpack.c.h.bf16 %v399_v15  ;;  %v10961_v58 = vadd.f32 %v10746_v24, %v2575_v52  ;;  %v10964_v53 = vadd.f32 %v15392_v44, %v2576_v36  ;;  %v879_v29 = vunpack.c.l.bf16 %v400_v54 }
 0x176   : > { %15388 = vst [vmem:[#allocation74_spill] sm:$0xff] %v10951_v62  ;;  %15389 = vst [vmem:[#allocation75_spill] sm:$0xff] %v10954_v33  ;;  %v880_v28 = vunpack.c.h.bf16 %v400_v54  ;;  %v2451_v60 = vmul.f32 %v1787_v9, %v875_v30  ;;  %v2452_v10 = vmul.f32 %v1787_v9, %v876_v12  ;;  %v2453_v16 = vmul.f32 %v1787_v9, %v877_v48  ;;  %v569_v12 = vld [vmem:[%s8732_s16 + $0x600] sm:$0xff] }
 0x177   : > { %15390 = vst [vmem:[#allocation76_spill] sm:$0xff] %v10957_v27  ;;  %15391 = vst [vmem:[#allocation77_spill] sm:$0xff] %v10961_v58  ;;  %v2454_v49 = vmul.f32 %v1787_v9, %v878_v55  ;;  %v2455_v46 = vmul.f32 %v1787_v9, %v879_v29  ;;  %v1439_v15 = vunpack.c.l.bf16 %v680_v39  ;;  %v1440_v57 = vunpack.c.h.bf16 %v680_v39  ;;  %v570_v29 = vld [vmem:[%s8732_s16 + $0x608] sm:$0xff] }
 0x178   : > { %15393 = vst [vmem:[#allocation78_spill] sm:$0xff] %v10964_v53  ;;  %v2456_v59 = vmul.f32 %v1787_v9, %v880_v28  ;;  %v10969_v24 = vadd.f32 %v10774_v38, %v2451_v60  ;;  %v10972_v52 = vadd.f32 %v10776_v43, %v2452_v10  ;;  %v10975_v54 = vadd.f32 %v10778_v22, %v2453_v16  ;;  %v571_v60 = vld [vmem:[%s8732_s16 + $0x610] sm:$0xff]  ;;  %v1955_v26 = vpop.permute.xlu1 %1954 }
 0x179   : > { %v10978_v30 = vadd.f32 %v10780_v63, %v2454_v49  ;;  %v10982_v36 = vadd.f32 %v10783_v42, %v2455_v46  ;;  %v1441_v48 = vunpack.c.l.bf16 %v681_v18  ;;  %v1442_v38 = vunpack.c.h.bf16 %v681_v18  ;;  %v2033_v18 = vpop.permute.xlu0 %2032  ;;  %v739_v53 = vld [vmem:[%s8732_s16 + $0xb50] sm:$0xff] }
 0x17a   : > { %v10985_v9 = vadd.f32 %v10785_v37, %v2456_v59  ;;  %v1443_v55 = vunpack.c.l.bf16 %v682_v21  ;;  %v1444_v39 = vunpack.c.h.bf16 %v682_v21  ;;  %v3015_v44 = vmul.f32 %v2193_v20, %v1439_v15  ;;  %v15397_v59 = vld [vmem:[#allocation20_spill] sm:$0xff] }
 0x17b   : > { %v3016_v43 = vmul.f32 %v2193_v20, %v1440_v57  ;;  %v3017_v22 = vmul.f32 %v2193_v20, %v1441_v48  ;;  %v3018_v28 = vmul.f32 %v2193_v20, %v1442_v38  ;;  %v1217_v63 = vunpack.c.l.bf16 %v569_v12  ;;  %v15399_v48 = vld [vmem:[#allocation21_spill] sm:$0xff] }
 0x17c   : > { %v1218_v10 = vunpack.c.h.bf16 %v569_v12  ;;  %v3019_v16 = vmul.f32 %v2193_v20, %v1443_v55  ;;  %v3020_v49 = vmul.f32 %v2193_v20, %v1444_v39  ;;  %v10990_v42 = vadd.f32 %v10800_v1, %v3015_v44  ;;  %v515_v12 = vld [vmem:[%s8732_s16 + $0x450] sm:$0xff]  ;;  %v15401_v1 = vld [vmem:[#allocation65_spill] sm:$0xff] }
 0x17d   : > { %v10993_v37 = vadd.f32 %v10803_v25, %v3016_v43  ;;  %v10996_v46 = vadd.f32 %v10806_v50, %v3017_v22  ;;  %v10999_v21 = vadd.f32 %v15397_v59, %v3018_v28  ;;  %v1219_v15 = vunpack.c.l.bf16 %v570_v29  ;;  %v516_v22 = vld [vmem:[%s8732_s16 + $0x458] sm:$0xff] }
 0x17e   : > { %15394 = vst [vmem:[#allocation79_spill] sm:$0xff] %v10990_v42  ;;  %v1220_v57 = vunpack.c.h.bf16 %v570_v29  ;;  %v11003_v20 = vadd.f32 %v15399_v48, %v3019_v16  ;;  %v11006_v38 = vadd.f32 %v15401_v1, %v3020_v49  ;;  %v1221_v55 = vunpack.c.l.bf16 %v571_v60  ;;  %v517_v29 = vld [vmem:[%s8732_s16 + $0x460] sm:$0xff]  ;;  %v792_v1 = vld [vmem:[%s8732_s16 + $0xcf8] sm:$0xff] }
 0x17f   : > { %15395 = vst [vmem:[#allocation22_spill] sm:$0xff] %v10993_v37  ;;  %15396 = vst [vmem:[#allocation80_spill] sm:$0xff] %v10996_v46  ;;  %v1222_v25 = vunpack.c.h.bf16 %v571_v60  ;;  %v2793_v39 = vmul.f32 %v2033_v18, %v1217_v63  ;;  %v2794_v44 = vmul.f32 %v2033_v18, %v1218_v10  ;;  %v2795_v50 = vmul.f32 %v2033_v18, %v1219_v15  ;;  %v15403_v60 = vld [vmem:[#allocation66_spill] sm:$0xff]  ;;  %v15404_v10 = vld [vmem:[#allocation67_spill] sm:$0xff] }
 0x180   : > { %15398 = vst [vmem:[#allocation81_spill] sm:$0xff] %v10999_v21  ;;  %15400 = vst [vmem:[#allocation82_spill] sm:$0xff] %v11003_v20  ;;  %v2796_v43 = vmul.f32 %v2033_v18, %v1220_v57  ;;  %v2797_v28 = vmul.f32 %v2033_v18, %v1221_v55  ;;  %v1109_v21 = vunpack.c.l.bf16 %v515_v12  ;;  %v1110_v46 = vunpack.c.h.bf16 %v515_v12  ;;  %v791_v57 = vld [vmem:[%s8732_s16 + $0xcf0] sm:$0xff]  ;;  %v738_v37 = vld [vmem:[%s8732_s16 + $0xb48] sm:$0xff] }
 0x181   : > { %15402 = vst [vmem:[#allocation83_spill] sm:$0xff] %v11006_v38  ;;  %v2798_v59 = vmul.f32 %v2033_v18, %v1222_v25  ;;  %v11011_v16 = vadd.f32 %v10825_v35, %v2793_v39  ;;  %v11014_v49 = vadd.f32 %v10827_v3, %v2794_v44  ;;  %v11017_v63 = vadd.f32 %v15403_v60, %v2795_v50  ;;  %v2353_v44 = vpop.permute.xlu0 %2352  ;;  %v793_v50 = vld [vmem:[%s8732_s16 + $0xd00] sm:$0xff] }
 0x182   : > { %v11020_v15 = vadd.f32 %v15404_v10, %v2796_v43  ;;  %v11024_v18 = vadd.f32 %v10845_v19, %v2797_v28  ;;  %v1111_v48 = vunpack.c.l.bf16 %v516_v22  ;;  %v1112_v35 = vunpack.c.h.bf16 %v516_v22 }
 0x183   : > { %v11027_v12 = vadd.f32 %v10847_v51, %v2798_v59  ;;  %v1113_v55 = vunpack.c.l.bf16 %v517_v29  ;;  %v1114_v3 = vunpack.c.h.bf16 %v517_v29  ;;  %v11030_v25 = vmul.f32 %v1955_v26, %v1109_v21  ;;  %v737_v59 = vld [vmem:[%s8732_s16 + $0xb40] sm:$0xff] }
 0x184   : > { %v11032_v39 = vmul.f32 %v1955_v26, %v1110_v46  ;;  %v11035_v43 = vmul.f32 %v1955_v26, %v1111_v48  ;;  %v11037_v19 = vmul.f32 %v1955_v26, %v1112_v35  ;;  %v1661_v28 = vunpack.c.l.bf16 %v791_v57 }
 0x185   : > { %v1662_v51 = vunpack.c.h.bf16 %v791_v57  ;;  %v11040_v60 = vmul.f32 %v1955_v26, %v1113_v55  ;;  %v11042_v22 = vmul.f32 %v1955_v26, %v1114_v3  ;;  %v1663_v29 = vunpack.c.l.bf16 %v792_v1  ;;  %v2275_v3 = vpop.permute.xlu1 %2274 }
 0x186   : > { %v1664_v21 = vunpack.c.h.bf16 %v792_v1  ;;  %v1665_v10 = vunpack.c.l.bf16 %v793_v50  ;;  %v1666_v46 = vunpack.c.h.bf16 %v793_v50  ;;  %v3237_v38 = vmul.f32 %v2353_v44, %v1661_v28 }
 0x187   : > { %v3238_v20 = vmul.f32 %v2353_v44, %v1662_v51  ;;  %v3239_v48 = vmul.f32 %v2353_v44, %v1663_v29  ;;  %v1553_v35 = vunpack.c.l.bf16 %v737_v59  ;;  %v1554_v58 = vunpack.c.h.bf16 %v737_v59  ;;  %v626_v59 = vld [vmem:[%s8732_s16 + $0x7c8] sm:$0xff] }
 0x188   : > { %v3240_v42 = vmul.f32 %v2353_v44, %v1664_v21  ;;  %v3241_v57 = vmul.f32 %v2353_v44, %v1665_v10  ;;  %v3242_v55 = vmul.f32 %v2353_v44, %v1666_v46  ;;  %v11047_v26 = vadd.f32 %v10882_v11, %v3237_v38  ;;  %v628_v44 = vld [vmem:[%s8732_s16 + $0x7d8] sm:$0xff]  ;;  %v461_v46 = vld [vmem:[%s8732_s16 + $0x2a0] sm:$0xff] }
 0x189   : > { %v11050_v1 = vadd.f32 %v10884_v7, %v3238_v20  ;;  %v11053_v50 = vadd.f32 %v10891_v61, %v3239_v48  ;;  %v1555_v51 = vunpack.c.l.bf16 %v738_v37  ;;  %v1556_v29 = vunpack.c.h.bf16 %v738_v37  ;;  %v627_v20 = vld [vmem:[%s8732_s16 + $0x7d0] sm:$0xff]  ;;  %v2115_v37 = vpop.permute.xlu0 %2114 }
 0x18a   : > { %v11056_v28 = vadd.f32 %v10893_v34, %v3240_v42  ;;  %v11060_v21 = vadd.f32 %v10896_v6, %v3241_v57  ;;  %v11063_v11 = vadd.f32 %v10898_v4, %v3242_v55  ;;  %v1557_v38 = vunpack.c.l.bf16 %v739_v53 }
 0x18b   : > { %v1558_v7 = vunpack.c.h.bf16 %v739_v53  ;;  %v11067_v61 = vmul.f32 %v2275_v3, %v1553_v35  ;;  %v11069_v10 = vmul.f32 %v2275_v3, %v1554_v58  ;;  %v11071_v34 = vmul.f32 %v2275_v3, %v1555_v51  ;;  %v462_v58 = vld [vmem:[%s8732_s16 + $0x2a8] sm:$0xff] }
 0x18c   : > { %v11073_v42 = vmul.f32 %v2275_v3, %v1556_v29  ;;  %v11076_v6 = vmul.f32 %v2275_v3, %v1557_v38  ;;  %v1331_v4 = vunpack.c.l.bf16 %v626_v59  ;;  %v1332_v53 = vunpack.c.h.bf16 %v626_v59 }
 0x18d   : > { %v11078_v48 = vmul.f32 %v2275_v3, %v1558_v7  ;;  %v1333_v57 = vunpack.c.l.bf16 %v627_v20  ;;  %v1334_v55 = vunpack.c.h.bf16 %v627_v20  ;;  %v1335_v27 = vunpack.c.l.bf16 %v628_v44  ;;  %v1877_v3 = vpop.permute.xlu1 %1876  ;;  %v463_v7 = vld [vmem:[%s8732_s16 + $0x2b0] sm:$0xff] }
 0x18e   : > { %v1336_v35 = vunpack.c.h.bf16 %v628_v44  ;;  %v2907_v33 = vmul.f32 %v2115_v37, %v1331_v4  ;;  %v2908_v51 = vmul.f32 %v2115_v37, %v1332_v53  ;;  %v1001_v62 = vunpack.c.l.bf16 %v461_v46  ;;  %v401_v4 = vld [vmem:[%s8732_s16 + $0xc0] sm:$0xff] }
 0x18f   : > { %15405 = vst [vmem:[#allocation84_spill] sm:$0xff] %v11078_v48  ;;  %v1002_v29 = vunpack.c.h.bf16 %v461_v46  ;;  %v2909_v2 = vmul.f32 %v2115_v37, %v1333_v57  ;;  %v2910_v0 = vmul.f32 %v2115_v37, %v1334_v55  ;;  %v2911_v38 = vmul.f32 %v2115_v37, %v1335_v27 }
 0x190   : > { %v2912_v45 = vmul.f32 %v2115_v37, %v1336_v35  ;;  %v11083_v59 = vadd.f32 %v10926_v47, %v2907_v33  ;;  %v11086_v20 = vadd.f32 %v10929_v41, %v2908_v51  ;;  %v1003_v44 = vunpack.c.l.bf16 %v462_v58  ;;  %v402_v47 = vld [vmem:[%s8732_s16 + $0xc8] sm:$0xff]  ;;  %v1791_v35 = vpop.permute.xlu0 %1790 }
 0x191   : > { %v1004_v48 = vunpack.c.h.bf16 %v462_v58  ;;  %v11090_v46 = vadd.f32 %v10932_v31, %v2909_v2  ;;  %v11093_v53 = vadd.f32 %v10935_v40, %v2910_v0  ;;  %v11096_v27 = vadd.f32 %v10940_v56, %v2911_v38  ;;  %v403_v31 = vld [vmem:[%s8732_s16 + $0xd0] sm:$0xff] }
 0x192   : > { %v11099_v37 = vadd.f32 %v10943_v17, %v2912_v45  ;;  %v1005_v33 = vunpack.c.l.bf16 %v463_v7  ;;  %v1006_v41 = vunpack.c.h.bf16 %v463_v7  ;;  %v11102_v57 = vmul.f32 %v1877_v3, %v1001_v62  ;;  %v683_v58 = vld [vmem:[%s8732_s16 + $0x990] sm:$0xff] }
 0x193   : > { %v11104_v55 = vmul.f32 %v1877_v3, %v1002_v29  ;;  %v11107_v2 = vmul.f32 %v1877_v3, %v1003_v44  ;;  %v11109_v0 = vmul.f32 %v1877_v3, %v1004_v48  ;;  %v881_v40 = vunpack.c.l.bf16 %v401_v4 }
 0x194   : > { %15406 = vst [vmem:[#allocation23_spill] sm:$0xff] %v11099_v37  ;;  %15407 = vst [vmem:[#allocation24_spill] sm:$0xff] %v11102_v57  ;;  %v882_v56 = vunpack.c.h.bf16 %v401_v4  ;;  %v11112_v45 = vmul.f32 %v1877_v3, %v1005_v33  ;;  %v11114_v17 = vmul.f32 %v1877_v3, %v1006_v41  ;;  %v883_v51 = vunpack.c.l.bf16 %v402_v47  ;;  %v684_v57 = vld [vmem:[%s8732_s16 + $0x998] sm:$0xff]  ;;  %v685_v37 = vld [vmem:[%s8732_s16 + $0x9a0] sm:$0xff]  ;;  %v2197_v41 = vpop.permute.xlu1 %2196 }
 0x195   : > { %15408 = vst [vmem:[#allocation27_spill] sm:$0xff] %v11104_v55  ;;  %15409 = vst [vmem:[#allocation85_spill] sm:$0xff] %v11107_v2  ;;  %v884_v62 = vunpack.c.h.bf16 %v402_v47  ;;  %v885_v38 = vunpack.c.l.bf16 %v403_v31  ;;  %v886_v29 = vunpack.c.h.bf16 %v403_v31  ;;  %v2457_v7 = vmul.f32 %v1791_v35, %v881_v40 }
 0x196   : > { %15410 = vst [vmem:[#allocation5_spill] sm:$0xff] %v11109_v0  ;;  %v2458_v55 = vmul.f32 %v1791_v35, %v882_v56  ;;  %v2459_v44 = vmul.f32 %v1791_v35, %v883_v51  ;;  %v1445_v48 = vunpack.c.l.bf16 %v683_v58  ;;  %v1446_v0 = vunpack.c.h.bf16 %v683_v58  ;;  %v572_v58 = vld [vmem:[%s8732_s16 + $0x618] sm:$0xff] }
 0x197   : > { %v2460_v2 = vmul.f32 %v1791_v35, %v884_v62  ;;  %v2461_v4 = vmul.f32 %v1791_v35, %v885_v38  ;;  %v2462_v33 = vmul.f32 %v1791_v35, %v886_v29  ;;  %v11119_v3 = vadd.f32 %v10969_v24, %v2457_v7  ;;  %v574_v38 = vld [vmem:[%s8732_s16 + $0x628] sm:$0xff] }
 0x198   : > { %v11122_v47 = vadd.f32 %v10972_v52, %v2458_v55  ;;  %v11125_v31 = vadd.f32 %v10975_v54, %v2459_v44  ;;  %v1447_v56 = vunpack.c.l.bf16 %v684_v57  ;;  %v1448_v51 = vunpack.c.h.bf16 %v684_v57  ;;  %v573_v55 = vld [vmem:[%s8732_s16 + $0x620] sm:$0xff]  ;;  %v2037_v57 = vpop.permute.xlu0 %2036  ;;  %v518_v7 = vld [vmem:[%s8732_s16 + $0x468] sm:$0xff] }
 0x199   : > { %v11128_v40 = vadd.f32 %v10978_v30, %v2460_v2  ;;  %v11132_v62 = vadd.f32 %v10982_v36, %v2461_v4  ;;  %v11135_v24 = vadd.f32 %v10985_v9, %v2462_v33  ;;  %v1449_v35 = vunpack.c.l.bf16 %v685_v37 }
 0x19a   : > { %v1450_v52 = vunpack.c.h.bf16 %v685_v37  ;;  %v11139_v54 = vmul.f32 %v2197_v41, %v1445_v48  ;;  %v11141_v29 = vmul.f32 %v2197_v41, %v1446_v0  ;;  %v11143_v30 = vmul.f32 %v2197_v41, %v1447_v56 }
 0x19b   : > { %15411 = vst [vmem:[#allocation28_spill] sm:$0xff] %v11128_v40  ;;  %15412 = vst [vmem:[#allocation29_spill] sm:$0xff] %v11132_v62  ;;  %v11145_v2 = vmul.f32 %v2197_v41, %v1448_v51  ;;  %v11148_v36 = vmul.f32 %v2197_v41, %v1449_v35  ;;  %v1223_v9 = vunpack.c.l.bf16 %v572_v58  ;;  %v1224_v37 = vunpack.c.h.bf16 %v572_v58  ;;  %v1959_v35 = vpop.permute.xlu1 %1958 }
 0x19c   : > { %15413 = vst [vmem:[#allocation86_spill] sm:$0xff] %v11135_v24  ;;  %15414 = vst [vmem:[#allocation8_spill] sm:$0xff] %v11139_v54  ;;  %v11150_v44 = vmul.f32 %v2197_v41, %v1450_v52  ;;  %v1225_v4 = vunpack.c.l.bf16 %v573_v55  ;;  %v1226_v33 = vunpack.c.h.bf16 %v573_v55  ;;  %v1227_v24 = vunpack.c.l.bf16 %v574_v38  ;;  %v519_v54 = vld [vmem:[%s8732_s16 + $0x470] sm:$0xff] }
 0x19d   : > { %15415 = vst [vmem:[#allocation87_spill] sm:$0xff] %v11141_v29  ;;  %15416 = vst [vmem:[#allocation25_spill] sm:$0xff] %v11143_v30  ;;  %v1228_v48 = vunpack.c.h.bf16 %v574_v38  ;;  %v2799_v0 = vmul.f32 %v2037_v57, %v1223_v9  ;;  %v2800_v29 = vmul.f32 %v2037_v57, %v1224_v37  ;;  %v1115_v56 = vunpack.c.l.bf16 %v518_v7 }
 0x19e   : > { %15417 = vst [vmem:[#allocation26_spill] sm:$0xff] %v11145_v2  ;;  %15418 = vst [vmem:[#allocation30_spill] sm:$0xff] %v11148_v36  ;;  %v1116_v30 = vunpack.c.h.bf16 %v518_v7  ;;  %v2801_v51 = vmul.f32 %v2037_v57, %v1225_v4  ;;  %v2802_v2 = vmul.f32 %v2037_v57, %v1226_v33  ;;  %v2803_v62 = vmul.f32 %v2037_v57, %v1227_v24  ;;  %v520_v36 = vld [vmem:[%s8732_s16 + $0x478] sm:$0xff] }
 0x19f   : > { %v2804_v40 = vmul.f32 %v2037_v57, %v1228_v48  ;;  %v11155_v41 = vadd.f32 %v11011_v16, %v2799_v0  ;;  %v11158_v58 = vadd.f32 %v11014_v49, %v2800_v29  ;;  %v1117_v52 = vunpack.c.l.bf16 %v519_v54  ;;  %v2357_v0 = vpop.permute.xlu0 %2356 }
 0x1a0   : > { %v1118_v55 = vunpack.c.h.bf16 %v519_v54  ;;  %v11161_v38 = vadd.f32 %v11017_v63, %v2801_v51  ;;  %v11164_v7 = vadd.f32 %v11020_v15, %v2802_v2  ;;  %v11167_v24 = vadd.f32 %v11024_v18, %v2803_v62  ;;  %v794_v2 = vld [vmem:[%s8732_s16 + $0xd08] sm:$0xff] }
 0x1a1   : > { %v11170_v57 = vadd.f32 %v11027_v12, %v2804_v40  ;;  %v1119_v16 = vunpack.c.l.bf16 %v520_v36  ;;  %v1120_v9 = vunpack.c.h.bf16 %v520_v36  ;;  %v2691_v37 = vmul.f32 %v1959_v35, %v1115_v56  ;;  %v15419_v12 = vld [vmem:[#allocation68_spill] sm:$0xff]  ;;  %v15420_v36 = vld [vmem:[#allocation69_spill] sm:$0xff] }
 0x1a2   : > { %v2692_v49 = vmul.f32 %v1959_v35, %v1116_v30  ;;  %v2693_v29 = vmul.f32 %v1959_v35, %v1117_v52  ;;  %v2694_v54 = vmul.f32 %v1959_v35, %v1118_v55  ;;  %v3629_v63 = vadd.f32 %v10853_v14, %v11030_v25  ;;  %v795_v30 = vld [vmem:[%s8732_s16 + $0xd10] sm:$0xff]  ;;  %v15421_v14 = vld [vmem:[#allocation6_spill] sm:$0xff]  ;;  %v796_v56 = vld [vmem:[%s8732_s16 + $0xd18] sm:$0xff] }
 0x1a3   : > { %v3654_v15 = vadd.f32 %v10856_v32, %v11032_v39  ;;  %v2695_v18 = vmul.f32 %v1959_v35, %v1119_v16  ;;  %v2696_v62 = vmul.f32 %v1959_v35, %v1120_v9  ;;  %v3679_v40 = vadd.f32 %v15419_v12, %v11035_v43  ;;  %v15422_v32 = vld [vmem:[#allocation70_spill] sm:$0xff]  ;;  %v740_v52 = vld [vmem:[%s8732_s16 + $0xb58] sm:$0xff] }
 0x1a4   : > { %v3704_v4 = vadd.f32 %v15420_v36, %v11037_v19  ;;  %v11182_v33 = vadd.f32 %v3629_v63, %v2691_v37  ;;  %v3729_v25 = vadd.f32 %v15421_v14, %v11040_v60  ;;  %v3754_v39 = vadd.f32 %v15422_v32, %v11042_v22 }
 0x1a5   : > { %v11184_v48 = vadd.f32 %v3654_v15, %v2692_v49  ;;  %v11191_v51 = vadd.f32 %v3679_v40, %v2693_v29  ;;  %v1667_v19 = vunpack.c.l.bf16 %v794_v2  ;;  %v1668_v35 = vunpack.c.h.bf16 %v794_v2  ;;  %v741_v15 = vld [vmem:[%s8732_s16 + $0xb60] sm:$0xff]  ;;  %v742_v40 = vld [vmem:[%s8732_s16 + $0xb68] sm:$0xff] }
 0x1a6   : > { %v11193_v43 = vadd.f32 %v3704_v4, %v2694_v54  ;;  %v11196_v55 = vadd.f32 %v3729_v25, %v2695_v18  ;;  %v11198_v16 = vadd.f32 %v3754_v39, %v2696_v62  ;;  %v1669_v9 = vunpack.c.l.bf16 %v795_v30  ;;  %v2279_v62 = vpop.permute.xlu1 %2278 }
 0x1a7   : > { %v1670_v60 = vunpack.c.h.bf16 %v795_v30  ;;  %v1671_v37 = vunpack.c.l.bf16 %v796_v56  ;;  %v1672_v49 = vunpack.c.h.bf16 %v796_v56  ;;  %v3243_v22 = vmul.f32 %v2357_v0, %v1667_v19 }
 0x1a8   : > { %v3244_v63 = vmul.f32 %v2357_v0, %v1668_v35  ;;  %v3245_v12 = vmul.f32 %v2357_v0, %v1669_v9  ;;  %v1559_v36 = vunpack.c.l.bf16 %v740_v52  ;;  %v1560_v54 = vunpack.c.h.bf16 %v740_v52  ;;  %v629_v9 = vld [vmem:[%s8732_s16 + $0x7e0] sm:$0xff] }
 0x1a9   : > { %v3246_v29 = vmul.f32 %v2357_v0, %v1670_v60  ;;  %v3247_v4 = vmul.f32 %v2357_v0, %v1671_v37  ;;  %v3248_v14 = vmul.f32 %v2357_v0, %v1672_v49  ;;  %v11203_v2 = vadd.f32 %v11047_v26, %v3243_v22  ;;  %v15423_v22 = vld [vmem:[#allocation71_spill] sm:$0xff] }
 0x1aa   : > { %v11206_v18 = vadd.f32 %v11050_v1, %v3244_v63  ;;  %v11209_v30 = vadd.f32 %v11053_v50, %v3245_v12  ;;  %v1561_v32 = vunpack.c.l.bf16 %v741_v15  ;;  %v1562_v39 = vunpack.c.h.bf16 %v741_v15  ;;  %v15424_v15 = vld [vmem:[#allocation84_spill] sm:$0xff] }
 0x1ab   : > { %v11212_v25 = vadd.f32 %v11056_v28, %v3246_v29  ;;  %v11215_v56 = vadd.f32 %v11060_v21, %v3247_v4  ;;  %v11218_v0 = vadd.f32 %v11063_v11, %v3248_v14  ;;  %v1563_v26 = vunpack.c.l.bf16 %v742_v40  ;;  %v15425_v12 = vld [vmem:[#allocation72_spill] sm:$0xff] }
 0x1ac   : > { %v1564_v1 = vunpack.c.h.bf16 %v742_v40  ;;  %v3135_v19 = vmul.f32 %v2279_v62, %v1559_v36  ;;  %v3136_v35 = vmul.f32 %v2279_v62, %v1560_v54  ;;  %v3137_v52 = vmul.f32 %v2279_v62, %v1561_v32  ;;  %v630_v40 = vld [vmem:[%s8732_s16 + $0x7e8] sm:$0xff]  ;;  %v631_v36 = vld [vmem:[%s8732_s16 + $0x7f0] sm:$0xff] }
 0x1ad   : > { %v3138_v50 = vmul.f32 %v2279_v62, %v1562_v39  ;;  %v3139_v28 = vmul.f32 %v2279_v62, %v1563_v26  ;;  %v4227_v37 = vadd.f32 %v10904_v13, %v11067_v61  ;;  %v4252_v21 = vadd.f32 %v10907_v5, %v11069_v10  ;;  %v2119_v5 = vpop.permute.xlu0 %2118  ;;  %v465_v39 = vld [vmem:[%s8732_s16 + $0x2c0] sm:$0xff] }
 0x1ae   : > { %v3140_v60 = vmul.f32 %v2279_v62, %v1564_v1  ;;  %v4277_v11 = vadd.f32 %v10910_v8, %v11071_v34  ;;  %v4302_v49 = vadd.f32 %v10913_v23, %v11073_v42  ;;  %v4327_v63 = vadd.f32 %v15423_v22, %v11076_v6  ;;  %v464_v8 = vld [vmem:[%s8732_s16 + $0x2b8] sm:$0xff] }
 0x1af   : > { %v4352_v29 = vadd.f32 %v15425_v12, %v15424_v15  ;;  %v11235_v54 = vadd.f32 %v4227_v37, %v3135_v19  ;;  %v11237_v13 = vadd.f32 %v4252_v21, %v3136_v35  ;;  %v1337_v61 = vunpack.c.l.bf16 %v629_v9  ;;  %v1881_v19 = vpop.permute.xlu1 %1880 }
 0x1b0   : > { %v1338_v10 = vunpack.c.h.bf16 %v629_v9  ;;  %v11240_v34 = vadd.f32 %v4277_v11, %v3137_v52  ;;  %v11242_v23 = vadd.f32 %v4302_v49, %v3138_v50  ;;  %v11244_v42 = vadd.f32 %v4327_v63, %v3139_v28  ;;  %v466_v11 = vld [vmem:[%s8732_s16 + $0x2c8] sm:$0xff] }
 0x1b1   : > { %v11246_v6 = vadd.f32 %v4352_v29, %v3140_v60  ;;  %v1339_v4 = vunpack.c.l.bf16 %v630_v40  ;;  %v1340_v14 = vunpack.c.h.bf16 %v630_v40  ;;  %v1341_v62 = vunpack.c.l.bf16 %v631_v36  ;;  %v15426_v29 = vld [vmem:[#allocation23_spill] sm:$0xff] }
 0x1b2   : > { %v1342_v32 = vunpack.c.h.bf16 %v631_v36  ;;  %v2913_v26 = vmul.f32 %v2119_v5, %v1337_v61  ;;  %v2914_v1 = vmul.f32 %v2119_v5, %v1338_v10  ;;  %v1007_v35 = vunpack.c.l.bf16 %v464_v8 }
 0x1b3   : > { %v1008_v9 = vunpack.c.h.bf16 %v464_v8  ;;  %v2915_v37 = vmul.f32 %v2119_v5, %v1339_v4  ;;  %v2916_v52 = vmul.f32 %v2119_v5, %v1340_v14  ;;  %v2917_v21 = vmul.f32 %v2119_v5, %v1341_v62  ;;  %v15427_v8 = vld [vmem:[#allocation24_spill] sm:$0xff]  ;;  %v15429_v14 = vld [vmem:[#allocation27_spill] sm:$0xff] }
 0x1b4   : > { %v2918_v50 = vmul.f32 %v2119_v5, %v1342_v32  ;;  %v11251_v28 = vadd.f32 %v11083_v59, %v2913_v26  ;;  %v11254_v60 = vadd.f32 %v11086_v20, %v2914_v1  ;;  %v1009_v49 = vunpack.c.l.bf16 %v465_v39  ;;  %v404_v32 = vld [vmem:[%s8732_s16 + $0xd8] sm:$0xff]  ;;  %v15432_v1 = vld [vmem:[#allocation75_spill] sm:$0xff] }
 0x1b5   : > { %v1010_v22 = vunpack.c.h.bf16 %v465_v39  ;;  %v11257_v63 = vadd.f32 %v11090_v46, %v2915_v37  ;;  %v11260_v15 = vadd.f32 %v11093_v53, %v2916_v52  ;;  %v11263_v12 = vadd.f32 %v11096_v27, %v2917_v21  ;;  %v15428_v46 = vld [vmem:[#allocation73_spill] sm:$0xff]  ;;  %v15430_v53 = vld [vmem:[#allocation74_spill] sm:$0xff]  ;;  %v15434_v21 = vld [vmem:[#allocation76_spill] sm:$0xff] }
 0x1b6   : > { %v11266_v40 = vadd.f32 %v15426_v29, %v2918_v50  ;;  %v1011_v59 = vunpack.c.l.bf16 %v466_v11  ;;  %v1012_v36 = vunpack.c.h.bf16 %v466_v11  ;;  %v2583_v5 = vmul.f32 %v1881_v19, %v1007_v35  ;;  %v15431_v26 = vld [vmem:[#allocation85_spill] sm:$0xff]  ;;  %v2201_v50 = vpop.permute.xlu1 %2200 }
 0x1b7   : > { %v2584_v20 = vmul.f32 %v1881_v19, %v1008_v9  ;;  %v2585_v61 = vmul.f32 %v1881_v19, %v1009_v49  ;;  %v2586_v10 = vmul.f32 %v1881_v19, %v1010_v22  ;;  %v3480_v4 = vadd.f32 %v15428_v46, %v15427_v8  ;;  %v15433_v52 = vld [vmem:[#allocation5_spill] sm:$0xff]  ;;  %v405_v9 = vld [vmem:[%s8732_s16 + $0xe0] sm:$0xff] }
 0x1b8   : > { %v3505_v62 = vadd.f32 %v15430_v53, %v15429_v14  ;;  %v2587_v39 = vmul.f32 %v1881_v19, %v1011_v59  ;;  %v2588_v27 = vmul.f32 %v1881_v19, %v1012_v36  ;;  %v3530_v37 = vadd.f32 %v15432_v1, %v15431_v26  ;;  %v15437_v22 = vld [vmem:[#allocation77_spill] sm:$0xff]  ;;  %v15438_v8 = vld [vmem:[#allocation78_spill] sm:$0xff]  ;;  %v1795_v19 = vpop.permute.xlu0 %1794  ;;  %v406_v36 = vld [vmem:[%s8732_s16 + $0xe8] sm:$0xff] }
 0x1b9   : > { %v3555_v35 = vadd.f32 %v15434_v21, %v15433_v52  ;;  %v11278_v11 = vadd.f32 %v3480_v4, %v2583_v5  ;;  %v3580_v29 = vadd.f32 %v15437_v22, %v11112_v45  ;;  %v3605_v59 = vadd.f32 %v15438_v8, %v11114_v17  ;;  %v686_v5 = vld [vmem:[%s8732_s16 + $0x9a8] sm:$0xff]  ;;  %v687_v22 = vld [vmem:[%s8732_s16 + $0x9b0] sm:$0xff] }
 0x1ba   : > { %v11280_v49 = vadd.f32 %v3505_v62, %v2584_v20  ;;  %v11287_v46 = vadd.f32 %v3530_v37, %v2585_v61  ;;  %v887_v53 = vunpack.c.l.bf16 %v404_v32  ;;  %v888_v26 = vunpack.c.h.bf16 %v404_v32  ;;  %v688_v37 = vld [vmem:[%s8732_s16 + $0x9b8] sm:$0xff] }
 0x1bb   : > { %15435 = vst [vmem:[#allocation88_spill] sm:$0xff] %v11278_v11  ;;  %v11289_v14 = vadd.f32 %v3555_v35, %v2586_v10  ;;  %v11292_v4 = vadd.f32 %v3580_v29, %v2587_v39  ;;  %v11294_v20 = vadd.f32 %v3605_v59, %v2588_v27  ;;  %v889_v62 = vunpack.c.l.bf16 %v405_v9  ;;  %v11304_v27 = vpop.permute.xlu1 %1962  ;;  %v15443_v29 = vld [vmem:[#allocation28_spill] sm:$0xff]  ;;  %v15455_v11 = vld [vmem:[#allocation81_spill] sm:$0xff] }
 0x1bc   : > { %15436 = vst [vmem:[#allocation31_spill] sm:$0xff] %v11280_v49  ;;  %15439 = vst [vmem:[#allocation32_spill] sm:$0xff] %v11287_v46  ;;  %v890_v45 = vunpack.c.h.bf16 %v405_v9  ;;  %v891_v1 = vunpack.c.l.bf16 %v406_v36  ;;  %v892_v52 = vunpack.c.h.bf16 %v406_v36  ;;  %v2463_v17 = vmul.f32 %v1795_v19, %v887_v53  ;;  %v15454_v49 = vld [vmem:[#allocation26_spill] sm:$0xff] }
 0x1bd   : > { %15440 = vst [vmem:[#allocation89_spill] sm:$0xff] %v11289_v14  ;;  %15441 = vst [vmem:[#allocation11_spill] sm:$0xff] %v11292_v4  ;;  %v2464_v21 = vmul.f32 %v1795_v19, %v888_v26  ;;  %v2465_v8 = vmul.f32 %v1795_v19, %v889_v62  ;;  %v1451_v46 = vunpack.c.l.bf16 %v686_v5  ;;  %v1452_v10 = vunpack.c.h.bf16 %v686_v5  ;;  %v15444_v26 = vld [vmem:[#allocation29_spill] sm:$0xff] }
 0x1be   : > { %15442 = vst [vmem:[#allocation90_spill] sm:$0xff] %v11294_v20  ;;  %v2466_v61 = vmul.f32 %v1795_v19, %v890_v45  ;;  %v2467_v35 = vmul.f32 %v1795_v19, %v891_v1  ;;  %v2468_v14 = vmul.f32 %v1795_v19, %v892_v52  ;;  %v11299_v32 = vadd.f32 %v11119_v3, %v2463_v17  ;;  %v15446_v19 = vld [vmem:[#allocation86_spill] sm:$0xff]  ;;  %v575_v17 = vld [vmem:[%s8732_s16 + $0x630] sm:$0xff] }
 0x1bf   : > { %v11302_v39 = vadd.f32 %v11122_v47, %v2464_v21  ;;  %v11307_v9 = vadd.f32 %v11125_v31, %v2465_v8  ;;  %v1453_v36 = vunpack.c.l.bf16 %v687_v22  ;;  %v1454_v53 = vunpack.c.h.bf16 %v687_v22  ;;  %v15449_v22 = vld [vmem:[#allocation79_spill] sm:$0xff] }
 0x1c0   : > { %v11310_v59 = vadd.f32 %v15443_v29, %v2466_v61  ;;  %v11313_v5 = vadd.f32 %v15444_v26, %v2467_v35  ;;  %v11316_v62 = vadd.f32 %v15446_v19, %v2468_v14  ;;  %v1455_v3 = vunpack.c.l.bf16 %v688_v37  ;;  %v15448_v61 = vld [vmem:[#allocation8_spill] sm:$0xff]  ;;  %v15450_v35 = vld [vmem:[#allocation87_spill] sm:$0xff]  ;;  %v15451_v26 = vld [vmem:[#allocation22_spill] sm:$0xff] }
 0x1c1   : > { %v1456_v47 = vunpack.c.h.bf16 %v688_v37  ;;  %v3027_v45 = vmul.f32 %v2201_v50, %v1451_v46  ;;  %v3028_v1 = vmul.f32 %v2201_v50, %v1452_v10  ;;  %v3029_v52 = vmul.f32 %v2201_v50, %v1453_v36  ;;  %v15452_v14 = vld [vmem:[#allocation25_spill] sm:$0xff]  ;;  %v15453_v19 = vld [vmem:[#allocation80_spill] sm:$0xff]  ;;  %v15456_v46 = vld [vmem:[#allocation30_spill] sm:$0xff] }
 0x1c2   : > { %15445 = vst [vmem:[#allocation91_spill] sm:$0xff] %v11313_v5  ;;  %15447 = vst [vmem:[#allocation92_spill] sm:$0xff] %v11316_v62  ;;  %v3030_v31 = vmul.f32 %v2201_v50, %v1454_v53  ;;  %v3031_v21 = vmul.f32 %v2201_v50, %v1455_v3  ;;  %v4078_v29 = vadd.f32 %v15449_v22, %v15448_v61  ;;  %v15457_v10 = vld [vmem:[#allocation82_spill] sm:$0xff]  ;;  %v15458_v53 = vld [vmem:[#allocation83_spill] sm:$0xff]  ;;  %v2041_v22 = vpop.permute.xlu0 %2040 }
 0x1c3   : > { %v3032_v8 = vmul.f32 %v2201_v50, %v1456_v47  ;;  %v4103_v20 = vadd.f32 %v15451_v26, %v15450_v35  ;;  %v4128_v4 = vadd.f32 %v15453_v19, %v15452_v14  ;;  %v4153_v37 = vadd.f32 %v15455_v11, %v15454_v49  ;;  %v576_v3 = vld [vmem:[%s8732_s16 + $0x638] sm:$0xff]  ;;  %v577_v50 = vld [vmem:[%s8732_s16 + $0x640] sm:$0xff]  ;;  %v11338_v19 = vpop.permute.xlu1 %2282 }
 0x1c4   : > { %v4178_v36 = vadd.f32 %v15457_v10, %v15456_v46  ;;  %v4203_v62 = vadd.f32 %v15458_v53, %v11150_v44  ;;  %v11333_v47 = vadd.f32 %v4078_v29, %v3027_v45  ;;  %v1229_v35 = vunpack.c.l.bf16 %v575_v17  ;;  %v521_v14 = vld [vmem:[%s8732_s16 + $0x480] sm:$0xff] }
 0x1c5   : > { %v11335_v61 = vadd.f32 %v4103_v20, %v3028_v1  ;;  %v1230_v26 = vunpack.c.h.bf16 %v575_v17  ;;  %v11340_v11 = vadd.f32 %v4128_v4, %v3029_v52  ;;  %v11342_v49 = vadd.f32 %v4153_v37, %v3030_v31  ;;  %v522_v1 = vld [vmem:[%s8732_s16 + $0x488] sm:$0xff]  ;;  %v523_v37 = vld [vmem:[%s8732_s16 + $0x490] sm:$0xff] }
 0x1c6   : > { %15459 = vst [vmem:[#allocation93_spill] sm:$0xff] %v11333_v47  ;;  %v11344_v46 = vadd.f32 %v4178_v36, %v3031_v21  ;;  %v11346_v44 = vadd.f32 %v4203_v62, %v3032_v8  ;;  %v1231_v10 = vunpack.c.l.bf16 %v576_v3  ;;  %v1232_v45 = vunpack.c.h.bf16 %v576_v3  ;;  %v797_v3 = vld [vmem:[%s8732_s16 + $0xd20] sm:$0xff] }
 0x1c7   : > { %15460 = vst [vmem:[#allocation94_spill] sm:$0xff] %v11335_v61  ;;  %v1233_v29 = vunpack.c.l.bf16 %v577_v50  ;;  %v1234_v20 = vunpack.c.h.bf16 %v577_v50  ;;  %v2805_v53 = vmul.f32 %v2041_v22, %v1229_v35  ;;  %v2806_v17 = vmul.f32 %v2041_v22, %v1230_v26 }
 0x1c8   : > { %v1121_v61 = vunpack.c.l.bf16 %v521_v14  ;;  %v1122_v47 = vunpack.c.h.bf16 %v521_v14  ;;  %v2807_v5 = vmul.f32 %v2041_v22, %v1231_v10  ;;  %v2808_v4 = vmul.f32 %v2041_v22, %v1232_v45 }
 0x1c9   : > { %v2809_v52 = vmul.f32 %v2041_v22, %v1233_v29  ;;  %v2810_v31 = vmul.f32 %v2041_v22, %v1234_v20  ;;  %v11351_v21 = vadd.f32 %v11155_v41, %v2805_v53  ;;  %v11354_v62 = vadd.f32 %v11158_v58, %v2806_v17  ;;  %v11369_v41 = vpop.permute.xlu1 %1798  ;;  %v799_v29 = vld [vmem:[%s8732_s16 + $0xd30] sm:$0xff] }
 0x1ca   : > { %v1123_v8 = vunpack.c.l.bf16 %v522_v1  ;;  %v1124_v36 = vunpack.c.h.bf16 %v522_v1  ;;  %v11358_v50 = vadd.f32 %v11161_v38, %v2807_v5  ;;  %v11361_v35 = vadd.f32 %v11164_v7, %v2808_v4  ;;  %v798_v38 = vld [vmem:[%s8732_s16 + $0xd28] sm:$0xff] }
 0x1cb   : > { %v11364_v22 = vadd.f32 %v11167_v24, %v2809_v52  ;;  %v11367_v26 = vadd.f32 %v11170_v57, %v2810_v31  ;;  %v1125_v58 = vunpack.c.l.bf16 %v523_v37  ;;  %v1126_v14 = vunpack.c.h.bf16 %v523_v37  ;;  %v743_v37 = vld [vmem:[%s8732_s16 + $0xb70] sm:$0xff] }
 0x1cc   : > { %v2697_v10 = vmul.f32 %v11304_v27, %v1121_v61  ;;  %v2698_v45 = vmul.f32 %v11304_v27, %v1122_v47  ;;  %v2699_v5 = vmul.f32 %v11304_v27, %v1123_v8  ;;  %v2700_v7 = vmul.f32 %v11304_v27, %v1124_v36  ;;  %v2361_v47 = vpop.permute.xlu0 %2360 }
 0x1cd   : > { %v1673_v24 = vunpack.c.l.bf16 %v797_v3  ;;  %v1674_v20 = vunpack.c.h.bf16 %v797_v3  ;;  %v2701_v57 = vmul.f32 %v11304_v27, %v1125_v58  ;;  %v2702_v1 = vmul.f32 %v11304_v27, %v1126_v14  ;;  %v744_v14 = vld [vmem:[%s8732_s16 + $0xb78] sm:$0xff] }
 0x1ce   : > { %v11380_v53 = vadd.f32 %v11182_v33, %v2697_v10  ;;  %v11383_v61 = vadd.f32 %v11184_v48, %v2698_v45  ;;  %v11386_v17 = vadd.f32 %v11191_v51, %v2699_v5  ;;  %v11389_v4 = vadd.f32 %v11193_v43, %v2700_v7  ;;  %v11399_v43 = vpop.permute.xlu1 %1884 }
 0x1cf   : > { %v1675_v52 = vunpack.c.l.bf16 %v798_v38  ;;  %v1676_v31 = vunpack.c.h.bf16 %v798_v38  ;;  %v11393_v27 = vadd.f32 %v11196_v55, %v2701_v57  ;;  %v11396_v33 = vadd.f32 %v11198_v16, %v2702_v1  ;;  %v745_v38 = vld [vmem:[%s8732_s16 + $0xb80] sm:$0xff] }
 0x1d0   : > { %v1677_v8 = vunpack.c.l.bf16 %v799_v29  ;;  %v1678_v48 = vunpack.c.h.bf16 %v799_v29  ;;  %v3249_v36 = vmul.f32 %v2361_v47, %v1673_v24  ;;  %v3250_v3 = vmul.f32 %v2361_v47, %v1674_v20  ;;  %v632_v20 = vld [vmem:[%s8732_s16 + $0x7f8] sm:$0xff] }
 0x1d1   : > { %v3251_v51 = vmul.f32 %v2361_v47, %v1675_v52  ;;  %v3252_v58 = vmul.f32 %v2361_v47, %v1676_v31  ;;  %v1565_v5 = vunpack.c.l.bf16 %v743_v37  ;;  %v1566_v55 = vunpack.c.h.bf16 %v743_v37 }
 0x1d2   : > { %v3253_v10 = vmul.f32 %v2361_v47, %v1677_v8  ;;  %v3254_v45 = vmul.f32 %v2361_v47, %v1678_v48  ;;  %v11403_v7 = vadd.f32 %v11203_v2, %v3249_v36  ;;  %v11406_v16 = vadd.f32 %v11206_v18, %v3250_v3  ;;  %v634_v48 = vld [vmem:[%s8732_s16 + $0x808] sm:$0xff] }
 0x1d3   : > { %v11409_v29 = vadd.f32 %v11209_v30, %v3251_v51  ;;  %v11412_v24 = vadd.f32 %v11212_v25, %v3252_v58  ;;  %v1567_v47 = vunpack.c.l.bf16 %v744_v14  ;;  %v1568_v2 = vunpack.c.h.bf16 %v744_v14  ;;  %v633_v30 = vld [vmem:[%s8732_s16 + $0x800] sm:$0xff]  ;;  %v2123_v14 = vpop.permute.xlu0 %2122 }
 0x1d4   : > { %v11416_v57 = vadd.f32 %v11215_v56, %v3253_v10  ;;  %v11419_v1 = vadd.f32 %v11218_v0, %v3254_v45  ;;  %v1569_v52 = vunpack.c.l.bf16 %v745_v38  ;;  %v1570_v31 = vunpack.c.h.bf16 %v745_v38  ;;  %v11435_v10 = vpop.permute.xlu1 %2044 }
 0x1d5   : > { %v3141_v18 = vmul.f32 %v11338_v19, %v1565_v5  ;;  %v3142_v37 = vmul.f32 %v11338_v19, %v1566_v55  ;;  %v3143_v25 = vmul.f32 %v11338_v19, %v1567_v47  ;;  %v3144_v8 = vmul.f32 %v11338_v19, %v1568_v2  ;;  %v407_v55 = vld [vmem:[%s8732_s16 + $0xf0] sm:$0xff] }
 0x1d6   : > { %v1343_v56 = vunpack.c.l.bf16 %v632_v20  ;;  %v1344_v36 = vunpack.c.h.bf16 %v632_v20  ;;  %v3145_v0 = vmul.f32 %v11338_v19, %v1569_v52  ;;  %v3146_v3 = vmul.f32 %v11338_v19, %v1570_v31 }
 0x1d7   : > { %v11430_v51 = vadd.f32 %v11235_v54, %v3141_v18  ;;  %v11433_v58 = vadd.f32 %v11237_v13, %v3142_v37  ;;  %v11438_v45 = vadd.f32 %v11240_v34, %v3143_v25  ;;  %v11441_v38 = vadd.f32 %v11242_v23, %v3144_v8  ;;  %v408_v18 = vld [vmem:[%s8732_s16 + $0xf8] sm:$0xff]  ;;  %v11452_v25 = vld [vmem:[%s8672_s11 + $0x8] sm:$0xff] }
 0x1d8   : > { %v1345_v5 = vunpack.c.l.bf16 %v633_v30  ;;  %v1346_v19 = vunpack.c.h.bf16 %v633_v30  ;;  %v11445_v54 = vadd.f32 %v11244_v42, %v3145_v0  ;;  %v11448_v13 = vadd.f32 %v11246_v6, %v3146_v3  ;;  %v15461_v30 = vld [vmem:[#allocation4_spill] sm:$0xff]  ;;  %v409_v42 = vld [vmem:[%s8732_s16 + $0x100] sm:$0xff] }
 0x1d9   : > { %v1347_v20 = vunpack.c.l.bf16 %v634_v48  ;;  %v1348_v47 = vunpack.c.h.bf16 %v634_v48  ;;  %v2919_v2 = vmul.f32 %v2123_v14, %v1343_v56  ;;  %v2920_v34 = vmul.f32 %v2123_v14, %v1344_v36  ;;  %v467_v3 = vld [vmem:[%s8732_s16 + $0x2d0] sm:$0xff] }
 0x1da   : > { %v2921_v52 = vmul.f32 %v2123_v14, %v1345_v5  ;;  %v2922_v31 = vmul.f32 %v2123_v14, %v1346_v19  ;;  %v11456_v8 = vrot.slane %v11452_v25, %v15461_v30  ;;  %v893_v0 = vunpack.c.l.bf16 %v407_v55  ;;  %v578_v30 = vld [vmem:[%s8732_s16 + $0x648] sm:$0xff] }
 0x1db   : > { %v2923_v23 = vmul.f32 %v2123_v14, %v1347_v20  ;;  %v2924_v37 = vmul.f32 %v2123_v14, %v1348_v47  ;;  %v11460_v6 = vadd.f32 %v11251_v28, %v2919_v2  ;;  %v11463_v48 = vadd.f32 %v11254_v60, %v2920_v34  ;;  %v11479_v60 = vpop.permute.xlu1 %2204 }
 0x1dc   : > { %v11466_v56 = vadd.f32 %v11257_v63, %v2921_v52  ;;  %v11469_v36 = vadd.f32 %v11260_v15, %v2922_v31  ;;  %1907 = vbcast.lane.b32.xlu0 %v11456_v8, 256  ;;  %v894_v28 = vunpack.c.h.bf16 %v407_v55  ;;  %v895_v19 = vunpack.c.l.bf16 %v408_v18  ;;  %v468_v15 = vld [vmem:[%s8732_s16 + $0x2d8] sm:$0xff]  ;;  %v469_v52 = vld [vmem:[%s8732_s16 + $0x2e0] sm:$0xff] }
 0x1dd   : > { %v11473_v14 = vadd.f32 %v11263_v12, %v2923_v23  ;;  %v11476_v5 = vadd.f32 %v11266_v40, %v2924_v37  ;;  %v896_v20 = vunpack.c.h.bf16 %v408_v18  ;;  %v897_v63 = vunpack.c.l.bf16 %v409_v42 }
 0x1de   : > { %v898_v47 = vunpack.c.h.bf16 %v409_v42  ;;  %v2469_v2 = vmul.f32 %v11369_v41, %v893_v0  ;;  %v2470_v34 = vmul.f32 %v11369_v41, %v894_v28  ;;  %v2471_v12 = vmul.f32 %v11369_v41, %v895_v19  ;;  %v15465_v28 = vld [vmem:[#allocation13_spill] sm:$0xff] }
 0x1df   : > { %v1013_v31 = vunpack.c.l.bf16 %v467_v3  ;;  %v1014_v40 = vunpack.c.h.bf16 %v467_v3  ;;  %v2472_v23 = vmul.f32 %v11369_v41, %v896_v20  ;;  %v2473_v55 = vmul.f32 %v11369_v41, %v897_v63  ;;  %v15467_v63 = vld [vmem:[#allocation91_spill] sm:$0xff] }
 0x1e0   : > { %v2474_v37 = vmul.f32 %v11369_v41, %v898_v47  ;;  %v11490_v18 = vadd.f32 %v11299_v32, %v2469_v2  ;;  %v11493_v42 = vadd.f32 %v11302_v39, %v2470_v34  ;;  %v11496_v0 = vadd.f32 %v11307_v9, %v2471_v12  ;;  %2224 = vbcast.lane.b32.xlu0 %v15465_v28, 368  ;;  %v15469_v32 = vld [vmem:[#allocation92_spill] sm:$0xff] }
 0x1e1   : > { %v1015_v19 = vunpack.c.l.bf16 %v468_v15  ;;  %v1016_v3 = vunpack.c.h.bf16 %v468_v15  ;;  %v11500_v20 = vadd.f32 %v11310_v59, %v2472_v23  ;;  %v11503_v41 = vadd.f32 %v15467_v63, %v2473_v55  ;;  %v11512_v15 = vpop.permute.xlu1 %2364  ;;  %v15471_v55 = vld [vmem:[#allocation3_spill] sm:$0xff] }
 0x1e2   : > { %15462 = vst [vmem:[#allocation95_spill] sm:$0xff] %v11490_v18  ;;  %15463 = vst [vmem:[#allocation96_spill] sm:$0xff] %v11493_v42  ;;  %v11506_v47 = vadd.f32 %v15469_v32, %v2474_v37  ;;  %v1017_v39 = vunpack.c.l.bf16 %v469_v52  ;;  %v1018_v2 = vunpack.c.h.bf16 %v469_v52  ;;  %v2589_v9 = vmul.f32 %v11399_v43, %v1013_v31  ;;  %v15472_v63 = vld [vmem:[#allocation7_spill] sm:$0xff]  ;;  %v579_v31 = vld [vmem:[%s8732_s16 + $0x650] sm:$0xff] }
 0x1e3   : > { %15464 = vst [vmem:[#allocation97_spill] sm:$0xff] %v11496_v0  ;;  %15466 = vst [vmem:[#allocation98_spill] sm:$0xff] %v11500_v20  ;;  %v2590_v34 = vmul.f32 %v11399_v43, %v1014_v40  ;;  %v2591_v12 = vmul.f32 %v11399_v43, %v1015_v19  ;;  %v2592_v59 = vmul.f32 %v11399_v43, %v1016_v3  ;;  %v580_v40 = vld [vmem:[%s8732_s16 + $0x658] sm:$0xff]  ;;  %v15473_v32 = vld [vmem:[#allocation88_spill] sm:$0xff] }
 0x1e4   : > { %15468 = vst [vmem:[#allocation100_spill] sm:$0xff] %v11503_v41  ;;  %15470 = vst [vmem:[#allocation101_spill] sm:$0xff] %v11506_v47  ;;  %v2593_v23 = vmul.f32 %v11399_v43, %v1017_v39  ;;  %v11518_v37 = vrot.slane %v11452_v25, %v15471_v55  ;;  %v11522_v52 = vrot.slane %v11452_v25, %v15472_v63  ;;  %v15474_v41 = vld [vmem:[#allocation31_spill] sm:$0xff]  ;;  %v15475_v20 = vld [vmem:[#allocation32_spill] sm:$0xff]  ;;  %v1240_v18 = vunpack.c.h.bf16 %v580_v40 }
 0x1e5   : > { %v2594_v19 = vmul.f32 %v11399_v43, %v1018_v2  ;;  %v11528_v47 = vadd.f32 %v15473_v32, %v2589_v9  ;;  %v11531_v3 = vadd.f32 %v15474_v41, %v2590_v34  ;;  %v11534_v39 = vadd.f32 %v15475_v20, %v2591_v12  ;;  %v15477_v0 = vld [vmem:[#allocation89_spill] sm:$0xff]  ;;  %v15479_v42 = vld [vmem:[#allocation11_spill] sm:$0xff]  ;;  %v689_v9 = vld [vmem:[%s8732_s16 + $0x9c0] sm:$0xff] }
 0x1e6   : > { %v11537_v55 = vadd.f32 %v15477_v0, %v2592_v59  ;;  %v11540_v63 = vadd.f32 %v15479_v42, %v2593_v23  ;;  %1989 = vbcast.lane.b32.xlu0 %v11518_v37, 256  ;;  %1825 = vbcast.lane.b32.xlu1 %v11522_v52, 256  ;;  %v1235_v43 = vunpack.c.l.bf16 %v578_v30  ;;  %v1236_v2 = vunpack.c.h.bf16 %v578_v30  ;;  %v15481_v41 = vld [vmem:[#allocation90_spill] sm:$0xff]  ;;  %v15483_v59 = vld [vmem:[#allocation9_spill] sm:$0xff] }
 0x1e7   : > { %15476 = vst [vmem:[#allocation102_spill] sm:$0xff] %v11534_v39  ;;  %v11546_v34 = vadd.f32 %v15481_v41, %v2594_v19  ;;  %v1237_v20 = vunpack.c.l.bf16 %v579_v31  ;;  %v1238_v12 = vunpack.c.h.bf16 %v579_v31  ;;  %v1239_v32 = vunpack.c.l.bf16 %v580_v40  ;;  %v691_v41 = vld [vmem:[%s8732_s16 + $0x9d0] sm:$0xff] }
 0x1e8   : > { %15478 = vst [vmem:[#allocation103_spill] sm:$0xff] %v11537_v55  ;;  %15480 = vst [vmem:[#allocation104_spill] sm:$0xff] %v11540_v63  ;;  %v2811_v0 = vmul.f32 %v11435_v10, %v1235_v43  ;;  %v2812_v42 = vmul.f32 %v11435_v10, %v1236_v2  ;;  %v11552_v23 = vrot.slane %v11452_v25, %v15483_v59  ;;  %v690_v63 = vld [vmem:[%s8732_s16 + $0x9c8] sm:$0xff]  ;;  %v1457_v31 = vunpack.c.l.bf16 %v689_v9  ;;  %v15485_v59 = vld [vmem:[#allocation14_spill] sm:$0xff] }
 0x1e9   : > { %15482 = vst [vmem:[#allocation105_spill] sm:$0xff] %v11546_v34  ;;  %v2813_v30 = vmul.f32 %v11435_v10, %v1237_v20  ;;  %v2814_v55 = vmul.f32 %v11435_v10, %v1238_v12  ;;  %v2815_v19 = vmul.f32 %v11435_v10, %v1239_v32  ;;  %v11559_v34 = vpop.permute.xlu1 %1966  ;;  %v2816_v40 = vmul.f32 %v11435_v10, %v1240_v18  ;;  %v800_v12 = vld [vmem:[%s8732_s16 + $0xd38] sm:$0xff] }
 0x1ea   : > { %v11563_v43 = vadd.f32 %v11351_v21, %v2811_v0  ;;  %v11566_v2 = vadd.f32 %v11354_v62, %v2812_v42  ;;  %2306 = vbcast.lane.b32.xlu0 %v15485_v59, 368  ;;  %2071 = vbcast.lane.b32.xlu1 %v11552_v23, 256  ;;  %v1458_v20 = vunpack.c.h.bf16 %v689_v9  ;;  %v1459_v21 = vunpack.c.l.bf16 %v690_v63 }
 0x1eb   : > { %v11572_v32 = vadd.f32 %v11358_v50, %v2813_v30  ;;  %v11575_v39 = vadd.f32 %v11361_v35, %v2814_v55  ;;  %v11578_v10 = vadd.f32 %v11364_v22, %v2815_v19  ;;  %v11581_v62 = vadd.f32 %v11367_v26, %v2816_v40  ;;  %v15488_v26 = vld [vmem:[#allocation15_spill] sm:$0xff]  ;;  %v15489_v40 = vld [vmem:[#allocation93_spill] sm:$0xff] }
 0x1ec   : > { %15484 = vst [vmem:[#allocation106_spill] sm:$0xff] %v11566_v2  ;;  %v1460_v18 = vunpack.c.h.bf16 %v690_v63  ;;  %v1461_v0 = vunpack.c.l.bf16 %v691_v41  ;;  %v1462_v42 = vunpack.c.h.bf16 %v691_v41  ;;  %v801_v2 = vld [vmem:[%s8732_s16 + $0xd40] sm:$0xff]  ;;  %v3033_v9 = vmul.f32 %v11479_v60, %v1457_v31  ;;  %v802_v63 = vld [vmem:[%s8732_s16 + $0xd48] sm:$0xff] }
 0x1ed   : > { %15486 = vst [vmem:[#allocation107_spill] sm:$0xff] %v11578_v10  ;;  %15487 = vst [vmem:[#allocation108_spill] sm:$0xff] %v11581_v62  ;;  %v3034_v50 = vmul.f32 %v11479_v60, %v1458_v20  ;;  %v3035_v35 = vmul.f32 %v11479_v60, %v1459_v21  ;;  %v1679_v55 = vunpack.c.l.bf16 %v800_v12  ;;  %v1680_v41 = vunpack.c.h.bf16 %v800_v12  ;;  %v15490_v20 = vld [vmem:[#allocation94_spill] sm:$0xff] }
 0x1ee   : > { %v3036_v22 = vmul.f32 %v11479_v60, %v1460_v18  ;;  %v3037_v30 = vmul.f32 %v11479_v60, %v1461_v0  ;;  %v3038_v19 = vmul.f32 %v11479_v60, %v1462_v42  ;;  %1911 = vbcast.lane.b32.xlu0 %v11456_v8, 264  ;;  %2388 = vbcast.lane.b32.xlu1 %v15488_v26, 368  ;;  %v1681_v18 = vunpack.c.l.bf16 %v801_v2  ;;  %v524_v0 = vld [vmem:[%s8732_s16 + $0x498] sm:$0xff]  ;;  %v11603_v60 = vpop.permute.xlu1 %2126 }
 0x1ef   : > { %v11594_v31 = vadd.f32 %v15489_v40, %v3033_v9  ;;  %v11597_v62 = vadd.f32 %v15490_v20, %v3034_v50  ;;  %v11600_v21 = vadd.f32 %v11340_v11, %v3035_v35  ;;  %v1682_v9 = vunpack.c.h.bf16 %v801_v2  ;;  %v525_v20 = vld [vmem:[%s8732_s16 + $0x4a0] sm:$0xff] }
 0x1f0   : > { %v11606_v42 = vadd.f32 %v11342_v49, %v3036_v22  ;;  %v11609_v10 = vadd.f32 %v11344_v46, %v3037_v30  ;;  %v11612_v12 = vadd.f32 %v11346_v44, %v3038_v19  ;;  %v1683_v50 = vunpack.c.l.bf16 %v802_v63  ;;  %v526_v46 = vld [vmem:[%s8732_s16 + $0x4a8] sm:$0xff] }
 0x1f1   : > { %15491 = vst [vmem:[#allocation109_spill] sm:$0xff] %v11600_v21  ;;  %v1684_v40 = vunpack.c.h.bf16 %v802_v63  ;;  %v3255_v11 = vmul.f32 %v11512_v15, %v1679_v55  ;;  %v3256_v35 = vmul.f32 %v11512_v15, %v1680_v41  ;;  %v3257_v21 = vmul.f32 %v11512_v15, %v1681_v18 }
 0x1f2   : > { %v3258_v49 = vmul.f32 %v11512_v15, %v1682_v9  ;;  %2228 = vbcast.lane.b32.xlu0 %v15465_v28, 376  ;;  %1993 = vbcast.lane.b32.xlu1 %v11518_v37, 264  ;;  %v1127_v44 = vunpack.c.l.bf16 %v524_v0  ;;  %v1128_v22 = vunpack.c.h.bf16 %v524_v0  ;;  %v3259_v2 = vmul.f32 %v11512_v15, %v1683_v50  ;;  %v635_v0 = vld [vmem:[%s8732_s16 + $0x810] sm:$0xff]  ;;  %v2287_v50 = vpop.permute.xlu1 %2286 }
 0x1f3   : > { %v3260_v30 = vmul.f32 %v11512_v15, %v1684_v40  ;;  %v11625_v55 = vadd.f32 %v11403_v7, %v3255_v11  ;;  %v11628_v19 = vadd.f32 %v11406_v16, %v3256_v35  ;;  %v11631_v63 = vadd.f32 %v11409_v29, %v3257_v21  ;;  %v636_v11 = vld [vmem:[%s8732_s16 + $0x818] sm:$0xff]  ;;  %v637_v35 = vld [vmem:[%s8732_s16 + $0x820] sm:$0xff] }
 0x1f4   : > { %v11634_v28 = vadd.f32 %v11412_v24, %v3258_v49  ;;  %v1129_v41 = vunpack.c.l.bf16 %v525_v20  ;;  %v1130_v18 = vunpack.c.h.bf16 %v525_v20  ;;  %v11638_v9 = vadd.f32 %v11416_v57, %v3259_v2 }
 0x1f5   : > { %v11641_v7 = vadd.f32 %v11419_v1, %v3260_v30  ;;  %v1131_v15 = vunpack.c.l.bf16 %v526_v46  ;;  %v1132_v16 = vunpack.c.h.bf16 %v526_v46  ;;  %v2703_v40 = vmul.f32 %v11559_v34, %v1127_v44 }
 0x1f6   : > { %v2704_v29 = vmul.f32 %v11559_v34, %v1128_v22  ;;  %v2705_v24 = vmul.f32 %v11559_v34, %v1129_v41  ;;  %v2706_v21 = vmul.f32 %v11559_v34, %v1130_v18  ;;  %1915 = vbcast.lane.b32.xlu0 %v11456_v8, 272  ;;  %2310 = vbcast.lane.b32.xlu1 %v15485_v59, 376  ;;  %v1349_v20 = vunpack.c.l.bf16 %v635_v0 }
 0x1f7   : > { %v2707_v57 = vmul.f32 %v11559_v34, %v1131_v15  ;;  %v2708_v1 = vmul.f32 %v11559_v34, %v1132_v16  ;;  %v1350_v49 = vunpack.c.h.bf16 %v635_v0  ;;  %v11654_v46 = vadd.f32 %v11380_v53, %v2703_v40  ;;  %v746_v34 = vld [vmem:[%s8732_s16 + $0xb88] sm:$0xff]  ;;  %v747_v0 = vld [vmem:[%s8732_s16 + $0xb90] sm:$0xff]  ;;  %v15492_v16 = vld [vmem:[#allocation10_spill] sm:$0xff] }
 0x1f8   : > { %v11657_v44 = vadd.f32 %v11383_v61, %v2704_v29  ;;  %v11660_v22 = vadd.f32 %v11386_v17, %v2705_v24  ;;  %v11663_v8 = vadd.f32 %v11389_v4, %v2706_v21  ;;  %v1351_v30 = vunpack.c.l.bf16 %v636_v11  ;;  %v1889_v29 = vpop.permute.xlu1 %1888 }
 0x1f9   : > { %v11667_v59 = vadd.f32 %v11393_v27, %v2707_v57  ;;  %v11670_v2 = vadd.f32 %v11396_v33, %v2708_v1  ;;  %v1352_v53 = vunpack.c.h.bf16 %v636_v11  ;;  %v1353_v41 = vunpack.c.l.bf16 %v637_v35  ;;  %v748_v33 = vld [vmem:[%s8732_s16 + $0xb98] sm:$0xff] }
 0x1fa   : > { %v1354_v18 = vunpack.c.h.bf16 %v637_v35  ;;  %v2925_v61 = vmul.f32 %v11603_v60, %v1349_v20  ;;  %v2926_v17 = vmul.f32 %v11603_v60, %v1350_v49  ;;  %v2927_v15 = vmul.f32 %v11603_v60, %v1351_v30  ;;  %1997 = vbcast.lane.b32.xlu1 %v11518_v37, 272  ;;  %v470_v49 = vld [vmem:[%s8732_s16 + $0x2e8] sm:$0xff] }
 0x1fb   : > { %v2928_v4 = vmul.f32 %v11603_v60, %v1352_v53  ;;  %v11679_v27 = vrot.slane %v11452_v25, %v15492_v16  ;;  %v1571_v40 = vunpack.c.l.bf16 %v746_v34  ;;  %v2929_v24 = vmul.f32 %v11603_v60, %v1353_v41  ;;  %v693_v16 = vld [vmem:[%s8732_s16 + $0x9e0] sm:$0xff] }
 0x1fc   : > { %v2930_v21 = vmul.f32 %v11603_v60, %v1354_v18  ;;  %v11686_v11 = vadd.f32 %v11460_v6, %v2925_v61  ;;  %v11689_v57 = vadd.f32 %v11463_v48, %v2926_v17  ;;  %v11692_v1 = vadd.f32 %v11466_v56, %v2927_v15  ;;  %v471_v18 = vld [vmem:[%s8732_s16 + $0x2f0] sm:$0xff] }
 0x1fd   : > { %v11695_v35 = vadd.f32 %v11469_v36, %v2928_v4  ;;  %2153 = vbcast.lane.b32.xlu0 %v11679_v27, 256  ;;  %v1572_v37 = vunpack.c.h.bf16 %v746_v34  ;;  %v1573_v20 = vunpack.c.l.bf16 %v747_v0  ;;  %v11700_v60 = vadd.f32 %v11473_v14, %v2929_v24  ;;  %v15493_v15 = vld [vmem:[#allocation12_spill] sm:$0xff]  ;;  %v472_v4 = vld [vmem:[%s8732_s16 + $0x2f8] sm:$0xff] }
 0x1fe   : > { %v11703_v6 = vadd.f32 %v11476_v5, %v2930_v21  ;;  %v1574_v48 = vunpack.c.h.bf16 %v747_v0  ;;  %v1575_v30 = vunpack.c.l.bf16 %v748_v33  ;;  %v1576_v53 = vunpack.c.h.bf16 %v748_v33  ;;  %v581_v21 = vld [vmem:[%s8732_s16 + $0x660] sm:$0xff] }
 0x1ff   : > { %v3147_v56 = vmul.f32 %v2287_v50, %v1571_v40  ;;  %v3148_v41 = vmul.f32 %v2287_v50, %v1572_v37  ;;  %v3149_v36 = vmul.f32 %v2287_v50, %v1573_v20  ;;  %v11708_v34 = vrot.slane %v11452_v25, %v15493_v15  ;;  %v2049_v40 = vpop.permute.xlu1 %2048  ;;  %v583_v15 = vld [vmem:[%s8732_s16 + $0x670] sm:$0xff] }
 0x200   : > { %v3150_v61 = vmul.f32 %v2287_v50, %v1574_v48  ;;  %v3151_v17 = vmul.f32 %v2287_v50, %v1575_v30  ;;  %v1019_v14 = vunpack.c.l.bf16 %v470_v49  ;;  %v3152_v24 = vmul.f32 %v2287_v50, %v1576_v53  ;;  %v582_v53 = vld [vmem:[%s8732_s16 + $0x668] sm:$0xff] }
 0x201   : > { %v11712_v5 = vadd.f32 %v11430_v51, %v3147_v56  ;;  %v11715_v0 = vadd.f32 %v11433_v58, %v3148_v41  ;;  %v11718_v33 = vadd.f32 %v11438_v45, %v3149_v36  ;;  %1829 = vbcast.lane.b32.xlu0 %v11522_v52, 264  ;;  %2235 = vbcast.lane.b32.xlu1 %v11708_v34, 256  ;;  %v1020_v51 = vunpack.c.h.bf16 %v470_v49 }
 0x202   : > { %v11723_v37 = vadd.f32 %v11441_v38, %v3150_v61  ;;  %v11726_v20 = vadd.f32 %v11445_v54, %v3151_v17  ;;  %v1021_v50 = vunpack.c.l.bf16 %v471_v18  ;;  %v11730_v58 = vadd.f32 %v11448_v13, %v3152_v24 }
 0x203   : > { %v1022_v45 = vunpack.c.h.bf16 %v471_v18  ;;  %v1023_v48 = vunpack.c.l.bf16 %v472_v4  ;;  %v1024_v30 = vunpack.c.h.bf16 %v472_v4  ;;  %v2595_v56 = vmul.f32 %v1889_v29, %v1019_v14  ;;  %v15494_v4 = vld [vmem:[#allocation102_spill] sm:$0xff] }
 0x204   : > { %v2596_v41 = vmul.f32 %v1889_v29, %v1020_v51  ;;  %v2597_v38 = vmul.f32 %v1889_v29, %v1021_v50  ;;  %v1241_v36 = vunpack.c.l.bf16 %v581_v21  ;;  %v1242_v49 = vunpack.c.h.bf16 %v581_v21  ;;  %v692_v51 = vld [vmem:[%s8732_s16 + $0x9d8] sm:$0xff] }
 0x205   : > { %v2598_v61 = vmul.f32 %v1889_v29, %v1022_v45  ;;  %v2599_v54 = vmul.f32 %v1889_v29, %v1023_v48  ;;  %v2600_v17 = vmul.f32 %v1889_v29, %v1024_v30  ;;  %2075 = vbcast.lane.b32.xlu0 %v11552_v23, 264  ;;  %v11736_v13 = vadd.f32 %v11528_v47, %v2595_v56  ;;  %v15496_v29 = vld [vmem:[#allocation103_spill] sm:$0xff]  ;;  %v15498_v45 = vld [vmem:[#allocation104_spill] sm:$0xff]  ;;  %v15499_v48 = vld [vmem:[#allocation105_spill] sm:$0xff] }
 0x206   : > { %v11739_v18 = vadd.f32 %v11531_v3, %v2596_v41  ;;  %v11742_v24 = vadd.f32 %v15494_v4, %v2597_v38  ;;  %1833 = vbcast.lane.b32.xlu1 %v11522_v52, 272  ;;  %v1243_v14 = vunpack.c.l.bf16 %v582_v53  ;;  %v1244_v30 = vunpack.c.h.bf16 %v582_v53  ;;  %v2209_v3 = vpop.permute.xlu1 %2208  ;;  %v15501_v53 = vld [vmem:[#allocation106_spill] sm:$0xff] }
 0x207   : > { %v11747_v50 = vadd.f32 %v15496_v29, %v2598_v61  ;;  %v11750_v21 = vadd.f32 %v15498_v45, %v2599_v54  ;;  %v11753_v47 = vadd.f32 %v15499_v48, %v2600_v17  ;;  %v1245_v56 = vunpack.c.l.bf16 %v583_v15  ;;  %v694_v61 = vld [vmem:[%s8732_s16 + $0x9e8] sm:$0xff] }
 0x208   : > { %15495 = vst [vmem:[#allocation110_spill] sm:$0xff] %v11742_v24  ;;  %v1246_v41 = vunpack.c.h.bf16 %v583_v15  ;;  %v2817_v38 = vmul.f32 %v2049_v40, %v1241_v36  ;;  %v2818_v4 = vmul.f32 %v2049_v40, %v1242_v49  ;;  %v2819_v52 = vmul.f32 %v2049_v40, %v1243_v14  ;;  %v803_v14 = vld [vmem:[%s8732_s16 + $0xd50] sm:$0xff] }
 0x209   : > { %15497 = vst [vmem:[#allocation111_spill] sm:$0xff] %v11747_v50  ;;  %15500 = vst [vmem:[#allocation112_spill] sm:$0xff] %v11753_v47  ;;  %v2820_v24 = vmul.f32 %v2049_v40, %v1244_v30  ;;  %2392 = vbcast.lane.b32.xlu0 %v15488_v26, 376  ;;  %v1463_v29 = vunpack.c.l.bf16 %v692_v51  ;;  %v1464_v50 = vunpack.c.h.bf16 %v692_v51  ;;  %v2821_v54 = vmul.f32 %v2049_v40, %v1245_v56 }
 0x20a   : > { %v2822_v45 = vmul.f32 %v2049_v40, %v1246_v41  ;;  %v11759_v17 = vadd.f32 %v11563_v43, %v2817_v38  ;;  %v11762_v48 = vadd.f32 %v15501_v53, %v2818_v4  ;;  %2157 = vbcast.lane.b32.xlu1 %v11679_v27, 264  ;;  %v11766_v15 = vadd.f32 %v11572_v32, %v2819_v52  ;;  %v15502_v40 = vld [vmem:[#allocation107_spill] sm:$0xff]  ;;  %v15503_v43 = vld [vmem:[#allocation108_spill] sm:$0xff] }
 0x20b   : > { %v11769_v36 = vadd.f32 %v11575_v39, %v2820_v24  ;;  %v1465_v26 = vunpack.c.l.bf16 %v693_v16  ;;  %v1466_v49 = vunpack.c.h.bf16 %v693_v16  ;;  %v11773_v51 = vadd.f32 %v15502_v40, %v2821_v54  ;;  %v2369_v39 = vpop.permute.xlu1 %2368  ;;  %v804_v24 = vld [vmem:[%s8732_s16 + $0xd58] sm:$0xff]  ;;  %v805_v54 = vld [vmem:[%s8732_s16 + $0xd60] sm:$0xff] }
 0x20c   : > { %v11776_v30 = vadd.f32 %v15503_v43, %v2822_v45  ;;  %v1467_v56 = vunpack.c.l.bf16 %v694_v61  ;;  %v1468_v41 = vunpack.c.h.bf16 %v694_v61  ;;  %v3039_v38 = vmul.f32 %v2209_v3, %v1463_v29 }
 0x20d   : > { %v3040_v4 = vmul.f32 %v2209_v3, %v1464_v50  ;;  %v3041_v53 = vmul.f32 %v2209_v3, %v1465_v26  ;;  %v3042_v32 = vmul.f32 %v2209_v3, %v1466_v49  ;;  %2079 = vbcast.lane.b32.xlu0 %v11552_v23, 272  ;;  %v1685_v40 = vunpack.c.l.bf16 %v803_v14  ;;  %v15504_v50 = vld [vmem:[#allocation109_spill] sm:$0xff] }
 0x20e   : > { %v3043_v52 = vmul.f32 %v2209_v3, %v1467_v56  ;;  %v3044_v16 = vmul.f32 %v2209_v3, %v1468_v41  ;;  %2161 = vbcast.lane.b32.xlu1 %v11679_v27, 272  ;;  %v1686_v47 = vunpack.c.h.bf16 %v803_v14  ;;  %v11783_v45 = vadd.f32 %v11594_v31, %v3039_v38  ;;  %v527_v56 = vld [vmem:[%s8732_s16 + $0x4b0] sm:$0xff] }
 0x20f   : > { %v11786_v61 = vadd.f32 %v11597_v62, %v3040_v4  ;;  %v11789_v29 = vadd.f32 %v15504_v50, %v3041_v53  ;;  %v11792_v23 = vadd.f32 %v11606_v42, %v3042_v32  ;;  %v1687_v26 = vunpack.c.l.bf16 %v804_v24  ;;  %v15506_v4 = vld [vmem:[#allocation2_spill] sm:$0xff]  ;;  %v528_v32 = vld [vmem:[%s8732_s16 + $0x4b8] sm:$0xff] }
 0x210   : > { %v11795_v3 = vadd.f32 %v11609_v10, %v3043_v52  ;;  %v11798_v27 = vadd.f32 %v11612_v12, %v3044_v16  ;;  %v1688_v49 = vunpack.c.h.bf16 %v804_v24  ;;  %v1689_v31 = vunpack.c.l.bf16 %v805_v54 }
 0x211   : > { %v1690_v14 = vunpack.c.h.bf16 %v805_v54  ;;  %v3261_v62 = vmul.f32 %v2369_v39, %v1685_v40  ;;  %v3262_v43 = vmul.f32 %v2369_v39, %v1686_v47  ;;  %v3263_v41 = vmul.f32 %v2369_v39, %v1687_v26  ;;  %v1971_v54 = vpop.permute.xlu1 %1970  ;;  %v529_v40 = vld [vmem:[%s8732_s16 + $0x4c0] sm:$0xff] }
 0x212   : > { %15505 = vst [vmem:[#allocation113_spill] sm:$0xff] %v11798_v27  ;;  %v3264_v38 = vmul.f32 %v2369_v39, %v1688_v49  ;;  %v15507_v53 = vsub.s32 6, %v15506_v4  ;;  %v15508_v10 = vsub.s32 7, %v15506_v4  ;;  %v3265_v24 = vmul.f32 %v2369_v39, %v1689_v31  ;;  %v1751_v49 = vpop.xlane.xlu0 %1750 }
 0x213   : > { %v3266_v52 = vmul.f32 %v2369_v39, %v1690_v14  ;;  %v11813_v16 = vadd.f32 %v11625_v55, %v3261_v62  ;;  %v11816_v47 = vadd.f32 %v11628_v19, %v3262_v43  ;;  %v11820_v50 = vadd.f32 %v11631_v63, %v3263_v41  ;;  %v638_v55 = vld [vmem:[%s8732_s16 + $0x828] sm:$0xff] }
 0x214   : > { %v11804_v42 = vrot.slane %v11452_v25, %v15507_v53  ;;  %v11809_v12 = vrot.slane %v11452_v25, %v15508_v10  ;;  %v11823_v26 = vadd.f32 %v11634_v28, %v3264_v38  ;;  %v1133_v25 = vunpack.c.l.bf16 %v527_v56 }
 0x215   : > { %v1134_v39 = vunpack.c.h.bf16 %v527_v56  ;;  %v11829_v31 = vadd.f32 %v11638_v9, %v3265_v24  ;;  %v11832_v19 = vadd.f32 %v11641_v7, %v3266_v52  ;;  %v1135_v14 = vunpack.c.l.bf16 %v528_v32 }
 0x216   : > { %2317 = vbcast.lane.b32.xlu0 %v11804_v42, 256  ;;  %2399 = vbcast.lane.b32.xlu1 %v11809_v12, 256  ;;  %v1136_v63 = vunpack.c.h.bf16 %v528_v32  ;;  %v1137_v62 = vunpack.c.l.bf16 %v529_v40  ;;  %v1138_v43 = vunpack.c.h.bf16 %v529_v40  ;;  %v2709_v28 = vmul.f32 %v1971_v54, %v1133_v25  ;;  %v639_v25 = vld [vmem:[%s8732_s16 + $0x830] sm:$0xff] }
 0x217   : > { %v2710_v41 = vmul.f32 %v1971_v54, %v1134_v39  ;;  %v2711_v38 = vmul.f32 %v1971_v54, %v1135_v14  ;;  %v1752_v53 = vmax.f32 %v1751_v49, 1.0  ;;  %v1355_v10 = vunpack.c.l.bf16 %v638_v55  ;;  %v2131_v49 = vpop.permute.xlu1 %2130  ;;  %v640_v14 = vld [vmem:[%s8732_s16 + $0x838] sm:$0xff] }
 0x218   : > { %v2712_v4 = vmul.f32 %v1971_v54, %v1136_v63  ;;  %v2713_v56 = vmul.f32 %v1971_v54, %v1137_v62  ;;  %v2714_v27 = vmul.f32 %v1971_v54, %v1138_v43  ;;  %v11835_v9 = vadd.f32 %v11654_v46, %v2709_v28 }
 0x219   : > { %v11838_v7 = vadd.f32 %v11657_v44, %v2710_v41  ;;  %v11842_v32 = vadd.f32 %v11660_v22, %v2711_v38  ;;  %v4523_v52 = vrot.slane %v1752_v53, 1  ;;  %v4524_v40 = vrot.slane %v1752_v53, 2 }
 0x21a   : > { %2239 = vbcast.lane.b32.xlu0 %v11708_v34, 264  ;;  %v11845_v24 = vadd.f32 %v11663_v8, %v2712_v4  ;;  %2321 = vbcast.lane.b32.xlu1 %v11804_v42, 264  ;;  %v11850_v54 = vadd.f32 %v11667_v59, %v2713_v56  ;;  %v11853_v46 = vadd.f32 %v11670_v2, %v2714_v27  ;;  %v4525_v44 = vrot.slane %v1752_v53, 3 }
 0x21b   : > { %15509 = vst [vmem:[#allocation114_spill] sm:$0xff] %v11838_v7  ;;  %15510 = vst [vmem:[#allocation115_spill] sm:$0xff] %v11842_v32  ;;  %v4526_v39 = vrot.slane %v1752_v53, 4  ;;  %v4527_v22 = vrot.slane %v1752_v53, 5  ;;  %v4528_v63 = vrot.slane %v1752_v53, 6  ;;  %v4529_v62 = vrot.slane %v1752_v53, 7 }
 0x21c   : > { %15511 = vst [vmem:[#allocation116_spill] sm:$0xff] %v11845_v24  ;;  %15512 = vst [vmem:[#allocation117_spill] sm:$0xff] %v11850_v54  ;;  %8559 = vrcp.f32 %v1752_v53  ;;  %v1356_v8 = vunpack.c.h.bf16 %v638_v55  ;;  %v1357_v43 = vunpack.c.l.bf16 %v639_v25  ;;  %v1358_v28 = vunpack.c.h.bf16 %v639_v25  ;;  %v410_v53 = vld [vmem:[%s8732_s16 + $0x108] sm:$0xff]  ;;  %v15519_v24 = vld [vmem:[#allocation101_spill] sm:$0xff] }
 0x21d   : > { %15513 = vst [vmem:[#allocation118_spill] sm:$0xff] %v11853_v46  ;;  %8561 = vrcp.f32 %v4523_v52  ;;  %v1359_v59 = vunpack.c.l.bf16 %v640_v14  ;;  %v1360_v2 = vunpack.c.h.bf16 %v640_v14  ;;  %v2931_v27 = vmul.f32 %v2131_v49, %v1355_v10  ;;  %v412_v14 = vld [vmem:[%s8732_s16 + $0x118] sm:$0xff]  ;;  %v15517_v46 = vld [vmem:[#allocation98_spill] sm:$0xff] }
 0x21e   : > { %2243 = vbcast.lane.b32.xlu0 %v11708_v34, 272  ;;  %8563 = vrcp.f32 %v4524_v40  ;;  %2403 = vbcast.lane.b32.xlu1 %v11809_v12, 264  ;;  %v2932_v41 = vmul.f32 %v2131_v49, %v1356_v8  ;;  %v2933_v38 = vmul.f32 %v2131_v49, %v1357_v43  ;;  %v2934_v4 = vmul.f32 %v2131_v49, %v1358_v28  ;;  %v411_v34 = vld [vmem:[%s8732_s16 + $0x110] sm:$0xff] }
 0x21f   : > { %8565 = vrcp.f32 %v4525_v44  ;;  %v2935_v55 = vmul.f32 %v2131_v49, %v1359_v59  ;;  %v2936_v56 = vmul.f32 %v2131_v49, %v1360_v2  ;;  %v11860_v52 = vadd.f32 %v11686_v11, %v2931_v27  ;;  %v1803_v44 = vpop.permute.xlu0 %1802 }
 0x220   : > { %8567 = vrcp.f32 %v4526_v39  ;;  %v11864_v10 = vadd.f32 %v11689_v57, %v2932_v41  ;;  %v11867_v40 = vadd.f32 %v11692_v1, %v2933_v38  ;;  %v11870_v25 = vadd.f32 %v11695_v35, %v2934_v4  ;;  %v413_v39 = vld [vmem:[%s8732_s16 + $0x120] sm:$0xff]  ;;  %v414_v35 = vld [vmem:[%s8732_s16 + $0x128] sm:$0xff]  ;;  %v415_v41 = vld [vmem:[%s8732_s16 + $0x130] sm:$0xff] }
 0x221   : > { %8569 = vrcp.f32 %v4527_v22  ;;  %v11876_v11 = vadd.f32 %v11700_v60, %v2935_v55  ;;  %v11879_v49 = vadd.f32 %v11703_v6, %v2936_v56  ;;  %v899_v57 = vunpack.c.l.bf16 %v410_v53  ;;  %v15514_v4 = vld [vmem:[#allocation95_spill] sm:$0xff]  ;;  %v15515_v56 = vld [vmem:[#allocation96_spill] sm:$0xff] }
 0x222   : > { %2325 = vbcast.lane.b32.xlu0 %v11804_v42, 272  ;;  %8571 = vrcp.f32 %v4528_v63  ;;  %v900_v1 = vunpack.c.h.bf16 %v410_v53  ;;  %v901_v22 = vunpack.c.l.bf16 %v411_v34  ;;  %v902_v8 = vunpack.c.h.bf16 %v411_v34  ;;  %v1807_v53 = vpop.permute.xlu1 %1806 }
 0x223   : > { %8573 = vrcp.f32 %v4529_v62  ;;  %v903_v43 = vunpack.c.l.bf16 %v412_v14  ;;  %v904_v28 = vunpack.c.h.bf16 %v412_v14  ;;  %v2475_v59 = vmul.f32 %v1803_v44, %v899_v57  ;;  %v15516_v14 = vld [vmem:[#allocation97_spill] sm:$0xff] }
 0x224   : > { %v905_v2 = vunpack.c.l.bf16 %v413_v39  ;;  %v2476_v42 = vmul.f32 %v1803_v44, %v900_v1  ;;  %v2477_v63 = vmul.f32 %v1803_v44, %v901_v22  ;;  %v2478_v27 = vmul.f32 %v1803_v44, %v902_v8  ;;  %v749_v22 = vld [vmem:[%s8732_s16 + $0xba0] sm:$0xff]  ;;  %v15518_v8 = vld [vmem:[#allocation100_spill] sm:$0xff] }
 0x225   : > { %v906_v60 = vunpack.c.h.bf16 %v413_v39  ;;  %v2479_v6 = vmul.f32 %v1803_v44, %v903_v43  ;;  %v2480_v38 = vmul.f32 %v1803_v44, %v904_v28  ;;  %v3331_v62 = vadd.f32 %v15514_v4, %v2475_v59 }
 0x226   : > { %2407 = vbcast.lane.b32.xlu0 %v11809_v12, 272  ;;  %v907_v55 = vunpack.c.l.bf16 %v414_v35  ;;  %v3357_v34 = vadd.f32 %v15515_v56, %v2476_v42  ;;  %v3382_v57 = vadd.f32 %v15516_v14, %v2477_v63  ;;  %v3407_v54 = vadd.f32 %v15517_v46, %v2478_v27  ;;  %v750_v56 = vld [vmem:[%s8732_s16 + $0xba8] sm:$0xff]  ;;  %v2291_v27 = vpop.permute.xlu0 %2290  ;;  %v751_v14 = vld [vmem:[%s8732_s16 + $0xbb0] sm:$0xff] }
 0x227   : > { %v908_v1 = vunpack.c.h.bf16 %v414_v35  ;;  %v3432_v39 = vadd.f32 %v15518_v8, %v2479_v6  ;;  %v3457_v12 = vadd.f32 %v15519_v24, %v2480_v38  ;;  %v909_v43 = vunpack.c.l.bf16 %v415_v41  ;;  %v584_v38 = vld [vmem:[%s8732_s16 + $0x678] sm:$0xff] }
 0x228   : > { %v910_v44 = vunpack.c.h.bf16 %v415_v41  ;;  %v2481_v59 = vmul.f32 %v1807_v53, %v905_v2  ;;  %v2482_v4 = vmul.f32 %v1807_v53, %v906_v60  ;;  %v2483_v32 = vmul.f32 %v1807_v53, %v907_v55 }
 0x229   : > { %v11891_v28 = vpop.eup %8559  ;;  %v2484_v42 = vmul.f32 %v1807_v53, %v908_v1  ;;  %v2485_v46 = vmul.f32 %v1807_v53, %v909_v43  ;;  %v1577_v7 = vunpack.c.l.bf16 %v749_v22  ;;  %v1578_v6 = vunpack.c.h.bf16 %v749_v22 }
 0x22a   : > { %15520 = vst [vmem:[#allocation119_spill] sm:$0xff] %v11891_v28  ;;  %v11894_v63 = vpop.eup %8561  ;;  %v2486_v35 = vmul.f32 %v1807_v53, %v910_v44  ;;  %v11899_v24 = vadd.f32 %v3331_v62, %v2481_v59  ;;  %v11901_v41 = vadd.f32 %v3357_v34, %v2482_v4  ;;  %v11903_v2 = vadd.f32 %v3382_v57, %v2483_v32  ;;  %v585_v32 = vld [vmem:[%s8732_s16 + $0x680] sm:$0xff]  ;;  %v586_v28 = vld [vmem:[%s8732_s16 + $0x688] sm:$0xff] }
 0x22b   : > { %15521 = vst [vmem:[#allocation120_spill] sm:$0xff] %v11894_v63  ;;  %v11897_v8 = vpop.eup %8563  ;;  %v11905_v60 = vadd.f32 %v3407_v54, %v2484_v42  ;;  %v11910_v53 = vadd.f32 %v3432_v39, %v2485_v46  ;;  %v1579_v22 = vunpack.c.l.bf16 %v750_v56  ;;  %v1580_v43 = vunpack.c.h.bf16 %v750_v56 }
 0x22c   : > { %15522 = vst [vmem:[#allocation121_spill] sm:$0xff] %v11897_v8  ;;  %v11908_v55 = vpop.eup %8565  ;;  %v11912_v1 = vadd.f32 %v3457_v12, %v2486_v35  ;;  %v1581_v62 = vunpack.c.l.bf16 %v751_v14  ;;  %v1582_v59 = vunpack.c.h.bf16 %v751_v14  ;;  %v3153_v34 = vmul.f32 %v2291_v27, %v1577_v7  ;;  %v2053_v7 = vpop.permute.xlu1 %2052 }
 0x22d   : > { %15523 = vst [vmem:[#allocation122_spill] sm:$0xff] %v11908_v55  ;;  %v11914_v44 = vpop.eup %8567  ;;  %v3154_v4 = vmul.f32 %v2291_v27, %v1578_v6  ;;  %v3155_v54 = vmul.f32 %v2291_v27, %v1579_v22  ;;  %v3156_v42 = vmul.f32 %v2291_v27, %v1580_v43  ;;  %v1247_v55 = vunpack.c.l.bf16 %v584_v38 }
 0x22e   : > { %15524 = vst [vmem:[#allocation123_spill] sm:$0xff] %v11914_v44  ;;  %v11917_v57 = vpop.eup %8569  ;;  %v1248_v39 = vunpack.c.h.bf16 %v584_v38  ;;  %v3157_v12 = vmul.f32 %v2291_v27, %v1581_v62  ;;  %v3158_v35 = vmul.f32 %v2291_v27, %v1582_v59  ;;  %v11923_v56 = vadd.f32 %v11712_v5, %v3153_v34  ;;  %v473_v27 = vld [vmem:[%s8732_s16 + $0x300] sm:$0xff]  ;;  %v475_v44 = vld [vmem:[%s8732_s16 + $0x310] sm:$0xff] }
 0x22f   : > { %15525 = vst [vmem:[#allocation124_spill] sm:$0xff] %v11917_v57  ;;  %v11920_v46 = vpop.eup %8571  ;;  %v11926_v14 = vadd.f32 %v11715_v0, %v3154_v4  ;;  %v11931_v22 = vadd.f32 %v11718_v33, %v3155_v54  ;;  %v11934_v43 = vadd.f32 %v11723_v37, %v3156_v42  ;;  %v1249_v38 = vunpack.c.l.bf16 %v585_v32  ;;  %v1893_v57 = vpop.permute.xlu0 %1892 }
 0x230   : > { %15526 = vst [vmem:[#allocation125_spill] sm:$0xff] %v11920_v46  ;;  %v11928_v6 = vpop.eup %8573  ;;  %v1250_v62 = vunpack.c.h.bf16 %v585_v32  ;;  %v11938_v5 = vadd.f32 %v11726_v20, %v3157_v12  ;;  %v11941_v0 = vadd.f32 %v11730_v58, %v3158_v35  ;;  %v1251_v59 = vunpack.c.l.bf16 %v586_v28  ;;  %v474_v46 = vld [vmem:[%s8732_s16 + $0x308] sm:$0xff] }
 0x231   : > { %15527 = vst [vmem:[#allocation126_spill] sm:$0xff] %v11928_v6  ;;  %v1252_v34 = vunpack.c.h.bf16 %v586_v28  ;;  %v2823_v4 = vmul.f32 %v2053_v7, %v1247_v55  ;;  %v2824_v6 = vmul.f32 %v2053_v7, %v1248_v39  ;;  %v2825_v33 = vmul.f32 %v2053_v7, %v1249_v38  ;;  %v806_v39 = vld [vmem:[%s8732_s16 + $0xd68] sm:$0xff] }
 0x232   : > { %v2826_v54 = vmul.f32 %v2053_v7, %v1250_v62  ;;  %v2827_v37 = vmul.f32 %v2053_v7, %v1251_v59  ;;  %v1025_v32 = vunpack.c.l.bf16 %v473_v27  ;;  %v1026_v8 = vunpack.c.h.bf16 %v473_v27 }
 0x233   : > { %v2828_v42 = vmul.f32 %v2053_v7, %v1252_v34  ;;  %v11946_v20 = vadd.f32 %v11759_v17, %v2823_v4  ;;  %v11949_v58 = vadd.f32 %v11762_v48, %v2824_v6  ;;  %v11952_v28 = vadd.f32 %v11766_v15, %v2825_v33  ;;  %v807_v6 = vld [vmem:[%s8732_s16 + $0xd70] sm:$0xff]  ;;  %v808_v34 = vld [vmem:[%s8732_s16 + $0xd78] sm:$0xff]  ;;  %v2213_v63 = vpop.permute.xlu0 %2212 }
 0x234   : > { %v11955_v55 = vadd.f32 %v11769_v36, %v2826_v54  ;;  %v11959_v12 = vadd.f32 %v11773_v51, %v2827_v37  ;;  %v1027_v7 = vunpack.c.l.bf16 %v474_v46  ;;  %v1028_v17 = vunpack.c.h.bf16 %v474_v46  ;;  %v2373_v46 = vpop.permute.xlu1 %2372 }
 0x235   : > { %v11962_v35 = vadd.f32 %v11776_v30, %v2828_v42  ;;  %v1029_v38 = vunpack.c.l.bf16 %v475_v44  ;;  %v1030_v62 = vunpack.c.h.bf16 %v475_v44  ;;  %v2601_v27 = vmul.f32 %v1893_v57, %v1025_v32  ;;  %v15528_v44 = vld [vmem:[#allocation110_spill] sm:$0xff] }
 0x236   : > { %v2602_v48 = vmul.f32 %v1893_v57, %v1026_v8  ;;  %v2603_v15 = vmul.f32 %v1893_v57, %v1027_v7  ;;  %v2604_v59 = vmul.f32 %v1893_v57, %v1028_v17  ;;  %v1691_v36 = vunpack.c.l.bf16 %v806_v39  ;;  %v15530_v8 = vld [vmem:[#allocation111_spill] sm:$0xff] }
 0x237   : > { %v1692_v4 = vunpack.c.h.bf16 %v806_v39  ;;  %v2605_v33 = vmul.f32 %v1893_v57, %v1029_v38  ;;  %v2606_v54 = vmul.f32 %v1893_v57, %v1030_v62  ;;  %v11967_v51 = vadd.f32 %v11736_v13, %v2601_v27  ;;  %v695_v39 = vld [vmem:[%s8732_s16 + $0x9f0] sm:$0xff] }
 0x238   : > { %v11970_v30 = vadd.f32 %v11739_v18, %v2602_v48  ;;  %v11973_v37 = vadd.f32 %v15528_v44, %v2603_v15  ;;  %v11976_v42 = vadd.f32 %v15530_v8, %v2604_v59  ;;  %v1693_v32 = vunpack.c.l.bf16 %v807_v6  ;;  %v15532_v13 = vld [vmem:[#allocation112_spill] sm:$0xff]  ;;  %v696_v44 = vld [vmem:[%s8732_s16 + $0x9f8] sm:$0xff] }
 0x239   : > { %v1694_v7 = vunpack.c.h.bf16 %v807_v6  ;;  %v11980_v57 = vadd.f32 %v11750_v21, %v2605_v33  ;;  %v11983_v17 = vadd.f32 %v15532_v13, %v2606_v54  ;;  %v1695_v38 = vunpack.c.l.bf16 %v808_v34 }
 0x23a   : > { %15529 = vst [vmem:[#allocation127_spill] sm:$0xff] %v11973_v37  ;;  %15531 = vst [vmem:[#allocation51_spill] sm:$0xff] %v11976_v42  ;;  %v1696_v18 = vunpack.c.h.bf16 %v808_v34  ;;  %v3267_v62 = vmul.f32 %v2373_v46, %v1691_v36  ;;  %v3268_v27 = vmul.f32 %v2373_v46, %v1692_v4  ;;  %v3269_v48 = vmul.f32 %v2373_v46, %v1693_v32  ;;  %v697_v42 = vld [vmem:[%s8732_s16 + $0xa00] sm:$0xff] }
 0x23b   : > { %v3270_v15 = vmul.f32 %v2373_v46, %v1694_v7  ;;  %v3271_v59 = vmul.f32 %v2373_v46, %v1695_v38  ;;  %v1469_v6 = vunpack.c.l.bf16 %v695_v39  ;;  %v1470_v37 = vunpack.c.h.bf16 %v695_v39  ;;  %v641_v4 = vld [vmem:[%s8732_s16 + $0x840] sm:$0xff]  ;;  %v642_v38 = vld [vmem:[%s8732_s16 + $0x848] sm:$0xff] }
 0x23c   : > { %v3272_v8 = vmul.f32 %v2373_v46, %v1696_v18  ;;  %v11988_v21 = vadd.f32 %v11813_v16, %v3267_v62  ;;  %v11991_v33 = vadd.f32 %v11816_v47, %v3268_v27  ;;  %v11994_v34 = vadd.f32 %v11820_v50, %v3269_v48  ;;  %v643_v62 = vld [vmem:[%s8732_s16 + $0x850] sm:$0xff] }
 0x23d   : > { %v11997_v36 = vadd.f32 %v11823_v26, %v3270_v15  ;;  %v12001_v54 = vadd.f32 %v11829_v31, %v3271_v59  ;;  %v1471_v32 = vunpack.c.l.bf16 %v696_v44  ;;  %v1472_v16 = vunpack.c.h.bf16 %v696_v44  ;;  %v2135_v44 = vpop.permute.xlu1 %2134 }
 0x23e   : > { %v12004_v46 = vadd.f32 %v11832_v19, %v3272_v8  ;;  %v1473_v7 = vunpack.c.l.bf16 %v697_v42  ;;  %v1474_v39 = vunpack.c.h.bf16 %v697_v42  ;;  %v3045_v13 = vmul.f32 %v2213_v63, %v1469_v6  ;;  %v530_v6 = vld [vmem:[%s8732_s16 + $0x4c8] sm:$0xff] }
 0x23f   : > { %v3046_v47 = vmul.f32 %v2213_v63, %v1470_v37  ;;  %v3047_v50 = vmul.f32 %v2213_v63, %v1471_v32  ;;  %v3048_v18 = vmul.f32 %v2213_v63, %v1472_v16  ;;  %v1361_v26 = vunpack.c.l.bf16 %v641_v4 }
 0x240   : > { %v1362_v27 = vunpack.c.h.bf16 %v641_v4  ;;  %v3049_v48 = vmul.f32 %v2213_v63, %v1473_v7  ;;  %v3050_v15 = vmul.f32 %v2213_v63, %v1474_v39  ;;  %v12009_v31 = vadd.f32 %v11783_v45, %v3045_v13  ;;  %v15534_v45 = vld [vmem:[#allocation113_spill] sm:$0xff]  ;;  %v531_v13 = vld [vmem:[%s8732_s16 + $0x4d0] sm:$0xff] }
 0x241   : > { %v12012_v19 = vadd.f32 %v11786_v61, %v3046_v47  ;;  %v12015_v42 = vadd.f32 %v11789_v29, %v3047_v50  ;;  %v12018_v37 = vadd.f32 %v11792_v23, %v3048_v18  ;;  %v1363_v59 = vunpack.c.l.bf16 %v642_v38  ;;  %v1975_v50 = vpop.permute.xlu0 %1974  ;;  %v532_v18 = vld [vmem:[%s8732_s16 + $0x4d8] sm:$0xff] }
 0x242   : > { %v1364_v8 = vunpack.c.h.bf16 %v642_v38  ;;  %v12022_v63 = vadd.f32 %v11795_v3, %v3049_v48  ;;  %v12025_v4 = vadd.f32 %v15534_v45, %v3050_v15  ;;  %v1365_v32 = vunpack.c.l.bf16 %v643_v62 }
 0x243   : > { %15533 = vst [vmem:[#allocation33_spill] sm:$0xff] %v12018_v37  ;;  %v1366_v61 = vunpack.c.h.bf16 %v643_v62  ;;  %v2937_v16 = vmul.f32 %v2135_v44, %v1361_v26  ;;  %v2938_v7 = vmul.f32 %v2135_v44, %v1362_v27  ;;  %v2939_v29 = vmul.f32 %v2135_v44, %v1363_v59  ;;  %v416_v27 = vld [vmem:[%s8732_s16 + $0x138] sm:$0xff] }
 0x244   : > { %v2940_v39 = vmul.f32 %v2135_v44, %v1364_v8  ;;  %v2941_v23 = vmul.f32 %v2135_v44, %v1365_v32  ;;  %v1139_v38 = vunpack.c.l.bf16 %v530_v6  ;;  %v1140_v37 = vunpack.c.h.bf16 %v530_v6  ;;  %v417_v32 = vld [vmem:[%s8732_s16 + $0x140] sm:$0xff] }
 0x245   : > { %v2942_v47 = vmul.f32 %v2135_v44, %v1366_v61  ;;  %v12030_v3 = vadd.f32 %v11860_v52, %v2937_v16  ;;  %v12033_v48 = vadd.f32 %v11864_v10, %v2938_v7  ;;  %v12036_v62 = vadd.f32 %v11867_v40, %v2939_v29  ;;  %v418_v16 = vld [vmem:[%s8732_s16 + $0x148] sm:$0xff] }
 0x246   : > { %v12039_v26 = vadd.f32 %v11870_v25, %v2940_v39  ;;  %v12043_v15 = vadd.f32 %v11876_v11, %v2941_v23  ;;  %v1141_v59 = vunpack.c.l.bf16 %v531_v13  ;;  %v1142_v52 = vunpack.c.h.bf16 %v531_v13  ;;  %v1811_v13 = vpop.permute.xlu1 %1810 }
 0x247   : > { %v12046_v44 = vadd.f32 %v11879_v49, %v2942_v47  ;;  %v1143_v8 = vunpack.c.l.bf16 %v532_v18  ;;  %v1144_v6 = vunpack.c.h.bf16 %v532_v18  ;;  %v2715_v45 = vmul.f32 %v1975_v50, %v1139_v38  ;;  %v15537_v49 = vld [vmem:[#allocation114_spill] sm:$0xff]  ;;  %v15539_v47 = vld [vmem:[#allocation115_spill] sm:$0xff] }
 0x248   : > { %v2716_v10 = vmul.f32 %v1975_v50, %v1140_v37  ;;  %v2717_v40 = vmul.f32 %v1975_v50, %v1141_v59  ;;  %v2718_v61 = vmul.f32 %v1975_v50, %v1142_v52  ;;  %v911_v25 = vunpack.c.l.bf16 %v416_v27  ;;  %v15541_v37 = vld [vmem:[#allocation116_spill] sm:$0xff] }
 0x249   : > { %15535 = vst [vmem:[#allocation52_spill] sm:$0xff] %v12046_v44  ;;  %v912_v7 = vunpack.c.h.bf16 %v416_v27  ;;  %v2719_v29 = vmul.f32 %v1975_v50, %v1143_v8  ;;  %v2720_v39 = vmul.f32 %v1975_v50, %v1144_v6  ;;  %v12051_v11 = vadd.f32 %v11835_v9, %v2715_v45  ;;  %v752_v27 = vld [vmem:[%s8732_s16 + $0xbb8] sm:$0xff]  ;;  %v15544_v9 = vld [vmem:[#allocation118_spill] sm:$0xff] }
 0x24a   : > { %v12054_v23 = vadd.f32 %v15537_v49, %v2716_v10  ;;  %v12057_v18 = vadd.f32 %v15539_v47, %v2717_v40  ;;  %v12060_v38 = vadd.f32 %v15541_v37, %v2718_v61  ;;  %v913_v59 = vunpack.c.l.bf16 %v417_v32  ;;  %v15543_v8 = vld [vmem:[#allocation117_spill] sm:$0xff] }
 0x24b   : > { %15536 = vst [vmem:[#allocation34_spill] sm:$0xff] %v12051_v11  ;;  %v914_v52 = vunpack.c.h.bf16 %v417_v32  ;;  %v12064_v50 = vadd.f32 %v15543_v8, %v2719_v29  ;;  %v12067_v6 = vadd.f32 %v15544_v9, %v2720_v39  ;;  %v915_v45 = vunpack.c.l.bf16 %v418_v16  ;;  %v754_v11 = vld [vmem:[%s8732_s16 + $0xbc8] sm:$0xff] }
 0x24c   : > { %15538 = vst [vmem:[#allocation53_spill] sm:$0xff] %v12054_v23  ;;  %15540 = vst [vmem:[#allocation35_spill] sm:$0xff] %v12057_v18  ;;  %v916_v10 = vunpack.c.h.bf16 %v418_v16  ;;  %v2487_v49 = vmul.f32 %v1811_v13, %v911_v25  ;;  %v2488_v23 = vmul.f32 %v1811_v13, %v912_v7  ;;  %v2489_v40 = vmul.f32 %v1811_v13, %v913_v59  ;;  %v753_v18 = vld [vmem:[%s8732_s16 + $0xbc0] sm:$0xff]  ;;  %v587_v7 = vld [vmem:[%s8732_s16 + $0x690] sm:$0xff] }
 0x24d   : > { %15542 = vst [vmem:[#allocation54_spill] sm:$0xff] %v12060_v38  ;;  %v2490_v47 = vmul.f32 %v1811_v13, %v914_v52  ;;  %v2491_v61 = vmul.f32 %v1811_v13, %v915_v45  ;;  %v2295_v38 = vpop.permute.xlu0 %2294  ;;  %v1583_v32 = vunpack.c.l.bf16 %v752_v27  ;;  %v1584_v44 = vunpack.c.h.bf16 %v752_v27 }
 0x24e   : > { %v2492_v37 = vmul.f32 %v1811_v13, %v916_v10  ;;  %v12072_v29 = vadd.f32 %v11899_v24, %v2487_v49  ;;  %v12075_v39 = vadd.f32 %v11901_v41, %v2488_v23  ;;  %v12078_v16 = vadd.f32 %v11903_v2, %v2489_v40  ;;  %v588_v23 = vld [vmem:[%s8732_s16 + $0x698] sm:$0xff]  ;;  %v589_v10 = vld [vmem:[%s8732_s16 + $0x6a0] sm:$0xff] }
 0x24f   : > { %v12081_v25 = vadd.f32 %v11905_v60, %v2490_v47  ;;  %v12085_v13 = vadd.f32 %v11910_v53, %v2491_v61  ;;  %v1585_v52 = vunpack.c.l.bf16 %v753_v18  ;;  %v1586_v24 = vunpack.c.h.bf16 %v753_v18  ;;  %v2057_v18 = vpop.permute.xlu1 %2056 }
 0x250   : > { %v12088_v59 = vadd.f32 %v11912_v1, %v2492_v37  ;;  %v1587_v27 = vunpack.c.l.bf16 %v754_v11  ;;  %v1588_v8 = vunpack.c.h.bf16 %v754_v11  ;;  %v3159_v9 = vmul.f32 %v2295_v38, %v1583_v32  ;;  %v476_v32 = vld [vmem:[%s8732_s16 + $0x318] sm:$0xff] }
 0x251   : > { %v3160_v41 = vmul.f32 %v2295_v38, %v1584_v44  ;;  %v3161_v2 = vmul.f32 %v2295_v38, %v1585_v52  ;;  %v3162_v45 = vmul.f32 %v2295_v38, %v1586_v24  ;;  %v1253_v60 = vunpack.c.l.bf16 %v587_v7 }
 0x252   : > { %v1254_v49 = vunpack.c.h.bf16 %v587_v7  ;;  %v3163_v40 = vmul.f32 %v2295_v38, %v1587_v27  ;;  %v3164_v47 = vmul.f32 %v2295_v38, %v1588_v8  ;;  %v12093_v53 = vadd.f32 %v11923_v56, %v3159_v9  ;;  %v477_v8 = vld [vmem:[%s8732_s16 + $0x320] sm:$0xff] }
 0x253   : > { %v12096_v1 = vadd.f32 %v11926_v14, %v3160_v41  ;;  %v12099_v11 = vadd.f32 %v11931_v22, %v3161_v2  ;;  %v12102_v44 = vadd.f32 %v11934_v43, %v3162_v45  ;;  %v1255_v61 = vunpack.c.l.bf16 %v588_v23  ;;  %v1897_v41 = vpop.permute.xlu0 %1896  ;;  %v478_v2 = vld [vmem:[%s8732_s16 + $0x328] sm:$0xff] }
 0x254   : > { %v1256_v37 = vunpack.c.h.bf16 %v588_v23  ;;  %v12106_v38 = vadd.f32 %v11938_v5, %v3163_v40  ;;  %v12109_v56 = vadd.f32 %v11941_v0, %v3164_v47  ;;  %v1257_v7 = vunpack.c.l.bf16 %v589_v10 }
 0x255   : > { %v1258_v14 = vunpack.c.h.bf16 %v589_v10  ;;  %v2829_v52 = vmul.f32 %v2057_v18, %v1253_v60  ;;  %v2830_v24 = vmul.f32 %v2057_v18, %v1254_v49  ;;  %v2831_v22 = vmul.f32 %v2057_v18, %v1255_v61  ;;  %v809_v49 = vld [vmem:[%s8732_s16 + $0xd80] sm:$0xff] }
 0x256   : > { %v2832_v27 = vmul.f32 %v2057_v18, %v1256_v37  ;;  %v2833_v43 = vmul.f32 %v2057_v18, %v1257_v7  ;;  %v1031_v23 = vunpack.c.l.bf16 %v476_v32  ;;  %v1032_v45 = vunpack.c.h.bf16 %v476_v32  ;;  %v810_v7 = vld [vmem:[%s8732_s16 + $0xd88] sm:$0xff] }
 0x257   : > { %v2834_v9 = vmul.f32 %v2057_v18, %v1258_v14  ;;  %v12114_v5 = vadd.f32 %v11946_v20, %v2829_v52  ;;  %v12117_v0 = vadd.f32 %v11949_v58, %v2830_v24  ;;  %v12120_v10 = vadd.f32 %v11952_v28, %v2831_v22  ;;  %v811_v52 = vld [vmem:[%s8732_s16 + $0xd90] sm:$0xff] }
 0x258   : > { %v12123_v60 = vadd.f32 %v11955_v55, %v2832_v27  ;;  %v12127_v40 = vadd.f32 %v11959_v12, %v2833_v43  ;;  %v1033_v18 = vunpack.c.l.bf16 %v477_v8  ;;  %v1034_v20 = vunpack.c.h.bf16 %v477_v8  ;;  %v2377_v8 = vpop.permute.xlu1 %2376  ;;  %v15545_v43 = vld [vmem:[#allocation127_spill] sm:$0xff] }
 0x259   : > { %v12130_v47 = vadd.f32 %v11962_v35, %v2834_v9  ;;  %v1035_v61 = vunpack.c.l.bf16 %v478_v2  ;;  %v1036_v37 = vunpack.c.h.bf16 %v478_v2  ;;  %v2607_v32 = vmul.f32 %v1897_v41, %v1031_v23  ;;  %v15547_v2 = vld [vmem:[#allocation51_spill] sm:$0xff] }
 0x25a   : > { %v2608_v58 = vmul.f32 %v1897_v41, %v1032_v45  ;;  %v2609_v28 = vmul.f32 %v1897_v41, %v1033_v18  ;;  %v2610_v14 = vmul.f32 %v1897_v41, %v1034_v20  ;;  %v1697_v55 = vunpack.c.l.bf16 %v809_v49 }
 0x25b   : > { %v1698_v24 = vunpack.c.h.bf16 %v809_v49  ;;  %v2611_v22 = vmul.f32 %v1897_v41, %v1035_v61  ;;  %v2612_v27 = vmul.f32 %v1897_v41, %v1036_v37  ;;  %v12135_v12 = vadd.f32 %v11967_v51, %v2607_v32  ;;  %v698_v49 = vld [vmem:[%s8732_s16 + $0xa08] sm:$0xff] }
 0x25c   : > { %v12138_v35 = vadd.f32 %v11970_v30, %v2608_v58  ;;  %v12141_v9 = vadd.f32 %v15545_v43, %v2609_v28  ;;  %v12144_v23 = vadd.f32 %v15547_v2, %v2610_v14  ;;  %v1699_v45 = vunpack.c.l.bf16 %v810_v7  ;;  %v699_v28 = vld [vmem:[%s8732_s16 + $0xa10] sm:$0xff]  ;;  %v2217_v2 = vpop.permute.xlu0 %2216 }
 0x25d   : > { %v1700_v18 = vunpack.c.h.bf16 %v810_v7  ;;  %v12148_v41 = vadd.f32 %v11980_v57, %v2611_v22  ;;  %v12151_v51 = vadd.f32 %v11983_v17, %v2612_v27  ;;  %v1701_v20 = vunpack.c.l.bf16 %v811_v52 }
 0x25e   : > { %15546 = vst [vmem:[#allocation36_spill] sm:$0xff] %v12141_v9  ;;  %15548 = vst [vmem:[#allocation57_spill] sm:$0xff] %v12144_v23  ;;  %v1702_v30 = vunpack.c.h.bf16 %v811_v52  ;;  %v3273_v61 = vmul.f32 %v2377_v8, %v1697_v55  ;;  %v3274_v37 = vmul.f32 %v2377_v8, %v1698_v24  ;;  %v3275_v32 = vmul.f32 %v2377_v8, %v1699_v45  ;;  %v700_v23 = vld [vmem:[%s8732_s16 + $0xa18] sm:$0xff] }
 0x25f   : > { %v3276_v58 = vmul.f32 %v2377_v8, %v1700_v18  ;;  %v3277_v14 = vmul.f32 %v2377_v8, %v1701_v20  ;;  %v1475_v7 = vunpack.c.l.bf16 %v698_v49  ;;  %v1476_v9 = vunpack.c.h.bf16 %v698_v49  ;;  %v644_v24 = vld [vmem:[%s8732_s16 + $0x858] sm:$0xff]  ;;  %v645_v20 = vld [vmem:[%s8732_s16 + $0x860] sm:$0xff] }
 0x260   : > { %v3278_v43 = vmul.f32 %v2377_v8, %v1702_v30  ;;  %v12156_v57 = vadd.f32 %v11988_v21, %v3273_v61  ;;  %v12159_v17 = vadd.f32 %v11991_v33, %v3274_v37  ;;  %v12162_v52 = vadd.f32 %v11994_v34, %v3275_v32  ;;  %v646_v61 = vld [vmem:[%s8732_s16 + $0x868] sm:$0xff] }
 0x261   : > { %v12165_v55 = vadd.f32 %v11997_v36, %v3276_v58  ;;  %v12169_v22 = vadd.f32 %v12001_v54, %v3277_v14  ;;  %v1477_v8 = vunpack.c.l.bf16 %v699_v28  ;;  %v1478_v21 = vunpack.c.h.bf16 %v699_v28  ;;  %v2139_v28 = vpop.permute.xlu1 %2138 }
 0x262   : > { %v12172_v27 = vadd.f32 %v12004_v46, %v3278_v43  ;;  %v1479_v45 = vunpack.c.l.bf16 %v700_v23  ;;  %v1480_v18 = vunpack.c.h.bf16 %v700_v23  ;;  %v3051_v49 = vmul.f32 %v2217_v2, %v1475_v7 }
 0x263   : > { %v3052_v33 = vmul.f32 %v2217_v2, %v1476_v9  ;;  %v3053_v34 = vmul.f32 %v2217_v2, %v1477_v8  ;;  %v3054_v30 = vmul.f32 %v2217_v2, %v1478_v21  ;;  %v1367_v36 = vunpack.c.l.bf16 %v644_v24  ;;  %v15549_v9 = vld [vmem:[#allocation33_spill] sm:$0xff] }
 0x264   : > { %v1368_v37 = vunpack.c.h.bf16 %v644_v24  ;;  %v3055_v32 = vmul.f32 %v2217_v2, %v1479_v45  ;;  %v3056_v58 = vmul.f32 %v2217_v2, %v1480_v18  ;;  %v12177_v54 = vadd.f32 %v12009_v31, %v3051_v49  ;;  %v533_v24 = vld [vmem:[%s8732_s16 + $0x4e0] sm:$0xff]  ;;  %v534_v49 = vld [vmem:[%s8732_s16 + $0x4e8] sm:$0xff] }
 0x265   : > { %v12180_v46 = vadd.f32 %v12012_v19, %v3052_v33  ;;  %v12183_v23 = vadd.f32 %v12015_v42, %v3053_v34  ;;  %v12186_v14 = vadd.f32 %v15549_v9, %v3054_v30  ;;  %v1369_v43 = vunpack.c.l.bf16 %v645_v20  ;;  %v1979_v30 = vpop.permute.xlu0 %1978  ;;  %v535_v9 = vld [vmem:[%s8732_s16 + $0x4f0] sm:$0xff] }
 0x266   : > { %v1370_v7 = vunpack.c.h.bf16 %v645_v20  ;;  %v12190_v2 = vadd.f32 %v12022_v63, %v3055_v32  ;;  %v12193_v31 = vadd.f32 %v12025_v4, %v3056_v58  ;;  %v1371_v8 = vunpack.c.l.bf16 %v646_v61  ;;  %v15551_v58 = vld [vmem:[#allocation52_spill] sm:$0xff] }
 0x267   : > { %15550 = vst [vmem:[#allocation39_spill] sm:$0xff] %v12186_v14  ;;  %v1372_v19 = vunpack.c.h.bf16 %v646_v61  ;;  %v2943_v21 = vmul.f32 %v2139_v28, %v1367_v36  ;;  %v2944_v45 = vmul.f32 %v2139_v28, %v1368_v37  ;;  %v2945_v42 = vmul.f32 %v2139_v28, %v1369_v43  ;;  %v419_v37 = vld [vmem:[%s8732_s16 + $0x150] sm:$0xff] }
 0x268   : > { %v2946_v18 = vmul.f32 %v2139_v28, %v1370_v7  ;;  %v2947_v33 = vmul.f32 %v2139_v28, %v1371_v8  ;;  %v1145_v20 = vunpack.c.l.bf16 %v533_v24  ;;  %v1146_v14 = vunpack.c.h.bf16 %v533_v24 }
 0x269   : > { %v2948_v34 = vmul.f32 %v2139_v28, %v1372_v19  ;;  %v12198_v63 = vadd.f32 %v12030_v3, %v2943_v21  ;;  %v12201_v4 = vadd.f32 %v12033_v48, %v2944_v45  ;;  %v12204_v61 = vadd.f32 %v12036_v62, %v2945_v42  ;;  %v420_v19 = vld [vmem:[%s8732_s16 + $0x158] sm:$0xff]  ;;  %v421_v45 = vld [vmem:[%s8732_s16 + $0x160] sm:$0xff] }
 0x26a   : > { %v12207_v36 = vadd.f32 %v12039_v26, %v2946_v18  ;;  %v12211_v32 = vadd.f32 %v12043_v15, %v2947_v33  ;;  %v1147_v43 = vunpack.c.l.bf16 %v534_v49  ;;  %v1148_v3 = vunpack.c.h.bf16 %v534_v49  ;;  %v8077_v15 = vld [vmem:[%s14457_s3 + $0x154] ss:$24 sps:$4 sm:$0xff]  }
 0x26b   : > { %v12214_v28 = vadd.f32 %v15551_v58, %v2948_v34  ;;  %v1149_v7 = vunpack.c.l.bf16 %v535_v9  ;;  %v1150_v24 = vunpack.c.h.bf16 %v535_v9  ;;  %v2721_v8 = vmul.f32 %v1979_v30, %v1145_v20  ;;  %v8079_v18 = vld [vmem:[%s14457_s3 + $0x454] ss:$24 sps:$4 sm:$0xff]   ;;  %v15553_v34 = vld [vmem:[#allocation34_spill] sm:$0xff]  ;;  %v1815_v58 = vpop.permute.xlu1 %1814  ;;  %6601 = vmatprep.subr.bf16.mxu0 %v8077_v15 }
 0x26c   : > { %v2722_v48 = vmul.f32 %v1979_v30, %v1146_v14  ;;  %v2723_v21 = vmul.f32 %v1979_v30, %v1147_v43  ;;  %v2724_v62 = vmul.f32 %v1979_v30, %v1148_v3  ;;  %v917_v26 = vunpack.c.l.bf16 %v419_v37  ;;  %v15555_v14 = vld [vmem:[#allocation53_spill] sm:$0xff]  ;;  %v8082_v43 = vld [vmem:[%s14457_s3 + $0x450] ss:$24 sps:$4 sm:$0xff]   ;;  %6642 = vmatprep.subr.bf16.mxu1 %v8079_v18  ;;  %v757_v18 = vld [vmem:[%s8732_s16 + $0xbe0] sm:$0xff] }
 0x26d   : > { %15552 = vst [vmem:[#allocation16_spill] sm:$0xff] %v12214_v28  ;;  %v918_v42 = vunpack.c.h.bf16 %v419_v37  ;;  %v2725_v49 = vmul.f32 %v1979_v30, %v1149_v7  ;;  %v2726_v33 = vmul.f32 %v1979_v30, %v1150_v24  ;;  %v12225_v9 = vadd.f32 %v15553_v34, %v2721_v8  ;;  %v8081_v37 = vld [vmem:[%s14457_s3 + $0x150] ss:$24 sps:$4 sm:$0xff]   ;;  %v15559_v7 = vld [vmem:[#allocation54_spill] sm:$0xff]  ;;  %6643 = vmatpush1.bf16.msra.mxu1 %v8082_v43 }
 0x26e   : > { %v12228_v20 = vadd.f32 %v15555_v14, %v2722_v48  ;;  %v15557_v3 = vld [vmem:[#allocation35_spill] sm:$0xff]  ;;  %v12240_v30 = vadd.f32 %v15559_v7, %v2724_v62  ;;  %v919_v24 = vunpack.c.l.bf16 %v420_v19  ;;  %v920_v8 = vunpack.c.h.bf16 %v420_v19  ;;  %v755_v48 = vld [vmem:[%s8732_s16 + $0xbd0] sm:$0xff]  ;;  %6602 = vmatpush1.bf16.msra.mxu0 %v8081_v37  ;;  %v756_v19 = vld [vmem:[%s8732_s16 + $0xbd8] sm:$0xff] }
 0x26f   : > { %15554 = vst [vmem:[#allocation40_spill] sm:$0xff] %v12225_v9  ;;  %v12237_v28 = vadd.f32 %v15557_v3, %v2723_v21  ;;  %v12244_v34 = vadd.f32 %v12064_v50, %v2725_v49  ;;  %v12247_v14 = vadd.f32 %v12067_v6, %v2726_v33  ;;  %v922_v9 = vunpack.c.h.bf16 %v421_v45  ;;  %v590_v33 = vld [vmem:[%s8732_s16 + $0x6a8] sm:$0xff] }
 0x270   : > { %15556 = vst [vmem:[#allocation128_spill] sm:$0xff] %v12228_v20  ;;  %15560 = vst [vmem:[#allocation41_spill] sm:$0xff] %v12240_v30  ;;  %v921_v20 = vunpack.c.l.bf16 %v421_v45  ;;  %v2493_v21 = vmul.f32 %v1815_v58, %v917_v26  ;;  %v2494_v62 = vmul.f32 %v1815_v58, %v918_v42  ;;  %v2495_v3 = vmul.f32 %v1815_v58, %v919_v24 }
 0x271   : > { %15558 = vst [vmem:[#allocation129_spill] sm:$0xff] %v12237_v28  ;;  %v2496_v7 = vmul.f32 %v1815_v58, %v920_v8  ;;  %v2498_v15 = vmul.f32 %v1815_v58, %v922_v9  ;;  %v2299_v28 = vpop.permute.xlu0 %2298  ;;  %v1589_v50 = vunpack.c.l.bf16 %v755_v48  ;;  %v1590_v49 = vunpack.c.h.bf16 %v755_v48  ;;  %v591_v8 = vld [vmem:[%s8732_s16 + $0x6b0] sm:$0xff] }
 0x272   : > { %v2497_v30 = vmul.f32 %v1815_v58, %v921_v20  ;;  %v12252_v6 = vadd.f32 %v12072_v29, %v2493_v21  ;;  %v12255_v45 = vadd.f32 %v12075_v39, %v2494_v62  ;;  %v12258_v26 = vadd.f32 %v12078_v16, %v2495_v3  ;;  %v592_v21 = vld [vmem:[%s8732_s16 + $0x6b8] sm:$0xff] }
 0x273   : > { %v12261_v42 = vadd.f32 %v12081_v25, %v2496_v7  ;;  %v12268_v20 = vadd.f32 %v12088_v59, %v2498_v15  ;;  %v1591_v58 = vunpack.c.l.bf16 %v756_v19  ;;  %v1592_v29 = vunpack.c.h.bf16 %v756_v19 }
 0x274   : > { %v12265_v9 = vadd.f32 %v12085_v13, %v2497_v30  ;;  %v1593_v37 = vunpack.c.l.bf16 %v757_v18  ;;  %v1594_v43 = vunpack.c.h.bf16 %v757_v18  ;;  %v3165_v24 = vmul.f32 %v2299_v28, %v1589_v50  ;;  %v2061_v30 = vpop.permute.xlu1 %2060 }
 0x275   : > { %v3166_v39 = vmul.f32 %v2299_v28, %v1590_v49  ;;  %v3167_v16 = vmul.f32 %v2299_v28, %v1591_v58  ;;  %v3168_v48 = vmul.f32 %v2299_v28, %v1592_v29  ;;  %v1259_v25 = vunpack.c.l.bf16 %v590_v33  ;;  %v479_v49 = vld [vmem:[%s8732_s16 + $0x330] sm:$0xff] }
 0x276   : > { %v1260_v62 = vunpack.c.h.bf16 %v590_v33  ;;  %v3169_v3 = vmul.f32 %v2299_v28, %v1593_v37  ;;  %v3170_v7 = vmul.f32 %v2299_v28, %v1594_v43  ;;  %v12273_v13 = vadd.f32 %v12093_v53, %v3165_v24  ;;  %v480_v43 = vld [vmem:[%s8732_s16 + $0x338] sm:$0xff] }
 0x277   : > { %v12276_v59 = vadd.f32 %v12096_v1, %v3166_v39  ;;  %v12279_v19 = vadd.f32 %v12099_v11, %v3167_v16  ;;  %v12282_v15 = vadd.f32 %v12102_v44, %v3168_v48  ;;  %v1261_v18 = vunpack.c.l.bf16 %v591_v8  ;;  %v1901_v39 = vpop.permute.xlu0 %1900  ;;  %v481_v16 = vld [vmem:[%s8732_s16 + $0x340] sm:$0xff] }
 0x278   : > { %v1262_v50 = vunpack.c.h.bf16 %v591_v8  ;;  %v12286_v28 = vadd.f32 %v12106_v38, %v3169_v3  ;;  %v12289_v53 = vadd.f32 %v12109_v56, %v3170_v7  ;;  %v1263_v33 = vunpack.c.l.bf16 %v592_v21 }
 0x279   : > { %v1264_v1 = vunpack.c.h.bf16 %v592_v21  ;;  %v2835_v58 = vmul.f32 %v2061_v30, %v1259_v25  ;;  %v2836_v29 = vmul.f32 %v2061_v30, %v1260_v62  ;;  %v2837_v11 = vmul.f32 %v2061_v30, %v1261_v18  ;;  %v812_v62 = vld [vmem:[%s8732_s16 + $0xd98] sm:$0xff] }
 0x27a   : > { %v2838_v37 = vmul.f32 %v2061_v30, %v1262_v50  ;;  %v2839_v44 = vmul.f32 %v2061_v30, %v1263_v33  ;;  %v1037_v8 = vunpack.c.l.bf16 %v479_v49  ;;  %v1038_v48 = vunpack.c.h.bf16 %v479_v49  ;;  %v813_v33 = vld [vmem:[%s8732_s16 + $0xda0] sm:$0xff] }
 0x27b   : > { %v2840_v24 = vmul.f32 %v2061_v30, %v1264_v1  ;;  %v12294_v38 = vadd.f32 %v12114_v5, %v2835_v58  ;;  %v12297_v56 = vadd.f32 %v12117_v0, %v2836_v29  ;;  %v12300_v21 = vadd.f32 %v12120_v10, %v2837_v11  ;;  %v814_v58 = vld [vmem:[%s8732_s16 + $0xda8] sm:$0xff] }
 0x27c   : > { %v12303_v25 = vadd.f32 %v12123_v60, %v2838_v37  ;;  %v12307_v3 = vadd.f32 %v12127_v40, %v2839_v44  ;;  %v1039_v30 = vunpack.c.l.bf16 %v480_v43  ;;  %v1040_v5 = vunpack.c.h.bf16 %v480_v43  ;;  %v2381_v43 = vpop.permute.xlu1 %2380  ;;  %v8083_v44 = vld [vmem:[%s14457_s3 + $0x124] ss:$24 sps:$4 sm:$0xff]  }
 0x27d   : > { %v12310_v7 = vadd.f32 %v12130_v47, %v2840_v24  ;;  %v1041_v18 = vunpack.c.l.bf16 %v481_v16  ;;  %v1042_v50 = vunpack.c.h.bf16 %v481_v16  ;;  %v2613_v49 = vmul.f32 %v1901_v39, %v1037_v8  ;;  %v8085_v24 = vld [vmem:[%s14457_s3 + $0x424] ss:$24 sps:$4 sm:$0xff]   ;;  %v15563_v16 = vld [vmem:[#allocation36_spill] sm:$0xff]  ;;  %6603 = vmatprep.subr.bf16.mxu0 %v8083_v44 }
 0x27e   : > { %v2614_v0 = vmul.f32 %v1901_v39, %v1038_v48  ;;  %v2615_v1 = vmul.f32 %v1901_v39, %v1039_v30  ;;  %v2616_v10 = vmul.f32 %v1901_v39, %v1040_v5  ;;  %v1703_v60 = vunpack.c.l.bf16 %v812_v62  ;;  %v15565_v48 = vld [vmem:[#allocation57_spill] sm:$0xff]  ;;  %6644 = vmatprep.subr.bf16.mxu1 %v8085_v24 }
 0x27f   : > { %v1704_v29 = vunpack.c.h.bf16 %v812_v62  ;;  %v2617_v11 = vmul.f32 %v1901_v39, %v1041_v18  ;;  %v2618_v37 = vmul.f32 %v1901_v39, %v1042_v50  ;;  %v12315_v40 = vadd.f32 %v12135_v12, %v2613_v49  ;;  %v8087_v30 = vld [vmem:[%s14457_s3 + $0x120] ss:$24 sps:$4 sm:$0xff]  }
 0x280   : > { %v12318_v47 = vadd.f32 %v12138_v35, %v2614_v0  ;;  %v12327_v8 = vadd.f32 %v15563_v16, %v2615_v1  ;;  %v12330_v39 = vadd.f32 %v15565_v48, %v2616_v10  ;;  %v1705_v12 = vunpack.c.l.bf16 %v813_v33  ;;  %v701_v35 = vld [vmem:[%s8732_s16 + $0xa20] sm:$0xff]  ;;  %v702_v48 = vld [vmem:[%s8732_s16 + $0xa28] sm:$0xff]  ;;  %6604 = vmatpush1.bf16.msra.mxu0 %v8087_v30  ;;  %v648_v30 = vld [vmem:[%s8732_s16 + $0x878] sm:$0xff] }
 0x281   : > { %15561 = vst [vmem:[#allocation17_spill] sm:$0xff] %v12315_v40  ;;  %v1706_v62 = vunpack.c.h.bf16 %v813_v33  ;;  %v8088_v5 = vld [vmem:[%s14457_s3 + $0x420] ss:$24 sps:$4 sm:$0xff]   ;;  %v12340_v18 = vadd.f32 %v12148_v41, %v2617_v11  ;;  %v12343_v50 = vadd.f32 %v12151_v51, %v2618_v37  ;;  %v1707_v49 = vunpack.c.l.bf16 %v814_v58  ;;  %v703_v40 = vld [vmem:[%s8732_s16 + $0xa30] sm:$0xff] }
 0x282   : > { %15562 = vst [vmem:[#allocation37_spill] sm:$0xff] %v12318_v47  ;;  %15564 = vst [vmem:[#allocation58_spill] sm:$0xff] %v12327_v8  ;;  %v1708_v0 = vunpack.c.h.bf16 %v814_v58  ;;  %v3279_v33 = vmul.f32 %v2381_v43, %v1703_v60  ;;  %v3280_v1 = vmul.f32 %v2381_v43, %v1704_v29  ;;  %v3281_v10 = vmul.f32 %v2381_v43, %v1705_v12  ;;  %v2221_v47 = vpop.permute.xlu0 %2220  ;;  %v647_v37 = vld [vmem:[%s8732_s16 + $0x870] sm:$0xff] }
 0x283   : > { %15566 = vst [vmem:[#allocation38_spill] sm:$0xff] %v12330_v39  ;;  %v3282_v16 = vmul.f32 %v2381_v43, %v1706_v62  ;;  %v3283_v39 = vmul.f32 %v2381_v43, %v1707_v49  ;;  %v1481_v41 = vunpack.c.l.bf16 %v701_v35  ;;  %v1482_v11 = vunpack.c.h.bf16 %v701_v35  ;;  %6645 = vmatpush1.bf16.msra.mxu1 %v8088_v5  ;;  %v649_v49 = vld [vmem:[%s8732_s16 + $0x880] sm:$0xff] }
 0x284   : > { %v3284_v8 = vmul.f32 %v2381_v43, %v1708_v0  ;;  %v12348_v51 = vadd.f32 %v12156_v57, %v3279_v33  ;;  %v12351_v58 = vadd.f32 %v12159_v17, %v3280_v1  ;;  %v12354_v60 = vadd.f32 %v12162_v52, %v3281_v10 }
 0x285   : > { %v12357_v29 = vadd.f32 %v12165_v55, %v3282_v16  ;;  %v12361_v43 = vadd.f32 %v12169_v22, %v3283_v39  ;;  %v1483_v24 = vunpack.c.l.bf16 %v702_v48  ;;  %v1484_v57 = vunpack.c.h.bf16 %v702_v48  ;;  %v15567_v39 = vld [vmem:[#allocation39_spill] sm:$0xff] }
 0x286   : > { %v12364_v44 = vadd.f32 %v12172_v27, %v3284_v8  ;;  %v1485_v12 = vunpack.c.l.bf16 %v703_v40  ;;  %v1486_v62 = vunpack.c.h.bf16 %v703_v40  ;;  %v3057_v35 = vmul.f32 %v2221_v47, %v1481_v41  ;;  %v2143_v8 = vpop.permute.xlu1 %2142  ;;  %v536_v41 = vld [vmem:[%s8732_s16 + $0x4f8] sm:$0xff] }
 0x287   : > { %v3058_v17 = vmul.f32 %v2221_v47, %v1482_v11  ;;  %v3059_v52 = vmul.f32 %v2221_v47, %v1483_v24  ;;  %v3060_v5 = vmul.f32 %v2221_v47, %v1484_v57  ;;  %v1373_v55 = vunpack.c.l.bf16 %v647_v37 }
 0x288   : > { %v1374_v0 = vunpack.c.h.bf16 %v647_v37  ;;  %v3061_v33 = vmul.f32 %v2221_v47, %v1485_v12  ;;  %v3062_v1 = vmul.f32 %v2221_v47, %v1486_v62  ;;  %v12369_v22 = vadd.f32 %v12177_v54, %v3057_v35  ;;  %v8091_v37 = vld [vmem:[%s14457_s3 + $0x3f4] ss:$24 sps:$4 sm:$0xff]   ;;  %v8094_v35 = vld [vmem:[%s14457_s3 + $0x3f0] ss:$24 sps:$4 sm:$0xff]  }
 0x289   : > { %v12372_v27 = vadd.f32 %v12180_v46, %v3058_v17  ;;  %v12375_v40 = vadd.f32 %v12183_v23, %v3059_v52  ;;  %v12378_v10 = vadd.f32 %v15567_v39, %v3060_v5  ;;  %v1375_v16 = vunpack.c.l.bf16 %v648_v30  ;;  %v8089_v23 = vld [vmem:[%s14457_s3 + $0xf4] ss:$24 sps:$4 sm:$0xff]   ;;  %v1983_v52 = vpop.permute.xlu0 %1982  ;;  %6646 = vmatprep.subr.bf16.mxu1 %v8091_v37 }
 0x28a   : > { %v1376_v48 = vunpack.c.h.bf16 %v648_v30  ;;  %v12382_v11 = vadd.f32 %v12190_v2, %v3061_v33  ;;  %v12385_v54 = vadd.f32 %v12193_v31, %v3062_v1  ;;  %v1377_v46 = vunpack.c.l.bf16 %v649_v49  ;;  %v537_v2 = vld [vmem:[%s8732_s16 + $0x500] sm:$0xff]  ;;  %v8093_v31 = vld [vmem:[%s14457_s3 + $0xf0] ss:$24 sps:$4 sm:$0xff]   ;;  %6605 = vmatprep.subr.bf16.mxu0 %v8089_v23  ;;  %6647 = vmatpush1.bf16.msra.mxu1 %v8094_v35  ;;  %v1819_v35 = vpop.permute.xlu1 %1818 }
 0x28b   : > { %v1378_v47 = vunpack.c.h.bf16 %v649_v49  ;;  %v2949_v24 = vmul.f32 %v2143_v8, %v1373_v55  ;;  %v2950_v57 = vmul.f32 %v2143_v8, %v1374_v0  ;;  %v2951_v12 = vmul.f32 %v2143_v8, %v1375_v16  ;;  %v538_v5 = vld [vmem:[%s8732_s16 + $0x508] sm:$0xff]  ;;  %6606 = vmatpush1.bf16.msra.mxu0 %v8093_v31  ;;  %v423_v37 = vld [vmem:[%s8732_s16 + $0x170] sm:$0xff] }
 0x28c   : > { %v2952_v62 = vmul.f32 %v2143_v8, %v1376_v48  ;;  %v2953_v17 = vmul.f32 %v2143_v8, %v1377_v46  ;;  %v1151_v49 = vunpack.c.l.bf16 %v536_v41  ;;  %v1152_v33 = vunpack.c.h.bf16 %v536_v41  ;;  %v15569_v48 = vld [vmem:[#allocation16_spill] sm:$0xff] }
 0x28d   : > { %v2954_v30 = vmul.f32 %v2143_v8, %v1378_v47  ;;  %v12402_v55 = vadd.f32 %v12198_v63, %v2949_v24  ;;  %v12405_v0 = vadd.f32 %v12201_v4, %v2950_v57  ;;  %v12408_v1 = vadd.f32 %v12204_v61, %v2951_v12  ;;  %v422_v8 = vld [vmem:[%s8732_s16 + $0x168] sm:$0xff]  ;;  %v424_v57 = vld [vmem:[%s8732_s16 + $0x178] sm:$0xff] }
 0x28e   : > { %v12411_v39 = vadd.f32 %v12207_v36, %v2952_v62  ;;  %v12415_v16 = vadd.f32 %v12211_v32, %v2953_v17  ;;  %v1153_v63 = vunpack.c.l.bf16 %v537_v2  ;;  %v1154_v46 = vunpack.c.h.bf16 %v537_v2  ;;  %v15570_v17 = vld [vmem:[#allocation40_spill] sm:$0xff] }
 0x28f   : > { %v12418_v41 = vadd.f32 %v15569_v48, %v2954_v30  ;;  %v1155_v4 = vunpack.c.l.bf16 %v538_v5  ;;  %v1156_v47 = vunpack.c.h.bf16 %v538_v5  ;;  %v2727_v23 = vmul.f32 %v1983_v52, %v1151_v49  ;;  %v15571_v30 = vld [vmem:[#allocation128_spill] sm:$0xff]  ;;  %v15573_v5 = vld [vmem:[#allocation129_spill] sm:$0xff] }
 0x290   : > { %15568 = vst [vmem:[#allocation59_spill] sm:$0xff] %v12415_v16  ;;  %v2728_v61 = vmul.f32 %v1983_v52, %v1152_v33  ;;  %v2729_v24 = vmul.f32 %v1983_v52, %v1153_v63  ;;  %v2730_v36 = vmul.f32 %v1983_v52, %v1154_v46  ;;  %v923_v12 = vunpack.c.l.bf16 %v422_v8  ;;  %v15575_v33 = vld [vmem:[#allocation41_spill] sm:$0xff] }
 0x291   : > { %v924_v62 = vunpack.c.h.bf16 %v422_v8  ;;  %v2731_v31 = vmul.f32 %v1983_v52, %v1155_v4  ;;  %v2732_v32 = vmul.f32 %v1983_v52, %v1156_v47  ;;  %v12423_v16 = vadd.f32 %v15570_v17, %v2727_v23  ;;  %v758_v8 = vld [vmem:[%s8732_s16 + $0xbe8] sm:$0xff] }
 0x292   : > { %v12426_v2 = vadd.f32 %v15571_v30, %v2728_v61  ;;  %v12429_v49 = vadd.f32 %v15573_v5, %v2729_v24  ;;  %v12432_v48 = vadd.f32 %v15575_v33, %v2730_v36  ;;  %v925_v63 = vunpack.c.l.bf16 %v423_v37  ;;  %v759_v5 = vld [vmem:[%s8732_s16 + $0xbf0] sm:$0xff] }
 0x293   : > { %v926_v46 = vunpack.c.h.bf16 %v423_v37  ;;  %v12436_v52 = vadd.f32 %v12244_v34, %v2731_v31  ;;  %v12439_v4 = vadd.f32 %v12247_v14, %v2732_v32  ;;  %v927_v47 = vunpack.c.l.bf16 %v424_v57 }
 0x294   : > { %15572 = vst [vmem:[#allocation42_spill] sm:$0xff] %v12426_v2  ;;  %15574 = vst [vmem:[#allocation55_spill] sm:$0xff] %v12429_v49  ;;  %v928_v23 = vunpack.c.h.bf16 %v424_v57  ;;  %v2499_v61 = vmul.f32 %v1819_v35, %v923_v12  ;;  %v2500_v17 = vmul.f32 %v1819_v35, %v924_v62  ;;  %v2501_v24 = vmul.f32 %v1819_v35, %v925_v63  ;;  %v760_v49 = vld [vmem:[%s8732_s16 + $0xbf8] sm:$0xff]  ;;  %v593_v62 = vld [vmem:[%s8732_s16 + $0x6c0] sm:$0xff] }
 0x295   : > { %15576 = vst [vmem:[#allocation43_spill] sm:$0xff] %v12432_v48  ;;  %v2502_v30 = vmul.f32 %v1819_v35, %v926_v46  ;;  %v2503_v36 = vmul.f32 %v1819_v35, %v927_v47  ;;  %v2303_v48 = vpop.permute.xlu0 %2302  ;;  %v1595_v37 = vunpack.c.l.bf16 %v758_v8  ;;  %v1596_v2 = vunpack.c.h.bf16 %v758_v8  ;;  %v594_v47 = vld [vmem:[%s8732_s16 + $0x6c8] sm:$0xff] }
 0x296   : > { %v2504_v33 = vmul.f32 %v1819_v35, %v928_v23  ;;  %v12444_v34 = vadd.f32 %v12252_v6, %v2499_v61  ;;  %v12447_v14 = vadd.f32 %v12255_v45, %v2500_v17  ;;  %v12450_v57 = vadd.f32 %v12258_v26, %v2501_v24  ;;  %v595_v61 = vld [vmem:[%s8732_s16 + $0x6d0] sm:$0xff] }
 0x297   : > { %v12453_v12 = vadd.f32 %v12261_v42, %v2502_v30  ;;  %v12457_v31 = vadd.f32 %v12265_v9, %v2503_v36  ;;  %v1597_v35 = vunpack.c.l.bf16 %v759_v5  ;;  %v1598_v6 = vunpack.c.h.bf16 %v759_v5  ;;  %v2065_v5 = vpop.permute.xlu1 %2064 }
 0x298   : > { %v12460_v32 = vadd.f32 %v12268_v20, %v2504_v33  ;;  %v1599_v63 = vunpack.c.l.bf16 %v760_v49  ;;  %v1600_v46 = vunpack.c.h.bf16 %v760_v49  ;;  %v3171_v8 = vmul.f32 %v2303_v48, %v1595_v37  ;;  %v482_v37 = vld [vmem:[%s8732_s16 + $0x348] sm:$0xff] }
 0x299   : > { %v3172_v45 = vmul.f32 %v2303_v48, %v1596_v2  ;;  %v3173_v26 = vmul.f32 %v2303_v48, %v1597_v35  ;;  %v3174_v23 = vmul.f32 %v2303_v48, %v1598_v6  ;;  %v1265_v42 = vunpack.c.l.bf16 %v593_v62 }
 0x29a   : > { %v1266_v17 = vunpack.c.h.bf16 %v593_v62  ;;  %v3175_v24 = vmul.f32 %v2303_v48, %v1599_v63  ;;  %v3176_v30 = vmul.f32 %v2303_v48, %v1600_v46  ;;  %v12465_v9 = vadd.f32 %v12273_v13, %v3171_v8  ;;  %v483_v46 = vld [vmem:[%s8732_s16 + $0x350] sm:$0xff] }
 0x29b   : > { %v12468_v20 = vadd.f32 %v12276_v59, %v3172_v45  ;;  %v12471_v49 = vadd.f32 %v12279_v19, %v3173_v26  ;;  %v12474_v2 = vadd.f32 %v12282_v15, %v3174_v23  ;;  %v1267_v36 = vunpack.c.l.bf16 %v594_v47  ;;  %v1908_v45 = vpop.permute.xlu0 %1907  ;;  %v484_v26 = vld [vmem:[%s8732_s16 + $0x358] sm:$0xff] }
 0x29c   : > { %v1268_v33 = vunpack.c.h.bf16 %v594_v47  ;;  %v12478_v48 = vadd.f32 %v12286_v28, %v3175_v24  ;;  %v12481_v13 = vadd.f32 %v12289_v53, %v3176_v30  ;;  %v1269_v62 = vunpack.c.l.bf16 %v595_v61  ;;  %v8095_v28 = vld [vmem:[%s14457_s3 + $0xc4] ss:$24 sps:$4 sm:$0xff]   ;;  %v815_v30 = vld [vmem:[%s8732_s16 + $0xdb0] sm:$0xff] }
 0x29d   : > { %v1270_v59 = vunpack.c.h.bf16 %v595_v61  ;;  %v2841_v35 = vmul.f32 %v2065_v5, %v1265_v42  ;;  %v2842_v6 = vmul.f32 %v2065_v5, %v1266_v17  ;;  %v2843_v19 = vmul.f32 %v2065_v5, %v1267_v36  ;;  %v8097_v53 = vld [vmem:[%s14457_s3 + $0x3c4] ss:$24 sps:$4 sm:$0xff]   ;;  %6607 = vmatprep.subr.bf16.mxu0 %v8095_v28 }
 0x29e   : > { %v2844_v63 = vmul.f32 %v2065_v5, %v1268_v33  ;;  %v2845_v15 = vmul.f32 %v2065_v5, %v1269_v62  ;;  %v1043_v47 = vunpack.c.l.bf16 %v482_v37  ;;  %v1044_v23 = vunpack.c.h.bf16 %v482_v37  ;;  %6648 = vmatprep.subr.bf16.mxu1 %v8097_v53  ;;  %v15583_v53 = vld [vmem:[#allocation38_spill] sm:$0xff] }
 0x29f   : > { %v2846_v8 = vmul.f32 %v2065_v5, %v1270_v59  ;;  %v12492_v61 = vadd.f32 %v12294_v38, %v2841_v35  ;;  %v12495_v42 = vadd.f32 %v12297_v56, %v2842_v6  ;;  %v12498_v17 = vadd.f32 %v12300_v21, %v2843_v19  ;;  %v8099_v5 = vld [vmem:[%s14457_s3 + $0xc0] ss:$24 sps:$4 sm:$0xff]  }
 0x2a0   : > { %v12501_v24 = vadd.f32 %v12303_v25, %v2844_v63  ;;  %v8100_v38 = vld [vmem:[%s14457_s3 + $0x3c0] ss:$24 sps:$4 sm:$0xff]   ;;  %v12511_v56 = vadd.f32 %v12307_v3, %v2845_v15  ;;  %v1045_v21 = vunpack.c.l.bf16 %v483_v46  ;;  %v1046_v33 = vunpack.c.h.bf16 %v483_v46  ;;  %6608 = vmatpush1.bf16.msra.mxu0 %v8099_v5 }
 0x2a1   : > { %v12514_v36 = vadd.f32 %v12310_v7, %v2846_v8  ;;  %v1047_v25 = vunpack.c.l.bf16 %v484_v26  ;;  %v1048_v37 = vunpack.c.h.bf16 %v484_v26  ;;  %v2619_v62 = vmul.f32 %v1908_v45, %v1043_v47  ;;  %v816_v35 = vld [vmem:[%s8732_s16 + $0xdb8] sm:$0xff]  ;;  %6649 = vmatpush1.bf16.msra.mxu1 %v8100_v38  ;;  %v817_v63 = vld [vmem:[%s8732_s16 + $0xdc0] sm:$0xff]  ;;  %v2385_v26 = vpop.permute.xlu1 %2384 }
 0x2a2   : > { %15577 = vst [vmem:[#allocation44_spill] sm:$0xff] %v12511_v56  ;;  %v2620_v59 = vmul.f32 %v1908_v45, %v1044_v23  ;;  %v2621_v6 = vmul.f32 %v1908_v45, %v1045_v21  ;;  %v2622_v19 = vmul.f32 %v1908_v45, %v1046_v33  ;;  %v1709_v3 = vunpack.c.l.bf16 %v815_v30  ;;  %v15579_v8 = vld [vmem:[#allocation17_spill] sm:$0xff]  ;;  %v15581_v47 = vld [vmem:[#allocation58_spill] sm:$0xff] }
 0x2a3   : > { %15578 = vst [vmem:[#allocation61_spill] sm:$0xff] %v12514_v36  ;;  %v1710_v15 = vunpack.c.h.bf16 %v815_v30  ;;  %v2623_v56 = vmul.f32 %v1908_v45, %v1047_v25  ;;  %v2624_v7 = vmul.f32 %v1908_v45, %v1048_v37  ;;  %v12519_v36 = vadd.f32 %v15579_v8, %v2619_v62  ;;  %v15580_v46 = vld [vmem:[#allocation37_spill] sm:$0xff] }
 0x2a4   : > { %v12522_v28 = vadd.f32 %v15580_v46, %v2620_v59  ;;  %v12525_v23 = vadd.f32 %v15581_v47, %v2621_v6  ;;  %v12528_v5 = vadd.f32 %v15583_v53, %v2622_v19  ;;  %v1711_v38 = vunpack.c.l.bf16 %v816_v35  ;;  %v704_v30 = vld [vmem:[%s8732_s16 + $0xa38] sm:$0xff]  ;;  %v705_v46 = vld [vmem:[%s8732_s16 + $0xa40] sm:$0xff]  ;;  %v2225_v53 = vpop.permute.xlu0 %2224 }
 0x2a5   : > { %v1712_v21 = vunpack.c.h.bf16 %v816_v35  ;;  %v12532_v45 = vadd.f32 %v12340_v18, %v2623_v56  ;;  %v12535_v33 = vadd.f32 %v12343_v50, %v2624_v7  ;;  %v1713_v25 = vunpack.c.l.bf16 %v817_v63 }
 0x2a6   : > { %15582 = vst [vmem:[#allocation62_spill] sm:$0xff] %v12525_v23  ;;  %15584 = vst [vmem:[#allocation56_spill] sm:$0xff] %v12528_v5  ;;  %v1714_v37 = vunpack.c.h.bf16 %v817_v63  ;;  %v3285_v62 = vmul.f32 %v2385_v26, %v1709_v3  ;;  %v3286_v59 = vmul.f32 %v2385_v26, %v1710_v15  ;;  %v3287_v6 = vmul.f32 %v2385_v26, %v1711_v38  ;;  %v706_v5 = vld [vmem:[%s8732_s16 + $0xa48] sm:$0xff] }
 0x2a7   : > { %v3288_v8 = vmul.f32 %v2385_v26, %v1712_v21  ;;  %v3289_v19 = vmul.f32 %v2385_v26, %v1713_v25  ;;  %v1487_v35 = vunpack.c.l.bf16 %v704_v30  ;;  %v1488_v23 = vunpack.c.h.bf16 %v704_v30  ;;  %v650_v3 = vld [vmem:[%s8732_s16 + $0x888] sm:$0xff]  ;;  %v651_v25 = vld [vmem:[%s8732_s16 + $0x890] sm:$0xff] }
 0x2a8   : > { %v3290_v47 = vmul.f32 %v2385_v26, %v1714_v37  ;;  %v12540_v18 = vadd.f32 %v12348_v51, %v3285_v62  ;;  %v12543_v50 = vadd.f32 %v12351_v58, %v3286_v59  ;;  %v12546_v56 = vadd.f32 %v12354_v60, %v3287_v6  ;;  %v8101_v58 = vld [vmem:[%s14457_s3 + $0x94] ss:$24 sps:$4 sm:$0xff]   ;;  %v652_v59 = vld [vmem:[%s8732_s16 + $0x898] sm:$0xff] }
 0x2a9   : > { %v12549_v63 = vadd.f32 %v12357_v29, %v3288_v8  ;;  %v12553_v15 = vadd.f32 %v12361_v43, %v3289_v19  ;;  %v1489_v26 = vunpack.c.l.bf16 %v705_v46  ;;  %v1490_v51 = vunpack.c.h.bf16 %v705_v46  ;;  %v8103_v60 = vld [vmem:[%s14457_s3 + $0x394] ss:$24 sps:$4 sm:$0xff]   ;;  %v8105_v43 = vld [vmem:[%s14457_s3 + $0x90] ss:$24 sps:$4 sm:$0xff]   ;;  %6609 = vmatprep.subr.bf16.mxu0 %v8101_v58 }
 0x2aa   : > { %v12556_v7 = vadd.f32 %v12364_v44, %v3290_v47  ;;  %v1491_v29 = vunpack.c.l.bf16 %v706_v5  ;;  %v1492_v38 = vunpack.c.h.bf16 %v706_v5  ;;  %v3063_v21 = vmul.f32 %v2225_v53, %v1487_v35  ;;  %v8106_v44 = vld [vmem:[%s14457_s3 + $0x390] ss:$24 sps:$4 sm:$0xff]   ;;  %6650 = vmatprep.subr.bf16.mxu1 %v8103_v60  ;;  %v2147_v47 = vpop.permute.xlu1 %2146  ;;  %6610 = vmatpush1.bf16.msra.mxu0 %v8105_v43 }
 0x2ab   : > { %v3064_v30 = vmul.f32 %v2225_v53, %v1488_v23  ;;  %v3065_v37 = vmul.f32 %v2225_v53, %v1489_v26  ;;  %v3066_v62 = vmul.f32 %v2225_v53, %v1490_v51  ;;  %v1379_v6 = vunpack.c.l.bf16 %v650_v3  ;;  %v539_v58 = vld [vmem:[%s8732_s16 + $0x510] sm:$0xff]  ;;  %6651 = vmatpush1.bf16.msra.mxu1 %v8106_v44 }
 0x2ac   : > { %v1380_v8 = vunpack.c.h.bf16 %v650_v3  ;;  %v3067_v5 = vmul.f32 %v2225_v53, %v1491_v29  ;;  %v3068_v46 = vmul.f32 %v2225_v53, %v1492_v38  ;;  %v12573_v23 = vadd.f32 %v12369_v22, %v3063_v21 }
 0x2ad   : > { %v12576_v19 = vadd.f32 %v12372_v27, %v3064_v30  ;;  %v12579_v35 = vadd.f32 %v12375_v40, %v3065_v37  ;;  %v12582_v26 = vadd.f32 %v12378_v10, %v3066_v62  ;;  %v1381_v3 = vunpack.c.l.bf16 %v651_v25  ;;  %v540_v10 = vld [vmem:[%s8732_s16 + $0x518] sm:$0xff]  ;;  %v1990_v37 = vpop.permute.xlu0 %1989 }
 0x2ae   : > { %v1382_v51 = vunpack.c.h.bf16 %v651_v25  ;;  %v12586_v22 = vadd.f32 %v12382_v11, %v3067_v5  ;;  %v12589_v27 = vadd.f32 %v12385_v54, %v3068_v46  ;;  %v1383_v53 = vunpack.c.l.bf16 %v652_v59  ;;  %v541_v25 = vld [vmem:[%s8732_s16 + $0x520] sm:$0xff]  ;;  %v15587_v5 = vld [vmem:[#allocation59_spill] sm:$0xff] }
 0x2af   : > { %v1384_v60 = vunpack.c.h.bf16 %v652_v59  ;;  %v2955_v29 = vmul.f32 %v2147_v47, %v1379_v6  ;;  %v2956_v40 = vmul.f32 %v2147_v47, %v1380_v8  ;;  %v2957_v38 = vmul.f32 %v2147_v47, %v1381_v3  ;;  %v425_v8 = vld [vmem:[%s8732_s16 + $0x180] sm:$0xff] }
 0x2b0   : > { %v2958_v21 = vmul.f32 %v2147_v47, %v1382_v51  ;;  %v2959_v30 = vmul.f32 %v2147_v47, %v1383_v53  ;;  %v1157_v44 = vunpack.c.l.bf16 %v539_v58  ;;  %v1158_v62 = vunpack.c.h.bf16 %v539_v58 }
 0x2b1   : > { %v2960_v43 = vmul.f32 %v2147_v47, %v1384_v60  ;;  %v12594_v11 = vadd.f32 %v12402_v55, %v2955_v29  ;;  %v12597_v54 = vadd.f32 %v12405_v0, %v2956_v40  ;;  %v12600_v59 = vadd.f32 %v12408_v1, %v2957_v38  ;;  %v426_v60 = vld [vmem:[%s8732_s16 + $0x188] sm:$0xff]  ;;  %v427_v40 = vld [vmem:[%s8732_s16 + $0x190] sm:$0xff] }
 0x2b2   : > { %v12603_v6 = vadd.f32 %v12411_v39, %v2958_v21  ;;  %v12607_v46 = vadd.f32 %v15587_v5, %v2959_v30  ;;  %v1159_v3 = vunpack.c.l.bf16 %v540_v10  ;;  %v1160_v55 = vunpack.c.h.bf16 %v540_v10  ;;  %v1826_v10 = vpop.permute.xlu1 %1825 }
 0x2b3   : > { %15585 = vst [vmem:[#allocation45_spill] sm:$0xff] %v12600_v59  ;;  %v12610_v47 = vadd.f32 %v12418_v41, %v2960_v43  ;;  %v1161_v51 = vunpack.c.l.bf16 %v541_v25  ;;  %v1162_v58 = vunpack.c.h.bf16 %v541_v25  ;;  %v2733_v53 = vmul.f32 %v1990_v37, %v1157_v44  ;;  %v15590_v41 = vld [vmem:[#allocation42_spill] sm:$0xff]  ;;  %v15591_v25 = vld [vmem:[#allocation55_spill] sm:$0xff] }
 0x2b4   : > { %15586 = vst [vmem:[#allocation60_spill] sm:$0xff] %v12603_v6  ;;  %15588 = vst [vmem:[#allocation46_spill] sm:$0xff] %v12607_v46  ;;  %v2734_v0 = vmul.f32 %v1990_v37, %v1158_v62  ;;  %v2735_v1 = vmul.f32 %v1990_v37, %v1159_v3  ;;  %v2736_v29 = vmul.f32 %v1990_v37, %v1160_v55  ;;  %v929_v39 = vunpack.c.l.bf16 %v425_v8  ;;  %v15592_v62 = vld [vmem:[#allocation43_spill] sm:$0xff]  ;;  %v763_v46 = vld [vmem:[%s8732_s16 + $0xc10] sm:$0xff] }
 0x2b5   : > { %15589 = vst [vmem:[#allocation63_spill] sm:$0xff] %v12610_v47  ;;  %v930_v38 = vunpack.c.h.bf16 %v425_v8  ;;  %v2737_v21 = vmul.f32 %v1990_v37, %v1161_v51  ;;  %v2738_v6 = vmul.f32 %v1990_v37, %v1162_v58  ;;  %v12615_v30 = vadd.f32 %v12423_v16, %v2733_v53  ;;  %v761_v8 = vld [vmem:[%s8732_s16 + $0xc00] sm:$0xff]  ;;  %v2307_v47 = vpop.permute.xlu0 %2306 }
 0x2b6   : > { %v12618_v43 = vadd.f32 %v15590_v41, %v2734_v0  ;;  %v12621_v44 = vadd.f32 %v15591_v25, %v2735_v1  ;;  %v12624_v5 = vadd.f32 %v15592_v62, %v2736_v29  ;;  %v931_v3 = vunpack.c.l.bf16 %v426_v60  ;;  %v762_v25 = vld [vmem:[%s8732_s16 + $0xc08] sm:$0xff] }
 0x2b7   : > { %v932_v55 = vunpack.c.h.bf16 %v426_v60  ;;  %v12628_v37 = vadd.f32 %v12436_v52, %v2737_v21  ;;  %v12631_v16 = vadd.f32 %v12439_v4, %v2738_v6  ;;  %v933_v51 = vunpack.c.l.bf16 %v427_v40 }
 0x2b8   : > { %v934_v58 = vunpack.c.h.bf16 %v427_v40  ;;  %v2505_v53 = vmul.f32 %v1826_v10, %v929_v39  ;;  %v2506_v0 = vmul.f32 %v1826_v10, %v930_v38  ;;  %v2507_v1 = vmul.f32 %v1826_v10, %v931_v3  ;;  %v596_v39 = vld [vmem:[%s8732_s16 + $0x6d8] sm:$0xff] }
 0x2b9   : > { %v2508_v41 = vmul.f32 %v1826_v10, %v932_v55  ;;  %v2509_v29 = vmul.f32 %v1826_v10, %v933_v51  ;;  %v1601_v60 = vunpack.c.l.bf16 %v761_v8  ;;  %v1602_v59 = vunpack.c.h.bf16 %v761_v8  ;;  %v597_v51 = vld [vmem:[%s8732_s16 + $0x6e0] sm:$0xff] }
 0x2ba   : > { %v2510_v62 = vmul.f32 %v1826_v10, %v934_v58  ;;  %v12636_v52 = vadd.f32 %v12444_v34, %v2505_v53  ;;  %v12639_v4 = vadd.f32 %v12447_v14, %v2506_v0  ;;  %v12642_v6 = vadd.f32 %v12450_v57, %v2507_v1  ;;  %v598_v53 = vld [vmem:[%s8732_s16 + $0x6e8] sm:$0xff] }
 0x2bb   : > { %v12645_v40 = vadd.f32 %v12453_v12, %v2508_v41  ;;  %v12649_v38 = vadd.f32 %v12457_v31, %v2509_v29  ;;  %v1603_v10 = vunpack.c.l.bf16 %v762_v25  ;;  %v1604_v34 = vunpack.c.h.bf16 %v762_v25  ;;  %v2072_v25 = vpop.permute.xlu1 %2071 }
 0x2bc   : > { %v12652_v21 = vadd.f32 %v12460_v32, %v2510_v62  ;;  %v1605_v3 = vunpack.c.l.bf16 %v763_v46  ;;  %v1606_v55 = vunpack.c.h.bf16 %v763_v46  ;;  %v3177_v8 = vmul.f32 %v2307_v47, %v1601_v60  ;;  %v485_v60 = vld [vmem:[%s8732_s16 + $0x360] sm:$0xff] }
 0x2bd   : > { %v3178_v14 = vmul.f32 %v2307_v47, %v1602_v59  ;;  %v3179_v57 = vmul.f32 %v2307_v47, %v1603_v10  ;;  %v3180_v58 = vmul.f32 %v2307_v47, %v1604_v34  ;;  %v1271_v12 = vunpack.c.l.bf16 %v596_v39 }
 0x2be   : > { %v1272_v0 = vunpack.c.h.bf16 %v596_v39  ;;  %v3181_v1 = vmul.f32 %v2307_v47, %v1605_v3  ;;  %v3182_v41 = vmul.f32 %v2307_v47, %v1606_v55  ;;  %v12657_v31 = vadd.f32 %v12465_v9, %v3177_v8  ;;  %v486_v55 = vld [vmem:[%s8732_s16 + $0x368] sm:$0xff] }
 0x2bf   : > { %v12660_v32 = vadd.f32 %v12468_v20, %v3178_v14  ;;  %v12663_v46 = vadd.f32 %v12471_v49, %v3179_v57  ;;  %v12666_v59 = vadd.f32 %v12474_v2, %v3180_v58  ;;  %v1273_v29 = vunpack.c.l.bf16 %v597_v51  ;;  %v1912_v14 = vpop.permute.xlu0 %1911  ;;  %v487_v57 = vld [vmem:[%s8732_s16 + $0x370] sm:$0xff] }
 0x2c0   : > { %v1274_v62 = vunpack.c.h.bf16 %v597_v51  ;;  %v12670_v47 = vadd.f32 %v12478_v48, %v3181_v1  ;;  %v12673_v9 = vadd.f32 %v12481_v13, %v3182_v41  ;;  %v1275_v39 = vunpack.c.l.bf16 %v598_v53  ;;  %v15596_v1 = vld [vmem:[#allocation44_spill] sm:$0xff] }
 0x2c1   : > { %v1276_v20 = vunpack.c.h.bf16 %v598_v53  ;;  %v2847_v10 = vmul.f32 %v2072_v25, %v1271_v12  ;;  %v2848_v34 = vmul.f32 %v2072_v25, %v1272_v0  ;;  %v2849_v49 = vmul.f32 %v2072_v25, %v1273_v29  ;;  %v818_v0 = vld [vmem:[%s8732_s16 + $0xdc8] sm:$0xff] }
 0x2c2   : > { %v2850_v3 = vmul.f32 %v2072_v25, %v1274_v62  ;;  %v2851_v2 = vmul.f32 %v2072_v25, %v1275_v39  ;;  %v1049_v51 = vunpack.c.l.bf16 %v485_v60  ;;  %v1050_v58 = vunpack.c.h.bf16 %v485_v60 }
 0x2c3   : > { %v2852_v8 = vmul.f32 %v2072_v25, %v1276_v20  ;;  %v12678_v48 = vadd.f32 %v12492_v61, %v2847_v10  ;;  %v12681_v13 = vadd.f32 %v12495_v42, %v2848_v34  ;;  %v12684_v53 = vadd.f32 %v12498_v17, %v2849_v49  ;;  %v15598_v25 = vld [vmem:[#allocation61_spill] sm:$0xff]  ;;  %v819_v10 = vld [vmem:[%s8732_s16 + $0xdd0] sm:$0xff] }
 0x2c4   : > { %v12687_v12 = vadd.f32 %v12501_v24, %v2850_v3  ;;  %v12691_v41 = vadd.f32 %v15596_v1, %v2851_v2  ;;  %v1051_v62 = vunpack.c.l.bf16 %v486_v55  ;;  %v1052_v61 = vunpack.c.h.bf16 %v486_v55  ;;  %v8107_v42 = vld [vmem:[%s14457_s3 + $0x64] ss:$24 sps:$4 sm:$0xff]   ;;  %v8111_v34 = vld [vmem:[%s14457_s3 + $0x60] ss:$24 sps:$4 sm:$0xff]  }
 0x2c5   : > { %15593 = vst [vmem:[#allocation47_spill] sm:$0xff] %v12681_v13  ;;  %15594 = vst [vmem:[#allocation18_spill] sm:$0xff] %v12684_v53  ;;  %v12694_v29 = vadd.f32 %v15598_v25, %v2852_v8  ;;  %v8109_v17 = vld [vmem:[%s14457_s3 + $0x364] ss:$24 sps:$4 sm:$0xff]   ;;  %v1053_v24 = vunpack.c.l.bf16 %v487_v57  ;;  %v1054_v60 = vunpack.c.h.bf16 %v487_v57  ;;  %v2625_v39 = vmul.f32 %v1912_v14, %v1049_v51  ;;  %v8112_v49 = vld [vmem:[%s14457_s3 + $0x360] ss:$24 sps:$4 sm:$0xff]   ;;  %6611 = vmatprep.subr.bf16.mxu0 %v8107_v42 }
 0x2c6   : > { %15595 = vst [vmem:[#allocation48_spill] sm:$0xff] %v12687_v12  ;;  %15597 = vst [vmem:[#allocation19_spill] sm:$0xff] %v12691_v41  ;;  %v2626_v20 = vmul.f32 %v1912_v14, %v1050_v58  ;;  %v2627_v3 = vmul.f32 %v1912_v14, %v1051_v62  ;;  %v2628_v55 = vmul.f32 %v1912_v14, %v1052_v61  ;;  %v820_v2 = vld [vmem:[%s8732_s16 + $0xdd8] sm:$0xff]  ;;  %v1715_v8 = vunpack.c.l.bf16 %v818_v0  ;;  %v15600_v41 = vld [vmem:[#allocation62_spill] sm:$0xff] }
 0x2c7   : > { %15599 = vst [vmem:[#allocation49_spill] sm:$0xff] %v12694_v29  ;;  %v1716_v1 = vunpack.c.h.bf16 %v818_v0  ;;  %6652 = vmatprep.subr.bf16.mxu1 %v8109_v17  ;;  %v2629_v57 = vmul.f32 %v1912_v14, %v1053_v24  ;;  %v2630_v51 = vmul.f32 %v1912_v14, %v1054_v60  ;;  %v12711_v58 = vadd.f32 %v12519_v36, %v2625_v39  ;;  %v2389_v29 = vpop.permute.xlu1 %2388  ;;  %v15601_v61 = vld [vmem:[#allocation56_spill] sm:$0xff] }
 0x2c8   : > { %v12714_v25 = vadd.f32 %v12522_v28, %v2626_v20  ;;  %6612 = vmatpush1.bf16.msra.mxu0 %v8111_v34  ;;  %v12717_v62 = vadd.f32 %v15600_v41, %v2627_v3  ;;  %v12720_v12 = vadd.f32 %v15601_v61, %v2628_v55  ;;  %v1717_v0 = vunpack.c.l.bf16 %v819_v10  ;;  %v707_v17 = vld [vmem:[%s8732_s16 + $0xa50] sm:$0xff]  ;;  %6653 = vmatpush1.bf16.msra.mxu1 %v8112_v49  ;;  %v708_v34 = vld [vmem:[%s8732_s16 + $0xa58] sm:$0xff]  ;;  %v2229_v61 = vpop.permute.xlu0 %2228 }
 0x2c9   : > { %v1718_v42 = vunpack.c.h.bf16 %v819_v10  ;;  %v12724_v36 = vadd.f32 %v12532_v45, %v2629_v57  ;;  %v12727_v28 = vadd.f32 %v12535_v33, %v2630_v51  ;;  %v1719_v14 = vunpack.c.l.bf16 %v820_v2  ;;  %v709_v10 = vld [vmem:[%s8732_s16 + $0xa60] sm:$0xff] }
 0x2ca   : > { %v1720_v24 = vunpack.c.h.bf16 %v820_v2  ;;  %v3291_v60 = vmul.f32 %v2389_v29, %v1715_v8  ;;  %v3292_v41 = vmul.f32 %v2389_v29, %v1716_v1  ;;  %v3293_v39 = vmul.f32 %v2389_v29, %v1717_v0  ;;  %v542_v1 = vld [vmem:[%s8732_s16 + $0x528] sm:$0xff] }
 0x2cb   : > { %v3294_v20 = vmul.f32 %v2389_v29, %v1718_v42  ;;  %v3295_v3 = vmul.f32 %v2389_v29, %v1719_v14  ;;  %v1493_v53 = vunpack.c.l.bf16 %v707_v17  ;;  %v1494_v49 = vunpack.c.h.bf16 %v707_v17  ;;  %v543_v14 = vld [vmem:[%s8732_s16 + $0x530] sm:$0xff] }
 0x2cc   : > { %v3296_v55 = vmul.f32 %v2389_v29, %v1720_v24  ;;  %v12732_v45 = vadd.f32 %v12540_v18, %v3291_v60  ;;  %v12735_v33 = vadd.f32 %v12543_v50, %v3292_v41  ;;  %v12738_v2 = vadd.f32 %v12546_v56, %v3293_v39  ;;  %v8113_v50 = vld [vmem:[%s14457_s3 + $0x34] ss:$24 sps:$4 sm:$0xff]   ;;  %v544_v41 = vld [vmem:[%s8732_s16 + $0x538] sm:$0xff] }
 0x2cd   : > { %v12741_v8 = vadd.f32 %v12549_v63, %v3294_v20  ;;  %v12745_v29 = vadd.f32 %v12553_v15, %v3295_v3  ;;  %v1495_v51 = vunpack.c.l.bf16 %v708_v34  ;;  %v1496_v18 = vunpack.c.h.bf16 %v708_v34  ;;  %v8115_v56 = vld [vmem:[%s14457_s3 + $0x334] ss:$24 sps:$4 sm:$0xff]   ;;  %v8117_v15 = vld [vmem:[%s14457_s3 + $0x30] ss:$24 sps:$4 sm:$0xff]   ;;  %6613 = vmatprep.subr.bf16.mxu0 %v8113_v50  ;;  %v488_v50 = vld [vmem:[%s8732_s16 + $0x378] sm:$0x11] }
 0x2ce   : > { %15602 = vst [vmem:[#allocation64_spill] sm:$0xff] %v12732_v45  ;;  %15603 = vst [vmem:[#allocation50_spill] sm:$0xff] %v12735_v33  ;;  %v12748_v57 = vadd.f32 %v12556_v7, %v3296_v55  ;;  %v1497_v63 = vunpack.c.l.bf16 %v709_v10  ;;  %v1498_v0 = vunpack.c.h.bf16 %v709_v10  ;;  %v3069_v42 = vmul.f32 %v2229_v61, %v1493_v53  ;;  %v8118_v7 = vld [vmem:[%s14457_s3 + $0x330] ss:$24 sps:$4 sm:$0xff]   ;;  %6654 = vmatprep.subr.bf16.mxu1 %v8115_v56  ;;  %v1994_v10 = vpop.permute.xlu1 %1993 }
 0x2cf   : > { %15604 = vst [vmem:[#allocation99_spill] sm:$0xff] %v12738_v2  ;;  %15605 = vst [vmem:[#allocation20_spill] sm:$0xff] %v12741_v8  ;;  %v3070_v17 = vmul.f32 %v2229_v61, %v1494_v49  ;;  %v3071_v24 = vmul.f32 %v2229_v61, %v1495_v51  ;;  %v3072_v60 = vmul.f32 %v2229_v61, %v1496_v18  ;;  %v1163_v39 = vunpack.c.l.bf16 %v542_v1 }
 0x2d0   : > { %15606 = vst [vmem:[#allocation21_spill] sm:$0xff] %v12745_v29  ;;  %15607 = vst [vmem:[#allocation65_spill] sm:$0xff] %v12748_v57  ;;  %v1164_v20 = vunpack.c.h.bf16 %v542_v1  ;;  %v3073_v34 = vmul.f32 %v2229_v61, %v1497_v63  ;;  %v3074_v53 = vmul.f32 %v2229_v61, %v1498_v0  ;;  %v12765_v3 = vadd.f32 %v12573_v23, %v3069_v42 }
 0x2d1   : > { %v12768_v55 = vadd.f32 %v12576_v19, %v3070_v17  ;;  %6614 = vmatpush1.bf16.msra.mxu0 %v8117_v15  ;;  %v12771_v49 = vadd.f32 %v12579_v35, %v3071_v24  ;;  %v12774_v51 = vadd.f32 %v12582_v26, %v3072_v60  ;;  %v1165_v1 = vunpack.c.l.bf16 %v543_v14  ;;  %6655 = vmatpush1.bf16.msra.mxu1 %v8118_v7  ;;  %v489_v26 = vld [vmem:[%s8732_s16 + $0x380] sm:$0x11]  ;;  %v490_v24 = vld [vmem:[%s8732_s16 + $0x388] sm:$0x11] }
 0x2d2   : > { %v1166_v18 = vunpack.c.h.bf16 %v543_v14  ;;  %v12778_v23 = vadd.f32 %v12586_v22, %v3073_v34  ;;  %v12781_v19 = vadd.f32 %v12589_v27, %v3074_v53  ;;  %v1167_v61 = vunpack.c.l.bf16 %v544_v41  ;;  %v1916_v14 = vpop.permute.xlu0 %1915 }
 0x2d3   : > { %v1168_v56 = vunpack.c.h.bf16 %v544_v41  ;;  %v2739_v63 = vmul.f32 %v1994_v10, %v1163_v39  ;;  %v2740_v35 = vmul.f32 %v1994_v10, %v1164_v20  ;;  %v2741_v0 = vmul.f32 %v1994_v10, %v1165_v1  ;;  %v764_v39 = vld [vmem:[%s8732_s16 + $0xc18] sm:$0xff] }
 0x2d4   : > { %v2742_v42 = vmul.f32 %v1994_v10, %v1166_v18  ;;  %v2743_v17 = vmul.f32 %v1994_v10, %v1167_v61  ;;  %v1055_v7 = vunpack.c.l.bf16 %v488_v50  ;;  %v1056_v53 = vunpack.c.h.bf16 %v488_v50  ;;  %v765_v61 = vld [vmem:[%s8732_s16 + $0xc20] sm:$0xff] }
 0x2d5   : > { %v2744_v15 = vmul.f32 %v1994_v10, %v1168_v56  ;;  %v12786_v22 = vadd.f32 %v12615_v30, %v2739_v63  ;;  %v12789_v27 = vadd.f32 %v12618_v43, %v2740_v35  ;;  %v12792_v60 = vadd.f32 %v12621_v44, %v2741_v0  ;;  %v8119_v30 = vld [vmem:[%s14457_s3 + $0x4] ss:$24 sps:$4 sm:$0xff]  }
 0x2d6   : > { %v12795_v41 = vadd.f32 %v12624_v5, %v2742_v42  ;;  %v12799_v20 = vadd.f32 %v12628_v37, %v2743_v17  ;;  %v1057_v10 = vunpack.c.l.bf16 %v489_v26  ;;  %v8121_v43 = vld [vmem:[%s14457_s3 + $0x304] ss:$24 sps:$4 sm:$0xff]   ;;  %v1058_v44 = vunpack.c.h.bf16 %v489_v26  ;;  %v8123_v37 = vld [vmem:[%s14457_s3] ss:$24 sps:$4 sm:$0xff]   ;;  %6615 = vmatprep.subr.bf16.mxu0 %v8119_v30 }
 0x2d7   : > { %v12802_v34 = vadd.f32 %v12631_v16, %v2744_v15  ;;  %v1059_v5 = vunpack.c.l.bf16 %v490_v24  ;;  %v1060_v1 = vunpack.c.h.bf16 %v490_v24  ;;  %v2631_v18 = vmul.f32 %v1916_v14, %v1055_v7  ;;  %v8124_v16 = vld [vmem:[%s14457_s3 + $0x300] ss:$24 sps:$4 sm:$0xff]   ;;  %6656 = vmatprep.subr.bf16.mxu1 %v8121_v43  ;;  %6616 = vmatpush1.bf16.msra.mxu0 %v8123_v37 }
 0x2d8   : > { %v2632_v50 = vmul.f32 %v1916_v14, %v1056_v53  ;;  %v2633_v56 = vmul.f32 %v1916_v14, %v1057_v10  ;;  %v1607_v63 = vunpack.c.l.bf16 %v764_v39  ;;  %v1608_v35 = vunpack.c.h.bf16 %v764_v39  ;;  %6657 = vmatpush1.bf16.msra.mxu1 %v8124_v16 }
 0x2d9   : > { %v2634_v0 = vmul.f32 %v1916_v14, %v1058_v44  ;;  %v2635_v42 = vmul.f32 %v1916_v14, %v1059_v5  ;;  %v2636_v26 = vmul.f32 %v1916_v14, %v1060_v1  ;;  %v3489_v17 = vsel %vm3338_vm1, %v2631_v18, 0.0  ;;  %v766_v14 = vld [vmem:[%s8732_s16 + $0xc28] sm:$0xff] }
 0x2da   : > { %v3490_v15 = vadd.f32 %v3489_v17, %v12711_v58  ;;  %v3514_v24 = vsel %vm3338_vm1, %v2632_v50, 0.0  ;;  %v3539_v7 = vsel %vm3338_vm1, %v2633_v56, 0.0  ;;  %v1609_v53 = vunpack.c.l.bf16 %v765_v61  ;;  %v2311_v50 = vpop.permute.xlu1 %2310 }
 0x2db   : > { %v3515_v10 = vadd.f32 %v3514_v24, %v12714_v25  ;;  %v3540_v39 = vadd.f32 %v3539_v7, %v12717_v62  ;;  %v3564_v30 = vsel %vm3338_vm1, %v2634_v0, 0.0  ;;  %v3589_v43 = vsel %vm3338_vm1, %v2635_v42, 0.0 }
 0x2dc   : > { %v3491_v44 = vrot.slane %v3490_v15, 4  ;;  %v3565_v5 = vadd.f32 %v3564_v30, %v12720_v12  ;;  %v3590_v1 = vadd.f32 %v3589_v43, %v12724_v36  ;;  %v3614_v58 = vsel %vm3338_vm1, %v2636_v26, 0.0 }
 0x2dd   : > { %v3516_v18 = vrot.slane %v3515_v10, 4  ;;  %v3541_v37 = vrot.slane %v3540_v39, 4  ;;  %v3615_v16 = vadd.f32 %v3614_v58, %v12727_v28  ;;  %v1610_v25 = vunpack.c.h.bf16 %v765_v61 }
 0x2de   : > { %v3492_v56 = vadd.f32 %v3491_v44, %v3490_v15  ;;  %v3566_v62 = vrot.slane %v3565_v5, 4  ;;  %v3591_v17 = vrot.slane %v3590_v1, 4  ;;  %v1611_v0 = vunpack.c.l.bf16 %v766_v14 }
 0x2df   : > { %v3517_v24 = vadd.f32 %v3516_v18, %v3515_v10  ;;  %v3542_v42 = vadd.f32 %v3541_v37, %v3540_v39  ;;  %v3616_v7 = vrot.slane %v3615_v16, 4  ;;  %v1612_v57 = vunpack.c.h.bf16 %v766_v14 }
 0x2e0   : > { %v3493_v29 = vrot.slane %v3492_v56, 2  ;;  %v3567_v12 = vadd.f32 %v3566_v62, %v3565_v5  ;;  %v3592_v30 = vadd.f32 %v3591_v17, %v3590_v1  ;;  %v3183_v36 = vmul.f32 %v2311_v50, %v1607_v63 }
 0x2e1   : > { %v3518_v43 = vrot.slane %v3517_v24, 2  ;;  %v3543_v26 = vrot.slane %v3542_v42, 2  ;;  %v3617_v8 = vadd.f32 %v3616_v7, %v3615_v16  ;;  %v3184_v2 = vmul.f32 %v2311_v50, %v1608_v35 }
 0x2e2   : > { %v3494_v33 = vadd.f32 %v3493_v29, %v3492_v56  ;;  %v3568_v28 = vrot.slane %v3567_v12, 2  ;;  %v3593_v58 = vrot.slane %v3592_v30, 2  ;;  %v3185_v61 = vmul.f32 %v2311_v50, %v1609_v53 }
 0x2e3   : > { %v3519_v15 = vadd.f32 %v3518_v43, %v3517_v24  ;;  %v3544_v44 = vadd.f32 %v3543_v26, %v3542_v42  ;;  %v3618_v45 = vrot.slane %v3617_v8, 2  ;;  %v3186_v13 = vmul.f32 %v2311_v50, %v1610_v25  ;;  %v15608_v42 = vld [vmem:[#allocation120_spill] sm:$0xff]  ;;  %v2154_v43 = vpop.permute.xlu0 %2153  ;;  %v545_v26 = vld [vmem:[%s8732_s16 + $0x540] sm:$0x11] }
 0x2e4   : > { %v3495_v10 = vrot.slane %v3494_v33, 1  ;;  %v3569_v39 = vadd.f32 %v3568_v28, %v3567_v12  ;;  %v3594_v18 = vadd.f32 %v3593_v58, %v3592_v30  ;;  %v3187_v14 = vmul.f32 %v2311_v50, %v1611_v0  ;;  %v8125_v28 = vld [vmem:[%s14457_s3 + $0x2d4] ss:$24 sps:$4 sm:$0xff]  }
 0x2e5   : > { %v3520_v37 = vrot.slane %v3519_v15, 1  ;;  %v3545_v5 = vrot.slane %v3544_v44, 1  ;;  %v3619_v63 = vadd.f32 %v3618_v45, %v3617_v8  ;;  %v3188_v1 = vmul.f32 %v2311_v50, %v1612_v57  ;;  %v654_v8 = vld [vmem:[%s8732_s16 + $0x8a8] sm:$0xff]  ;;  %6617 = vmatprep.subr.bf16.mxu0 %v8125_v28  ;;  %v15617_v28 = vld [vmem:[#allocation46_spill] sm:$0xff] }
 0x2e6   : > { %v3496_v16 = vadd.f32 %v3495_v10, %v3494_v33  ;;  %v3570_v35 = vrot.slane %v3569_v39, 1  ;;  %v3595_v29 = vrot.slane %v3594_v18, 1  ;;  %v12831_v53 = vadd.f32 %v12657_v31, %v3183_v36  ;;  %v653_v33 = vld [vmem:[%s8732_s16 + $0x8a0] sm:$0xff] }
 0x2e7   : > { %v3521_v56 = vadd.f32 %v3520_v37, %v3519_v15  ;;  %v3546_v62 = vadd.f32 %v3545_v5, %v3544_v44  ;;  %v3620_v25 = vrot.slane %v3619_v63, 1  ;;  %v12834_v17 = vadd.f32 %v12660_v32, %v3184_v2  ;;  %v655_v2 = vld [vmem:[%s8732_s16 + $0x8b0] sm:$0xff] }
 0x2e8   : > { %v3571_v0 = vadd.f32 %v3570_v35, %v3569_v39  ;;  %v3596_v24 = vadd.f32 %v3595_v29, %v3594_v18  ;;  %v12837_v7 = vmul.f32 %v15608_v42, %v3496_v16  ;;  %v12840_v45 = vadd.f32 %v12663_v46, %v3185_v61  ;;  %v8130_v15 = vld [vmem:[%s14457_s3 + $0x5d0] ss:$24 sps:$4 sm:$0xff]  }
 0x2e9   : > { %v3621_v57 = vadd.f32 %v3620_v25, %v3619_v63  ;;  %v12845_v31 = vmul.f32 %v15608_v42, %v3521_v56  ;;  %v12848_v50 = vmul.f32 %v15608_v42, %v3546_v62  ;;  %v12851_v32 = vadd.f32 %v12666_v59, %v3186_v13  ;;  %v8127_v59 = vld [vmem:[%s14457_s3 + $0x5d4] ss:$24 sps:$4 sm:$0xff]  }
 0x2ea   : > { %15609 = vst [vmem:[#allocation66_spill] sm:$0xff] %v12837_v7  ;;  %v12855_v12 = vmul.f32 %v15608_v42, %v3571_v0  ;;  %v4550_v30 = vmul.f32 %v15608_v42, %v3596_v24  ;;  %v12859_v46 = vadd.f32 %v12670_v47, %v3187_v14  ;;  %v12862_v36 = vadd.f32 %v12673_v9, %v3188_v1  ;;  %v8129_v9 = vld [vmem:[%s14457_s3 + $0x2d0] ss:$24 sps:$4 sm:$0xff]   ;;  %v15615_v24 = vld [vmem:[#allocation45_spill] sm:$0xff] }
 0x2eb   : > { %15610 = vst [vmem:[#allocation67_spill] sm:$0xff] %v12845_v31  ;;  %15611 = vst [vmem:[#allocation68_spill] sm:$0xff] %v12848_v50  ;;  %v12872_v13 = vmul.f32 %v15608_v42, %v3621_v57  ;;  %v1385_v58 = vunpack.c.l.bf16 %v653_v33  ;;  %v1386_v61 = vunpack.c.h.bf16 %v653_v33  ;;  %v1387_v47 = vunpack.c.l.bf16 %v654_v8  ;;  %6658 = vmatprep.subr.bf16.mxu1 %v8127_v59  ;;  %6618 = vmatpush2.bf16.msra.mxu0 %v8129_v9  ;;  %v546_v56 = vld [vmem:[%s8732_s16 + $0x548] sm:$0x11]  ;;  %v547_v62 = vld [vmem:[%s8732_s16 + $0x550] sm:$0x11]  ;;  %v1998_v33 = vpop.permute.xlu1 %1997 }
 0x2ec   : > { %15612 = vst [vmem:[#allocation69_spill] sm:$0xff] %v12855_v12  ;;  %v4604_v44 = vpack.c.bf16 %v4550_v30, %v4550_v30  ;;  %v1388_v10 = vunpack.c.h.bf16 %v654_v8  ;;  %v1389_v39 = vunpack.c.l.bf16 %v655_v2  ;;  %v1390_v18 = vunpack.c.h.bf16 %v655_v2  ;;  %6659 = vmatpush2.bf16.msra.mxu1 %v8130_v15  ;;  %v12894_v57 = vld [vmem:[%s8732_s16 + $0x198] sm:$0xff]  ;;  %v15616_v30 = vld [vmem:[#allocation60_spill] sm:$0xff]  ;;  %v12907_v15 = vld [vmem:[%s8732_s16 + $0x1a0] sm:$0xff] }
 0x2ed   : > { %15613 = vst [vmem:[#allocation6_spill] sm:$0xff] %v12872_v13  ;;  %v2961_v14 = vmul.f32 %v2154_v43, %v1385_v58  ;;  %v2962_v37 = vmul.f32 %v2154_v43, %v1386_v61  ;;  %v2963_v5 = vmul.f32 %v2154_v43, %v1387_v47  ;;  %v1169_v63 = vunpack.c.l.bf16 %v545_v26 }
 0x2ee   : > { %v12880_v1 = vunpack.c.l.b16 %v4604_v44  ;;  %v2964_v16 = vmul.f32 %v2154_v43, %v1388_v10  ;;  %v2965_v35 = vmul.f32 %v2154_v43, %v1389_v39  ;;  %v2966_v29 = vmul.f32 %v2154_v43, %v1390_v18  ;;  %v8133_v44 = vld [vmem:[%s14457_s3 + $0x5a4] ss:$24 sps:$4 sm:$0xff]  }
 0x2ef   : > { %v12885_v25 = vadd.f32 %v12594_v11, %v2961_v14  ;;  %v12888_v0 = vadd.f32 %v12597_v54, %v2962_v37  ;;  %v12891_v42 = vadd.f32 %v15615_v24, %v2963_v5  ;;  %v1170_v8 = vunpack.c.h.bf16 %v545_v26  ;;  %v15618_v11 = vld [vmem:[#allocation63_spill] sm:$0xff]  ;;  %v8131_v26 = vld [vmem:[%s14457_s3 + $0x2a4] ss:$24 sps:$4 sm:$0xff]   ;;  %v8135_v37 = vld [vmem:[%s14457_s3 + $0x2a0] ss:$24 sps:$4 sm:$0xff]   ;;  %6660 = vmatprep.subr.bf16.mxu1 %v8133_v44 }
 0x2f0   : > { %15614 = vst [vmem:[#allocation70_spill] sm:$0xff] %v12880_v1  ;;  %v12898_v43 = vadd.f32 %v15616_v30, %v2964_v16  ;;  %v12901_v59 = vadd.f32 %v15617_v28, %v2965_v35  ;;  %v12904_v58 = vadd.f32 %v15618_v11, %v2966_v29  ;;  %v1171_v54 = vunpack.c.l.bf16 %v546_v56  ;;  %v8136_v5 = vld [vmem:[%s14457_s3 + $0x5a0] ss:$24 sps:$4 sm:$0xff]   ;;  %6619 = vmatprep.subr.bf16.mxu0 %v8131_v26  ;;  %v12926_v24 = vld [vmem:[%s8732_s16 + $0x1a8] sm:$0xff] }
 0x2f1   : > { %v1172_v61 = vunpack.c.h.bf16 %v546_v56  ;;  %v1173_v47 = vunpack.c.l.bf16 %v547_v62  ;;  %v1174_v9 = vunpack.c.h.bf16 %v547_v62  ;;  %v2745_v10 = vmul.f32 %v1998_v33, %v1169_v63  ;;  %6620 = vmatpush2.bf16.msra.mxu0 %v8135_v37  ;;  %6661 = vmatpush2.bf16.msra.mxu1 %v8136_v5  ;;  %v8142_v26 = vld [vmem:[%s14457_s3 + $0x570] ss:$24 sps:$4 sm:$0xff]   ;;  %v1830_v37 = vpop.permute.xlu0 %1829 }
 0x2f2   : > { %v2746_v39 = vmul.f32 %v1998_v33, %v1170_v8  ;;  %v935_v18 = vunpack.c.l.bf16 %v12894_v57  ;;  %v936_v14 = vunpack.c.h.bf16 %v12894_v57  ;;  %v2747_v16 = vmul.f32 %v1998_v33, %v1171_v54  ;;  %v8137_v54 = vld [vmem:[%s14457_s3 + $0x274] ss:$24 sps:$4 sm:$0xff]  }
 0x2f3   : > { %v2748_v35 = vmul.f32 %v1998_v33, %v1172_v61  ;;  %v2749_v29 = vmul.f32 %v1998_v33, %v1173_v47  ;;  %v2750_v56 = vmul.f32 %v1998_v33, %v1174_v9  ;;  %v3639_v63 = vsel %vm3338_vm1, %v2745_v10, 0.0  ;;  %v8139_v61 = vld [vmem:[%s14457_s3 + $0x574] ss:$24 sps:$4 sm:$0xff]   ;;  %6621 = vmatprep.subr.bf16.mxu0 %v8137_v54 }
 0x2f4   : > { %v3664_v62 = vsel %vm3338_vm1, %v2746_v39, 0.0  ;;  %v937_v8 = vunpack.c.l.bf16 %v12907_v15  ;;  %v938_v57 = vunpack.c.h.bf16 %v12907_v15  ;;  %v3640_v30 = vadd.f32 %v3639_v63, %v12786_v22  ;;  %v8141_v15 = vld [vmem:[%s14457_s3 + $0x270] ss:$24 sps:$4 sm:$0xff]   ;;  %6662 = vmatprep.subr.bf16.mxu1 %v8139_v61 }
 0x2f5   : > { %v3665_v28 = vadd.f32 %v3664_v62, %v12789_v27  ;;  %v3689_v11 = vsel %vm3338_vm1, %v2747_v16, 0.0  ;;  %v3714_v33 = vsel %vm3338_vm1, %v2748_v35, 0.0  ;;  %v3739_v22 = vsel %vm3338_vm1, %v2749_v29, 0.0  ;;  %6622 = vmatpush2.bf16.msra.mxu0 %v8141_v15  ;;  %6663 = vmatpush2.bf16.msra.mxu1 %v8142_v26 }
 0x2f6   : > { %v3690_v47 = vadd.f32 %v3689_v11, %v12792_v60  ;;  %v3715_v9 = vadd.f32 %v3714_v33, %v12795_v41  ;;  %v3764_v27 = vsel %vm3338_vm1, %v2750_v56, 0.0  ;;  %v3641_v44 = vrot.slane %v3640_v30, 4 }
 0x2f7   : > { %v3666_v10 = vrot.slane %v3665_v28, 4  ;;  %v3740_v39 = vadd.f32 %v3739_v22, %v12799_v20  ;;  %v3765_v60 = vadd.f32 %v3764_v27, %v12802_v34  ;;  %v939_v16 = vunpack.c.l.bf16 %v12926_v24  ;;  %v8143_v20 = vld [vmem:[%s14457_s3 + $0x244] ss:$24 sps:$4 sm:$0xff]  }
 0x2f8   : > { %v3691_v41 = vrot.slane %v3690_v47, 4  ;;  %v3716_v5 = vrot.slane %v3715_v9, 4  ;;  %v940_v35 = vunpack.c.h.bf16 %v12926_v24  ;;  %v3642_v29 = vadd.f32 %v3641_v44, %v3640_v30  ;;  %v8145_v34 = vld [vmem:[%s14457_s3 + $0x544] ss:$24 sps:$4 sm:$0xff]   ;;  %v8147_v24 = vld [vmem:[%s14457_s3 + $0x240] ss:$24 sps:$4 sm:$0xff]   ;;  %6623 = vmatprep.subr.bf16.mxu0 %v8143_v20 }
 0x2f9   : > { %v3667_v56 = vadd.f32 %v3666_v10, %v3665_v28  ;;  %v3741_v63 = vrot.slane %v3740_v39, 4  ;;  %v3766_v62 = vrot.slane %v3765_v60, 4  ;;  %v2511_v54 = vmul.f32 %v1830_v37, %v935_v18  ;;  %v8148_v30 = vld [vmem:[%s14457_s3 + $0x540] ss:$24 sps:$4 sm:$0xff]   ;;  %6664 = vmatprep.subr.bf16.mxu1 %v8145_v34  ;;  %6624 = vmatpush2.bf16.msra.mxu0 %v8147_v24 }
 0x2fa   : > { %v3692_v11 = vadd.f32 %v3691_v41, %v3690_v47  ;;  %v3717_v33 = vadd.f32 %v3716_v5, %v3715_v9  ;;  %v2512_v61 = vmul.f32 %v1830_v37, %v936_v14  ;;  %v3643_v28 = vrot.slane %v3642_v29, 2  ;;  %6665 = vmatpush2.bf16.msra.mxu1 %v8148_v30  ;;  %v8149_v5 = vld [vmem:[%s14457_s3 + $0x214] ss:$24 sps:$4 sm:$0xff]  }
 0x2fb   : > { %v3668_v22 = vrot.slane %v3667_v56, 2  ;;  %v3742_v27 = vadd.f32 %v3741_v63, %v3740_v39  ;;  %v3767_v15 = vadd.f32 %v3766_v62, %v3765_v60  ;;  %v2513_v47 = vmul.f32 %v1830_v37, %v937_v8  ;;  %v8151_v39 = vld [vmem:[%s14457_s3 + $0x514] ss:$24 sps:$4 sm:$0xff]   ;;  %6625 = vmatprep.subr.bf16.mxu0 %v8149_v5 }
 0x2fc   : > { %v3693_v26 = vrot.slane %v3692_v11, 2  ;;  %v3718_v44 = vrot.slane %v3717_v33, 2  ;;  %v2514_v9 = vmul.f32 %v1830_v37, %v938_v57  ;;  %v3644_v18 = vadd.f32 %v3643_v28, %v3642_v29  ;;  %v8153_v57 = vld [vmem:[%s14457_s3 + $0x210] ss:$24 sps:$4 sm:$0xff]   ;;  %6666 = vmatprep.subr.bf16.mxu1 %v8151_v39  ;;  %v8163_v39 = vld [vmem:[%s14457_s3 + $0x4b4] ss:$24 sps:$4 sm:$0xff]  }
 0x2fd   : > { %v3669_v14 = vadd.f32 %v3668_v22, %v3667_v56  ;;  %v3743_v10 = vrot.slane %v3742_v27, 2  ;;  %v3768_v41 = vrot.slane %v3767_v15, 2  ;;  %v2515_v62 = vmul.f32 %v1830_v37, %v939_v16  ;;  %v8154_v29 = vld [vmem:[%s14457_s3 + $0x510] ss:$24 sps:$4 sm:$0xff]   ;;  %v8155_v16 = vld [vmem:[%s14457_s3 + $0x1e4] ss:$24 sps:$4 sm:$0xff]   ;;  %6626 = vmatpush2.bf16.msra.mxu0 %v8153_v57 }
 0x2fe   : > { %v3694_v60 = vadd.f32 %v3693_v26, %v3692_v11  ;;  %v3719_v63 = vadd.f32 %v3718_v44, %v3717_v33  ;;  %v2516_v8 = vmul.f32 %v1830_v37, %v940_v35  ;;  %v3645_v56 = vrot.slane %v3644_v18, 1  ;;  %v8157_v37 = vld [vmem:[%s14457_s3 + $0x4e4] ss:$24 sps:$4 sm:$0xff]   ;;  %v710_v28 = vld [vmem:[%s8732_s16 + $0xa68] sm:$0xff]  ;;  %v711_v22 = vld [vmem:[%s8732_s16 + $0xa70] sm:$0xff]  ;;  %6667 = vmatpush2.bf16.msra.mxu1 %v8154_v29  ;;  %6627 = vmatprep.subr.bf16.mxu0 %v8155_v16 }
 0x2ff   : > { %v3670_v20 = vrot.slane %v3669_v14, 1  ;;  %v3744_v34 = vadd.f32 %v3743_v10, %v3742_v27  ;;  %v3769_v24 = vadd.f32 %v3768_v41, %v3767_v15  ;;  %v12985_v33 = vadd.f32 %v12636_v52, %v2511_v54  ;;  %v8159_v27 = vld [vmem:[%s14457_s3 + $0x1e0] ss:$24 sps:$4 sm:$0xff]   ;;  %v599_v5 = vld [vmem:[%s8732_s16 + $0x6f0] sm:$0xff]  ;;  %6668 = vmatprep.subr.bf16.mxu1 %v8157_v37 }
 0x300   : > { %v3695_v35 = vrot.slane %v3694_v60, 1  ;;  %v3720_v11 = vrot.slane %v3719_v63, 1  ;;  %v12988_v30 = vadd.f32 %v12639_v4, %v2512_v61  ;;  %v12995_v15 = vadd.f32 %v3645_v56, %v3644_v18  ;;  %v8160_v52 = vld [vmem:[%s14457_s3 + $0x4e0] ss:$24 sps:$4 sm:$0xff]   ;;  %v8161_v4 = vld [vmem:[%s14457_s3 + $0x1b4] ss:$24 sps:$4 sm:$0xff]  }
 0x301   : > { %v12997_v26 = vadd.f32 %v3670_v20, %v3669_v14  ;;  %v3745_v44 = vrot.slane %v3744_v34, 1  ;;  %v3770_v10 = vrot.slane %v3769_v24, 1  ;;  %v13010_v18 = vadd.f32 %v12642_v6, %v2513_v47  ;;  %v712_v41 = vld [vmem:[%s8732_s16 + $0xa78] sm:$0xff]  ;;  %v2236_v6 = vpop.permute.xlu1 %2235  ;;  %6628 = vmatpush2.bf16.msra.mxu0 %v8159_v27  ;;  %v8165_v20 = vld [vmem:[%s14457_s3 + $0x1b0] ss:$24 sps:$4 sm:$0xff]  }
 0x302   : > { %15619 = vst [vmem:[#allocation71_spill] sm:$0xff] %v12995_v15  ;;  %v13005_v54 = vadd.f32 %v3695_v35, %v3694_v60  ;;  %v13007_v61 = vadd.f32 %v3720_v11, %v3719_v63  ;;  %v13013_v14 = vadd.f32 %v12645_v40, %v2514_v9  ;;  %v13023_v60 = vadd.f32 %v12649_v38, %v2515_v62  ;;  %v8167_v62 = vld [vmem:[%s14457_s3 + $0x184] ss:$24 sps:$4 sm:$0xff]  }
 0x303   : > { %v3746_v57 = vadd.f32 %v3745_v44, %v3744_v34  ;;  %v13020_v29 = vadd.f32 %v3770_v10, %v3769_v24  ;;  %v13026_v63 = vadd.f32 %v12652_v21, %v2516_v8  ;;  %v1499_v47 = vunpack.c.l.bf16 %v710_v28  ;;  %v15623_v34 = vld [vmem:[#allocation121_spill] sm:$0xff]  ;;  %6669 = vmatpush2.bf16.msra.mxu1 %v8160_v52  ;;  %6629 = vmatprep.subr.bf16.mxu0 %v8161_v4  ;;  %v8166_v21 = vld [vmem:[%s14457_s3 + $0x4b0] ss:$24 sps:$4 sm:$0xff]   ;;  %v2076_v4 = vpop.permute.xlu0 %2075 }
 0x304   : > { %15620 = vst [vmem:[#allocation84_spill] sm:$0xff] %v13005_v54  ;;  %15621 = vst [vmem:[#allocation72_spill] sm:$0xff] %v13007_v61  ;;  %v1500_v40 = vunpack.c.h.bf16 %v710_v28  ;;  %v1501_v9 = vunpack.c.l.bf16 %v711_v22  ;;  %v1502_v56 = vunpack.c.h.bf16 %v711_v22  ;;  %v1503_v16 = vunpack.c.l.bf16 %v712_v41  ;;  %v600_v22 = vld [vmem:[%s8732_s16 + $0x6f8] sm:$0xff]  ;;  %6670 = vmatprep.subr.bf16.mxu1 %v8163_v39 }
 0x305   : > { %15622 = vst [vmem:[#allocation23_spill] sm:$0xff] %v13020_v29  ;;  %v4557_v24 = vmul.f32 %v15623_v34, %v3746_v57  ;;  %v1504_v37 = vunpack.c.h.bf16 %v712_v41  ;;  %v1277_v38 = vunpack.c.l.bf16 %v599_v5  ;;  %v3075_v8 = vmul.f32 %v2236_v6, %v1499_v47  ;;  %v8169_v27 = vld [vmem:[%s14457_s3 + $0x484] ss:$24 sps:$4 sm:$0xff]   ;;  %6630 = vmatpush2.bf16.msra.mxu0 %v8165_v20 }
 0x306   : > { %v3076_v35 = vmul.f32 %v2236_v6, %v1500_v40  ;;  %v3077_v11 = vmul.f32 %v2236_v6, %v1501_v9  ;;  %v3078_v28 = vmul.f32 %v2236_v6, %v1502_v56  ;;  %v3079_v10 = vmul.f32 %v2236_v6, %v1503_v16  ;;  %v601_v41 = vld [vmem:[%s8732_s16 + $0x700] sm:$0xff]  ;;  %v431_v9 = vld [vmem:[%s8732_s16 + $0x1b0] sm:$0x11]  ;;  %6631 = vmatprep.subr.bf16.mxu0 %v8167_v62 }
 0x307   : > { %v4610_v44 = vpack.c.bf16 %v4557_v24, %v4557_v24  ;;  %v3080_v52 = vmul.f32 %v2236_v6, %v1504_v37  ;;  %v1278_v57 = vunpack.c.h.bf16 %v599_v5  ;;  %v13044_v2 = vadd.f32 %v12765_v3, %v3075_v8  ;;  %v8171_v6 = vld [vmem:[%s14457_s3 + $0x180] ss:$24 sps:$4 sm:$0xff]   ;;  %6671 = vmatpush2.bf16.msra.mxu1 %v8166_v21 }
 0x308   : > { %v13047_v47 = vadd.f32 %v12768_v55, %v3076_v35  ;;  %v13050_v40 = vadd.f32 %v12771_v49, %v3077_v11  ;;  %v13053_v39 = vadd.f32 %v12774_v51, %v3078_v28  ;;  %v13062_v3 = vadd.f32 %v12778_v23, %v3079_v10  ;;  %v8172_v51 = vld [vmem:[%s14457_s3 + $0x480] ss:$24 sps:$4 sm:$0xff]   ;;  %6672 = vmatprep.subr.bf16.mxu1 %v8169_v27  ;;  %v1834_v10 = vpop.permute.xlu1 %1833 }
 0x309   : > { %v13059_v5 = vunpack.c.l.b16 %v4610_v44  ;;  %v13065_v55 = vadd.f32 %v12781_v19, %v3080_v52  ;;  %v1279_v49 = vunpack.c.l.bf16 %v600_v22  ;;  %v1280_v56 = vunpack.c.h.bf16 %v600_v22  ;;  %v432_v37 = vld [vmem:[%s8732_s16 + $0x1b8] sm:$0x11]  ;;  %v433_v35 = vld [vmem:[%s8732_s16 + $0x1c0] sm:$0x11]  ;;  %6632 = vmatpush2.bf16.msra.mxu0 %v8171_v6  ;;  %v15625_v22 = vld [vmem:[#allocation47_spill] sm:$0xff] }
 0x30a   : > { %v1281_v20 = vunpack.c.l.bf16 %v601_v41  ;;  %v1282_v24 = vunpack.c.h.bf16 %v601_v41  ;;  %v2853_v16 = vmul.f32 %v2076_v4, %v1277_v38  ;;  %v2854_v8 = vmul.f32 %v2076_v4, %v1278_v57  ;;  %v15626_v38 = vld [vmem:[#allocation18_spill] sm:$0xff] }
 0x30b   : > { %15624 = vst [vmem:[#allocation24_spill] sm:$0xff] %v13059_v5  ;;  %v2855_v23 = vmul.f32 %v2076_v4, %v1279_v49  ;;  %v941_v11 = vunpack.c.l.bf16 %v431_v9  ;;  %v942_v19 = vunpack.c.h.bf16 %v431_v9  ;;  %v2856_v28 = vmul.f32 %v2076_v4, %v1280_v56  ;;  %v821_v49 = vld [vmem:[%s8732_s16 + $0xde0] sm:$0xff]  ;;  %6673 = vmatpush2.bf16.msra.mxu1 %v8172_v51  ;;  %v15627_v9 = vld [vmem:[#allocation48_spill] sm:$0xff] }
 0x30c   : > { %v2857_v44 = vmul.f32 %v2076_v4, %v1281_v20  ;;  %v2858_v21 = vmul.f32 %v2076_v4, %v1282_v24  ;;  %v13073_v62 = vadd.f32 %v12678_v48, %v2853_v16  ;;  %v13076_v52 = vadd.f32 %v15625_v22, %v2854_v8  ;;  %v15628_v4 = vld [vmem:[#allocation19_spill] sm:$0xff]  ;;  %v15629_v48 = vld [vmem:[#allocation49_spill] sm:$0xff] }
 0x30d   : > { %v13079_v27 = vadd.f32 %v15626_v38, %v2855_v23  ;;  %v943_v41 = vunpack.c.l.bf16 %v432_v37  ;;  %v944_v57 = vunpack.c.h.bf16 %v432_v37  ;;  %v13083_v56 = vadd.f32 %v15627_v9, %v2856_v28  ;;  %v822_v37 = vld [vmem:[%s8732_s16 + $0xde8] sm:$0xff] }
 0x30e   : > { %v13086_v20 = vadd.f32 %v15628_v4, %v2857_v44  ;;  %v13089_v24 = vadd.f32 %v15629_v48, %v2858_v21  ;;  %v945_v6 = vunpack.c.l.bf16 %v433_v35  ;;  %v946_v16 = vunpack.c.h.bf16 %v433_v35 }
 0x30f   : > { %v2517_v8 = vmul.f32 %v1834_v10, %v941_v11  ;;  %v2518_v22 = vmul.f32 %v1834_v10, %v942_v19  ;;  %v2519_v23 = vmul.f32 %v1834_v10, %v943_v41  ;;  %v2520_v38 = vmul.f32 %v1834_v10, %v944_v57  ;;  %v823_v41 = vld [vmem:[%s8732_s16 + $0xdf0] sm:$0xff] }
 0x310   : > { %v2521_v1 = vmul.f32 %v1834_v10, %v945_v6  ;;  %v1721_v5 = vunpack.c.l.bf16 %v821_v49  ;;  %v1722_v51 = vunpack.c.h.bf16 %v821_v49  ;;  %v2522_v13 = vmul.f32 %v1834_v10, %v946_v16 }
 0x311   : > { %v3339_v28 = vsel %vm3338_vm1, %v2517_v8, 0.0  ;;  %v3364_v44 = vsel %vm3338_vm1, %v2518_v22, 0.0  ;;  %v3389_v9 = vsel %vm3338_vm1, %v2519_v23, 0.0  ;;  %v3414_v19 = vsel %vm3338_vm1, %v2520_v38, 0.0 }
 0x312   : > { %v3340_v21 = vadd.f32 %v3339_v28, %v12985_v33  ;;  %v3365_v35 = vadd.f32 %v3364_v44, %v12988_v30  ;;  %v3390_v11 = vadd.f32 %v3389_v9, %v13010_v18  ;;  %v3415_v57 = vadd.f32 %v3414_v19, %v13013_v14  ;;  %v2393_v33 = vpop.permute.xlu0 %2392 }
 0x313   : > { %v3439_v49 = vsel %vm3338_vm1, %v2521_v1, 0.0  ;;  %v3464_v10 = vsel %vm3338_vm1, %v2522_v13, 0.0  ;;  %v1723_v4 = vunpack.c.l.bf16 %v822_v37  ;;  %v1724_v18 = vunpack.c.h.bf16 %v822_v37 }
 0x314   : > { %v3341_v48 = vrot.slane %v3340_v21, 4  ;;  %v3366_v6 = vrot.slane %v3365_v35, 4  ;;  %v3391_v16 = vrot.slane %v3390_v11, 4  ;;  %v3440_v8 = vadd.f32 %v3439_v49, %v13023_v60 }
 0x315   : > { %v3416_v22 = vrot.slane %v3415_v57, 4  ;;  %v3465_v30 = vadd.f32 %v3464_v10, %v13026_v63  ;;  %v1725_v23 = vunpack.c.l.bf16 %v823_v41  ;;  %v1726_v19 = vunpack.c.h.bf16 %v823_v41 }
 0x316   : > { %v3342_v38 = vadd.f32 %v3341_v48, %v3340_v21  ;;  %v3367_v28 = vadd.f32 %v3366_v6, %v3365_v35  ;;  %v3392_v44 = vadd.f32 %v3391_v16, %v3390_v11  ;;  %v3441_v14 = vrot.slane %v3440_v8, 4  ;;  %v8175_v21 = vld [vmem:[%s14457_s3 + $0x754] ss:$24 sps:$4 sm:$0xff]  }
 0x317   : > { %v3417_v9 = vadd.f32 %v3416_v22, %v3415_v57  ;;  %v3466_v1 = vrot.slane %v3465_v30, 4  ;;  %v3297_v13 = vmul.f32 %v2393_v33, %v1721_v5  ;;  %v3298_v49 = vmul.f32 %v2393_v33, %v1722_v51  ;;  %v8178_v57 = vld [vmem:[%s14457_s3 + $0x15c] ss:$24 sps:$4 sm:$0xff]   ;;  %6683 = vmatprep.subr.bf16.mxu0 %v8175_v21 }
 0x318   : > { %v3343_v29 = vrot.slane %v3342_v38, 2  ;;  %v3368_v50 = vrot.slane %v3367_v28, 2  ;;  %v3393_v54 = vrot.slane %v3392_v44, 2  ;;  %v3442_v7 = vadd.f32 %v3441_v14, %v3440_v8  ;;  %v15630_v16 = vld [vmem:[#allocation64_spill] sm:$0xff]  ;;  %6724 = vmatprep.subr.bf16.mxu1 %v8178_v57  ;;  %v15638_v21 = vld [vmem:[#allocation21_spill] sm:$0xff] }
 0x319   : > { %v3418_v15 = vrot.slane %v3417_v9, 2  ;;  %v3467_v60 = vadd.f32 %v3466_v1, %v3465_v30  ;;  %v3299_v12 = vmul.f32 %v2393_v33, %v1723_v4  ;;  %v3300_v41 = vmul.f32 %v2393_v33, %v1724_v18  ;;  %v15633_v1 = vld [vmem:[#allocation119_spill] sm:$0xff] }
 0x31a   : > { %v3344_v61 = vadd.f32 %v3343_v29, %v3342_v38  ;;  %v3369_v63 = vadd.f32 %v3368_v50, %v3367_v28  ;;  %v3394_v37 = vadd.f32 %v3393_v54, %v3392_v44  ;;  %v3443_v10 = vrot.slane %v3442_v7, 2  ;;  %v15631_v28 = vld [vmem:[#allocation50_spill] sm:$0xff] }
 0x31b   : > { %v3419_v35 = vadd.f32 %v3418_v15, %v3417_v9  ;;  %v3468_v11 = vrot.slane %v3467_v60, 2  ;;  %v3301_v5 = vmul.f32 %v2393_v33, %v1725_v23  ;;  %v3302_v4 = vmul.f32 %v2393_v33, %v1726_v19  ;;  %v656_v9 = vld [vmem:[%s8732_s16 + $0x8b8] sm:$0xff] }
 0x31c   : > { %v3345_v48 = vrot.slane %v3344_v61, 1  ;;  %v3370_v6 = vrot.slane %v3369_v63, 1  ;;  %v3395_v51 = vrot.slane %v3394_v37, 1  ;;  %v3444_v29 = vadd.f32 %v3443_v10, %v3442_v7  ;;  %v15632_v7 = vld [vmem:[#allocation99_spill] sm:$0xff] }
 0x31d   : > { %v3420_v50 = vrot.slane %v3419_v35, 1  ;;  %v3469_v54 = vadd.f32 %v3468_v11, %v3467_v60  ;;  %v13112_v8 = vadd.f32 %v15630_v16, %v3297_v13  ;;  %v13115_v44 = vadd.f32 %v15631_v28, %v3298_v49  ;;  %v657_v60 = vld [vmem:[%s8732_s16 + $0x8c0] sm:$0xff]  ;;  %v2158_v11 = vpop.permute.xlu1 %2157 }
 0x31e   : > { %v3346_v15 = vadd.f32 %v3345_v48, %v3344_v61  ;;  %v3371_v22 = vadd.f32 %v3370_v6, %v3369_v63  ;;  %v3396_v30 = vadd.f32 %v3395_v51, %v3394_v37  ;;  %v3445_v18 = vrot.slane %v3444_v29, 1  ;;  %v658_v63 = vld [vmem:[%s8732_s16 + $0x8c8] sm:$0xff]  ;;  %v15639_v48 = vld [vmem:[#allocation65_spill] sm:$0xff] }
 0x31f   : > { %v3421_v23 = vadd.f32 %v3420_v50, %v3419_v35  ;;  %v3470_v38 = vrot.slane %v3469_v54, 1  ;;  %v13118_v14 = vadd.f32 %v15632_v7, %v3299_v12  ;;  %v15637_v12 = vld [vmem:[#allocation20_spill] sm:$0xff]  ;;  %v13139_v35 = vadd.f32 %v15638_v21, %v3301_v5  ;;  %v602_v50 = vld [vmem:[%s8732_s16 + $0x708] sm:$0x11]  ;;  %v604_v7 = vld [vmem:[%s8732_s16 + $0x718] sm:$0x11] }
 0x320   : > { %v3446_v33 = vadd.f32 %v3445_v18, %v3444_v29  ;;  %v13122_v19 = vmul.f32 %v15633_v1, %v3346_v15  ;;  %v13125_v13 = vmul.f32 %v15633_v1, %v3371_v22  ;;  %v13128_v61 = vmul.f32 %v15633_v1, %v3396_v30 }
 0x321   : > { %v3471_v37 = vadd.f32 %v3470_v38, %v3469_v54  ;;  %v13133_v49 = vmul.f32 %v15633_v1, %v3421_v23  ;;  %v13136_v10 = vadd.f32 %v15637_v12, %v3300_v41  ;;  %v13143_v6 = vadd.f32 %v15639_v48, %v3302_v4  ;;  %v603_v4 = vld [vmem:[%s8732_s16 + $0x710] sm:$0x11] }
 0x322   : > { %15634 = vst [vmem:[#allocation73_spill] sm:$0xff] %v13122_v19  ;;  %15635 = vst [vmem:[#allocation27_spill] sm:$0xff] %v13128_v61  ;;  %v4543_v57 = vmul.f32 %v15633_v1, %v3446_v33  ;;  %v1391_v51 = vunpack.c.l.bf16 %v656_v9  ;;  %v1392_v29 = vunpack.c.h.bf16 %v656_v9  ;;  %v1393_v16 = vunpack.c.l.bf16 %v657_v60 }
 0x323   : > { %15636 = vst [vmem:[#allocation74_spill] sm:$0xff] %v13133_v49  ;;  %v13147_v54 = vmul.f32 %v15633_v1, %v3471_v37  ;;  %v1394_v41 = vunpack.c.h.bf16 %v657_v60  ;;  %v1395_v15 = vunpack.c.l.bf16 %v658_v63  ;;  %v1396_v22 = vunpack.c.h.bf16 %v658_v63  ;;  %v2080_v37 = vpop.permute.xlu0 %2079  ;;  %v659_v63 = vld [vmem:[%s8732_s16 + $0x8d0] sm:$0x11] }
 0x324   : > { %v4598_v5 = vpack.c.bf16 %v4543_v57, %v4543_v57  ;;  %v2967_v30 = vmul.f32 %v2158_v11, %v1391_v51  ;;  %v2968_v18 = vmul.f32 %v2158_v11, %v1392_v29  ;;  %v2969_v23 = vmul.f32 %v2158_v11, %v1393_v16 }
 0x325   : > { %15640 = vst [vmem:[#allocation85_spill] sm:$0xff] %v13147_v54  ;;  %v2970_v38 = vmul.f32 %v2158_v11, %v1394_v41  ;;  %v2971_v28 = vmul.f32 %v2158_v11, %v1395_v15  ;;  %v1283_v33 = vunpack.c.l.bf16 %v602_v50  ;;  %v2972_v12 = vmul.f32 %v2158_v11, %v1396_v22 }
 0x326   : > { %v13151_v9 = vunpack.c.l.b16 %v4598_v5  ;;  %v13154_v1 = vadd.f32 %v12885_v25, %v2967_v30  ;;  %v13157_v60 = vadd.f32 %v12888_v0, %v2968_v18  ;;  %v13161_v21 = vadd.f32 %v12891_v42, %v2969_v23  ;;  %v660_v0 = vld [vmem:[%s8732_s16 + $0x8d8] sm:$0x11] }
 0x327   : > { %v13164_v57 = vadd.f32 %v12898_v43, %v2970_v38  ;;  %v13167_v48 = vadd.f32 %v12901_v59, %v2971_v28  ;;  %v1284_v51 = vunpack.c.h.bf16 %v602_v50  ;;  %v13170_v11 = vadd.f32 %v12904_v58, %v2972_v12 }
 0x328   : > { %15641 = vst [vmem:[#allocation75_spill] sm:$0xff] %v13151_v9  ;;  %v1285_v25 = vunpack.c.l.bf16 %v603_v4  ;;  %v1286_v29 = vunpack.c.h.bf16 %v603_v4  ;;  %v1287_v16 = vunpack.c.l.bf16 %v604_v7  ;;  %v1288_v41 = vunpack.c.h.bf16 %v604_v7 }
 0x329   : > { %v2859_v15 = vmul.f32 %v2080_v37, %v1283_v33  ;;  %v2860_v5 = vmul.f32 %v2080_v37, %v1284_v51  ;;  %v1397_v42 = vunpack.c.l.bf16 %v659_v63  ;;  %v1398_v18 = vunpack.c.h.bf16 %v659_v63  ;;  %v661_v33 = vld [vmem:[%s8732_s16 + $0x8e0] sm:$0x11] }
 0x32a   : > { %v2861_v22 = vmul.f32 %v2080_v37, %v1285_v25  ;;  %v2862_v30 = vmul.f32 %v2080_v37, %v1286_v29  ;;  %v2863_v43 = vmul.f32 %v2080_v37, %v1287_v16  ;;  %v2864_v23 = vmul.f32 %v2080_v37, %v1288_v41 }
 0x32b   : > { %v3789_v59 = vsel %vm3338_vm1, %v2859_v15, 0.0  ;;  %v3814_v50 = vsel %vm3338_vm1, %v2860_v5, 0.0  ;;  %v1399_v58 = vunpack.c.l.bf16 %v660_v0  ;;  %v1400_v5 = vunpack.c.h.bf16 %v660_v0 }
 0x32c   : > { %v3790_v38 = vadd.f32 %v3789_v59, %v13073_v62  ;;  %v3815_v28 = vadd.f32 %v3814_v50, %v13076_v52  ;;  %v3839_v4 = vsel %vm3338_vm1, %v2861_v22, 0.0  ;;  %v3864_v7 = vsel %vm3338_vm1, %v2862_v30, 0.0  ;;  %v2162_v52 = vpop.permute.xlu1 %2161 }
 0x32d   : > { %v3840_v12 = vadd.f32 %v3839_v4, %v13079_v27  ;;  %v3865_v51 = vadd.f32 %v3864_v7, %v13083_v56  ;;  %v3889_v37 = vsel %vm3338_vm1, %v2863_v43, 0.0  ;;  %v3914_v63 = vsel %vm3338_vm1, %v2864_v23, 0.0 }
 0x32e   : > { %v3791_v25 = vrot.slane %v3790_v38, 4  ;;  %v3816_v29 = vrot.slane %v3815_v28, 4  ;;  %v3890_v16 = vadd.f32 %v3889_v37, %v13086_v20  ;;  %v3915_v62 = vadd.f32 %v3914_v63, %v13089_v24 }
 0x32f   : > { %v3841_v41 = vrot.slane %v3840_v12, 4  ;;  %v3866_v15 = vrot.slane %v3865_v51, 4  ;;  %v1401_v22 = vunpack.c.l.bf16 %v661_v33  ;;  %v1402_v43 = vunpack.c.h.bf16 %v661_v33 }
 0x330   : > { %v3792_v30 = vadd.f32 %v3791_v25, %v3790_v38  ;;  %v3817_v59 = vadd.f32 %v3816_v29, %v3815_v28  ;;  %v3891_v27 = vrot.slane %v3890_v16, 4  ;;  %v3916_v50 = vrot.slane %v3915_v62, 4 }
 0x331   : > { %v3842_v56 = vadd.f32 %v3841_v41, %v3840_v12  ;;  %v3867_v4 = vadd.f32 %v3866_v15, %v3865_v51  ;;  %v2973_v7 = vmul.f32 %v2162_v52, %v1397_v42  ;;  %v2974_v24 = vmul.f32 %v2162_v52, %v1398_v18 }
 0x332   : > { %v3793_v23 = vrot.slane %v3792_v30, 2  ;;  %v3818_v9 = vrot.slane %v3817_v59, 2  ;;  %v3892_v54 = vadd.f32 %v3891_v27, %v3890_v16  ;;  %v3917_v61 = vadd.f32 %v3916_v50, %v3915_v62 }
 0x333   : > { %v3843_v20 = vrot.slane %v3842_v56, 2  ;;  %v3868_v37 = vrot.slane %v3867_v4, 2  ;;  %v2975_v63 = vmul.f32 %v2162_v52, %v1399_v58  ;;  %v2976_v25 = vmul.f32 %v2162_v52, %v1400_v5 }
 0x334   : > { %v3794_v19 = vadd.f32 %v3793_v23, %v3792_v30  ;;  %v3819_v49 = vadd.f32 %v3818_v9, %v3817_v59  ;;  %v3893_v0 = vrot.slane %v3892_v54, 2  ;;  %v3918_v31 = vrot.slane %v3917_v61, 2 }
 0x335   : > { %v3844_v38 = vadd.f32 %v3843_v20, %v3842_v56  ;;  %v3869_v28 = vadd.f32 %v3868_v37, %v3867_v4  ;;  %v2977_v29 = vmul.f32 %v2162_v52, %v1401_v22  ;;  %v2978_v62 = vmul.f32 %v2162_v52, %v1402_v43  ;;  %v767_v22 = vld [vmem:[%s8732_s16 + $0xc30] sm:$0xff]  ;;  %v768_v20 = vld [vmem:[%s8732_s16 + $0xc38] sm:$0xff] }
 0x336   : > { %v3795_v12 = vrot.slane %v3794_v19, 1  ;;  %v3820_v51 = vrot.slane %v3819_v49, 1  ;;  %v3894_v33 = vadd.f32 %v3893_v0, %v3892_v54  ;;  %v3919_v42 = vadd.f32 %v3918_v31, %v3917_v61 }
 0x337   : > { %v3845_v41 = vrot.slane %v3844_v38, 1  ;;  %v3870_v16 = vrot.slane %v3869_v28, 1  ;;  %v3939_v15 = vsel %vm3338_vm1, %v2973_v7, 0.0  ;;  %v3964_v31 = vsel %vm3338_vm1, %v2974_v24, 0.0 }
 0x338   : > { %v13187_v18 = vadd.f32 %v3795_v12, %v3794_v19  ;;  %v13189_v58 = vadd.f32 %v3820_v51, %v3819_v49  ;;  %v3895_v9 = vrot.slane %v3894_v33, 1  ;;  %v3920_v30 = vrot.slane %v3919_v42, 1 }
 0x339   : > { %v13191_v59 = vadd.f32 %v3845_v41, %v3844_v38  ;;  %v13193_v5 = vadd.f32 %v3870_v16, %v3869_v28  ;;  %v3940_v54 = vadd.f32 %v3939_v15, %v13154_v1  ;;  %v3965_v19 = vadd.f32 %v3964_v31, %v13157_v60  ;;  %v769_v28 = vld [vmem:[%s8732_s16 + $0xc40] sm:$0xff]  ;;  %v2318_v41 = vpop.permute.xlu0 %2317 }
 0x33a   : > { %v13197_v61 = vadd.f32 %v3895_v9, %v3894_v33  ;;  %v13199_v52 = vadd.f32 %v3920_v30, %v3919_v42  ;;  %v3989_v49 = vsel %vm3338_vm1, %v2975_v63, 0.0  ;;  %v4014_v56 = vsel %vm3338_vm1, %v2976_v25, 0.0 }
 0x33b   : > { %v3941_v27 = vrot.slane %v3940_v54, 4  ;;  %v3990_v50 = vadd.f32 %v3989_v49, %v13161_v21  ;;  %v4039_v4 = vsel %vm3338_vm1, %v2977_v29, 0.0  ;;  %v3966_v1 = vrot.slane %v3965_v19, 4 }
 0x33c   : > { %v4015_v43 = vadd.f32 %v4014_v56, %v13164_v57  ;;  %v4040_v7 = vadd.f32 %v4039_v4, %v13167_v48  ;;  %v4064_v23 = vsel %vm3338_vm1, %v2978_v62, 0.0  ;;  %v1613_v63 = vunpack.c.l.bf16 %v767_v22 }
 0x33d   : > { %v3942_v60 = vadd.f32 %v3941_v27, %v3940_v54  ;;  %v3991_v37 = vrot.slane %v3990_v50, 4  ;;  %v4065_v24 = vadd.f32 %v4064_v23, %v13170_v11  ;;  %v3967_v0 = vadd.f32 %v3966_v1, %v3965_v19 }
 0x33e   : > { %v4016_v38 = vrot.slane %v4015_v43, 4  ;;  %v4041_v21 = vrot.slane %v4040_v7, 4  ;;  %v1614_v25 = vunpack.c.h.bf16 %v767_v22  ;;  %v1615_v33 = vunpack.c.l.bf16 %v768_v20 }
 0x33f   : > { %v3943_v12 = vrot.slane %v3942_v60, 2  ;;  %v3992_v29 = vadd.f32 %v3991_v37, %v3990_v50  ;;  %v4066_v51 = vrot.slane %v4065_v24, 4  ;;  %v3968_v57 = vrot.slane %v3967_v0, 2 }
 0x340   : > { %v4017_v42 = vadd.f32 %v4016_v38, %v4015_v43  ;;  %v4042_v48 = vadd.f32 %v4041_v21, %v4040_v7  ;;  %v1616_v16 = vunpack.c.h.bf16 %v768_v20  ;;  %v1617_v11 = vunpack.c.l.bf16 %v769_v28  ;;  %v825_v21 = vld [vmem:[%s8732_s16 + $0xe00] sm:$0xff] }
 0x341   : > { %v13213_v62 = vadd.f32 %v3943_v12, %v3942_v60  ;;  %v3993_v15 = vrot.slane %v3992_v29, 2  ;;  %v4067_v9 = vadd.f32 %v4066_v51, %v4065_v24  ;;  %v13215_v30 = vadd.f32 %v3968_v57, %v3967_v0  ;;  %v826_v51 = vld [vmem:[%s8732_s16 + $0xe08] sm:$0xff] }
 0x342   : > { %v4018_v54 = vrot.slane %v4017_v42, 2  ;;  %v4043_v31 = vrot.slane %v4042_v48, 2  ;;  %v1618_v19 = vunpack.c.h.bf16 %v769_v28  ;;  %v3189_v50 = vmul.f32 %v2318_v41, %v1613_v63  ;;  %v824_v63 = vld [vmem:[%s8732_s16 + $0xdf8] sm:$0xff] }
 0x343   : > { %v13218_v22 = vadd.f32 %v3993_v15, %v3992_v29  ;;  %v4068_v27 = vrot.slane %v4067_v9, 2  ;;  %v3190_v43 = vmul.f32 %v2318_v41, %v1614_v25  ;;  %v3191_v20 = vmul.f32 %v2318_v41, %v1615_v33  ;;  %v713_v33 = vld [vmem:[%s8732_s16 + $0xa80] sm:$0xff]  ;;  %v772_v28 = vld [vmem:[%s8732_s16 + $0xc58] sm:$0xff] }
 0x344   : > { %v13221_v4 = vadd.f32 %v4018_v54, %v4017_v42  ;;  %v4044_v1 = vadd.f32 %v4043_v31, %v4042_v48  ;;  %v3192_v60 = vmul.f32 %v2318_v41, %v1616_v16  ;;  %v3193_v0 = vmul.f32 %v2318_v41, %v1617_v11  ;;  %v2240_v31 = vpop.permute.xlu0 %2239 }
 0x345   : > { %v13224_v23 = vadd.f32 %v4068_v27, %v4067_v9  ;;  %v3194_v38 = vmul.f32 %v2318_v41, %v1618_v19  ;;  %v13231_v12 = vadd.f32 %v12831_v53, %v3189_v50  ;;  %v13234_v25 = vadd.f32 %v12834_v17, %v3190_v43  ;;  %v2400_v53 = vpop.permute.xlu1 %2399  ;;  %v714_v9 = vld [vmem:[%s8732_s16 + $0xa88] sm:$0xff]  ;;  %v715_v19 = vld [vmem:[%s8732_s16 + $0xa90] sm:$0xff] }
 0x346   : > { %v4045_v24 = vrot.slane %v4044_v1, 1  ;;  %v13237_v29 = vadd.f32 %v12840_v45, %v3191_v20  ;;  %v4312_v42 = vadd.f32 %v12851_v32, %v3192_v60  ;;  %v13245_v48 = vadd.f32 %v12859_v46, %v3193_v0  ;;  %v770_v43 = vld [vmem:[%s8732_s16 + $0xc48] sm:$0xff] }
 0x347   : > { %v13248_v41 = vadd.f32 %v12862_v36, %v3194_v38  ;;  %v1727_v17 = vunpack.c.l.bf16 %v824_v63  ;;  %v1728_v16 = vunpack.c.h.bf16 %v824_v63  ;;  %v1729_v15 = vunpack.c.l.bf16 %v825_v21 }
 0x348   : > { %v13241_v57 = vadd.f32 %v4045_v24, %v4044_v1  ;;  %v1730_v45 = vunpack.c.h.bf16 %v825_v21  ;;  %v1731_v11 = vunpack.c.l.bf16 %v826_v51  ;;  %v1732_v54 = vunpack.c.h.bf16 %v826_v51 }
 0x349   : > { %v1505_v27 = vunpack.c.l.bf16 %v713_v33  ;;  %v1506_v32 = vunpack.c.h.bf16 %v713_v33  ;;  %v13252_v50 = vmul.f32 %v2400_v53, %v1727_v17  ;;  %v13254_v46 = vmul.f32 %v2400_v53, %v1728_v16  ;;  %v771_v33 = vld [vmem:[%s8732_s16 + $0xc50] sm:$0xff] }
 0x34a   : > { %v13256_v36 = vmul.f32 %v2400_v53, %v1729_v15  ;;  %v13258_v1 = vmul.f32 %v2400_v53, %v1730_v45  ;;  %v13261_v20 = vmul.f32 %v2400_v53, %v1731_v11  ;;  %v13263_v60 = vmul.f32 %v2400_v53, %v1732_v54  ;;  %v2322_v54 = vpop.permute.xlu1 %2321 }
 0x34b   : > { %v1507_v24 = vunpack.c.l.bf16 %v714_v9  ;;  %v1508_v0 = vunpack.c.h.bf16 %v714_v9  ;;  %v1509_v38 = vunpack.c.l.bf16 %v715_v19  ;;  %v1510_v63 = vunpack.c.h.bf16 %v715_v19 }
 0x34c   : > { %v3081_v21 = vmul.f32 %v2240_v31, %v1505_v27  ;;  %v3082_v51 = vmul.f32 %v2240_v31, %v1506_v32  ;;  %v1619_v15 = vunpack.c.l.bf16 %v770_v43  ;;  %v1620_v7 = vunpack.c.h.bf16 %v770_v43 }
 0x34d   : > { %v3083_v17 = vmul.f32 %v2240_v31, %v1507_v24  ;;  %v3084_v16 = vmul.f32 %v2240_v31, %v1508_v0  ;;  %v3085_v45 = vmul.f32 %v2240_v31, %v1509_v38  ;;  %v3086_v49 = vmul.f32 %v2240_v31, %v1510_v63  ;;  %v716_v24 = vld [vmem:[%s8732_s16 + $0xa98] sm:$0x11] }
 0x34e   : > { %v4088_v11 = vadd.f32 %v13044_v2, %v3081_v21  ;;  %v4113_v53 = vadd.f32 %v13047_v47, %v3082_v51  ;;  %v1621_v27 = vunpack.c.l.bf16 %v771_v33  ;;  %v1622_v32 = vunpack.c.h.bf16 %v771_v33  ;;  %v717_v51 = vld [vmem:[%s8732_s16 + $0xaa0] sm:$0x11] }
 0x34f   : > { %v4138_v9 = vadd.f32 %v13050_v40, %v3083_v17  ;;  %v4163_v19 = vadd.f32 %v13053_v39, %v3084_v16  ;;  %v4188_v0 = vadd.f32 %v13062_v3, %v3085_v45  ;;  %v4213_v43 = vadd.f32 %v13065_v55, %v3086_v49  ;;  %v2244_v17 = vpop.permute.xlu0 %2243  ;;  %v718_v39 = vld [vmem:[%s8732_s16 + $0xaa8] sm:$0x11] }
 0x350   : > { %v1623_v38 = vunpack.c.l.bf16 %v772_v28  ;;  %v1624_v31 = vunpack.c.h.bf16 %v772_v28  ;;  %v3195_v2 = vmul.f32 %v2322_v54, %v1619_v15  ;;  %v3196_v63 = vmul.f32 %v2322_v54, %v1620_v7  ;;  %v827_v7 = vld [vmem:[%s8732_s16 + $0xe10] sm:$0xff] }
 0x351   : > { %v3197_v21 = vmul.f32 %v2322_v54, %v1621_v27  ;;  %v3198_v47 = vmul.f32 %v2322_v54, %v1622_v32  ;;  %v1511_v16 = vunpack.c.l.bf16 %v716_v24  ;;  %v1512_v56 = vunpack.c.h.bf16 %v716_v24 }
 0x352   : > { %v3199_v37 = vmul.f32 %v2322_v54, %v1623_v38  ;;  %v3200_v40 = vmul.f32 %v2322_v54, %v1624_v31  ;;  %v13277_v33 = vadd.f32 %v13231_v12, %v3195_v2  ;;  %v13280_v3 = vadd.f32 %v13234_v25, %v3196_v63 }
 0x353   : > { %v13283_v55 = vadd.f32 %v13237_v29, %v3197_v21  ;;  %v13285_v49 = vadd.f32 %v4312_v42, %v3198_v47  ;;  %v1513_v45 = vunpack.c.l.bf16 %v717_v51  ;;  %v1514_v54 = vunpack.c.h.bf16 %v717_v51  ;;  %v828_v51 = vld [vmem:[%s8732_s16 + $0xe18] sm:$0xff] }
 0x354   : > { %v13289_v28 = vadd.f32 %v13245_v48, %v3199_v37  ;;  %v13292_v15 = vadd.f32 %v13248_v41, %v3200_v40  ;;  %v1515_v27 = vunpack.c.l.bf16 %v718_v39  ;;  %v1516_v12 = vunpack.c.h.bf16 %v718_v39 }
 0x355   : > { %v3087_v32 = vmul.f32 %v2244_v17, %v1511_v16  ;;  %v3088_v25 = vmul.f32 %v2244_v17, %v1512_v56  ;;  %v3089_v24 = vmul.f32 %v2244_v17, %v1513_v45  ;;  %v3090_v38 = vmul.f32 %v2244_v17, %v1514_v54 }
 0x356   : > { %v1733_v29 = vunpack.c.l.bf16 %v827_v7  ;;  %v1734_v31 = vunpack.c.h.bf16 %v827_v7  ;;  %v3091_v42 = vmul.f32 %v2244_v17, %v1515_v27  ;;  %v3092_v2 = vmul.f32 %v2244_v17, %v1516_v12  ;;  %v829_v27 = vld [vmem:[%s8732_s16 + $0xe20] sm:$0xff] }
 0x357   : > { %v4089_v37 = vsel %vm3338_vm1, %v3087_v32, 0.0  ;;  %v4114_v48 = vsel %vm3338_vm1, %v3088_v25, 0.0  ;;  %v4139_v21 = vsel %vm3338_vm1, %v3089_v24, 0.0  ;;  %v4164_v47 = vsel %vm3338_vm1, %v3090_v38, 0.0 }
 0x358   : > { %v4090_v41 = vadd.f32 %v4089_v37, %v4088_v11  ;;  %v4115_v63 = vadd.f32 %v4114_v48, %v4113_v53  ;;  %v4140_v40 = vadd.f32 %v4139_v21, %v4138_v9  ;;  %v4165_v56 = vadd.f32 %v4164_v47, %v4163_v19  ;;  %v2404_v19 = vpop.permute.xlu1 %2403 }
 0x359   : > { %v4189_v39 = vsel %vm3338_vm1, %v3091_v42, 0.0  ;;  %v4214_v16 = vsel %vm3338_vm1, %v3092_v2, 0.0  ;;  %v1735_v11 = vunpack.c.l.bf16 %v828_v51  ;;  %v1736_v53 = vunpack.c.h.bf16 %v828_v51 }
 0x35a   : > { %v4091_v7 = vrot.slane %v4090_v41, 4  ;;  %v4116_v17 = vrot.slane %v4115_v63, 4  ;;  %v4190_v45 = vadd.f32 %v4189_v39, %v4188_v0  ;;  %v4215_v54 = vadd.f32 %v4214_v16, %v4213_v43 }
 0x35b   : > { %v4141_v12 = vrot.slane %v4140_v40, 4  ;;  %v4166_v32 = vrot.slane %v4165_v56, 4  ;;  %v1737_v2 = vunpack.c.l.bf16 %v829_v27  ;;  %v1738_v0 = vunpack.c.h.bf16 %v829_v27 }
 0x35c   : > { %v13302_v25 = vadd.f32 %v4091_v7, %v4090_v41  ;;  %v13304_v24 = vadd.f32 %v4116_v17, %v4115_v63  ;;  %v4191_v38 = vrot.slane %v4190_v45, 4  ;;  %v4216_v9 = vrot.slane %v4215_v54, 4  ;;  %v773_v17 = vld [vmem:[%s8732_s16 + $0xc60] sm:$0x11] }
 0x35d   : > { %v13306_v37 = vadd.f32 %v4141_v12, %v4140_v40  ;;  %v13308_v42 = vadd.f32 %v4166_v32, %v4165_v56  ;;  %v3309_v51 = vmul.f32 %v2404_v19, %v1733_v29  ;;  %v3310_v40 = vmul.f32 %v2404_v19, %v1734_v31 }
 0x35e   : > { %v4093_v43 = vrot.slane %v13302_v25, 2  ;;  %v4118_v48 = vrot.slane %v13304_v24, 2  ;;  %v4192_v21 = vadd.f32 %v4191_v38, %v4190_v45  ;;  %v13312_v47 = vadd.f32 %v4216_v9, %v4215_v54 }
 0x35f   : > { %v4143_v41 = vrot.slane %v13306_v37, 2  ;;  %v4168_v63 = vrot.slane %v13308_v42, 2  ;;  %v3311_v16 = vmul.f32 %v2404_v19, %v1735_v11  ;;  %v3312_v7 = vmul.f32 %v2404_v19, %v1736_v53  ;;  %v774_v53 = vld [vmem:[%s8732_s16 + $0xc68] sm:$0x11] }
 0x360   : > { %v4193_v39 = vrot.slane %v4192_v21, 2  ;;  %v3313_v27 = vmul.f32 %v2404_v19, %v1737_v2  ;;  %v3314_v12 = vmul.f32 %v2404_v19, %v1738_v0  ;;  %v4387_v45 = vadd.f32 %v13112_v8, %v13252_v50  ;;  %v775_v50 = vld [vmem:[%s8732_s16 + $0xc70] sm:$0x11]  ;;  %v830_v19 = vld [vmem:[%s8732_s16 + $0xe28] sm:$0x11] }
 0x361   : > { %v4412_v54 = vadd.f32 %v13115_v44, %v13254_v46  ;;  %v4437_v29 = vadd.f32 %v13118_v14, %v13256_v36  ;;  %v4462_v31 = vadd.f32 %v13136_v10, %v13258_v1  ;;  %v4487_v11 = vadd.f32 %v13139_v35, %v13261_v20  ;;  %v2326_v44 = vpop.permute.xlu0 %2325 }
 0x362   : > { %v13322_v32 = vadd.f32 %v4193_v39, %v4192_v21  ;;  %v13331_v38 = vadd.f32 %v4387_v45, %v3309_v51  ;;  %v4512_v8 = vadd.f32 %v13143_v6, %v13263_v60  ;;  %v1625_v46 = vunpack.c.l.bf16 %v773_v17  ;;  %v831_v21 = vld [vmem:[%s8732_s16 + $0xe30] sm:$0x11] }
 0x363   : > { %v13333_v9 = vadd.f32 %v4412_v54, %v3310_v40  ;;  %v4438_v36 = vadd.f32 %v4437_v29, %v3311_v16  ;;  %v4463_v10 = vadd.f32 %v4462_v31, %v3312_v7  ;;  %v13340_v1 = vadd.f32 %v4487_v11, %v3313_v27 }
 0x364   : > { %v13342_v35 = vadd.f32 %v4512_v8, %v3314_v12  ;;  %v1626_v20 = vunpack.c.h.bf16 %v773_v17  ;;  %v1627_v2 = vunpack.c.l.bf16 %v774_v53  ;;  %v1628_v0 = vunpack.c.h.bf16 %v774_v53 }
 0x365   : > { %v1629_v51 = vunpack.c.l.bf16 %v775_v50  ;;  %v1630_v40 = vunpack.c.h.bf16 %v775_v50  ;;  %v3201_v39 = vmul.f32 %v2326_v44, %v1625_v46  ;;  %v1739_v6 = vunpack.c.l.bf16 %v830_v19 }
 0x366   : > { %v3202_v60 = vmul.f32 %v2326_v44, %v1626_v20  ;;  %v3203_v45 = vmul.f32 %v2326_v44, %v1627_v2  ;;  %v3204_v54 = vmul.f32 %v2326_v44, %v1628_v0  ;;  %v1740_v56 = vunpack.c.h.bf16 %v830_v19 }
 0x367   : > { %v3205_v14 = vmul.f32 %v2326_v44, %v1629_v51  ;;  %v3206_v16 = vmul.f32 %v2326_v44, %v1630_v40  ;;  %v4239_v7 = vsel %vm3338_vm1, %v3201_v39, 0.0  ;;  %v1741_v27 = vunpack.c.l.bf16 %v831_v21  ;;  %v832_v44 = vld [vmem:[%s8732_s16 + $0xe38] sm:$0x11]  ;;  %v2408_v39 = vpop.permute.xlu0 %2407 }
 0x368   : > { %v4240_v12 = vadd.f32 %v4239_v7, %v13277_v33  ;;  %v4264_v17 = vsel %vm3338_vm1, %v3202_v60, 0.0  ;;  %v4289_v29 = vsel %vm3338_vm1, %v3203_v45, 0.0  ;;  %v4314_v31 = vsel %vm3338_vm1, %v3204_v54, 0.0 }
 0x369   : > { %v4265_v11 = vadd.f32 %v4264_v17, %v13280_v3  ;;  %v4290_v53 = vadd.f32 %v4289_v29, %v13283_v55  ;;  %v4315_v8 = vadd.f32 %v4314_v31, %v13285_v49  ;;  %v4339_v50 = vsel %vm3338_vm1, %v3205_v14, 0.0 }
 0x36a   : > { %v4241_v46 = vrot.slane %v4240_v12, 4  ;;  %v4340_v19 = vadd.f32 %v4339_v50, %v13289_v28  ;;  %v4364_v33 = vsel %vm3338_vm1, %v3206_v16, 0.0  ;;  %v1742_v20 = vunpack.c.h.bf16 %v831_v21 }
 0x36b   : > { %v4266_v2 = vrot.slane %v4265_v11, 4  ;;  %v4291_v0 = vrot.slane %v4290_v53, 4  ;;  %v4316_v51 = vrot.slane %v4315_v8, 4  ;;  %v4365_v40 = vadd.f32 %v4364_v33, %v13292_v15 }
 0x36c   : > { %v13358_v3 = vadd.f32 %v4241_v46, %v4240_v12  ;;  %v4341_v55 = vrot.slane %v4340_v19, 4  ;;  %v1743_v60 = vunpack.c.l.bf16 %v832_v44  ;;  %v1744_v49 = vunpack.c.h.bf16 %v832_v44 }
 0x36d   : > { %v4267_v45 = vadd.f32 %v4266_v2, %v4265_v11  ;;  %v13360_v14 = vadd.f32 %v4291_v0, %v4290_v53  ;;  %v13362_v54 = vadd.f32 %v4316_v51, %v4315_v8  ;;  %v4366_v28 = vrot.slane %v4365_v40, 4 }
 0x36e   : > { %v4342_v7 = vadd.f32 %v4341_v55, %v4340_v19  ;;  %v3315_v16 = vmul.f32 %v2408_v39, %v1739_v6  ;;  %v3316_v21 = vmul.f32 %v2408_v39, %v1740_v56  ;;  %v3317_v17 = vmul.f32 %v2408_v39, %v1741_v27 }
 0x36f   : > { %v13364_v29 = vadd.f32 %v4366_v28, %v4365_v40  ;;  %v3318_v31 = vmul.f32 %v2408_v39, %v1742_v20  ;;  %v3319_v15 = vmul.f32 %v2408_v39, %v1743_v60  ;;  %v3320_v50 = vmul.f32 %v2408_v39, %v1744_v49 }
 0x370   : > { %v4343_v12 = vrot.slane %v4342_v7, 2  ;;  %v4389_v46 = vsel %vm3338_vm1, %v3315_v16, 0.0  ;;  %v4414_v44 = vsel %vm3338_vm1, %v3316_v21, 0.0  ;;  %v4439_v11 = vsel %vm3338_vm1, %v3317_v17, 0.0 }
 0x371   : > { %v4390_v53 = vadd.f32 %v4389_v46, %v13331_v38  ;;  %v4415_v8 = vadd.f32 %v4414_v44, %v13333_v9  ;;  %v4440_v19 = vadd.f32 %v4439_v11, %v4438_v36  ;;  %v4464_v56 = vsel %vm3338_vm1, %v3318_v31, 0.0  ;;  %v15643_v11 = vld [vmem:[#allocation122_spill] sm:$0xff] }
 0x372   : > { %v13372_v6 = vadd.f32 %v4343_v12, %v4342_v7  ;;  %v4465_v27 = vadd.f32 %v4464_v56, %v4463_v10  ;;  %v4489_v33 = vsel %vm3338_vm1, %v3319_v15, 0.0  ;;  %v4514_v20 = vsel %vm3338_vm1, %v3320_v50, 0.0  ;;  %v15644_v56 = vld [vmem:[#allocation123_spill] sm:$0xff] }
 0x373   : > { %v4391_v2 = vrot.slane %v4390_v53, 4  ;;  %v4416_v0 = vrot.slane %v4415_v8, 4  ;;  %v4441_v51 = vrot.slane %v4440_v19, 4  ;;  %v4490_v40 = vadd.f32 %v4489_v33, %v13340_v1  ;;  %v15645_v33 = vld [vmem:[#allocation124_spill] sm:$0xff] }
 0x374   : > { %v4466_v39 = vrot.slane %v4465_v27, 4  ;;  %v4515_v38 = vadd.f32 %v4514_v20, %v13342_v35  ;;  %v15642_v9 = vrot.slane %v13215_v30, 1  ;;  %v4119_v10 = vadd.f32 %v4118_v48, %v13304_v24 }
 0x375   : > { %v13384_v55 = vadd.f32 %v4391_v2, %v4390_v53  ;;  %v4417_v60 = vadd.f32 %v4416_v0, %v4415_v8  ;;  %v13386_v49 = vadd.f32 %v4441_v51, %v4440_v19  ;;  %v4491_v28 = vrot.slane %v4490_v40, 4  ;;  %v15646_v51 = vld [vmem:[#allocation67_spill] sm:$0xff] }
 0x376   : > { %v3971_v36 = vadd.f32 %v15642_v9, %v13215_v30  ;;  %v4467_v7 = vadd.f32 %v4466_v39, %v4465_v27  ;;  %v4516_v16 = vrot.slane %v4515_v38, 4  ;;  %v4120_v1 = vrot.slane %v4119_v10, 1 }
 0x377   : > { %v4268_v21 = vrot.slane %v4267_v45, 2  ;;  %v4393_v35 = vrot.slane %v13384_v55, 2  ;;  %v4418_v17 = vrot.slane %v4417_v60, 2  ;;  %v4443_v31 = vrot.slane %v13386_v49, 2 }
 0x378   : > { %v4492_v30 = vadd.f32 %v4491_v28, %v4490_v40  ;;  %v4468_v15 = vrot.slane %v4467_v7, 2  ;;  %v13390_v50 = vadd.f32 %v4516_v16, %v4515_v38  ;;  %v4121_v24 = vadd.f32 %v4120_v1, %v4119_v10  ;;  %v15647_v28 = vld [vmem:[#allocation125_spill] sm:$0xff] }
 0x379   : > { %v4269_v48 = vadd.f32 %v4268_v21, %v4267_v45  ;;  %v4419_v46 = vadd.f32 %v4418_v17, %v4417_v60  ;;  %v4554_v44 = vmul.f32 %v15623_v34, %v12997_v26  ;;  %v4561_v53 = vmul.f32 %v15643_v11, %v13189_v58 }
 0x37a   : > { %v4493_v12 = vrot.slane %v4492_v30, 2  ;;  %v4518_v8 = vrot.slane %v13390_v50, 2  ;;  %v4568_v27 = vmul.f32 %v15644_v56, %v3971_v36  ;;  %v4575_v20 = vmul.f32 %v15645_v33, %v4121_v24 }
 0x37b   : > { %v4270_v19 = vrot.slane %v4269_v48, 1  ;;  %v4420_v0 = vrot.slane %v4419_v46, 1  ;;  %v4595_v45 = vpack.c.bf16 %v13125_v13, %v13125_v13  ;;  %v4601_v40 = vpack.c.bf16 %v15646_v51, %v15646_v51 }
 0x37c   : > { %v13399_v2 = vadd.f32 %v4493_v12, %v4492_v30  ;;  %v4607_v39 = vpack.c.bf16 %v4554_v44, %v4554_v44  ;;  %v4613_v38 = vpack.c.bf16 %v4561_v53, %v4561_v53  ;;  %v4619_v58 = vpack.c.bf16 %v4568_v27, %v4568_v27  ;;  %v15648_v30 = vld [vmem:[#allocation126_spill] sm:$0xff] }
 0x37d   : > { %v4271_v26 = vadd.f32 %v4270_v19, %v4269_v48  ;;  %v4421_v10 = vadd.f32 %v4420_v0, %v4419_v46  ;;  %v4625_v60 = vpack.c.bf16 %v4575_v20, %v4575_v20  ;;  %v5011_v36 = vunpack.c.l.b16 %v4595_v45 }
 0x37e   : > { %v4495_v9 = vrot.slane %v13399_v2, 1  ;;  %v5017_v1 = vunpack.c.l.b16 %v4601_v40  ;;  %v5023_v21 = vunpack.c.l.b16 %v4607_v39  ;;  %v5029_v17 = vunpack.c.l.b16 %v4613_v38 }
 0x37f   : > { %v4582_v16 = vmul.f32 %v15647_v28, %v4271_v26  ;;  %v4589_v24 = vmul.f32 %v15648_v30, %v4421_v10  ;;  %v5035_v13 = vunpack.c.l.b16 %v4619_v58  ;;  %v5041_v12 = vunpack.c.l.b16 %v4625_v60 }
 0x380   : > { %v5079_v44 = vrot.slane %v5017_v1, 7  ;;  %v5081_v53 = vrot.slane %v5023_v21, 6  ;;  %v5083_v19 = vrot.slane %v5029_v17, 5  ;;  %v15649_v45 = vrot.slane %v13221_v4, 1  ;;  %v15650_v1 = vld [vmem:[#allocation72_spill] sm:$0xff] }
 0x381   : > { %v4631_v51 = vpack.c.bf16 %v4582_v16, %v4582_v16  ;;  %v4637_v48 = vpack.c.bf16 %v4589_v24, %v4589_v24  ;;  %v5085_v20 = vrot.slane %v5035_v13, 4  ;;  %v5087_v0 = vrot.slane %v5041_v12, 3  ;;  %v15651_v12 = vld [vmem:[#allocation74_spill] sm:$0xff] }
 0x382   : > { %v4021_v40 = vadd.f32 %v15649_v45, %v13221_v4  ;;  %v5080_v26 = vsel %vm5059_vm2, %v5079_v44, %v5011_v36  ;;  %v4169_v38 = vadd.f32 %v4168_v63, %v13308_v42  ;;  %v4318_v58 = vrot.slane %v13362_v54, 2 }
 0x383   : > { %v5047_v46 = vunpack.c.l.b16 %v4631_v51  ;;  %v5053_v27 = vunpack.c.l.b16 %v4637_v48  ;;  %v5082_v10 = vsel %vm5062_vm3, %v5081_v53, %v5080_v26  ;;  %v4469_v16 = vadd.f32 %v4468_v15, %v4467_v7 }
 0x384   : > { %v4556_v21 = vmul.f32 %v15623_v34, %v15650_v1  ;;  %v5084_v17 = vsel %vm5065_vm4, %v5083_v19, %v5082_v10  ;;  %v4170_v24 = vrot.slane %v4169_v38, 1  ;;  %v4319_v4 = vadd.f32 %v4318_v58, %v13362_v54 }
 0x385   : > { %v5089_v39 = vrot.slane %v5047_v46, 2  ;;  %v5091_v60 = vrot.slane %v5053_v27, 1  ;;  %v4563_v36 = vmul.f32 %v15643_v11, %v13193_v5  ;;  %v5086_v13 = vsel %vm5068_vm5, %v5085_v20, %v5084_v17  ;;  %v15652_v46 = vld [vmem:[#allocation69_spill] sm:$0xff] }
 0x386   : > { %v4470_v42 = vrot.slane %v4469_v16, 1  ;;  %v4570_v63 = vmul.f32 %v15644_v56, %v4021_v40  ;;  %v4597_v51 = vpack.c.bf16 %v15651_v12, %v15651_v12  ;;  %v5088_v7 = vsel %vm5071_vm6, %v5087_v0, %v5086_v13 }
 0x387   : > { %v4171_v15 = vadd.f32 %v4170_v24, %v4169_v38  ;;  %v4320_v48 = vrot.slane %v4319_v4, 1  ;;  %v4603_v44 = vpack.c.bf16 %v15652_v46, %v15652_v46  ;;  %v5090_v54 = vsel %vm5074_vm7, %v5089_v39, %v5088_v7 }
 0x388   : > { %v4471_v53 = vadd.f32 %v4470_v42, %v4469_v16  ;;  %v4609_v19 = vpack.c.bf16 %v4556_v21, %v4556_v21  ;;  %v4615_v5 = vpack.c.bf16 %v4563_v36, %v4563_v36  ;;  %v5092_v27 = vsel %vm5077_vm8, %v5091_v60, %v5090_v54 }
 0x389   : > { %v4321_v20 = vadd.f32 %v4320_v48, %v4319_v4  ;;  %v4577_v45 = vmul.f32 %v15645_v33, %v4171_v15  ;;  %v4621_v40 = vpack.c.bf16 %v4570_v63, %v4570_v63  ;;  %v13433_v26 = vpack.c.b16 %v5092_v27, %v5092_v27 }
 0x38a   : > { %v4591_v0 = vmul.f32 %v15648_v30, %v4471_v53  ;;  %v5013_v38 = vunpack.c.l.b16 %v4597_v51  ;;  %v5019_v58 = vunpack.c.l.b16 %v4603_v44  ;;  %v5025_v17 = vunpack.c.l.b16 %v4609_v19 }
 0x38b   : > { %v4584_v10 = vmul.f32 %v15647_v28, %v4321_v20  ;;  %v4627_v1 = vpack.c.bf16 %v4577_v45, %v4577_v45  ;;  %v5031_v39 = vunpack.c.l.b16 %v4615_v5  ;;  %6633 = vmatprep.mubr.bf16.mxu0 %v13433_v26  ;;  %v5037_v21 = vunpack.c.l.b16 %v4621_v40 }
 0x38c   : > { %v4639_v16 = vpack.c.bf16 %v4591_v0, %v4591_v0  ;;  %v5107_v60 = vrot.slane %v5019_v58, 7  ;;  %v15653_v24 = vrot.slane %v13213_v62, 1  ;;  %v5109_v42 = vrot.slane %v5025_v17, 6 }
 0x38d   : > { %v4633_v36 = vpack.c.bf16 %v4584_v10, %v4584_v10  ;;  %v5043_v13 = vunpack.c.l.b16 %v4627_v1  ;;  %v5111_v63 = vrot.slane %v5031_v39, 5  ;;  %v5113_v7 = vrot.slane %v5037_v21, 4  ;;  %v15656_v21 = vld [vmem:[#allocation66_spill] sm:$0xff] }
 0x38e   : > { %v3946_v4 = vadd.f32 %v15653_v24, %v13213_v62  ;;  %v5055_v12 = vunpack.c.l.b16 %v4639_v16  ;;  %v5108_v51 = vsel %vm5059_vm2, %v5107_v60, %v5013_v38  ;;  %v4094_v15 = vadd.f32 %v4093_v43, %v13302_v25  ;;  %v15654_v25 = vld [vmem:[#allocation71_spill] sm:$0xff] }
 0x38f   : > { %v5049_v48 = vunpack.c.l.b16 %v4633_v36  ;;  %v5110_v46 = vsel %vm5062_vm3, %v5109_v42, %v5108_v51  ;;  %v5115_v44 = vrot.slane %v5043_v13, 3  ;;  %v4243_v54 = vrot.slane %v13358_v3, 2 }
 0x390   : > { %v5112_v62 = vsel %vm5065_vm4, %v5111_v63, %v5110_v46  ;;  %v5119_v53 = vrot.slane %v5055_v12, 1  ;;  %v4095_v19 = vrot.slane %v4094_v15, 1  ;;  %v4394_v5 = vadd.f32 %v4393_v35, %v13384_v55  ;;  %v15655_v35 = vld [vmem:[#allocation73_spill] sm:$0xff] }
 0x391   : > { %v5114_v27 = vsel %vm5068_vm5, %v5113_v7, %v5112_v62  ;;  %v5117_v20 = vrot.slane %v5049_v48, 2  ;;  %v4244_v45 = vadd.f32 %v4243_v54, %v13358_v3  ;;  %v4553_v43 = vmul.f32 %v15623_v34, %v15654_v25 }
 0x392   : > { %v5116_v40 = vsel %vm5071_vm6, %v5115_v44, %v5114_v27  ;;  %v4096_v0 = vadd.f32 %v4095_v19, %v4094_v15  ;;  %v4395_v38 = vrot.slane %v4394_v5, 1  ;;  %v4560_v58 = vmul.f32 %v15643_v11, %v13187_v18 }
 0x393   : > { %v5118_v10 = vsel %vm5074_vm7, %v5117_v20, %v5116_v40  ;;  %v4245_v1 = vrot.slane %v4244_v45, 1  ;;  %v4567_v55 = vmul.f32 %v15644_v56, %v3946_v4  ;;  %v4594_v17 = vpack.c.bf16 %v15655_v35, %v15655_v35  ;;  %v15658_v35 = vld [vmem:[#allocation84_spill] sm:$0xff] }
 0x394   : > { %v5120_v3 = vsel %vm5077_vm8, %v5119_v53, %v5118_v10  ;;  %v4396_v39 = vadd.f32 %v4395_v38, %v4394_v5  ;;  %v4574_v16 = vmul.f32 %v15645_v33, %v4096_v0  ;;  %v4600_v60 = vpack.c.bf16 %v15656_v21, %v15656_v21 }
 0x395   : > { %v13466_v24 = vpack.c.b16 %v5120_v3, %v5120_v3  ;;  %v4246_v36 = vadd.f32 %v4245_v1, %v4244_v45  ;;  %v4606_v18 = vpack.c.bf16 %v4553_v43, %v4553_v43  ;;  %v4612_v13 = vpack.c.bf16 %v4560_v58, %v4560_v58 }
 0x396   : > { %v4588_v42 = vmul.f32 %v15648_v30, %v4396_v39  ;;  %v4618_v63 = vpack.c.bf16 %v4567_v55, %v4567_v55  ;;  %v4624_v4 = vpack.c.bf16 %v4574_v16, %v4574_v16  ;;  %v5010_v12 = vunpack.c.l.b16 %v4594_v17 }
 0x397   : > { %6674 = vmatprep.mubr.bf16.mxu1 %v13466_v24  ;;  %v4581_v51 = vmul.f32 %v15647_v28, %v4246_v36  ;;  %v5016_v7 = vunpack.c.l.b16 %v4600_v60  ;;  %v5022_v15 = vunpack.c.l.b16 %v4606_v18  ;;  %v5028_v48 = vunpack.c.l.b16 %v4612_v13  ;;  %v15659_v13 = vld [vmem:[#allocation27_spill] sm:$0xff] }
 0x398   : > { %v4636_v46 = vpack.c.bf16 %v4588_v42, %v4588_v42  ;;  %v5034_v44 = vunpack.c.l.b16 %v4618_v63  ;;  %v5040_v54 = vunpack.c.l.b16 %v4624_v4  ;;  %v15657_v62 = vrot.slane %v13218_v22, 1  ;;  %v15660_v4 = vld [vmem:[#allocation68_spill] sm:$0xff] }
 0x399   : > { %v4630_v19 = vpack.c.bf16 %v4581_v51, %v4581_v51  ;;  %v5058_v5 = vrot.slane %v5016_v7, 7  ;;  %v5061_v27 = vrot.slane %v5022_v15, 6  ;;  %v5064_v20 = vrot.slane %v5028_v48, 5 }
 0x39a   : > { %v3996_v53 = vadd.f32 %v15657_v62, %v13218_v22  ;;  %v5052_v45 = vunpack.c.l.b16 %v4636_v46  ;;  %v5067_v25 = vrot.slane %v5034_v44, 4  ;;  %v5070_v43 = vrot.slane %v5040_v54, 3 }
 0x39b   : > { %v4144_v40 = vadd.f32 %v4143_v41, %v13306_v37  ;;  %v5046_v0 = vunpack.c.l.b16 %v4630_v19  ;;  %v5060_v38 = vsel %vm5059_vm2, %v5058_v5, %v5010_v12  ;;  %v4293_v58 = vrot.slane %v13360_v14, 2  ;;  %v8181_v19 = vld [vmem:[%s14457_s3 + $0x724] ss:$24 sps:$4 sm:$0xff]  }
 0x39c   : > { %v4444_v22 = vadd.f32 %v4443_v31, %v13386_v49  ;;  %v5063_v10 = vsel %vm5062_vm3, %v5061_v27, %v5060_v38  ;;  %v5076_v1 = vrot.slane %v5052_v45, 1  ;;  %v4555_v17 = vmul.f32 %v15623_v34, %v15658_v35 }
 0x39d   : > { %v4145_v55 = vrot.slane %v4144_v40, 1  ;;  %v5066_v3 = vsel %vm5065_vm4, %v5064_v20, %v5063_v10  ;;  %v5073_v39 = vrot.slane %v5046_v0, 2  ;;  %v4294_v37 = vadd.f32 %v4293_v58, %v13360_v14 }
 0x39e   : > { %v4445_v41 = vrot.slane %v4444_v22, 1  ;;  %v5069_v16 = vsel %vm5068_vm5, %v5067_v25, %v5066_v3  ;;  %v4562_v60 = vmul.f32 %v15643_v11, %v13191_v59  ;;  %v4569_v49 = vmul.f32 %v15644_v56, %v3996_v53  ;;  %v8173_v59 = vld [vmem:[%s14457_s3 + $0x750] ss:$24 sps:$4 sm:$0xff]  }
 0x39f   : > { %v4146_v21 = vadd.f32 %v4145_v55, %v4144_v40  ;;  %v5072_v31 = vsel %vm5071_vm6, %v5070_v43, %v5069_v16  ;;  %v4295_v36 = vrot.slane %v4294_v37, 1  ;;  %v4596_v42 = vpack.c.bf16 %v15659_v13, %v15659_v13  ;;  %v8179_v55 = vld [vmem:[%s14457_s3 + $0x720] ss:$24 sps:$4 sm:$0xff]  }
 0x3a0   : > { %v4446_v18 = vadd.f32 %v4445_v41, %v4444_v22  ;;  %v5075_v63 = vsel %vm5074_vm7, %v5073_v39, %v5072_v31  ;;  %v4602_v12 = vpack.c.bf16 %v15660_v4, %v15660_v4  ;;  %v4608_v51 = vpack.c.bf16 %v4555_v17, %v4555_v17  ;;  %v8185_v4 = vld [vmem:[%s14457_s3 + $0x6f0] ss:$24 sps:$4 sm:$0xff]  }
 0x3a1   : > { %v4576_v14 = vmul.f32 %v15645_v33, %v4146_v21  ;;  %v5078_v7 = vsel %vm5077_vm8, %v5076_v1, %v5075_v63  ;;  %v4296_v15 = vadd.f32 %v4295_v36, %v4294_v37  ;;  %v4614_v46 = vpack.c.bf16 %v4562_v60, %v4562_v60 }
 0x3a2   : > { %v4590_v48 = vmul.f32 %v15648_v30, %v4446_v18  ;;  %v13503_v44 = vpack.c.b16 %v5078_v7, %v5078_v7  ;;  %v4620_v54 = vpack.c.bf16 %v4569_v49, %v4569_v49  ;;  %v5012_v53 = vunpack.c.l.b16 %v4596_v42  ;;  %v15663_v18 = vld [vmem:[#allocation23_spill] sm:$0xff] }
 0x3a3   : > { %v4626_v62 = vpack.c.bf16 %v4576_v14, %v4576_v14  ;;  %v4583_v5 = vmul.f32 %v15647_v28, %v4296_v15  ;;  %v5018_v20 = vunpack.c.l.b16 %v4602_v12  ;;  %v5024_v45 = vunpack.c.l.b16 %v4608_v51  ;;  %v15665_v15 = vld [vmem:[#allocation6_spill] sm:$0xff] }
 0x3a4   : > { %v4638_v27 = vpack.c.bf16 %v4590_v48, %v4590_v48  ;;  %6634 = vmatmul.mubr.bf16.vlgmr.msra.gmra.mxu0 %v13503_v44  ;;  %v5030_v25 = vunpack.c.l.b16 %v4614_v46  ;;  %v5036_v43 = vunpack.c.l.b16 %v4620_v54  ;;  %v15661_v0 = vrot.slane %v13224_v23, 1 }
 0x3a5   : > { %v5042_v40 = vunpack.c.l.b16 %v4626_v62  ;;  %v4632_v58 = vpack.c.bf16 %v4583_v5, %v4583_v5  ;;  %v5093_v10 = vrot.slane %v5018_v20, 7  ;;  %v5095_v1 = vrot.slane %v5024_v45, 6  ;;  %6684 = vmatpush1.bf16.msra.mxu0 %v8173_v59 }
 0x3a6   : > { %v4071_v38 = vadd.f32 %v15661_v0, %v13224_v23  ;;  %v5054_v22 = vunpack.c.l.b16 %v4638_v27  ;;  %v5097_v35 = vrot.slane %v5030_v25, 5  ;;  %v5099_v17 = vrot.slane %v5036_v43, 4  ;;  %6685 = vmatprep.subr.bf16.mxu0 %v8181_v19  ;;  %v8187_v23 = vld [vmem:[%s14457_s3 + $0x6f4] ss:$24 sps:$4 sm:$0xff]   ;;  %v8176_v19 = vld [vmem:[%s14457_s3 + $0x158] ss:$24 sps:$4 sm:$0xff]  }
 0x3a7   : > { %v5101_v3 = vrot.slane %v5042_v40, 3  ;;  %v15662_v39 = vrot.slane %v13312_v47, 2  ;;  %v5048_v41 = vunpack.c.l.b16 %v4632_v58  ;;  %v5094_v16 = vsel %vm5059_vm2, %v5093_v10, %v5012_v53  ;;  %v8191_v58 = vld [vmem:[%s14457_s3 + $0x6c0] ss:$24 sps:$4 sm:$0xff]  }
 0x3a8   : > { %v5105_v21 = vrot.slane %v5054_v22, 1  ;;  %v4368_v60 = vrot.slane %v13364_v29, 2  ;;  %v5096_v49 = vsel %vm5062_vm3, %v5095_v1, %v5094_v16  ;;  %v4519_v36 = vadd.f32 %v4518_v8, %v13390_v50 }
 0x3a9   : > { %v4219_v37 = vadd.f32 %v15662_v39, %v13312_v47  ;;  %v4558_v47 = vmul.f32 %v15623_v34, %v15663_v18  ;;  %v5098_v13 = vsel %vm5065_vm4, %v5097_v35, %v5096_v49  ;;  %v5103_v42 = vrot.slane %v5048_v41, 2  ;;  %6686 = vmatpush1.bf16.msra.mxu0 %v8179_v55  ;;  %v8193_v34 = vld [vmem:[%s14457_s3 + $0x6c4] ss:$24 sps:$4 sm:$0xff]   ;;  %v8199_v35 = vld [vmem:[%s14457_s3 + $0x694] ss:$24 sps:$4 sm:$0xff]  }
 0x3aa   : > { %v4369_v63 = vadd.f32 %v4368_v60, %v13364_v29  ;;  %v4565_v14 = vmul.f32 %v15643_v11, %v13199_v52  ;;  %v5100_v12 = vsel %vm5068_vm5, %v5099_v17, %v5098_v13  ;;  %v4520_v50 = vrot.slane %v4519_v36, 1  ;;  %6687 = vmatprep.subr.bf16.mxu0 %v8187_v23  ;;  %v15664_v52 = vld [vmem:[#allocation85_spill] sm:$0xff] }
 0x3ab   : > { %v4220_v31 = vrot.slane %v4219_v37, 1  ;;  %v4572_v8 = vmul.f32 %v15644_v56, %v4071_v38  ;;  %v5102_v29 = vsel %vm5071_vm6, %v5101_v3, %v5100_v12  ;;  %v4599_v7 = vpack.c.bf16 %v15664_v52, %v15664_v52  ;;  %v8184_v38 = vld [vmem:[%s14457_s3 + $0x12c] ss:$24 sps:$4 sm:$0xff]   ;;  %v8188_v52 = vld [vmem:[%s14457_s3 + $0xf8] ss:$24 sps:$4 sm:$0xff]  }
 0x3ac   : > { %v4370_v59 = vrot.slane %v4369_v63, 1  ;;  %v4605_v48 = vpack.c.bf16 %v15665_v15, %v15665_v15  ;;  %v5104_v46 = vsel %vm5074_vm7, %v5103_v42, %v5102_v29  ;;  %v4521_v54 = vadd.f32 %v4520_v50, %v4519_v36 }
 0x3ad   : > { %v4221_v51 = vadd.f32 %v4220_v31, %v4219_v37  ;;  %v4611_v53 = vpack.c.bf16 %v4558_v47, %v4558_v47  ;;  %v5106_v5 = vsel %vm5077_vm8, %v5105_v21, %v5104_v46  ;;  %v4617_v20 = vpack.c.bf16 %v4565_v14, %v4565_v14  ;;  %6688 = vmatpush1.bf16.msra.mxu0 %v8185_v4  ;;  %v8182_v37 = vld [vmem:[%s14457_s3 + $0x128] ss:$24 sps:$4 sm:$0xff]   ;;  %v8190_v31 = vld [vmem:[%s14457_s3 + $0xfc] ss:$24 sps:$4 sm:$0xff]  }
 0x3ae   : > { %v4371_v27 = vadd.f32 %v4370_v59, %v4369_v63  ;;  %v4623_v45 = vpack.c.bf16 %v4572_v8, %v4572_v8  ;;  %v13553_v25 = vpack.c.b16 %v5106_v5, %v5106_v5  ;;  %v4593_v43 = vmul.f32 %v15648_v30, %v4521_v54  ;;  %6689 = vmatprep.subr.bf16.mxu0 %v8193_v34  ;;  %v8205_v14 = vld [vmem:[%s14457_s3 + $0x664] ss:$24 sps:$4 sm:$0xff]   ;;  %v15668_v5 = vld [vmem:[#allocation75_spill] sm:$0xff] }
 0x3af   : > { %v4579_v62 = vmul.f32 %v15645_v33, %v4221_v51  ;;  %v5015_v0 = vunpack.c.l.b16 %v4599_v7  ;;  %v5021_v10 = vunpack.c.l.b16 %v4605_v48  ;;  %v5027_v1 = vunpack.c.l.b16 %v4611_v53  ;;  %v15667_v7 = vld [vmem:[#allocation24_spill] sm:$0xff] }
 0x3b0   : > { %v4586_v22 = vmul.f32 %v15647_v28, %v4371_v27  ;;  %v5033_v55 = vunpack.c.l.b16 %v4617_v20  ;;  %6675 = vmatmul.mubr.bf16.vlgmr.msra.gmra.mxu1 %v13553_v25  ;;  %v4641_v17 = vpack.c.bf16 %v4593_v43, %v4593_v43  ;;  %v5039_v3 = vunpack.c.l.b16 %v4623_v45  ;;  %v15669_v27 = vld [vmem:[#allocation70_spill] sm:$0xff] }
 0x3b1   : > { %v4629_v40 = vpack.c.bf16 %v4579_v62, %v4579_v62  ;;  %v15666_v23 = vrot.slane %v13322_v32, 1  ;;  %6725 = vmatpush1.bf16.msra.mxu1 %v8176_v19  ;;  %v5135_v21 = vrot.slane %v5021_v10, 7  ;;  %v5137_v60 = vrot.slane %v5027_v1, 6  ;;  %6756 = vmatprep.mubr.bf16.mxu1 %v13433_v26  ;;  %v8194_v43 = vld [vmem:[%s14457_s3 + $0xc8] ss:$24 sps:$4 sm:$0xff]  }
 0x3b2   : > { %v4635_v16 = vpack.c.bf16 %v4586_v22, %v4586_v22  ;;  %v5139_v49 = vrot.slane %v5033_v55, 5  ;;  %v5057_v36 = vunpack.c.l.b16 %v4641_v17  ;;  %v5141_v18 = vrot.slane %v5039_v3, 4  ;;  %6726 = vmatprep.subr.bf16.mxu1 %v8184_v38  ;;  %6690 = vmatpush1.bf16.msra.mxu0 %v8191_v58  ;;  %v8202_v22 = vld [vmem:[%s14457_s3 + $0x9c] ss:$24 sps:$4 sm:$0xff]   ;;  %v8209_v10 = vld [vmem:[%s14457_s3 + $0x630] ss:$24 sps:$4 sm:$0xff]  }
 0x3b3   : > { %v5045_v39 = vunpack.c.l.b16 %v4629_v40  ;;  %v4196_v41 = vadd.f32 %v15666_v23, %v13322_v32  ;;  %v8197_v32 = vld [vmem:[%s14457_s3 + $0x690] ss:$24 sps:$4 sm:$0xff]   ;;  %v4345_v13 = vrot.slane %v13372_v6, 1  ;;  %v5136_v63 = vsel %vm5059_vm2, %v5135_v21, %v5015_v0  ;;  %6691 = vmatprep.subr.bf16.mxu0 %v8199_v35  ;;  %v8217_v17 = vld [vmem:[%s14457_s3 + $0x604] ss:$24 sps:$4 sm:$0xff]  }
 0x3b4   : > { %v5051_v42 = vunpack.c.l.b16 %v4635_v16  ;;  %v4496_v4 = vadd.f32 %v4495_v9, %v13399_v2  ;;  %v4564_v12 = vmul.f32 %v15643_v11, %v13197_v61  ;;  %v5138_v51 = vsel %vm5062_vm3, %v5137_v60, %v5136_v63  ;;  %v8200_v16 = vld [vmem:[%s14457_s3 + $0x98] ss:$24 sps:$4 sm:$0xff]   ;;  %v8208_v60 = vld [vmem:[%s14457_s3 + $0x6c] ss:$24 sps:$4 sm:$0xff]  }
 0x3b5   : > { %v5143_v47 = vrot.slane %v5045_v39, 3  ;;  %v5147_v50 = vrot.slane %v5057_v36, 1  ;;  %v4346_v8 = vadd.f32 %v4345_v13, %v13372_v6  ;;  %v4571_v34 = vmul.f32 %v15644_v56, %v13241_v57  ;;  %6727 = vmatpush1.bf16.msra.mxu1 %v8182_v37  ;;  %v8196_v6 = vld [vmem:[%s14457_s3 + $0xcc] ss:$24 sps:$4 sm:$0xff]   ;;  %v8203_v57 = vld [vmem:[%s14457_s3 + $0x660] ss:$24 sps:$4 sm:$0xff]  }
 0x3b6   : > { %v5140_v29 = vsel %vm5065_vm4, %v5139_v49, %v5138_v51  ;;  %v5145_v59 = vrot.slane %v5051_v42, 2  ;;  %v4578_v2 = vmul.f32 %v15645_v33, %v4196_v41  ;;  %v4592_v61 = vmul.f32 %v15648_v30, %v4496_v4  ;;  %6728 = vmatprep.subr.bf16.mxu1 %v8190_v31  ;;  %6692 = vmatpush1.bf16.msra.mxu0 %v8197_v32  ;;  %v8211_v30 = vld [vmem:[%s14457_s3 + $0x634] ss:$24 sps:$4 sm:$0xff]   ;;  %v8215_v49 = vld [vmem:[%s14457_s3 + $0x600] ss:$24 sps:$4 sm:$0xff]  }
 0x3b7   : > { %v5142_v11 = vsel %vm5068_vm5, %v5141_v18, %v5140_v29  ;;  %v4585_v56 = vmul.f32 %v15647_v28, %v4346_v8  ;;  %v4616_v9 = vpack.c.bf16 %v4564_v12, %v4564_v12  ;;  %v5123_v15 = vrot.slane %v15667_v7, 6  ;;  %6693 = vmatprep.subr.bf16.mxu0 %v8205_v14  ;;  %v8223_v36 = vld [vmem:[%s14457_s3 + $0x8d4] ss:$24 sps:$4 sm:$0xff]   ;;  %v8206_v32 = vld [vmem:[%s14457_s3 + $0x68] ss:$24 sps:$4 sm:$0xff]  }
 0x3b8   : > { %v5144_v33 = vsel %vm5071_vm6, %v5143_v47, %v5142_v11  ;;  %v4622_v48 = vpack.c.bf16 %v4571_v34, %v4571_v34  ;;  %v4628_v46 = vpack.c.bf16 %v4578_v2, %v4578_v2  ;;  %v4640_v54 = vpack.c.bf16 %v4592_v61, %v4592_v61  ;;  %v8214_v13 = vld [vmem:[%s14457_s3 + $0x3c] ss:$24 sps:$4 sm:$0xff]   ;;  %v8221_v42 = vld [vmem:[%s14457_s3 + $0x8d0] ss:$24 sps:$4 sm:$0xff]   ;;  %v8220_v4 = vld [vmem:[%s14457_s3 + $0xc] ss:$24 sps:$4 sm:$0xff]  }
 0x3b9   : > { %v5146_v62 = vsel %vm5074_vm7, %v5145_v59, %v5144_v33  ;;  %v4634_v53 = vpack.c.bf16 %v4585_v56, %v4585_v56  ;;  %v5032_v19 = vunpack.c.l.b16 %v4616_v9  ;;  %v15670_v28 = vrot.slane %v15669_v27, 7  ;;  %6729 = vmatpush1.bf16.msra.mxu1 %v8188_v52  ;;  %v8229_v63 = vld [vmem:[%s14457_s3 + $0x8a4] ss:$24 sps:$4 sm:$0xff]   ;;  %v8212_v14 = vld [vmem:[%s14457_s3 + $0x38] ss:$24 sps:$4 sm:$0xff]  }
 0x3ba   : > { %v5148_v45 = vsel %vm5077_vm8, %v5147_v50, %v5146_v62  ;;  %v5038_v40 = vunpack.c.l.b16 %v4622_v48  ;;  %v5044_v0 = vunpack.c.l.b16 %v4628_v46  ;;  %v5056_v38 = vunpack.c.l.b16 %v4640_v54  ;;  %6730 = vmatprep.subr.bf16.mxu1 %v8196_v6  ;;  %6694 = vmatpush1.bf16.msra.mxu0 %v8203_v57  ;;  %v8227_v12 = vld [vmem:[%s14457_s3 + $0x8a0] ss:$24 sps:$4 sm:$0xff]   ;;  %v8235_v51 = vld [vmem:[%s14457_s3 + $0x874] ss:$24 sps:$4 sm:$0xff]   ;;  %v8233_v34 = vld [vmem:[%s14457_s3 + $0x870] ss:$24 sps:$4 sm:$0xff]  }
 0x3bb   : > { %v5122_v20 = vsel %vm5059_vm2, %v15670_v28, %v15668_v5  ;;  %v13622_v58 = vpack.c.b16 %v5148_v45, %v5148_v45  ;;  %v5050_v1 = vunpack.c.l.b16 %v4634_v53  ;;  %v5125_v35 = vrot.slane %v5032_v19, 5  ;;  %6695 = vmatprep.subr.bf16.mxu0 %v8211_v30  ;;  %v8218_v50 = vld [vmem:[%s14457_s3 + $0x8] ss:$24 sps:$4 sm:$0xff]   ;;  %v8226_v8 = vld [vmem:[%s14457_s3 + $0x2dc] ss:$24 sps:$4 sm:$0xff]  }
 0x3bc   : > { %v5124_v55 = vsel %vm5062_vm3, %v5123_v15, %v5122_v20  ;;  %v5127_v3 = vrot.slane %v5038_v40, 4  ;;  %v5129_v39 = vrot.slane %v5044_v0, 3  ;;  %v5133_v41 = vrot.slane %v5056_v38, 1  ;;  %v8241_v29 = vld [vmem:[%s14457_s3 + $0x844] ss:$24 sps:$4 sm:$0xff]  }
 0x3bd   : > { %6715 = vmatprep.mubr.bf16.mxu0 %v13622_v58  ;;  %v5126_v37 = vsel %vm5065_vm4, %v5125_v35, %v5124_v55  ;;  %v5131_v23 = vrot.slane %v5050_v1, 2  ;;  %6731 = vmatpush1.bf16.msra.mxu1 %v8194_v43  ;;  %v8224_v59 = vld [vmem:[%s14457_s3 + $0x2d8] ss:$24 sps:$4 sm:$0xff]   ;;  %v8232_v52 = vld [vmem:[%s14457_s3 + $0x2ac] ss:$24 sps:$4 sm:$0xff]  }
 0x3be   : > { %v5128_v21 = vsel %vm5068_vm5, %v5127_v3, %v5126_v37  ;;  %6732 = vmatprep.subr.bf16.mxu1 %v8202_v22  ;;  %6696 = vmatpush1.bf16.msra.mxu0 %v8209_v10  ;;  %v8239_v2 = vld [vmem:[%s14457_s3 + $0x840] ss:$24 sps:$4 sm:$0xff]   ;;  %v8247_v61 = vld [vmem:[%s14457_s3 + $0x814] ss:$24 sps:$4 sm:$0xff]   ;;  %v8245_v57 = vld [vmem:[%s14457_s3 + $0x810] ss:$24 sps:$4 sm:$0xff]  }
 0x3bf   : > { %v5130_v31 = vsel %vm5071_vm6, %v5129_v39, %v5128_v21  ;;  %6697 = vmatprep.subr.bf16.mxu0 %v8217_v17  ;;  %v8230_v11 = vld [vmem:[%s14457_s3 + $0x2a8] ss:$24 sps:$4 sm:$0xff]   ;;  %v8238_v6 = vld [vmem:[%s14457_s3 + $0x27c] ss:$24 sps:$4 sm:$0xff]   ;;  %v8236_v9 = vld [vmem:[%s14457_s3 + $0x278] ss:$24 sps:$4 sm:$0xff]  }
 0x3c0   : > { %v5132_v18 = vsel %vm5074_vm7, %v5131_v23, %v5130_v31  ;;  %v8253_v56 = vld [vmem:[%s14457_s3 + $0x7e4] ss:$24 sps:$4 sm:$0xff]   ;;  %v8251_v15 = vld [vmem:[%s14457_s3 + $0x7e0] ss:$24 sps:$4 sm:$0xff]   ;;  %v8259_v33 = vld [vmem:[%s14457_s3 + $0x7b4] ss:$24 sps:$4 sm:$0xff]  }
 0x3c1   : > { %v13652_v47 = vsel %vm5077_vm8, %v5133_v41, %v5132_v18  ;;  %6733 = vmatpush1.bf16.msra.mxu1 %v8200_v16  ;;  %v8244_v7 = vld [vmem:[%s14457_s3 + $0x24c] ss:$24 sps:$4 sm:$0xff]   ;;  %v8242_v30 = vld [vmem:[%s14457_s3 + $0x248] ss:$24 sps:$4 sm:$0xff]   ;;  %v8250_v48 = vld [vmem:[%s14457_s3 + $0x21c] ss:$24 sps:$4 sm:$0xff]  }
 0x3c2   : > { %6734 = vmatprep.subr.bf16.mxu1 %v8208_v60  ;;  %6698 = vmatpush1.bf16.msra.mxu0 %v8215_v49  ;;  %v8257_v46 = vld [vmem:[%s14457_s3 + $0x7b0] ss:$24 sps:$4 sm:$0xff]   ;;  %v8265_v54 = vld [vmem:[%s14457_s3 + $0x784] ss:$24 sps:$4 sm:$0xff]   ;;  %v8263_v19 = vld [vmem:[%s14457_s3 + $0x780] ss:$24 sps:$4 sm:$0xff]   ;;  %v13761_v45 = vpack.c.b16 %v13652_v47, %v13652_v47 }
 0x3c3   : > { %6699 = vmatprep.subr.bf16.mxu0 %v8223_v36  ;;  %v8248_v62 = vld [vmem:[%s14457_s3 + $0x218] ss:$24 sps:$4 sm:$0xff]   ;;  %v8256_v53 = vld [vmem:[%s14457_s3 + $0x1ec] ss:$24 sps:$4 sm:$0xff]   ;;  %v8271_v5 = vld [vmem:[%s14457_s3 + $0x45c] ss:$24 sps:$4 sm:$0xff]  }
 0x3c4   : > { %v8254_v27 = vld [vmem:[%s14457_s3 + $0x1e8] ss:$24 sps:$4 sm:$0xff]   ;;  %v8262_v28 = vld [vmem:[%s14457_s3 + $0x1bc] ss:$24 sps:$4 sm:$0xff]   ;;  %v8269_v20 = vld [vmem:[%s14457_s3 + $0x458] ss:$24 sps:$4 sm:$0xff]  }
 0x3c5   : > { %6735 = vmatpush1.bf16.msra.mxu1 %v8206_v32  ;;  %v8277_v43 = vld [vmem:[%s14457_s3 + $0x42c] ss:$24 sps:$4 sm:$0xff]   ;;  %v8260_v40 = vld [vmem:[%s14457_s3 + $0x1b8] ss:$24 sps:$4 sm:$0xff]   ;;  %v8275_v38 = vld [vmem:[%s14457_s3 + $0x428] ss:$24 sps:$4 sm:$0xff]  }
 0x3c6   : > { %6736 = vmatprep.subr.bf16.mxu1 %v8214_v13  ;;  %6700 = vmatpush2.bf16.msra.mxu0 %v8221_v42  ;;  %v8268_v0 = vld [vmem:[%s14457_s3 + $0x18c] ss:$24 sps:$4 sm:$0xff]   ;;  %v8283_v22 = vld [vmem:[%s14457_s3 + $0x3fc] ss:$24 sps:$4 sm:$0xff]   ;;  %v8266_v10 = vld [vmem:[%s14457_s3 + $0x188] ss:$24 sps:$4 sm:$0xff]  }
 0x3c7   : > { %6701 = vmatprep.subr.bf16.mxu0 %v8229_v63  ;;  %v8274_v1 = vld [vmem:[%s14457_s3 + $0x75c] ss:$24 sps:$4 sm:$0xff]   ;;  %v8281_v55 = vld [vmem:[%s14457_s3 + $0x3f8] ss:$24 sps:$4 sm:$0xff]   ;;  %v8289_v35 = vld [vmem:[%s14457_s3 + $0x3cc] ss:$24 sps:$4 sm:$0xff]  }
 0x3c8   : > { %v8272_v17 = vld [vmem:[%s14457_s3 + $0x758] ss:$24 sps:$4 sm:$0xff]   ;;  %v8280_v3 = vld [vmem:[%s14457_s3 + $0x72c] ss:$24 sps:$4 sm:$0xff]   ;;  %v8287_v39 = vld [vmem:[%s14457_s3 + $0x3c8] ss:$24 sps:$4 sm:$0xff]  }
 0x3c9   : > { %6737 = vmatpush1.bf16.msra.mxu1 %v8212_v14  ;;  %v8295_v37 = vld [vmem:[%s14457_s3 + $0x39c] ss:$24 sps:$4 sm:$0xff]   ;;  %v8278_v23 = vld [vmem:[%s14457_s3 + $0x728] ss:$24 sps:$4 sm:$0xff]   ;;  %v8293_v16 = vld [vmem:[%s14457_s3 + $0x398] ss:$24 sps:$4 sm:$0xff]  }
 0x3ca   : > { %6738 = vmatprep.subr.bf16.mxu1 %v8220_v4  ;;  %6702 = vmatpush2.bf16.msra.mxu0 %v8227_v12  ;;  %v8286_v41 = vld [vmem:[%s14457_s3 + $0x6fc] ss:$24 sps:$4 sm:$0xff]   ;;  %v8301_v21 = vld [vmem:[%s14457_s3 + $0x36c] ss:$24 sps:$4 sm:$0xff]   ;;  %v8284_v60 = vld [vmem:[%s14457_s3 + $0x6f8] ss:$24 sps:$4 sm:$0xff]  }
 0x3cb   : > { %6703 = vmatprep.subr.bf16.mxu0 %v8235_v51  ;;  %v8292_v49 = vld [vmem:[%s14457_s3 + $0x6cc] ss:$24 sps:$4 sm:$0xff]   ;;  %v8299_v31 = vld [vmem:[%s14457_s3 + $0x368] ss:$24 sps:$4 sm:$0xff]   ;;  %v8307_v36 = vld [vmem:[%s14457_s3 + $0x33c] ss:$24 sps:$4 sm:$0xff]  }
 0x3cc   : > { %v8290_v18 = vld [vmem:[%s14457_s3 + $0x6c8] ss:$24 sps:$4 sm:$0xff]   ;;  %v8298_v47 = vld [vmem:[%s14457_s3 + $0x69c] ss:$24 sps:$4 sm:$0xff]   ;;  %v8305_v32 = vld [vmem:[%s14457_s3 + $0x338] ss:$24 sps:$4 sm:$0xff]  }
 0x3cd   : > { %6739 = vmatpush1.bf16.msra.mxu1 %v8218_v50  ;;  %v8313_v13 = vld [vmem:[%s14457_s3 + $0x30c] ss:$24 sps:$4 sm:$0xff]   ;;  %v8296_v42 = vld [vmem:[%s14457_s3 + $0x698] ss:$24 sps:$4 sm:$0xff]   ;;  %v8311_v14 = vld [vmem:[%s14457_s3 + $0x308] ss:$24 sps:$4 sm:$0xff]  }
 0x3ce   : > { %6740 = vmatprep.subr.bf16.mxu1 %v8226_v8  ;;  %6704 = vmatpush2.bf16.msra.mxu0 %v8233_v34  ;;  %v8304_v63 = vld [vmem:[%s14457_s3 + $0x66c] ss:$24 sps:$4 sm:$0xff]   ;;  %v8319_v4 = vld [vmem:[%s14457_s3 + $0x5dc] ss:$24 sps:$4 sm:$0xff]   ;;  %v8302_v12 = vld [vmem:[%s14457_s3 + $0x668] ss:$24 sps:$4 sm:$0xff]  }
 0x3cf   : > { %6705 = vmatprep.subr.bf16.mxu0 %v8241_v29  ;;  %v8310_v51 = vld [vmem:[%s14457_s3 + $0x63c] ss:$24 sps:$4 sm:$0xff]   ;;  %v8317_v50 = vld [vmem:[%s14457_s3 + $0x5d8] ss:$24 sps:$4 sm:$0xff]   ;;  %v8325_v8 = vld [vmem:[%s14457_s3 + $0x5ac] ss:$24 sps:$4 sm:$0xff]  }
 0x3d0   : > { %v8308_v34 = vld [vmem:[%s14457_s3 + $0x638] ss:$24 sps:$4 sm:$0xff]   ;;  %v8316_v29 = vld [vmem:[%s14457_s3 + $0x60c] ss:$24 sps:$4 sm:$0xff]  }
 0x3d1   : > { %6741 = vmatpush2.bf16.msra.mxu1 %v8224_v59  ;;  %v8323_v59 = vld [vmem:[%s14457_s3 + $0x5a8] ss:$24 sps:$4 sm:$0xff]  }
 0x3d2   : > { %6742 = vmatprep.subr.bf16.mxu1 %v8232_v52  ;;  %6706 = vmatpush2.bf16.msra.mxu0 %v8239_v2  ;;  %v8331_v52 = vld [vmem:[%s14457_s3 + $0x57c] ss:$24 sps:$4 sm:$0xff]   ;;  %v8314_v2 = vld [vmem:[%s14457_s3 + $0x608] ss:$24 sps:$4 sm:$0xff]  }
 0x3d3   : > { %6707 = vmatprep.subr.bf16.mxu0 %v8247_v61  ;;  %v8322_v61 = vld [vmem:[%s14457_s3 + $0x8dc] ss:$24 sps:$4 sm:$0xff]  }
 0x3d5   : > { %6743 = vmatpush2.bf16.msra.mxu1 %v8230_v11  ;;  %v8329_v11 = vld [vmem:[%s14457_s3 + $0x578] ss:$24 sps:$4 sm:$0xff]  }
 0x3d6   : > { %6744 = vmatprep.subr.bf16.mxu1 %v8238_v6  ;;  %6708 = vmatpush2.bf16.msra.mxu0 %v8245_v57  ;;  %v8337_v6 = vld [vmem:[%s14457_s3 + $0x54c] ss:$24 sps:$4 sm:$0xff]   ;;  %v8320_v57 = vld [vmem:[%s14457_s3 + $0x8d8] ss:$24 sps:$4 sm:$0xff]  }
 0x3d7   : > { %6709 = vmatprep.subr.bf16.mxu0 %v8253_v56  ;;  %v8328_v56 = vld [vmem:[%s14457_s3 + $0x8ac] ss:$24 sps:$4 sm:$0xff]  }
 0x3d9   : > { %6745 = vmatpush2.bf16.msra.mxu1 %v8236_v9  ;;  %v8335_v9 = vld [vmem:[%s14457_s3 + $0x548] ss:$24 sps:$4 sm:$0xff]  }
 0x3da   : > { %6746 = vmatprep.subr.bf16.mxu1 %v8244_v7  ;;  %6710 = vmatpush2.bf16.msra.mxu0 %v8251_v15  ;;  %v8343_v7 = vld [vmem:[%s14457_s3 + $0x51c] ss:$24 sps:$4 sm:$0xff]   ;;  %v8326_v15 = vld [vmem:[%s14457_s3 + $0x8a8] ss:$24 sps:$4 sm:$0xff]  }
 0x3db   : > { %6711 = vmatprep.subr.bf16.mxu0 %v8259_v33  ;;  %v8334_v33 = vld [vmem:[%s14457_s3 + $0x87c] ss:$24 sps:$4 sm:$0xff]  }
 0x3dd   : > { %6747 = vmatpush2.bf16.msra.mxu1 %v8242_v30  ;;  %v8341_v30 = vld [vmem:[%s14457_s3 + $0x518] ss:$24 sps:$4 sm:$0xff]  }
 0x3de   : > { %6748 = vmatprep.subr.bf16.mxu1 %v8250_v48  ;;  %6712 = vmatpush2.bf16.msra.mxu0 %v8257_v46  ;;  %v8349_v48 = vld [vmem:[%s14457_s3 + $0x4ec] ss:$24 sps:$4 sm:$0xff]   ;;  %v8332_v46 = vld [vmem:[%s14457_s3 + $0x878] ss:$24 sps:$4 sm:$0xff]  }
 0x3df   : > { %6713 = vmatprep.subr.bf16.mxu0 %v8265_v54  ;;  %v8340_v54 = vld [vmem:[%s14457_s3 + $0x84c] ss:$24 sps:$4 sm:$0xff]  }
 0x3e1   : > { %6749 = vmatpush2.bf16.msra.mxu1 %v8248_v62  ;;  %v8347_v62 = vld [vmem:[%s14457_s3 + $0x4e8] ss:$24 sps:$4 sm:$0xff]  }
 0x3e2   : > { %6750 = vmatprep.subr.bf16.mxu1 %v8256_v53  ;;  %6714 = vmatpush2.bf16.msra.mxu0 %v8263_v19  ;;  %v8355_v53 = vld [vmem:[%s14457_s3 + $0x4bc] ss:$24 sps:$4 sm:$0xff]   ;;  %v8338_v19 = vld [vmem:[%s14457_s3 + $0x848] ss:$24 sps:$4 sm:$0xff]  }
 0x3e3   : > { %6765 = vmatprep.subr.bf16.mxu0 %v8271_v5  ;;  %v8346_v5 = vld [vmem:[%s14457_s3 + $0x81c] ss:$24 sps:$4 sm:$0xff]  }
 0x3e5   : > { %6751 = vmatpush2.bf16.msra.mxu1 %v8254_v27  ;;  %6716 = vmatmul.mubr.bf16.vlgmr.msra.gmra.mxu0 %v13761_v45  ;;  %v8353_v27 = vld [vmem:[%s14457_s3 + $0x4b8] ss:$24 sps:$4 sm:$0xff]  }
 0x3e6   : > { %6752 = vmatprep.subr.bf16.mxu1 %v8262_v28  ;;  %6766 = vmatpush1.bf16.msra.mxu0 %v8269_v20  ;;  %v8361_v28 = vld [vmem:[%s14457_s3 + $0x48c] ss:$24 sps:$4 sm:$0xff]   ;;  %v8344_v20 = vld [vmem:[%s14457_s3 + $0x818] ss:$24 sps:$4 sm:$0xff]  }
 0x3e7   : > { %6797 = vmatprep.mubr.bf16.mxu0 %v13466_v24  ;;  %6767 = vmatprep.subr.bf16.mxu0 %v8277_v43  ;;  %v8352_v43 = vld [vmem:[%s14457_s3 + $0x7ec] ss:$24 sps:$4 sm:$0xff]  }
 0x3e9   : > { %6753 = vmatpush2.bf16.msra.mxu1 %v8260_v40  ;;  %v8359_v40 = vld [vmem:[%s14457_s3 + $0x488] ss:$24 sps:$4 sm:$0xff]  }
 0x3ea   : > { %6754 = vmatprep.subr.bf16.mxu1 %v8268_v0  ;;  %6768 = vmatpush1.bf16.msra.mxu0 %v8275_v38  ;;  %v8367_v0 = vld [vmem:[%s14457_s3 + $0x164] ss:$24 sps:$4 sm:$0xff]   ;;  %v8350_v38 = vld [vmem:[%s14457_s3 + $0x7e8] ss:$24 sps:$4 sm:$0xff]  }
 0x3eb   : > { %6769 = vmatprep.subr.bf16.mxu0 %v8283_v22  ;;  %v8358_v22 = vld [vmem:[%s14457_s3 + $0x7bc] ss:$24 sps:$4 sm:$0xff]  }
 0x3ed   : > { %6755 = vmatpush2.bf16.msra.mxu1 %v8266_v10  ;;  %v8365_v10 = vld [vmem:[%s14457_s3 + $0x160] ss:$24 sps:$4 sm:$0xff]  }
 0x3ee   : > { %6806 = vmatprep.subr.bf16.mxu1 %v8274_v1  ;;  %6770 = vmatpush1.bf16.msra.mxu0 %v8281_v55  ;;  %v8373_v1 = vld [vmem:[%s14457_s3 + $0x134] ss:$24 sps:$4 sm:$0xff]   ;;  %v8356_v55 = vld [vmem:[%s14457_s3 + $0x7b8] ss:$24 sps:$4 sm:$0xff]  }
 0x3ef   : > { %6771 = vmatprep.subr.bf16.mxu0 %v8289_v35  ;;  %v8364_v35 = vld [vmem:[%s14457_s3 + $0x78c] ss:$24 sps:$4 sm:$0xff]  }
 0x3f0   : > { %6757 = vmatmul.mubr.bf16.vlgmr.msra.gmra.mxu1 %v13503_v44 }
 0x3f1   : > { %6807 = vmatpush1.bf16.msra.mxu1 %v8272_v17  ;;  %6838 = vmatprep.mubr.bf16.mxu1 %v13622_v58  ;;  %v8371_v17 = vld [vmem:[%s14457_s3 + $0x130] ss:$24 sps:$4 sm:$0xff]  }
 0x3f2   : > { %6808 = vmatprep.subr.bf16.mxu1 %v8280_v3  ;;  %6772 = vmatpush1.bf16.msra.mxu0 %v8287_v39  ;;  %v8379_v3 = vld [vmem:[%s14457_s3 + $0x104] ss:$24 sps:$4 sm:$0xff]   ;;  %v8362_v39 = vld [vmem:[%s14457_s3 + $0x788] ss:$24 sps:$4 sm:$0xff]  }
 0x3f3   : > { %6773 = vmatprep.subr.bf16.mxu0 %v8295_v37  ;;  %v8370_v37 = vld [vmem:[%s14457_s3 + $0x464] ss:$24 sps:$4 sm:$0xff]  }
 0x3f5   : > { %6809 = vmatpush1.bf16.msra.mxu1 %v8278_v23  ;;  %v8385_v23 = vld [vmem:[%s14457_s3 + $0xd4] ss:$24 sps:$4 sm:$0xff]  }
 0x3f6   : > { %6810 = vmatprep.subr.bf16.mxu1 %v8286_v41  ;;  %6774 = vmatpush1.bf16.msra.mxu0 %v8293_v16  ;;  %v8368_v41 = vld [vmem:[%s14457_s3 + $0x460] ss:$24 sps:$4 sm:$0xff]   ;;  %v8376_v16 = vld [vmem:[%s14457_s3 + $0x434] ss:$24 sps:$4 sm:$0xff]  }
 0x3f7   : > { %6775 = vmatprep.subr.bf16.mxu0 %v8301_v21  ;;  %v8383_v21 = vld [vmem:[%s14457_s3 + $0xd0] ss:$24 sps:$4 sm:$0xff]  }
 0x3f9   : > { %6811 = vmatpush1.bf16.msra.mxu1 %v8284_v60  ;;  %v8391_v60 = vld [vmem:[%s14457_s3 + $0xa4] ss:$24 sps:$4 sm:$0xff]  }
 0x3fa   : > { %6812 = vmatprep.subr.bf16.mxu1 %v8292_v49  ;;  %6776 = vmatpush1.bf16.msra.mxu0 %v8299_v31  ;;  %v8374_v49 = vld [vmem:[%s14457_s3 + $0x430] ss:$24 sps:$4 sm:$0xff]   ;;  %v8382_v31 = vld [vmem:[%s14457_s3 + $0x404] ss:$24 sps:$4 sm:$0xff]  }
 0x3fb   : > { %6777 = vmatprep.subr.bf16.mxu0 %v8307_v36  ;;  %v8389_v36 = vld [vmem:[%s14457_s3 + $0xa0] ss:$24 sps:$4 sm:$0xff]  }
 0x3fd   : > { %6813 = vmatpush1.bf16.msra.mxu1 %v8290_v18  ;;  %v8397_v18 = vld [vmem:[%s14457_s3 + $0x74] ss:$24 sps:$4 sm:$0xff]  }
 0x3fe   : > { %6814 = vmatprep.subr.bf16.mxu1 %v8298_v47  ;;  %6778 = vmatpush1.bf16.msra.mxu0 %v8305_v32  ;;  %v8388_v47 = vld [vmem:[%s14457_s3 + $0x3d4] ss:$24 sps:$4 sm:$0xff]   ;;  %v8395_v32 = vld [vmem:[%s14457_s3 + $0x70] ss:$24 sps:$4 sm:$0xff]  }
 0x3ff   : > { %6779 = vmatprep.subr.bf16.mxu0 %v8313_v13  ;;  %v8403_v13 = vld [vmem:[%s14457_s3 + $0x44] ss:$24 sps:$4 sm:$0xff]  }
 0x401   : > { %6815 = vmatpush1.bf16.msra.mxu1 %v8296_v42  ;;  %v8386_v42 = vld [vmem:[%s14457_s3 + $0x3d0] ss:$24 sps:$4 sm:$0xff]  }
 0x402   : > { %6816 = vmatprep.subr.bf16.mxu1 %v8304_v63  ;;  %6780 = vmatpush1.bf16.msra.mxu0 %v8311_v14  ;;  %v8394_v63 = vld [vmem:[%s14457_s3 + $0x3a4] ss:$24 sps:$4 sm:$0xff]   ;;  %v8401_v14 = vld [vmem:[%s14457_s3 + $0x40] ss:$24 sps:$4 sm:$0xff]  }
 0x403   : > { %6781 = vmatprep.subr.bf16.mxu0 %v8319_v4  ;;  %v8409_v4 = vld [vmem:[%s14457_s3 + $0x14] ss:$24 sps:$4 sm:$0xff]  }
 0x405   : > { %6817 = vmatpush1.bf16.msra.mxu1 %v8302_v12  ;;  %v8392_v12 = vld [vmem:[%s14457_s3 + $0x3a0] ss:$24 sps:$4 sm:$0xff]  }
 0x406   : > { %6818 = vmatprep.subr.bf16.mxu1 %v8310_v51  ;;  %6782 = vmatpush2.bf16.msra.mxu0 %v8317_v50  ;;  %v8400_v51 = vld [vmem:[%s14457_s3 + $0x374] ss:$24 sps:$4 sm:$0xff]   ;;  %v8407_v50 = vld [vmem:[%s14457_s3 + $0x10] ss:$24 sps:$4 sm:$0xff]  }
 0x407   : > { %6783 = vmatprep.subr.bf16.mxu0 %v8325_v8  ;;  %v8415_v8 = vld [vmem:[%s14457_s3 + $0x2e4] ss:$24 sps:$4 sm:$0xff]  }
 0x409   : > { %6819 = vmatpush1.bf16.msra.mxu1 %v8308_v34  ;;  %v8398_v34 = vld [vmem:[%s14457_s3 + $0x370] ss:$24 sps:$4 sm:$0xff]  }
 0x40a   : > { %6820 = vmatprep.subr.bf16.mxu1 %v8316_v29  ;;  %6784 = vmatpush2.bf16.msra.mxu0 %v8323_v59  ;;  %v8406_v29 = vld [vmem:[%s14457_s3 + $0x344] ss:$24 sps:$4 sm:$0xff]   ;;  %v8413_v59 = vld [vmem:[%s14457_s3 + $0x2e0] ss:$24 sps:$4 sm:$0xff]  }
 0x40b   : > { %6785 = vmatprep.subr.bf16.mxu0 %v8331_v52  ;;  %v8421_v52 = vld [vmem:[%s14457_s3 + $0x2b4] ss:$24 sps:$4 sm:$0xff]  }
 0x40d   : > { %6821 = vmatpush1.bf16.msra.mxu1 %v8314_v2  ;;  %v8404_v2 = vld [vmem:[%s14457_s3 + $0x340] ss:$24 sps:$4 sm:$0xff]  }
 0x40e   : > { %6822 = vmatprep.subr.bf16.mxu1 %v8322_v61  ;;  %6786 = vmatpush2.bf16.msra.mxu0 %v8329_v11  ;;  %v8412_v61 = vld [vmem:[%s14457_s3 + $0x314] ss:$24 sps:$4 sm:$0xff]   ;;  %v8419_v11 = vld [vmem:[%s14457_s3 + $0x2b0] ss:$24 sps:$4 sm:$0xff]  }
 0x40f   : > { %6787 = vmatprep.subr.bf16.mxu0 %v8337_v6  ;;  %v8427_v6 = vld [vmem:[%s14457_s3 + $0x284] ss:$24 sps:$4 sm:$0xff]  }
 0x411   : > { %6823 = vmatpush2.bf16.msra.mxu1 %v8320_v57  ;;  %v8410_v57 = vld [vmem:[%s14457_s3 + $0x310] ss:$24 sps:$4 sm:$0xff]  }
 0x412   : > { %6824 = vmatprep.subr.bf16.mxu1 %v8328_v56  ;;  %6788 = vmatpush2.bf16.msra.mxu0 %v8335_v9  ;;  %v8418_v56 = vld [vmem:[%s14457_s3 + $0x5e4] ss:$24 sps:$4 sm:$0xff]   ;;  %v8425_v9 = vld [vmem:[%s14457_s3 + $0x280] ss:$24 sps:$4 sm:$0xff]  }
 0x413   : > { %6789 = vmatprep.subr.bf16.mxu0 %v8343_v7  ;;  %v8433_v7 = vld [vmem:[%s14457_s3 + $0x254] ss:$24 sps:$4 sm:$0xff]  }
 0x415   : > { %6825 = vmatpush2.bf16.msra.mxu1 %v8326_v15  ;;  %v8416_v15 = vld [vmem:[%s14457_s3 + $0x5e0] ss:$24 sps:$4 sm:$0xff]  }
 0x416   : > { %6826 = vmatprep.subr.bf16.mxu1 %v8334_v33  ;;  %6790 = vmatpush2.bf16.msra.mxu0 %v8341_v30  ;;  %v8424_v33 = vld [vmem:[%s14457_s3 + $0x5b4] ss:$24 sps:$4 sm:$0xff]   ;;  %v8431_v30 = vld [vmem:[%s14457_s3 + $0x250] ss:$24 sps:$4 sm:$0xff]  }
 0x417   : > { %6791 = vmatprep.subr.bf16.mxu0 %v8349_v48  ;;  %v8439_v48 = vld [vmem:[%s14457_s3 + $0x224] ss:$24 sps:$4 sm:$0xff]  }
 0x419   : > { %6827 = vmatpush2.bf16.msra.mxu1 %v8332_v46  ;;  %v8422_v46 = vld [vmem:[%s14457_s3 + $0x5b0] ss:$24 sps:$4 sm:$0xff]  }
 0x41a   : > { %6828 = vmatprep.subr.bf16.mxu1 %v8340_v54  ;;  %6792 = vmatpush2.bf16.msra.mxu0 %v8347_v62  ;;  %v8430_v54 = vld [vmem:[%s14457_s3 + $0x584] ss:$24 sps:$4 sm:$0xff]   ;;  %v8437_v62 = vld [vmem:[%s14457_s3 + $0x220] ss:$24 sps:$4 sm:$0xff]  }
 0x41b   : > { %6793 = vmatprep.subr.bf16.mxu0 %v8355_v53  ;;  %v8445_v53 = vld [vmem:[%s14457_s3 + $0x1f4] ss:$24 sps:$4 sm:$0xff]  }
 0x41d   : > { %6829 = vmatpush2.bf16.msra.mxu1 %v8338_v19  ;;  %v8428_v19 = vld [vmem:[%s14457_s3 + $0x580] ss:$24 sps:$4 sm:$0xff]  }
 0x41e   : > { %6830 = vmatprep.subr.bf16.mxu1 %v8346_v5  ;;  %6794 = vmatpush2.bf16.msra.mxu0 %v8353_v27  ;;  %v8436_v5 = vld [vmem:[%s14457_s3 + $0x554] ss:$24 sps:$4 sm:$0xff]   ;;  %v8443_v27 = vld [vmem:[%s14457_s3 + $0x1f0] ss:$24 sps:$4 sm:$0xff]  }
 0x41f   : > { %6795 = vmatprep.subr.bf16.mxu0 %v8361_v28  ;;  %v8451_v28 = vld [vmem:[%s14457_s3 + $0x1c4] ss:$24 sps:$4 sm:$0xff]  }
 0x421   : > { %6831 = vmatpush2.bf16.msra.mxu1 %v8344_v20  ;;  %v8434_v20 = vld [vmem:[%s14457_s3 + $0x550] ss:$24 sps:$4 sm:$0xff]  }
 0x422   : > { %6832 = vmatprep.subr.bf16.mxu1 %v8352_v43  ;;  %6796 = vmatpush2.bf16.msra.mxu0 %v8359_v40  ;;  %v8442_v43 = vld [vmem:[%s14457_s3 + $0x524] ss:$24 sps:$4 sm:$0xff]   ;;  %v8449_v40 = vld [vmem:[%s14457_s3 + $0x1c0] ss:$24 sps:$4 sm:$0xff]  }
 0x423   : > { %6847 = vmatprep.subr.bf16.mxu0 %v8367_v0  ;;  %v8457_v0 = vld [vmem:[%s14457_s3 + $0x194] ss:$24 sps:$4 sm:$0xff]  }
 0x425   : > { %6833 = vmatpush2.bf16.msra.mxu1 %v8350_v38  ;;  %6798 = vmatmul.mubr.bf16.vlgmr.msra.gmra.mxu0 %v13553_v25  ;;  %v8440_v38 = vld [vmem:[%s14457_s3 + $0x520] ss:$24 sps:$4 sm:$0xff]  }
 0x426   : > { %6834 = vmatprep.subr.bf16.mxu1 %v8358_v22  ;;  %6848 = vmatpush1.bf16.msra.mxu0 %v8365_v10  ;;  %v8448_v22 = vld [vmem:[%s14457_s3 + $0x4f4] ss:$24 sps:$4 sm:$0xff]   ;;  %v8455_v10 = vld [vmem:[%s14457_s3 + $0x190] ss:$24 sps:$4 sm:$0xff]  }
 0x427   : > { %6879 = vmatprep.mubr.bf16.mxu0 %v13433_v26  ;;  %6849 = vmatprep.subr.bf16.mxu0 %v8373_v1  ;;  %v8377_v26 = vld [vmem:[%s14457_s3 + $0x100] ss:$24 sps:$4 sm:$0xff]   ;;  %v8463_v1 = vld [vmem:[%s14457_s3 + $0x764] ss:$24 sps:$4 sm:$0xff]  }
 0x429   : > { %6835 = vmatpush2.bf16.msra.mxu1 %v8356_v55  ;;  %v8446_v55 = vld [vmem:[%s14457_s3 + $0x4f0] ss:$24 sps:$4 sm:$0xff]  }
 0x42a   : > { %6836 = vmatprep.subr.bf16.mxu1 %v8364_v35  ;;  %6850 = vmatpush1.bf16.msra.mxu0 %v8371_v17  ;;  %v8454_v35 = vld [vmem:[%s14457_s3 + $0x4c4] ss:$24 sps:$4 sm:$0xff]   ;;  %v8461_v17 = vld [vmem:[%s14457_s3 + $0x760] ss:$24 sps:$4 sm:$0xff]  }
 0x42b   : > { %6851 = vmatprep.subr.bf16.mxu0 %v8379_v3  ;;  %v8466_v3 = vld [vmem:[%s14457_s3 + $0x734] ss:$24 sps:$4 sm:$0xff]  }
 0x42d   : > { %6837 = vmatpush2.bf16.msra.mxu1 %v8362_v39 }
 0x42e   : > { %6888 = vmatprep.subr.bf16.mxu1 %v8370_v37  ;;  %6852 = vmatpush1.bf16.msra.mxu0 %v8377_v26  ;;  %v8452_v37 = vld [vmem:[%s14457_s3 + $0x4c0] ss:$24 sps:$4 sm:$0xff]   ;;  %v8460_v26 = vld [vmem:[%s14457_s3 + $0x494] ss:$24 sps:$4 sm:$0xff]  }
 0x42f   : > { %6853 = vmatprep.subr.bf16.mxu0 %v8385_v23 }
 0x430   : > { %6839 = vmatmul.mubr.bf16.vlgmr.msra.gmra.mxu1 %v13761_v45 }
 0x431   : > { %6889 = vmatpush1.bf16.msra.mxu1 %v8368_v41  ;;  %6920 = vmatprep.mubr.bf16.mxu1 %v13466_v24  ;;  %v8380_v24 = vld [vmem:[%s14457_s3 + $0x400] ss:$24 sps:$4 sm:$0xff]   ;;  %v8464_v41 = vld [vmem:[%s14457_s3 + $0x730] ss:$24 sps:$4 sm:$0xff]  }
 0x432   : > { %6890 = vmatprep.subr.bf16.mxu1 %v8376_v16  ;;  %6854 = vmatpush1.bf16.msra.mxu0 %v8383_v21  ;;  %v8469_v16 = vld [vmem:[%s14457_s3 + $0x704] ss:$24 sps:$4 sm:$0xff]   ;;  %v8458_v21 = vld [vmem:[%s14457_s3 + $0x490] ss:$24 sps:$4 sm:$0xff]  }
 0x433   : > { %6855 = vmatprep.subr.bf16.mxu0 %v8391_v60 }
 0x435   : > { %6891 = vmatpush1.bf16.msra.mxu1 %v8374_v49  ;;  %v8467_v49 = vld [vmem:[%s14457_s3 + $0x700] ss:$24 sps:$4 sm:$0xff]  }
 0x436   : > { %6892 = vmatprep.subr.bf16.mxu1 %v8382_v31  ;;  %6856 = vmatpush1.bf16.msra.mxu0 %v8389_v36  ;;  %v8472_v31 = vld [vmem:[%s14457_s3 + $0x6d4] ss:$24 sps:$4 sm:$0xff]   ;;  %v8504_v36 = vld [vmem:[%s14460_s6 + $0x38] sm:$0xff]  }
 0x437   : > { %6857 = vmatprep.subr.bf16.mxu0 %v8397_v18  ;;  %v8470_v18 = vld [vmem:[%s14457_s3 + $0x6d0] ss:$24 sps:$4 sm:$0xff]  }
 0x439   : > { %6893 = vmatpush1.bf16.msra.mxu1 %v8380_v24  ;;  %v8508_v24 = vld [vmem:[%s14460_s6 + $0x70] sm:$0xff]  }
 0x43a   : > { %6894 = vmatprep.subr.bf16.mxu1 %v8388_v47  ;;  %6858 = vmatpush1.bf16.msra.mxu0 %v8395_v32  ;;  %v8475_v47 = vld [vmem:[%s14457_s3 + $0x6a4] ss:$24 sps:$4 sm:$0xff]  }
 0x43b   : > { %6859 = vmatprep.subr.bf16.mxu0 %v8403_v13  ;;  %v8509_v13 = vld [vmem:[%s14460_s6 + $0x30] sm:$0xff]  }
 0x43d   : > { %6895 = vmatpush1.bf16.msra.mxu1 %v8386_v42 }
 0x43e   : > { %6896 = vmatprep.subr.bf16.mxu1 %v8394_v63  ;;  %6860 = vmatpush1.bf16.msra.mxu0 %v8401_v14  ;;  %v8473_v63 = vld [vmem:[%s14457_s3 + $0x6a0] ss:$24 sps:$4 sm:$0xff]   ;;  %v8513_v14 = vld [vmem:[%s14460_s6 + $0x68] sm:$0xff]  }
 0x43f   : > { %6861 = vmatprep.subr.bf16.mxu0 %v8409_v4 }
 0x441   : > { %6897 = vmatpush1.bf16.msra.mxu1 %v8392_v12  ;;  %v8514_v12 = vld [vmem:[%s14460_s6 + $0x28] sm:$0xff]  }
 0x442   : > { %6898 = vmatprep.subr.bf16.mxu1 %v8400_v51  ;;  %6862 = vmatpush1.bf16.msra.mxu0 %v8407_v50  ;;  %v8476_v50 = vld [vmem:[%s14457_s3 + $0x670] ss:$24 sps:$4 sm:$0xff]  }
 0x443   : > { %6863 = vmatprep.subr.bf16.mxu0 %v8415_v8  ;;  %v8515_v8 = vld [vmem:[%s14460_s6 + $0x60] sm:$0xff]  }
 0x445   : > { %6899 = vmatpush1.bf16.msra.mxu1 %v8398_v34  ;;  %v8481_v34 = vld [vmem:[%s14457_s3 + $0x644] ss:$24 sps:$4 sm:$0xff]  }
 0x446   : > { %6900 = vmatprep.subr.bf16.mxu1 %v8406_v29  ;;  %6864 = vmatpush2.bf16.msra.mxu0 %v8413_v59  ;;  %v8516_v29 = vld [vmem:[%s14460_s6 + $0x20] sm:$0xff]  }
 0x447   : > { %6865 = vmatprep.subr.bf16.mxu0 %v8421_v52  ;;  %v8479_v59 = vld [vmem:[%s14457_s3 + $0x640] ss:$24 sps:$4 sm:$0xff]  }
 0x448   : > { %v8517_v52 = vld [vmem:[%s14460_s6 + $0x58] sm:$0xff]  }
 0x449   : > { %6901 = vmatpush1.bf16.msra.mxu1 %v8404_v2  ;;  %v8484_v2 = vld [vmem:[%s14457_s3 + $0x614] ss:$24 sps:$4 sm:$0xff]  }
 0x44a   : > { %6902 = vmatprep.subr.bf16.mxu1 %v8412_v61  ;;  %6866 = vmatpush2.bf16.msra.mxu0 %v8419_v11  ;;  %v8518_v61 = vld [vmem:[%s14460_s6 + $0x18] sm:$0xff]   ;;  %v8482_v11 = vld [vmem:[%s14457_s3 + $0x610] ss:$24 sps:$4 sm:$0xff]  }
 0x44b   : > { %6867 = vmatprep.subr.bf16.mxu0 %v8427_v6  ;;  %v8519_v6 = vld [vmem:[%s14460_s6 + $0x50] sm:$0xff]  }
 0x44d   : > { %6903 = vmatpush1.bf16.msra.mxu1 %v8410_v57  ;;  %v8487_v57 = vld [vmem:[%s14457_s3 + $0x8e4] ss:$24 sps:$4 sm:$0xff]  }
 0x44e   : > { %6904 = vmatprep.subr.bf16.mxu1 %v8418_v56  ;;  %6868 = vmatpush2.bf16.msra.mxu0 %v8425_v9  ;;  %v8520_v56 = vld [vmem:[%s14460_s6 + $0x10] sm:$0xff]   ;;  %v8485_v9 = vld [vmem:[%s14457_s3 + $0x8e0] ss:$24 sps:$4 sm:$0xff]  }
 0x44f   : > { %6869 = vmatprep.subr.bf16.mxu0 %v8433_v7  ;;  %v8521_v7 = vld [vmem:[%s14460_s6 + $0x48] sm:$0xff]  }
 0x451   : > { %6905 = vmatpush2.bf16.msra.mxu1 %v8416_v15  ;;  %v8490_v15 = vld [vmem:[%s14457_s3 + $0x8b4] ss:$24 sps:$4 sm:$0xff]  }
 0x452   : > { %6906 = vmatprep.subr.bf16.mxu1 %v8424_v33  ;;  %6870 = vmatpush2.bf16.msra.mxu0 %v8431_v30  ;;  %v8522_v33 = vld [vmem:[%s14460_s6 + $0x8] sm:$0xff]  }
 0x453   : > { %6871 = vmatprep.subr.bf16.mxu0 %v8439_v48  ;;  %v8488_v30 = vld [vmem:[%s14457_s3 + $0x8b0] ss:$24 sps:$4 sm:$0xff]   ;;  %v8523_v48 = vld [vmem:[%s14460_s6 + $0x40] sm:$0xff]  }
 0x455   : > { %6907 = vmatpush2.bf16.msra.mxu1 %v8422_v46  ;;  %v8493_v46 = vld [vmem:[%s14457_s3 + $0x884] ss:$24 sps:$4 sm:$0xff]  }
 0x456   : > { %6908 = vmatprep.subr.bf16.mxu1 %v8430_v54  ;;  %6872 = vmatpush2.bf16.msra.mxu0 %v8437_v62  ;;  %v8524_v54 = vld [vmem:[%s14460_s6] sm:$0xff]  }
 0x457   : > { %6873 = vmatprep.subr.bf16.mxu0 %v8445_v53  ;;  %v8491_v62 = vld [vmem:[%s14457_s3 + $0x880] ss:$24 sps:$4 sm:$0xff]  }
 0x458   : > { %v8525_v53 = vld [vmem:[%s14460_s6 + $0xf8] sm:$0xff]  }
 0x459   : > { %6909 = vmatpush2.bf16.msra.mxu1 %v8428_v19  ;;  %v8496_v19 = vld [vmem:[%s14457_s3 + $0x854] ss:$24 sps:$4 sm:$0xff]  }
 0x45a   : > { %6910 = vmatprep.subr.bf16.mxu1 %v8436_v5  ;;  %6874 = vmatpush2.bf16.msra.mxu0 %v8443_v27  ;;  %v8494_v5 = vld [vmem:[%s14457_s3 + $0x850] ss:$24 sps:$4 sm:$0xff]   ;;  %v8499_v27 = vld [vmem:[%s14457_s3 + $0x824] ss:$24 sps:$4 sm:$0xff]  }
 0x45b   : > { %6875 = vmatprep.subr.bf16.mxu0 %v8451_v28  ;;  %v8497_v28 = vld [vmem:[%s14457_s3 + $0x820] ss:$24 sps:$4 sm:$0xff]  }
 0x45d   : > { %6911 = vmatpush2.bf16.msra.mxu1 %v8434_v20  ;;  %v8502_v20 = vld [vmem:[%s14457_s3 + $0x7f4] ss:$24 sps:$4 sm:$0xff]  }
 0x45e   : > { %6912 = vmatprep.subr.bf16.mxu1 %v8442_v43  ;;  %6876 = vmatpush2.bf16.msra.mxu0 %v8449_v40  ;;  %v8500_v43 = vld [vmem:[%s14457_s3 + $0x7f0] ss:$24 sps:$4 sm:$0xff]   ;;  %v8507_v40 = vld [vmem:[%s14457_s3 + $0x7c4] ss:$24 sps:$4 sm:$0xff]  }
 0x45f   : > { %6877 = vmatprep.subr.bf16.mxu0 %v8457_v0  ;;  %v14310_v0 = vld [vmem:[%s14458_s4] sm:$0x3f] }
 0x461   : > { %6913 = vmatpush2.bf16.msra.mxu1 %v8440_v38  ;;  %v8505_v38 = vld [vmem:[%s14457_s3 + $0x7c0] ss:$24 sps:$4 sm:$0xff]  }
 0x462   : > { %6914 = vmatprep.subr.bf16.mxu1 %v8448_v22  ;;  %6878 = vmatpush2.bf16.msra.mxu0 %v8455_v10  ;;  %v8512_v22 = vld [vmem:[%s14457_s3 + $0x794] ss:$24 sps:$4 sm:$0xff]  }
 0x463   : > { %6929 = vmatprep.subr.bf16.mxu0 %v8463_v1  ;;  %v15671_v10 = vld [vmem:[#allocation7_spill] sm:$0xff] }
 0x464   : > { %v14158_v39 = vpop.f32.mrf.mxu0  ;;  %v4935_v1 = vrot.slane %v14310_v0, %v15671_v10  ;;  %v8548_v10 = vld [vmem:[%s14460_s6 + $0x120] sm:$0xff]  }
 0x465   : > { %6915 = vmatpush2.bf16.msra.mxu1 %v8446_v55  ;;  %6880 = vmatmul.mubr.bf16.vlgmr.msra.gmra.mxu0 %v13503_v44  ;;  %v15672_v55 = vld [vmem:[#allocation4_spill] sm:$0xff] }
 0x466   : > { %6916 = vmatprep.subr.bf16.mxu1 %v8454_v35  ;;  %6930 = vmatpush1.bf16.msra.mxu0 %v8461_v17  ;;  %v14167_v23 = vpop.f32.mrf.mxu0  ;;  %v4939_v35 = vrot.slane %v14310_v0, %v15672_v55  ;;  %v8510_v17 = vld [vmem:[%s14457_s3 + $0x790] ss:$24 sps:$4 sm:$0xff]   ;;  %v8599_v55 = vmov 0.0  }
 0x467   : > { %6961 = vmatprep.mubr.bf16.mxu0 %v13622_v58  ;;  %6931 = vmatprep.subr.bf16.mxu0 %v8466_v3  ;;  %v8503_v58 = vld [vmem:[%s14460_s6 + $0x78] sm:$0xff]   ;;  %v6636_v3 = vadd.f32 %v14158_v39, %v4935_v1 }
 0x468   : > { %v6639_v44 = vpop.f32.mrf.mxu0  ;;  %v8549_v1 = vld [vmem:[%s14460_s6 + $0x158] sm:$0xff]  }
 0x469   : > { %6917 = vmatpush2.bf16.msra.mxu1 %v8452_v37  ;;  %v6638_v37 = vadd.f32 %v14167_v23, %v4939_v35  ;;  %v8550_v35 = vld [vmem:[%s14460_s6 + $0x118] sm:$0xff]  }
 0x46a   : > { %6918 = vmatprep.subr.bf16.mxu1 %v8460_v26  ;;  %6932 = vmatpush1.bf16.msra.mxu0 %v8464_v41  ;;  %v6640_v60 = vpop.f32.mrf.mxu0 }
 0x46b   : > { %6933 = vmatprep.subr.bf16.mxu0 %v8469_v16 }
 0x46d   : > { %6919 = vmatpush2.bf16.msra.mxu1 %v8458_v21 }
 0x46e   : > { %6934 = vmatpush1.bf16.msra.mxu0 %v8467_v49  ;;  %7989 = vmatprep.subr.bf16.mxu1 %v8503_v58 }
 0x46f   : > { %6935 = vmatprep.subr.bf16.mxu0 %v8472_v31 }
 0x470   : > { %6921 = vmatmul.mubr.bf16.vlgmr.msra.gmra.mxu1 %v13553_v25  ;;  %v14201_v32 = vpop.f32.mrf.mxu1  ;;  %v8478_v25 = vld [vmem:[%s14457_s3 + $0x674] ss:$24 sps:$4 sm:$0xff]  }
 0x471   : > { %7990 = vmatpush3.bf16.msra.mxu1 %v8504_v36  ;;  %v6677_v26 = vadd.f32 %v14201_v32, %v6636_v3  ;;  %v6976_v3 = vld [vmem:[%s371_s10] sm:$0xff]  ;;  %s375_s10 = scalar_lea.vmem %s14462_s8, %s7644_s28 }
 0x472   : > { %v14206_v42 = vpop.f32.mrf.mxu1  ;;  %6936 = vmatpush1.bf16.msra.mxu0 %v8470_v18  ;;  %7991 = vmatprep.subr.bf16.mxu1 %v8508_v24  ;;  %v8541_v24 = vld [vmem:[%s14460_s6 + $0x178] sm:$0xff]  }
 0x473   : > { %6937 = vmatprep.subr.bf16.mxu0 %v8475_v47  ;;  %v6679_v16 = vadd.f32 %v14206_v42, %v6638_v37  ;;  %v8543_v47 = vld [vmem:[%s14460_s6 + $0x170] sm:$0xff]   ;;  %v8526_v42 = vld [vmem:[%s14460_s6 + $0xb8] sm:$0xff]  }
 0x474   : > { %v6680_v4 = vpop.f32.mrf.mxu1  ;;  %v8552_v37 = vld [vmem:[%s14460_s6 + $0x110] sm:$0xff]  }
 0x475   : > { %7992 = vmatpush3.bf16.msra.mxu1 %v8509_v13  ;;  %v8545_v4 = vld [vmem:[%s14460_s6 + $0x168] sm:$0xff]  }
 0x476   : > { %v6681_v51 = vpop.f32.mrf.mxu1  ;;  %6938 = vmatpush1.bf16.msra.mxu0 %v8473_v63  ;;  %7993 = vmatprep.subr.bf16.mxu1 %v8513_v14  ;;  %v8527_v14 = vld [vmem:[%s14460_s6 + $0xf0] sm:$0xff]  }
 0x477   : > { %6939 = vmatprep.subr.bf16.mxu0 %v8478_v25  ;;  %v8544_v25 = vld [vmem:[%s14460_s6 + $0x130] sm:$0xff]   ;;  %v8529_v51 = vld [vmem:[%s14460_s6 + $0xe8] sm:$0xff]  }
 0x479   : > { %7994 = vmatpush3.bf16.msra.mxu1 %v8514_v12  ;;  %v8528_v12 = vld [vmem:[%s14460_s6 + $0xb0] sm:$0xff]  }
 0x47a   : > { %6940 = vmatpush1.bf16.msra.mxu0 %v8476_v50  ;;  %7995 = vmatprep.subr.bf16.mxu1 %v8515_v8  ;;  %v8546_v50 = vld [vmem:[%s14460_s6 + $0x128] sm:$0xff]  }
 0x47b   : > { %6941 = vmatprep.subr.bf16.mxu0 %v8481_v34  ;;  %v8530_v8 = vld [vmem:[%s14460_s6 + $0xa8] sm:$0xff]   ;;  %v8531_v34 = vld [vmem:[%s14460_s6 + $0xe0] sm:$0xff]  }
 0x47d   : > { %7996 = vmatpush3.bf16.msra.mxu1 %v8516_v29  ;;  %v8532_v29 = vld [vmem:[%s14460_s6 + $0xa0] sm:$0xff]  }
 0x47e   : > { %6942 = vmatpush1.bf16.msra.mxu0 %v8479_v59  ;;  %7997 = vmatprep.subr.bf16.mxu1 %v8517_v52  ;;  %v8533_v59 = vld [vmem:[%s14460_s6 + $0xd8] sm:$0xff]  }
 0x47f   : > { %6943 = vmatprep.subr.bf16.mxu0 %v8484_v2  ;;  %v8534_v52 = vld [vmem:[%s14460_s6 + $0x98] sm:$0xff]   ;;  %v8535_v2 = vld [vmem:[%s14460_s6 + $0xd0] sm:$0xff]  }
 0x481   : > { %7998 = vmatpush3.bf16.msra.mxu1 %v8518_v61  ;;  %v8536_v61 = vld [vmem:[%s14460_s6 + $0x90] sm:$0xff]  }
 0x482   : > { %6944 = vmatpush1.bf16.msra.mxu0 %v8482_v11  ;;  %7999 = vmatprep.subr.bf16.mxu1 %v8519_v6  ;;  %v8537_v11 = vld [vmem:[%s14460_s6 + $0xc8] sm:$0xff]  }
 0x483   : > { %6945 = vmatprep.subr.bf16.mxu0 %v8487_v57  ;;  %v8538_v6 = vld [vmem:[%s14460_s6 + $0x88] sm:$0xff]   ;;  %v8539_v57 = vld [vmem:[%s14460_s6 + $0xc0] sm:$0xff]  }
 0x485   : > { %8000 = vmatpush3.bf16.msra.mxu1 %v8520_v56  ;;  %v8540_v56 = vld [vmem:[%s14460_s6 + $0x80] sm:$0xff]  }
 0x486   : > { %6946 = vmatpush2.bf16.msra.mxu0 %v8485_v9  ;;  %8001 = vmatprep.subr.bf16.mxu1 %v8521_v7  ;;  %v15673_v7 = vld [vmem:[#allocation3_spill] sm:$0xff] }
 0x487   : > { %6947 = vmatprep.subr.bf16.mxu0 %v8490_v15  ;;  %v4943_v15 = vrot.slane %v14310_v0, %v15673_v7 }
 0x489   : > { %8002 = vmatpush3.bf16.msra.mxu1 %v8522_v33 }
 0x48a   : > { %6948 = vmatpush2.bf16.msra.mxu0 %v8488_v30  ;;  %8003 = vmatprep.subr.bf16.mxu1 %v8523_v48  ;;  %v15674_v30 = vld [vmem:[#allocation9_spill] sm:$0xff] }
 0x48b   : > { %6949 = vmatprep.subr.bf16.mxu0 %v8493_v46  ;;  %v4947_v48 = vrot.slane %v14310_v0, %v15674_v30 }
 0x48d   : > { %8004 = vmatpush3.bf16.msra.mxu1 %v8524_v54 }
 0x48e   : > { %6950 = vmatpush2.bf16.msra.mxu0 %v8491_v62  ;;  %8011 = vmatprep.subr.bf16.mxu1 %v8525_v53 }
 0x48f   : > { %6951 = vmatprep.subr.bf16.mxu0 %v8496_v19 }
 0x492   : > { %6952 = vmatpush2.bf16.msra.mxu0 %v8494_v5 }
 0x493   : > { %6953 = vmatprep.subr.bf16.mxu0 %v8499_v27 }
 0x496   : > { %6954 = vmatpush2.bf16.msra.mxu0 %v8497_v28 }
 0x497   : > { %6955 = vmatprep.subr.bf16.mxu0 %v8502_v20 }
 0x49a   : > { %6956 = vmatpush2.bf16.msra.mxu0 %v8500_v43 }
 0x49b   : > { %6957 = vmatprep.subr.bf16.mxu0 %v8507_v40 }
 0x49e   : > { %6958 = vmatpush2.bf16.msra.mxu0 %v8505_v38 }
 0x49f   : > { %6959 = vmatprep.subr.bf16.mxu0 %v8512_v22  ;;  %v8547_v22 = vld [vmem:[%s14460_s6 + $0x160] sm:$0xff]  }
 0x4a2   : > { %6960 = vmatpush2.bf16.msra.mxu0 %v8510_v17  ;;  %v8551_v17 = vld [vmem:[%s14460_s6 + $0x150] sm:$0xff]  }
 0x4a3   : > { %8033 = vmatprep.subr.bf16.mxu0 %v8541_v24 }
 0x4a5   : > { %v6717_v41 = vpop.f32.mrf.mxu0  ;;  %6962 = vmatmul.mubr.bf16.vlgmr.msra.gmra.mxu0 %v13761_v45  ;;  %v8542_v45 = vld [vmem:[%s14460_s6 + $0x138] sm:$0xff]  }
 0x4a6   : > { %v6718_v44 = vadd.f32 %v6717_v41, %v6677_v26  ;;  %8034 = vmatpush3.bf16.msra.mxu0 %v8542_v45  ;;  %v8553_v26 = vld [vmem:[%s14460_s6 + $0x148] sm:$0xff]  }
 0x4a7   : > { %v6719_v21 = vpop.f32.mrf.mxu0  ;;  %8035 = vmatprep.subr.bf16.mxu0 %v8543_v47 }
 0x4a8   : > { %v6720_v60 = vadd.f32 %v6719_v21, %v6679_v16  ;;  %8575 = vtanh.f32 %v6718_v44  ;;  %v8555_v16 = vld [vmem:[%s14460_s6 + $0x108] sm:$0xff]   ;;  %v8556_v21 = vld [vmem:[%s14460_s6 + $0x140] sm:$0xff]  }
 0x4a9   : > { %v6721_v49 = vpop.f32.mrf.mxu0 }
 0x4aa   : > { %8577 = vtanh.f32 %v6720_v60  ;;  %8036 = vmatpush3.bf16.msra.mxu0 %v8544_v25  ;;  %v8554_v49 = vld [vmem:[%s14459_s5 + $0x8] sm:$0xff]  }
 0x4ab   : > { %v6722_v58 = vpop.f32.mrf.mxu0  ;;  %8037 = vmatprep.subr.bf16.mxu0 %v8545_v4  ;;  %v15676_v4 = vld [vmem:[#allocation12_spill] sm:$0xff] }
 0x4ae   : > { %8038 = vmatpush3.bf16.msra.mxu0 %v8546_v50 }
 0x4af   : > { %8039 = vmatprep.subr.bf16.mxu0 %v8547_v22 }
 0x4b0   : > { %v6758_v31 = vpop.f32.mrf.mxu1 }
 0x4b1   : > { %v6759_v54 = vadd.f32 %v6758_v31, %v4943_v15  ;;  %v8558_v31 = vld [vmem:[%s14460_s6 + $0x100] sm:$0xff]  }
 0x4b2   : > { %v6760_v36 = vpop.f32.mrf.mxu1  ;;  %8040 = vmatpush3.bf16.msra.mxu0 %v8548_v10 }
 0x4b3   : > { %v6761_v53 = vadd.f32 %v6760_v36, %v4947_v48  ;;  %8041 = vmatprep.subr.bf16.mxu0 %v8549_v1  ;;  %v8557_v36 = vld [vmem:[%s14459_s5] sm:$0xff]  }
 0x4b4   : > { %v6762_v39 = vpop.f32.mrf.mxu1  ;;  %v7985_v1 = vld [vmem:[%s14461_s7] ss:$0 sm:$0xff] }
 0x4b5   : > { %v8576_v18 = vpop.eup %8575 }
 0x4b6   : > { %v6763_v23 = vpop.f32.mrf.mxu1  ;;  %v6983_v63 = vpack.c.bf16 %v8576_v18, %v8576_v18  ;;  %8042 = vmatpush3.bf16.msra.mxu0 %v8550_v35 }
 0x4b7   : > { %v8578_v32 = vpop.eup %8577  ;;  %8043 = vmatprep.subr.bf16.mxu0 %v8551_v17 }
 0x4b8   : > { %v6984_v13 = vpack.c.bf16 %v8578_v32, %v8578_v32 }
 0x4ba   : > { %7405 = vmatprep.mubr.bf16.mxu1 %v6984_v13  ;;  %8044 = vmatpush3.bf16.msra.mxu0 %v8552_v37 }
 0x4bb   : > { %7406 = vmatmul.mubr.bf16.vlgmr.msra.gmra.mxu1 %v6983_v63  ;;  %8045 = vmatprep.subr.bf16.mxu0 %v8553_v26 }
 0x4bc   : > { %8012 = vmatpush3.bf16.msra.mxu1 %v8526_v42 }
 0x4bd   : > { %8013 = vmatprep.subr.bf16.mxu1 %v8527_v14  ;;  %v15675_v14 = vld [vmem:[#allocation10_spill] sm:$0xff] }
 0x4be   : > { %8046 = vmatpush3.bf16.msra.mxu0 %v8555_v16  ;;  %v4951_v25 = vrot.slane %v14310_v0, %v15675_v14 }
 0x4bf   : > { %8047 = vmatprep.subr.bf16.mxu0 %v8556_v21 }
 0x4c0   : > { %8014 = vmatpush3.bf16.msra.mxu1 %v8528_v12  ;;  %v4955_v12 = vrot.slane %v14310_v0, %v15676_v4 }
 0x4c1   : > { %8015 = vmatprep.subr.bf16.mxu1 %v8529_v51 }
 0x4c2   : > { %8048 = vmatpush3.bf16.msra.mxu0 %v8558_v31 }
 0x4c4   : > { %8016 = vmatpush3.bf16.msra.mxu1 %v8530_v8 }
 0x4c5   : > { %8017 = vmatprep.subr.bf16.mxu1 %v8531_v34 }
 0x4c8   : > { %8018 = vmatpush3.bf16.msra.mxu1 %v8532_v29 }
 0x4c9   : > { %8019 = vmatprep.subr.bf16.mxu1 %v8533_v59 }
 0x4cc   : > { %8020 = vmatpush3.bf16.msra.mxu1 %v8534_v52 }
 0x4cd   : > { %8021 = vmatprep.subr.bf16.mxu1 %v8535_v2 }
 0x4d0   : > { %8022 = vmatpush3.bf16.msra.mxu1 %v8536_v61 }
 0x4d1   : > { %8023 = vmatprep.subr.bf16.mxu1 %v8537_v11 }
 0x4d4   : > { %8024 = vmatpush3.bf16.msra.mxu1 %v8538_v6 }
 0x4d5   : > { %8025 = vmatprep.subr.bf16.mxu1 %v8539_v57 }
 0x4d8   : > { %8026 = vmatpush3.bf16.msra.mxu1 %v8540_v56 }
 0x4d9   : > { %8058 = vmatprep.subr.bf16.mxu1 %v8599_v55 }
 0x4e5   : > { %v6799_v9 = vpop.f32.mrf.mxu0 }
 0x4e6   : > { %v6800_v19 = vadd.f32 %v6799_v9, %v6759_v54 }
 0x4e7   : > { %v6801_v33 = vpop.f32.mrf.mxu0 }
 0x4e8   : > { %v6802_v5 = vadd.f32 %v6801_v33, %v6761_v53 }
 0x4e9   : > { %v6803_v46 = vpop.f32.mrf.mxu0 }
 0x4eb   : > { %v6804_v62 = vpop.f32.mrf.mxu0 }
 0x4f0   : > { %v6840_v27 = vpop.f32.mrf.mxu1 }
 0x4f1   : > { %v6841_v28 = vadd.f32 %v6840_v27, %v6800_v19 }
 0x4f2   : > { %v6842_v20 = vpop.f32.mrf.mxu1 }
 0x4f3   : > { %v6843_v43 = vadd.f32 %v6842_v20, %v6802_v5  ;;  %8579 = vtanh.f32 %v6841_v28 }
 0x4f4   : > { %v6844_v40 = vpop.f32.mrf.mxu1 }
 0x4f5   : > { %8581 = vtanh.f32 %v6843_v43 }
 0x4f6   : > { %v6845_v38 = vpop.f32.mrf.mxu1  ;;  %8583 = vtanh.f32 %v6976_v3 }
 0x500   : > { %v8580_v41 = vpop.eup %8579 }
 0x501   : > { %v6985_v58 = vpack.c.bf16 %v8580_v41, %v8580_v41 }
 0x502   : > { %v8582_v44 = vpop.eup %8581 }
 0x503   : > { %v6986_v60 = vpack.c.bf16 %v8582_v44, %v8582_v44  ;;  %v8584_v39 = vpop.eup %8583 }
 0x504   : > { %v6978_v18 = vpack.c.bf16 %v8584_v39, %v8584_v39 }
 0x505   : > { %7445 = vmatprep.mubr.bf16.mxu1 %v6986_v60 }
 0x506   : > { %7446 = vmatmul.mubr.bf16.vlgmr.msra.gmra.mxu1 %v6985_v58 }
 0x507   : > { %8059 = vmatpush3.bf16.msra.mxu1 %v8554_v49  ;;  %8062 = vmatprep.mubr.msk.bf16.mxu1 %vm8600_vm9, %v8599_v55 }
 0x508   : > { %8060 = vmatprep.subr.bf16.mxu1 %v8599_v55 }
 0x50b   : > { %8061 = vmatpush3.bf16.msra.mxu1 %v8557_v36 }
 0x50e   : > { %8063 = vmatmul.mubr.msk.bf16.vlgmr.msra.gmra.mxu1 %vm7505_vm10, %v6978_v18 }
 0x525   : > { %v6881_v23 = vpop.f32.mrf.mxu0 }
 0x526   : > { %v6882_v51 = vadd.f32 %v6881_v23, %v4951_v25 }
 0x527   : > { %v6883_v24 = vpop.f32.mrf.mxu0 }
 0x528   : > { %v6884_v50 = vadd.f32 %v6883_v24, %v4955_v12 }
 0x529   : > { %v6885_v45 = vpop.f32.mrf.mxu0 }
 0x52b   : > { %v6886_v47 = vpop.f32.mrf.mxu0 }
 0x530   : > { %v6922_v32 = vpop.f32.mrf.mxu1 }
 0x531   : > { %v6923_v8 = vadd.f32 %v6922_v32, %v6882_v51 }
 0x532   : > { %v6924_v13 = vpop.f32.mrf.mxu1 }
 0x533   : > { %v6925_v29 = vadd.f32 %v6924_v13, %v6884_v50 }
 0x534   : > { %v6926_v42 = vpop.f32.mrf.mxu1 }
 0x536   : > { %v6927_v63 = vpop.f32.mrf.mxu1 }
 0x565   : > { %v6963_v34 = vpop.f32.mrf.mxu0 }
 0x566   : > { %v6964_v59 = vadd.f32 %v6963_v34, %v6923_v8 }
 0x567   : > { %v6965_v52 = vpop.f32.mrf.mxu0 }
 0x568   : > { %v6966_v2 = vadd.f32 %v6965_v52, %v6925_v29  ;;  %8585 = vtanh.f32 %v6964_v59 }
 0x569   : > { %v6967_v61 = vpop.f32.mrf.mxu0 }
 0x56a   : > { %8587 = vtanh.f32 %v6966_v2 }
 0x56b   : > { %v6968_v11 = vpop.f32.mrf.mxu0 }
 0x575   : > { %v8586_v6 = vpop.eup %8585 }
 0x576   : > { %v6987_v9 = vpack.c.bf16 %v8586_v6, %v8586_v6 }
 0x577   : > { %v8588_v57 = vpop.eup %8587 }
 0x578   : > { %v6988_v56 = vpack.c.bf16 %v8588_v57, %v8588_v57 }
 0x57a   : > { %7485 = vmatprep.mubr.bf16.mxu0 %v6988_v56 }
 0x57b   : > { %v8005_v7 = vpop.f32.mrf.mxu1  ;;  %7486 = vmatmul.mubr.bf16.vlgmr.msra.gmra.mxu0 %v6987_v9 }
 0x57d   : > { %v8006_v0 = vpop.f32.mrf.mxu1 }
 0x57e   : > { %v8007_v15 = vadd.f32 %v8006_v0, %v8005_v7 }
 0x57f   : > { %v8008_v33 = vpop.f32.mrf.mxu1 }
 0x581   : > { %v8009_v30 = vpop.f32.mrf.mxu1 }
 0x5c6   : > { %v8027_v48 = vpop.f32.mrf.mxu1 }
 0x5c8   : > { %v8028_v46 = vpop.f32.mrf.mxu1 }
 0x5c9   : > { %v8029_v54 = vadd.f32 %v8028_v46, %v8027_v48 }
 0x5ca   : > { %v8030_v62 = vpop.f32.mrf.mxu1 }
 0x5cb   : > { %v7448_v53 = vadd.f32 %v8029_v54, %v8007_v15 }
 0x5cc   : > { %v8031_v19 = vpop.f32.mrf.mxu1 }
 0x5ce   : > { %v7543_v5 = vpop.f32.mrf.mxu1 }
 0x5d0   : > { %v8064_v27 = vpop.f32.mrf.mxu1 }
 0x5d2   : > { %v7546_v28 = vpop.f32.mrf.mxu1 }
 0x5d4   : > { %v8065_v20 = vpop.f32.mrf.mxu1 }
 0x63b   : > { %v8049_v43 = vpop.f32.mrf.mxu0 }
 0x63d   : > { %v8050_v40 = vpop.f32.mrf.mxu0 }
 0x63e   : > { %v8051_v38 = vadd.f32 %v8050_v40, %v8049_v43 }
 0x63f   : > { %v8052_v22 = vpop.f32.mrf.mxu0 }
 0x640   : > { %v7488_v10 = vadd.f32 %v8051_v38, %v7448_v53 }
 0x641   : > { %v8053_v55 = vpop.f32.mrf.mxu0 }
 0x642   : > { %v7544_v35 = vadd.f32 %v7543_v5, %v7488_v10 }
 0x644   : > { %v7556_v17 = vadd.f32 %v7985_v1, %v7544_v35 }
 0x646   : > { %7557 = vst [vmem:[%s375_s10] sm:$0xff] %v7556_v17 }
 0x647 PF: > { %s18_s27 = sadd.s32 1, %s8597_s27  }
 0x648   : > { %p15_p5 = scmp.ge.s32.totalorder %s18_s27, 5  }
 0x64a   :  { %17 = sbr.rel (!%p15_p5) target bundleno = 1 (0x1), region = 88 }

</bundles_post_ra>
